<compile_context>
chip_gen: v6e
topology: v6e:2x2x1
jax: 0.10.0
libtpu: 0.0.40
codegen_flags: <defaults>
</compile_context>

<pallas_src>
import jax
import jax.numpy as jnp
from jax.experimental import pallas as pl
from jax.experimental.pallas import tpu as pltpu

VGG_CFG = [8, "M", 16, "M", 512]   # last conv must emit 512 (classifier is Linear(512, num_classes))
IN_CHANNELS = 3
NUM_CLASSES = 1
IS_CIFAR = False
BN_EPS = 1e-5


# ---------------------------------------------------------------------------
# Static shape plan
# ---------------------------------------------------------------------------
def _build_plan(cfg, in_channels, h, w):
    """Per-stage static shapes: ('C', H, W, Cin, Cout) or ('M', H, W, C)."""
    plan = []
    c = in_channels
    for v in cfg:
        if v == "M":
            plan.append(("M", h, w, c))
            h, w = h // 2, w // 2
        else:
            plan.append(("C", h, w, c, v))
            c = v
    return plan, (h, w, c)


# ---------------------------------------------------------------------------
# Fused kernel: conv+BN+ReLU stack, maxpools, global-avg-pool + Linear + act
# ---------------------------------------------------------------------------
def make_vgg_kernel(plan, is_cifar):
    n_conv = sum(1 for st in plan if st[0] == "C")

    def kernel(*refs):
        x_ref = refs[0]
        conv_refs = refs[1:1 + 3 * n_conv]          # (w9, scale, shift) per conv
        wc_ref = refs[1 + 3 * n_conv]               # (512, num_classes)
        bc_ref = refs[2 + 3 * n_conv]               # (1, num_classes)
        o_ref = refs[3 + 3 * n_conv]                # (1, 1, num_classes)
        pad_refs = refs[4 + 3 * n_conv:]            # padded-input VMEM scratch per conv

        a = x_ref[0]                                # (H, W, C) f32, stays in VMEM/vregs
        ci = 0
        for st in plan:
            if st[0] == "M":
                _, H, W, C = st
                t = a.reshape(H * W, C)                               # rows = h*W + w
                t = jnp.max(t.reshape(H * W // 2, 2, C), axis=1)      # pool along W
                t = jnp.max(t.reshape(H // 2, 2, W // 2, C), axis=1)  # pool along H
                a = t                                                 # (H/2, W/2, C)
            else:
                _, H, W, Cin, Cout = st
                w_ref = conv_refs[3 * ci]           # (9, Cin, Cout) bf16
                s_ref = conv_refs[3 * ci + 1]       # (1, Cout) f32 folded BN scale
                b_ref = conv_refs[3 * ci + 2]       # (1, Cout) f32 folded BN shift (+bias)
                pad_ref = pad_refs[ci]
                ci += 1

                # In-kernel zero padding (pad=1) into VMEM scratch.
                pad_ref[...] = jnp.zeros((H + 2, W + 2, Cin), jnp.float32)
                pad_ref[1:H + 1, 1:W + 1, :] = a
                xp = pad_ref[...]                   # (H+2, W+2, Cin)

                # 3x3 conv as 9 shifted (HW x Cin)@(Cin x Cout) MXU matmuls,
                # bf16 operands, f32 accumulation.
                acc = jnp.zeros((H * W, Cout), jnp.float32)
                for kh in range(3):
                    for kw in range(3):
                        win = xp[kh:kh + H, kw:kw + W, :].reshape(H * W, Cin)
                        acc = acc + jnp.dot(win.astype(jnp.bfloat16),
                                            w_ref[3 * kh + kw],
                                            preferred_element_type=jnp.float32)

                y = acc * s_ref[...] + b_ref[...]   # folded BatchNorm (+conv bias), f32
                y = jnp.maximum(y, 0.0)             # ReLU
                a = y.reshape(H, W, Cout)

        # Head: AdaptiveAvgPool2d((1,1)) + flatten + Linear + sigmoid/softmax.
        H, W, C = a.shape
        pooled = jnp.mean(a.reshape(H * W, C), axis=0, keepdims=True)   # (1, C)
        logits = jnp.dot(pooled, wc_ref[...],
                         preferred_element_type=jnp.float32) + bc_ref[...]
        if is_cifar:
            m = jnp.max(logits, axis=-1, keepdims=True)
            e = jnp.exp(logits - m)
            out = e / jnp.sum(e, axis=-1, keepdims=True)                # softmax
        else:
            out = 1.0 / (1.0 + jnp.exp(-logits))                        # sigmoid
        o_ref[0] = out.astype(o_ref.dtype)

    return kernel


# ---------------------------------------------------------------------------
# Wrapper: one pallas_call for the whole network
# ---------------------------------------------------------------------------
def vgg_forward(x_nchw, conv_params, head_params, *, cfg=VGG_CFG, is_cifar=IS_CIFAR):
    x = jnp.transpose(x_nchw, (0, 2, 3, 1)).astype(jnp.float32)   # NCHW -> NHWC
    N, H, W, Cin = x.shape
    plan, _ = _build_plan(cfg, Cin, H, W)

    w_cls, b_cls = head_params
    ncls = w_cls.shape[-1]

    inputs = [x]
    in_specs = [pl.BlockSpec((1, H, W, Cin), lambda n: (n, 0, 0, 0))]
    scratch_shapes = []
    conv_stages = [st for st in plan if st[0] == "C"]
    for st, (wt, sc, sh) in zip(conv_stages, conv_params):
        _, h, w, cin, cout = st
        inputs += [wt, sc, sh]
        in_specs += [
            pl.BlockSpec((9, cin, cout), lambda n: (0, 0, 0)),
            pl.BlockSpec((1, cout), lambda n: (0, 0)),
            pl.BlockSpec((1, cout), lambda n: (0, 0)),
        ]
        scratch_shapes.append(pltpu.VMEM((h + 2, w + 2, cin), jnp.float32))
    inputs += [w_cls, b_cls]
    in_specs += [
        pl.BlockSpec((w_cls.shape[0], ncls), lambda n: (0, 0)),
        pl.BlockSpec((1, ncls), lambda n: (0, 0)),
    ]

    out = pl.pallas_call(
        make_vgg_kernel(plan, is_cifar),
        out_shape=jax.ShapeDtypeStruct((N, 1, ncls), jnp.float32),
        grid=(N,),
        in_specs=in_specs,
        out_specs=pl.BlockSpec((1, 1, ncls), lambda n: (n, 0, 0)),
        scratch_shapes=scratch_shapes,
        compiler_params=pltpu.CompilerParams(dimension_semantics=("parallel",)),
    )(*inputs)
    return out.reshape(N, ncls)


# ---------------------------------------------------------------------------
# Parameter init (deterministic, synthetic; BN folded in eval mode)
# ---------------------------------------------------------------------------
def init_params(key, cfg, in_channels, num_classes):
    conv_params = []
    c_in = in_channels
    for v in cfg:
        if v == "M":
            continue
        key, k1, k2, k3, k4, k5, k6 = jax.random.split(key, 7)
        w = 0.1 * jax.random.normal(k1, (3, 3, c_in, v), jnp.float32)
        bias = 0.1 * jax.random.normal(k2, (v,), jnp.float32)
        gamma = 1.0 + 0.1 * jax.random.normal(k3, (v,), jnp.float32)
        beta = 0.1 * jax.random.normal(k4, (v,), jnp.float32)
        rmean = 0.1 * jax.random.normal(k5, (v,), jnp.float32)
        rvar = 1.0 + 0.1 * jnp.abs(jax.random.normal(k6, (v,), jnp.float32))
        # fold conv bias + eval-mode BatchNorm into per-channel scale/shift
        scale = gamma / jnp.sqrt(rvar + BN_EPS)
        shift = beta + (bias - rmean) * scale
        conv_params.append((
            w.reshape(9, c_in, v).astype(jnp.bfloat16),   # taps flattened; MXU-native bf16
            scale.reshape(1, v),
            shift.reshape(1, v),
        ))
        c_in = v
    key, kw, kb = jax.random.split(key, 3)
    w_cls = 0.05 * jax.random.normal(kw, (512, num_classes), jnp.float32)
    b_cls = 0.05 * jax.random.normal(kb, (1, num_classes), jnp.float32)
    return conv_params, (w_cls, b_cls)


if __name__ == "__main__":
    key = jax.random.PRNGKey(0)
    key, kx = jax.random.split(key)
    # PyTorch-style NCHW input: (batch=2, channels=3, 16, 16)
    x = jax.random.normal(kx, (2, IN_CHANNELS, 16, 16), jnp.float32)

    conv_params, head_params = init_params(key, VGG_CFG, IN_CHANNELS, NUM_CLASSES)

    fwd = jax.jit(lambda xv: vgg_forward(xv, conv_params, head_params))
    out = fwd(x)
    jax.block_until_ready(out)

    assert out.shape == (2, NUM_CLASSES), out.shape
    assert bool(jnp.all(jnp.isfinite(out)))
    print("KERNEL_OK")
</pallas_src>

<mosaic_0001>
module attributes {stable_mosaic.version = 11 : i64} {
  func.func @kernel(%arg0: i32, %arg1: memref<1x16x16x3xf32, #tpu.memory_space<vmem>>, %arg2: memref<9x3x8xbf16, #tpu.memory_space<vmem>>, %arg3: memref<1x8xf32, #tpu.memory_space<vmem>>, %arg4: memref<1x8xf32, #tpu.memory_space<vmem>>, %arg5: memref<9x8x16xbf16, #tpu.memory_space<vmem>>, %arg6: memref<1x16xf32, #tpu.memory_space<vmem>>, %arg7: memref<1x16xf32, #tpu.memory_space<vmem>>, %arg8: memref<9x16x512xbf16, #tpu.memory_space<vmem>>, %arg9: memref<1x512xf32, #tpu.memory_space<vmem>>, %arg10: memref<1x512xf32, #tpu.memory_space<vmem>>, %arg11: memref<512x1xf32, #tpu.memory_space<vmem>>, %arg12: memref<1x1xf32, #tpu.memory_space<vmem>>, %arg13: memref<1x1x1xf32, #tpu.memory_space<vmem>>, %arg14: memref<18x18x3xf32, #tpu.memory_space<vmem>>, %arg15: memref<10x10x8xf32, #tpu.memory_space<vmem>>, %arg16: memref<6x6x16xf32, #tpu.memory_space<vmem>>) attributes {dimension_semantics = [#tpu.dimension_semantics<parallel>], iteration_bounds = array<i64: 2>, scalar_prefetch = 0 : i64, scratch_operands = 3 : i64, tpu.core_type = #tpu.core_type<tc>, window_params = [{transform_indices = @transform_0, window_bounds = array<i64: 1, 16, 16, 3>}, {pipeline_mode = #tpu.pipeline_mode<synchronous>, transform_indices = @transform_1, window_bounds = array<i64: 9, 3, 8>}, {pipeline_mode = #tpu.pipeline_mode<synchronous>, transform_indices = @transform_2, window_bounds = array<i64: 1, 8>}, {pipeline_mode = #tpu.pipeline_mode<synchronous>, transform_indices = @transform_3, window_bounds = array<i64: 1, 8>}, {pipeline_mode = #tpu.pipeline_mode<synchronous>, transform_indices = @transform_4, window_bounds = array<i64: 9, 8, 16>}, {pipeline_mode = #tpu.pipeline_mode<synchronous>, transform_indices = @transform_5, window_bounds = array<i64: 1, 16>}, {pipeline_mode = #tpu.pipeline_mode<synchronous>, transform_indices = @transform_6, window_bounds = array<i64: 1, 16>}, {pipeline_mode = #tpu.pipeline_mode<synchronous>, transform_indices = @transform_7, window_bounds = array<i64: 9, 16, 512>}, {pipeline_mode = #tpu.pipeline_mode<synchronous>, transform_indices = @transform_8, window_bounds = array<i64: 1, 512>}, {pipeline_mode = #tpu.pipeline_mode<synchronous>, transform_indices = @transform_9, window_bounds = array<i64: 1, 512>}, {pipeline_mode = #tpu.pipeline_mode<synchronous>, transform_indices = @transform_10, window_bounds = array<i64: 512, 1>}, {pipeline_mode = #tpu.pipeline_mode<synchronous>, transform_indices = @transform_11, window_bounds = array<i64: 1, 1>}, {transform_indices = @transform_12, window_bounds = array<i64: 1, 1, 1>}]} {
    %c0 = arith.constant 0 : index
    %c0_0 = arith.constant 0 : index
    %c0_1 = arith.constant 0 : index
    %c0_2 = arith.constant 0 : index
    %0 = vector.load %arg1[%c0, %c0_0, %c0_1, %c0_2] : memref<1x16x16x3xf32, #tpu.memory_space<vmem>>, vector<1x16x16x3xf32>
    %1 = vector.shape_cast %0 : vector<1x16x16x3xf32> to vector<16x16x3xf32>
    %cst = arith.constant 0.000000e+00 : f32
    %2 = vector.broadcast %cst : f32 to vector<18x18x3xf32>
    %c0_3 = arith.constant 0 : index
    %c0_4 = arith.constant 0 : index
    %c0_5 = arith.constant 0 : index
    %3 = vector.load %arg14[%c0_3, %c0_4, %c0_5] : memref<18x18x3xf32, #tpu.memory_space<vmem>>, vector<18x18x3xf32>
    tpu.vector_store %arg14[%c0_3, %c0_4, %c0_5], %2 {strides = array<i32>} : memref<18x18x3xf32, #tpu.memory_space<vmem>>, vector<18x18x3xf32>,
    %c1 = arith.constant 1 : index
    %c1_6 = arith.constant 1 : index
    %c0_7 = arith.constant 0 : index
    %4 = vector.load %arg14[%c1, %c1_6, %c0_7] : memref<18x18x3xf32, #tpu.memory_space<vmem>>, vector<16x16x3xf32>
    tpu.vector_store %arg14[%c1, %c1_6, %c0_7], %1 {strides = array<i32>} : memref<18x18x3xf32, #tpu.memory_space<vmem>>, vector<16x16x3xf32>,
    %c0_8 = arith.constant 0 : index
    %c0_9 = arith.constant 0 : index
    %c0_10 = arith.constant 0 : index
    %5 = vector.load %arg14[%c0_8, %c0_9, %c0_10] : memref<18x18x3xf32, #tpu.memory_space<vmem>>, vector<18x18x3xf32>
    %cst_11 = arith.constant 0.000000e+00 : f32
    %6 = vector.broadcast %cst_11 : f32 to vector<256x8xf32>
    %7 = vector.extract_strided_slice %5 {offsets = [0, 0, 0], sizes = [16, 16, 3], strides = [1, 1, 1]} : vector<18x18x3xf32> to vector<16x16x3xf32>
    %8 = vector.shape_cast %7 : vector<16x16x3xf32> to vector<256x3xf32>
    %9 = arith.truncf %8 : vector<256x3xf32> to vector<256x3xbf16>
    %c0_12 = arith.constant 0 : index
    %c0_13 = arith.constant 0 : index
    %c0_14 = arith.constant 0 : index
    %10 = vector.load %arg2[%c0_12, %c0_13, %c0_14] : memref<9x3x8xbf16, #tpu.memory_space<vmem>>, vector<1x3x8xbf16>
    %11 = vector.shape_cast %10 : vector<1x3x8xbf16> to vector<3x8xbf16>
    %cst_15 = arith.constant dense<0.000000e+00> : vector<256x8xf32>
    %12 = tpu.matmul %9, %11, %cst_15 {dimension_numbers = #tpu.dot_dimension_numbers<[1], [0], [0], [1], [0, 0, 1, 1], [], []>} : vector<256x3xbf16>, vector<3x8xbf16>, vector<256x8xf32> -> vector<256x8xf32>
    %13 = arith.addf %6, %12 : vector<256x8xf32>
    %14 = vector.extract_strided_slice %5 {offsets = [0, 1, 0], sizes = [16, 16, 3], strides = [1, 1, 1]} : vector<18x18x3xf32> to vector<16x16x3xf32>
    %15 = vector.shape_cast %14 : vector<16x16x3xf32> to vector<256x3xf32>
    %16 = arith.truncf %15 : vector<256x3xf32> to vector<256x3xbf16>
    %c1_16 = arith.constant 1 : index
    %c0_17 = arith.constant 0 : index
    %c0_18 = arith.constant 0 : index
    %17 = vector.load %arg2[%c1_16, %c0_17, %c0_18] : memref<9x3x8xbf16, #tpu.memory_space<vmem>>, vector<1x3x8xbf16>
    %18 = vector.shape_cast %17 : vector<1x3x8xbf16> to vector<3x8xbf16>
    %cst_19 = arith.constant dense<0.000000e+00> : vector<256x8xf32>
    %19 = tpu.matmul %16, %18, %cst_19 {dimension_numbers = #tpu.dot_dimension_numbers<[1], [0], [0], [1], [0, 0, 1, 1], [], []>} : vector<256x3xbf16>, vector<3x8xbf16>, vector<256x8xf32> -> vector<256x8xf32>
    %20 = arith.addf %13, %19 : vector<256x8xf32>
    %21 = vector.extract_strided_slice %5 {offsets = [0, 2, 0], sizes = [16, 16, 3], strides = [1, 1, 1]} : vector<18x18x3xf32> to vector<16x16x3xf32>
    %22 = vector.shape_cast %21 : vector<16x16x3xf32> to vector<256x3xf32>
    %23 = arith.truncf %22 : vector<256x3xf32> to vector<256x3xbf16>
    %c2 = arith.constant 2 : index
    %c0_20 = arith.constant 0 : index
    %c0_21 = arith.constant 0 : index
    %24 = vector.load %arg2[%c2, %c0_20, %c0_21] : memref<9x3x8xbf16, #tpu.memory_space<vmem>>, vector<1x3x8xbf16>
    %25 = vector.shape_cast %24 : vector<1x3x8xbf16> to vector<3x8xbf16>
    %cst_22 = arith.constant dense<0.000000e+00> : vector<256x8xf32>
    %26 = tpu.matmul %23, %25, %cst_22 {dimension_numbers = #tpu.dot_dimension_numbers<[1], [0], [0], [1], [0, 0, 1, 1], [], []>} : vector<256x3xbf16>, vector<3x8xbf16>, vector<256x8xf32> -> vector<256x8xf32>
    %27 = arith.addf %20, %26 : vector<256x8xf32>
    %28 = vector.extract_strided_slice %5 {offsets = [1, 0, 0], sizes = [16, 16, 3], strides = [1, 1, 1]} : vector<18x18x3xf32> to vector<16x16x3xf32>
    %29 = vector.shape_cast %28 : vector<16x16x3xf32> to vector<256x3xf32>
    %30 = arith.truncf %29 : vector<256x3xf32> to vector<256x3xbf16>
    %c3 = arith.constant 3 : index
    %c0_23 = arith.constant 0 : index
    %c0_24 = arith.constant 0 : index
    %31 = vector.load %arg2[%c3, %c0_23, %c0_24] : memref<9x3x8xbf16, #tpu.memory_space<vmem>>, vector<1x3x8xbf16>
    %32 = vector.shape_cast %31 : vector<1x3x8xbf16> to vector<3x8xbf16>
    %cst_25 = arith.constant dense<0.000000e+00> : vector<256x8xf32>
    %33 = tpu.matmul %30, %32, %cst_25 {dimension_numbers = #tpu.dot_dimension_numbers<[1], [0], [0], [1], [0, 0, 1, 1], [], []>} : vector<256x3xbf16>, vector<3x8xbf16>, vector<256x8xf32> -> vector<256x8xf32>
    %34 = arith.addf %27, %33 : vector<256x8xf32>
    %35 = vector.extract_strided_slice %5 {offsets = [1, 1, 0], sizes = [16, 16, 3], strides = [1, 1, 1]} : vector<18x18x3xf32> to vector<16x16x3xf32>
    %36 = vector.shape_cast %35 : vector<16x16x3xf32> to vector<256x3xf32>
    %37 = arith.truncf %36 : vector<256x3xf32> to vector<256x3xbf16>
    %c4 = arith.constant 4 : index
    %c0_26 = arith.constant 0 : index
    %c0_27 = arith.constant 0 : index
    %38 = vector.load %arg2[%c4, %c0_26, %c0_27] : memref<9x3x8xbf16, #tpu.memory_space<vmem>>, vector<1x3x8xbf16>
    %39 = vector.shape_cast %38 : vector<1x3x8xbf16> to vector<3x8xbf16>
    %cst_28 = arith.constant dense<0.000000e+00> : vector<256x8xf32>
    %40 = tpu.matmul %37, %39, %cst_28 {dimension_numbers = #tpu.dot_dimension_numbers<[1], [0], [0], [1], [0, 0, 1, 1], [], []>} : vector<256x3xbf16>, vector<3x8xbf16>, vector<256x8xf32> -> vector<256x8xf32>
    %41 = arith.addf %34, %40 : vector<256x8xf32>
    %42 = vector.extract_strided_slice %5 {offsets = [1, 2, 0], sizes = [16, 16, 3], strides = [1, 1, 1]} : vector<18x18x3xf32> to vector<16x16x3xf32>
    %43 = vector.shape_cast %42 : vector<16x16x3xf32> to vector<256x3xf32>
    %44 = arith.truncf %43 : vector<256x3xf32> to vector<256x3xbf16>
    %c5 = arith.constant 5 : index
    %c0_29 = arith.constant 0 : index
    %c0_30 = arith.constant 0 : index
    %45 = vector.load %arg2[%c5, %c0_29, %c0_30] : memref<9x3x8xbf16, #tpu.memory_space<vmem>>, vector<1x3x8xbf16>
    %46 = vector.shape_cast %45 : vector<1x3x8xbf16> to vector<3x8xbf16>
    %cst_31 = arith.constant dense<0.000000e+00> : vector<256x8xf32>
    %47 = tpu.matmul %44, %46, %cst_31 {dimension_numbers = #tpu.dot_dimension_numbers<[1], [0], [0], [1], [0, 0, 1, 1], [], []>} : vector<256x3xbf16>, vector<3x8xbf16>, vector<256x8xf32> -> vector<256x8xf32>
    %48 = arith.addf %41, %47 : vector<256x8xf32>
    %49 = vector.extract_strided_slice %5 {offsets = [2, 0, 0], sizes = [16, 16, 3], strides = [1, 1, 1]} : vector<18x18x3xf32> to vector<16x16x3xf32>
    %50 = vector.shape_cast %49 : vector<16x16x3xf32> to vector<256x3xf32>
    %51 = arith.truncf %50 : vector<256x3xf32> to vector<256x3xbf16>
    %c6 = arith.constant 6 : index
    %c0_32 = arith.constant 0 : index
    %c0_33 = arith.constant 0 : index
    %52 = vector.load %arg2[%c6, %c0_32, %c0_33] : memref<9x3x8xbf16, #tpu.memory_space<vmem>>, vector<1x3x8xbf16>
    %53 = vector.shape_cast %52 : vector<1x3x8xbf16> to vector<3x8xbf16>
    %cst_34 = arith.constant dense<0.000000e+00> : vector<256x8xf32>
    %54 = tpu.matmul %51, %53, %cst_34 {dimension_numbers = #tpu.dot_dimension_numbers<[1], [0], [0], [1], [0, 0, 1, 1], [], []>} : vector<256x3xbf16>, vector<3x8xbf16>, vector<256x8xf32> -> vector<256x8xf32>
    %55 = arith.addf %48, %54 : vector<256x8xf32>
    %56 = vector.extract_strided_slice %5 {offsets = [2, 1, 0], sizes = [16, 16, 3], strides = [1, 1, 1]} : vector<18x18x3xf32> to vector<16x16x3xf32>
    %57 = vector.shape_cast %56 : vector<16x16x3xf32> to vector<256x3xf32>
    %58 = arith.truncf %57 : vector<256x3xf32> to vector<256x3xbf16>
    %c7 = arith.constant 7 : index
    %c0_35 = arith.constant 0 : index
    %c0_36 = arith.constant 0 : index
    %59 = vector.load %arg2[%c7, %c0_35, %c0_36] : memref<9x3x8xbf16, #tpu.memory_space<vmem>>, vector<1x3x8xbf16>
    %60 = vector.shape_cast %59 : vector<1x3x8xbf16> to vector<3x8xbf16>
    %cst_37 = arith.constant dense<0.000000e+00> : vector<256x8xf32>
    %61 = tpu.matmul %58, %60, %cst_37 {dimension_numbers = #tpu.dot_dimension_numbers<[1], [0], [0], [1], [0, 0, 1, 1], [], []>} : vector<256x3xbf16>, vector<3x8xbf16>, vector<256x8xf32> -> vector<256x8xf32>
    %62 = arith.addf %55, %61 : vector<256x8xf32>
    %63 = vector.extract_strided_slice %5 {offsets = [2, 2, 0], sizes = [16, 16, 3], strides = [1, 1, 1]} : vector<18x18x3xf32> to vector<16x16x3xf32>
    %64 = vector.shape_cast %63 : vector<16x16x3xf32> to vector<256x3xf32>
    %65 = arith.truncf %64 : vector<256x3xf32> to vector<256x3xbf16>
    %c8 = arith.constant 8 : index
    %c0_38 = arith.constant 0 : index
    %c0_39 = arith.constant 0 : index
    %66 = vector.load %arg2[%c8, %c0_38, %c0_39] : memref<9x3x8xbf16, #tpu.memory_space<vmem>>, vector<1x3x8xbf16>
    %67 = vector.shape_cast %66 : vector<1x3x8xbf16> to vector<3x8xbf16>
    %cst_40 = arith.constant dense<0.000000e+00> : vector<256x8xf32>
    %68 = tpu.matmul %65, %67, %cst_40 {dimension_numbers = #tpu.dot_dimension_numbers<[1], [0], [0], [1], [0, 0, 1, 1], [], []>} : vector<256x3xbf16>, vector<3x8xbf16>, vector<256x8xf32> -> vector<256x8xf32>
    %69 = arith.addf %62, %68 : vector<256x8xf32>
    %c0_41 = arith.constant 0 : index
    %c0_42 = arith.constant 0 : index
    %70 = vector.load %arg3[%c0_41, %c0_42] : memref<1x8xf32, #tpu.memory_space<vmem>>, vector<1x8xf32>
    %71 = vector.broadcast %70 : vector<1x8xf32> to vector<256x8xf32>
    %72 = arith.mulf %69, %71 : vector<256x8xf32>
    %c0_43 = arith.constant 0 : index
    %c0_44 = arith.constant 0 : index
    %73 = vector.load %arg4[%c0_43, %c0_44] : memref<1x8xf32, #tpu.memory_space<vmem>>, vector<1x8xf32>
    %74 = vector.broadcast %73 : vector<1x8xf32> to vector<256x8xf32>
    %75 = arith.addf %72, %74 : vector<256x8xf32>
    %cst_45 = arith.constant 0.000000e+00 : f32
    %76 = vector.broadcast %cst_45 : f32 to vector<256x8xf32>
    %77 = arith.maximumf %75, %76 : vector<256x8xf32>
    %78 = vector.shape_cast %77 : vector<256x8xf32> to vector<16x16x8xf32>
    %79 = vector.shape_cast %78 : vector<16x16x8xf32> to vector<256x8xf32>
    %80 = vector.shape_cast %79 : vector<256x8xf32> to vector<128x2x8xf32>
    %cst_46 = arith.constant dense<0xFF800000> : vector<128x8xf32>
    %81 = vector.multi_reduction <maximumf>, %80, %cst_46 [1] : vector<128x2x8xf32> to vector<128x8xf32>
    %82 = vector.shape_cast %81 : vector<128x8xf32> to vector<8x2x8x8xf32>
    %cst_47 = arith.constant dense<0xFF800000> : vector<8x8x8xf32>
    %83 = vector.multi_reduction <maximumf>, %82, %cst_47 [1] : vector<8x2x8x8xf32> to vector<8x8x8xf32>
    %cst_48 = arith.constant 0.000000e+00 : f32
    %84 = vector.broadcast %cst_48 : f32 to vector<10x10x8xf32>
    %c0_49 = arith.constant 0 : index
    %c0_50 = arith.constant 0 : index
    %c0_51 = arith.constant 0 : index
    %85 = vector.load %arg15[%c0_49, %c0_50, %c0_51] : memref<10x10x8xf32, #tpu.memory_space<vmem>>, vector<10x10x8xf32>
    tpu.vector_store %arg15[%c0_49, %c0_50, %c0_51], %84 {strides = array<i32>} : memref<10x10x8xf32, #tpu.memory_space<vmem>>, vector<10x10x8xf32>,
    %c1_52 = arith.constant 1 : index
    %c1_53 = arith.constant 1 : index
    %c0_54 = arith.constant 0 : index
    %86 = vector.load %arg15[%c1_52, %c1_53, %c0_54] : memref<10x10x8xf32, #tpu.memory_space<vmem>>, vector<8x8x8xf32>
    tpu.vector_store %arg15[%c1_52, %c1_53, %c0_54], %83 {strides = array<i32>} : memref<10x10x8xf32, #tpu.memory_space<vmem>>, vector<8x8x8xf32>,
    %c0_55 = arith.constant 0 : index
    %c0_56 = arith.constant 0 : index
    %c0_57 = arith.constant 0 : index
    %87 = vector.load %arg15[%c0_55, %c0_56, %c0_57] : memref<10x10x8xf32, #tpu.memory_space<vmem>>, vector<10x10x8xf32>
    %cst_58 = arith.constant 0.000000e+00 : f32
    %88 = vector.broadcast %cst_58 : f32 to vector<64x16xf32>
    %89 = vector.extract_strided_slice %87 {offsets = [0, 0, 0], sizes = [8, 8, 8], strides = [1, 1, 1]} : vector<10x10x8xf32> to vector<8x8x8xf32>
    %90 = vector.shape_cast %89 : vector<8x8x8xf32> to vector<64x8xf32>
    %91 = arith.truncf %90 : vector<64x8xf32> to vector<64x8xbf16>
    %c0_59 = arith.constant 0 : index
    %c0_60 = arith.constant 0 : index
    %c0_61 = arith.constant 0 : index
    %92 = vector.load %arg5[%c0_59, %c0_60, %c0_61] : memref<9x8x16xbf16, #tpu.memory_space<vmem>>, vector<1x8x16xbf16>
    %93 = vector.shape_cast %92 : vector<1x8x16xbf16> to vector<8x16xbf16>
    %cst_62 = arith.constant dense<0.000000e+00> : vector<64x16xf32>
    %94 = tpu.matmul %91, %93, %cst_62 {dimension_numbers = #tpu.dot_dimension_numbers<[1], [0], [0], [1], [0, 0, 1, 1], [], []>} : vector<64x8xbf16>, vector<8x16xbf16>, vector<64x16xf32> -> vector<64x16xf32>
    %95 = arith.addf %88, %94 : vector<64x16xf32>
    %96 = vector.extract_strided_slice %87 {offsets = [0, 1, 0], sizes = [8, 8, 8], strides = [1, 1, 1]} : vector<10x10x8xf32> to vector<8x8x8xf32>
    %97 = vector.shape_cast %96 : vector<8x8x8xf32> to vector<64x8xf32>
    %98 = arith.truncf %97 : vector<64x8xf32> to vector<64x8xbf16>
    %c1_63 = arith.constant 1 : index
    %c0_64 = arith.constant 0 : index
    %c0_65 = arith.constant 0 : index
    %99 = vector.load %arg5[%c1_63, %c0_64, %c0_65] : memref<9x8x16xbf16, #tpu.memory_space<vmem>>, vector<1x8x16xbf16>
    %100 = vector.shape_cast %99 : vector<1x8x16xbf16> to vector<8x16xbf16>
    %cst_66 = arith.constant dense<0.000000e+00> : vector<64x16xf32>
    %101 = tpu.matmul %98, %100, %cst_66 {dimension_numbers = #tpu.dot_dimension_numbers<[1], [0], [0], [1], [0, 0, 1, 1], [], []>} : vector<64x8xbf16>, vector<8x16xbf16>, vector<64x16xf32> -> vector<64x16xf32>
    %102 = arith.addf %95, %101 : vector<64x16xf32>
    %103 = vector.extract_strided_slice %87 {offsets = [0, 2, 0], sizes = [8, 8, 8], strides = [1, 1, 1]} : vector<10x10x8xf32> to vector<8x8x8xf32>
    %104 = vector.shape_cast %103 : vector<8x8x8xf32> to vector<64x8xf32>
    %105 = arith.truncf %104 : vector<64x8xf32> to vector<64x8xbf16>
    %c2_67 = arith.constant 2 : index
    %c0_68 = arith.constant 0 : index
    %c0_69 = arith.constant 0 : index
    %106 = vector.load %arg5[%c2_67, %c0_68, %c0_69] : memref<9x8x16xbf16, #tpu.memory_space<vmem>>, vector<1x8x16xbf16>
    %107 = vector.shape_cast %106 : vector<1x8x16xbf16> to vector<8x16xbf16>
    %cst_70 = arith.constant dense<0.000000e+00> : vector<64x16xf32>
    %108 = tpu.matmul %105, %107, %cst_70 {dimension_numbers = #tpu.dot_dimension_numbers<[1], [0], [0], [1], [0, 0, 1, 1], [], []>} : vector<64x8xbf16>, vector<8x16xbf16>, vector<64x16xf32> -> vector<64x16xf32>
    %109 = arith.addf %102, %108 : vector<64x16xf32>
    %110 = vector.extract_strided_slice %87 {offsets = [1, 0, 0], sizes = [8, 8, 8], strides = [1, 1, 1]} : vector<10x10x8xf32> to vector<8x8x8xf32>
    %111 = vector.shape_cast %110 : vector<8x8x8xf32> to vector<64x8xf32>
    %112 = arith.truncf %111 : vector<64x8xf32> to vector<64x8xbf16>
    %c3_71 = arith.constant 3 : index
    %c0_72 = arith.constant 0 : index
    %c0_73 = arith.constant 0 : index
    %113 = vector.load %arg5[%c3_71, %c0_72, %c0_73] : memref<9x8x16xbf16, #tpu.memory_space<vmem>>, vector<1x8x16xbf16>
    %114 = vector.shape_cast %113 : vector<1x8x16xbf16> to vector<8x16xbf16>
    %cst_74 = arith.constant dense<0.000000e+00> : vector<64x16xf32>
    %115 = tpu.matmul %112, %114, %cst_74 {dimension_numbers = #tpu.dot_dimension_numbers<[1], [0], [0], [1], [0, 0, 1, 1], [], []>} : vector<64x8xbf16>, vector<8x16xbf16>, vector<64x16xf32> -> vector<64x16xf32>
    %116 = arith.addf %109, %115 : vector<64x16xf32>
    %117 = vector.extract_strided_slice %87 {offsets = [1, 1, 0], sizes = [8, 8, 8], strides = [1, 1, 1]} : vector<10x10x8xf32> to vector<8x8x8xf32>
    %118 = vector.shape_cast %117 : vector<8x8x8xf32> to vector<64x8xf32>
    %119 = arith.truncf %118 : vector<64x8xf32> to vector<64x8xbf16>
    %c4_75 = arith.constant 4 : index
    %c0_76 = arith.constant 0 : index
    %c0_77 = arith.constant 0 : index
    %120 = vector.load %arg5[%c4_75, %c0_76, %c0_77] : memref<9x8x16xbf16, #tpu.memory_space<vmem>>, vector<1x8x16xbf16>
    %121 = vector.shape_cast %120 : vector<1x8x16xbf16> to vector<8x16xbf16>
    %cst_78 = arith.constant dense<0.000000e+00> : vector<64x16xf32>
    %122 = tpu.matmul %119, %121, %cst_78 {dimension_numbers = #tpu.dot_dimension_numbers<[1], [0], [0], [1], [0, 0, 1, 1], [], []>} : vector<64x8xbf16>, vector<8x16xbf16>, vector<64x16xf32> -> vector<64x16xf32>
    %123 = arith.addf %116, %122 : vector<64x16xf32>
    %124 = vector.extract_strided_slice %87 {offsets = [1, 2, 0], sizes = [8, 8, 8], strides = [1, 1, 1]} : vector<10x10x8xf32> to vector<8x8x8xf32>
    %125 = vector.shape_cast %124 : vector<8x8x8xf32> to vector<64x8xf32>
    %126 = arith.truncf %125 : vector<64x8xf32> to vector<64x8xbf16>
    %c5_79 = arith.constant 5 : index
    %c0_80 = arith.constant 0 : index
    %c0_81 = arith.constant 0 : index
    %127 = vector.load %arg5[%c5_79, %c0_80, %c0_81] : memref<9x8x16xbf16, #tpu.memory_space<vmem>>, vector<1x8x16xbf16>
    %128 = vector.shape_cast %127 : vector<1x8x16xbf16> to vector<8x16xbf16>
    %cst_82 = arith.constant dense<0.000000e+00> : vector<64x16xf32>
    %129 = tpu.matmul %126, %128, %cst_82 {dimension_numbers = #tpu.dot_dimension_numbers<[1], [0], [0], [1], [0, 0, 1, 1], [], []>} : vector<64x8xbf16>, vector<8x16xbf16>, vector<64x16xf32> -> vector<64x16xf32>
    %130 = arith.addf %123, %129 : vector<64x16xf32>
    %131 = vector.extract_strided_slice %87 {offsets = [2, 0, 0], sizes = [8, 8, 8], strides = [1, 1, 1]} : vector<10x10x8xf32> to vector<8x8x8xf32>
    %132 = vector.shape_cast %131 : vector<8x8x8xf32> to vector<64x8xf32>
    %133 = arith.truncf %132 : vector<64x8xf32> to vector<64x8xbf16>
    %c6_83 = arith.constant 6 : index
    %c0_84 = arith.constant 0 : index
    %c0_85 = arith.constant 0 : index
    %134 = vector.load %arg5[%c6_83, %c0_84, %c0_85] : memref<9x8x16xbf16, #tpu.memory_space<vmem>>, vector<1x8x16xbf16>
    %135 = vector.shape_cast %134 : vector<1x8x16xbf16> to vector<8x16xbf16>
    %cst_86 = arith.constant dense<0.000000e+00> : vector<64x16xf32>
    %136 = tpu.matmul %133, %135, %cst_86 {dimension_numbers = #tpu.dot_dimension_numbers<[1], [0], [0], [1], [0, 0, 1, 1], [], []>} : vector<64x8xbf16>, vector<8x16xbf16>, vector<64x16xf32> -> vector<64x16xf32>
    %137 = arith.addf %130, %136 : vector<64x16xf32>
    %138 = vector.extract_strided_slice %87 {offsets = [2, 1, 0], sizes = [8, 8, 8], strides = [1, 1, 1]} : vector<10x10x8xf32> to vector<8x8x8xf32>
    %139 = vector.shape_cast %138 : vector<8x8x8xf32> to vector<64x8xf32>
    %140 = arith.truncf %139 : vector<64x8xf32> to vector<64x8xbf16>
    %c7_87 = arith.constant 7 : index
    %c0_88 = arith.constant 0 : index
    %c0_89 = arith.constant 0 : index
    %141 = vector.load %arg5[%c7_87, %c0_88, %c0_89] : memref<9x8x16xbf16, #tpu.memory_space<vmem>>, vector<1x8x16xbf16>
    %142 = vector.shape_cast %141 : vector<1x8x16xbf16> to vector<8x16xbf16>
    %cst_90 = arith.constant dense<0.000000e+00> : vector<64x16xf32>
    %143 = tpu.matmul %140, %142, %cst_90 {dimension_numbers = #tpu.dot_dimension_numbers<[1], [0], [0], [1], [0, 0, 1, 1], [], []>} : vector<64x8xbf16>, vector<8x16xbf16>, vector<64x16xf32> -> vector<64x16xf32>
    %144 = arith.addf %137, %143 : vector<64x16xf32>
    %145 = vector.extract_strided_slice %87 {offsets = [2, 2, 0], sizes = [8, 8, 8], strides = [1, 1, 1]} : vector<10x10x8xf32> to vector<8x8x8xf32>
    %146 = vector.shape_cast %145 : vector<8x8x8xf32> to vector<64x8xf32>
    %147 = arith.truncf %146 : vector<64x8xf32> to vector<64x8xbf16>
    %c8_91 = arith.constant 8 : index
    %c0_92 = arith.constant 0 : index
    %c0_93 = arith.constant 0 : index
    %148 = vector.load %arg5[%c8_91, %c0_92, %c0_93] : memref<9x8x16xbf16, #tpu.memory_space<vmem>>, vector<1x8x16xbf16>
    %149 = vector.shape_cast %148 : vector<1x8x16xbf16> to vector<8x16xbf16>
    %cst_94 = arith.constant dense<0.000000e+00> : vector<64x16xf32>
    %150 = tpu.matmul %147, %149, %cst_94 {dimension_numbers = #tpu.dot_dimension_numbers<[1], [0], [0], [1], [0, 0, 1, 1], [], []>} : vector<64x8xbf16>, vector<8x16xbf16>, vector<64x16xf32> -> vector<64x16xf32>
    %151 = arith.addf %144, %150 : vector<64x16xf32>
    %c0_95 = arith.constant 0 : index
    %c0_96 = arith.constant 0 : index
    %152 = vector.load %arg6[%c0_95, %c0_96] : memref<1x16xf32, #tpu.memory_space<vmem>>, vector<1x16xf32>
    %153 = vector.broadcast %152 : vector<1x16xf32> to vector<64x16xf32>
    %154 = arith.mulf %151, %153 : vector<64x16xf32>
    %c0_97 = arith.constant 0 : index
    %c0_98 = arith.constant 0 : index
    %155 = vector.load %arg7[%c0_97, %c0_98] : memref<1x16xf32, #tpu.memory_space<vmem>>, vector<1x16xf32>
    %156 = vector.broadcast %155 : vector<1x16xf32> to vector<64x16xf32>
    %157 = arith.addf %154, %156 : vector<64x16xf32>
    %cst_99 = arith.constant 0.000000e+00 : f32
    %158 = vector.broadcast %cst_99 : f32 to vector<64x16xf32>
    %159 = arith.maximumf %157, %158 : vector<64x16xf32>
    %160 = vector.shape_cast %159 : vector<64x16xf32> to vector<8x8x16xf32>
    %161 = vector.shape_cast %160 : vector<8x8x16xf32> to vector<64x16xf32>
    %162 = vector.shape_cast %161 : vector<64x16xf32> to vector<32x2x16xf32>
    %cst_100 = arith.constant dense<0xFF800000> : vector<32x16xf32>
    %163 = vector.multi_reduction <maximumf>, %162, %cst_100 [1] : vector<32x2x16xf32> to vector<32x16xf32>
    %164 = vector.shape_cast %163 : vector<32x16xf32> to vector<4x2x4x16xf32>
    %cst_101 = arith.constant dense<0xFF800000> : vector<4x4x16xf32>
    %165 = vector.multi_reduction <maximumf>, %164, %cst_101 [1] : vector<4x2x4x16xf32> to vector<4x4x16xf32>
    %cst_102 = arith.constant 0.000000e+00 : f32
    %166 = vector.broadcast %cst_102 : f32 to vector<6x6x16xf32>
    %c0_103 = arith.constant 0 : index
    %c0_104 = arith.constant 0 : index
    %c0_105 = arith.constant 0 : index
    %167 = vector.load %arg16[%c0_103, %c0_104, %c0_105] : memref<6x6x16xf32, #tpu.memory_space<vmem>>, vector<6x6x16xf32>
    tpu.vector_store %arg16[%c0_103, %c0_104, %c0_105], %166 {strides = array<i32>} : memref<6x6x16xf32, #tpu.memory_space<vmem>>, vector<6x6x16xf32>,
    %c1_106 = arith.constant 1 : index
    %c1_107 = arith.constant 1 : index
    %c0_108 = arith.constant 0 : index
    %168 = vector.load %arg16[%c1_106, %c1_107, %c0_108] : memref<6x6x16xf32, #tpu.memory_space<vmem>>, vector<4x4x16xf32>
    tpu.vector_store %arg16[%c1_106, %c1_107, %c0_108], %165 {strides = array<i32>} : memref<6x6x16xf32, #tpu.memory_space<vmem>>, vector<4x4x16xf32>,
    %c0_109 = arith.constant 0 : index
    %c0_110 = arith.constant 0 : index
    %c0_111 = arith.constant 0 : index
    %169 = vector.load %arg16[%c0_109, %c0_110, %c0_111] : memref<6x6x16xf32, #tpu.memory_space<vmem>>, vector<6x6x16xf32>
    %cst_112 = arith.constant 0.000000e+00 : f32
    %170 = vector.broadcast %cst_112 : f32 to vector<16x512xf32>
    %171 = vector.extract_strided_slice %169 {offsets = [0, 0, 0], sizes = [4, 4, 16], strides = [1, 1, 1]} : vector<6x6x16xf32> to vector<4x4x16xf32>
    %172 = vector.shape_cast %171 : vector<4x4x16xf32> to vector<16x16xf32>
    %173 = arith.truncf %172 : vector<16x16xf32> to vector<16x16xbf16>
    %c0_113 = arith.constant 0 : index
    %c0_114 = arith.constant 0 : index
    %c0_115 = arith.constant 0 : index
    %174 = vector.load %arg8[%c0_113, %c0_114, %c0_115] : memref<9x16x512xbf16, #tpu.memory_space<vmem>>, vector<1x16x512xbf16>
    %175 = vector.shape_cast %174 : vector<1x16x512xbf16> to vector<16x512xbf16>
    %cst_116 = arith.constant dense<0.000000e+00> : vector<16x512xf32>
    %176 = tpu.matmul %173, %175, %cst_116 {dimension_numbers = #tpu.dot_dimension_numbers<[1], [0], [0], [1], [0, 0, 1, 1], [], []>} : vector<16x16xbf16>, vector<16x512xbf16>, vector<16x512xf32> -> vector<16x512xf32>
    %177 = arith.addf %170, %176 : vector<16x512xf32>
    %178 = vector.extract_strided_slice %169 {offsets = [0, 1, 0], sizes = [4, 4, 16], strides = [1, 1, 1]} : vector<6x6x16xf32> to vector<4x4x16xf32>
    %179 = vector.shape_cast %178 : vector<4x4x16xf32> to vector<16x16xf32>
    %180 = arith.truncf %179 : vector<16x16xf32> to vector<16x16xbf16>
    %c1_117 = arith.constant 1 : index
    %c0_118 = arith.constant 0 : index
    %c0_119 = arith.constant 0 : index
    %181 = vector.load %arg8[%c1_117, %c0_118, %c0_119] : memref<9x16x512xbf16, #tpu.memory_space<vmem>>, vector<1x16x512xbf16>
    %182 = vector.shape_cast %181 : vector<1x16x512xbf16> to vector<16x512xbf16>
    %cst_120 = arith.constant dense<0.000000e+00> : vector<16x512xf32>
    %183 = tpu.matmul %180, %182, %cst_120 {dimension_numbers = #tpu.dot_dimension_numbers<[1], [0], [0], [1], [0, 0, 1, 1], [], []>} : vector<16x16xbf16>, vector<16x512xbf16>, vector<16x512xf32> -> vector<16x512xf32>
    %184 = arith.addf %177, %183 : vector<16x512xf32>
    %185 = vector.extract_strided_slice %169 {offsets = [0, 2, 0], sizes = [4, 4, 16], strides = [1, 1, 1]} : vector<6x6x16xf32> to vector<4x4x16xf32>
    %186 = vector.shape_cast %185 : vector<4x4x16xf32> to vector<16x16xf32>
    %187 = arith.truncf %186 : vector<16x16xf32> to vector<16x16xbf16>
    %c2_121 = arith.constant 2 : index
    %c0_122 = arith.constant 0 : index
    %c0_123 = arith.constant 0 : index
    %188 = vector.load %arg8[%c2_121, %c0_122, %c0_123] : memref<9x16x512xbf16, #tpu.memory_space<vmem>>, vector<1x16x512xbf16>
    %189 = vector.shape_cast %188 : vector<1x16x512xbf16> to vector<16x512xbf16>
    %cst_124 = arith.constant dense<0.000000e+00> : vector<16x512xf32>
    %190 = tpu.matmul %187, %189, %cst_124 {dimension_numbers = #tpu.dot_dimension_numbers<[1], [0], [0], [1], [0, 0, 1, 1], [], []>} : vector<16x16xbf16>, vector<16x512xbf16>, vector<16x512xf32> -> vector<16x512xf32>
    %191 = arith.addf %184, %190 : vector<16x512xf32>
    %192 = vector.extract_strided_slice %169 {offsets = [1, 0, 0], sizes = [4, 4, 16], strides = [1, 1, 1]} : vector<6x6x16xf32> to vector<4x4x16xf32>
    %193 = vector.shape_cast %192 : vector<4x4x16xf32> to vector<16x16xf32>
    %194 = arith.truncf %193 : vector<16x16xf32> to vector<16x16xbf16>
    %c3_125 = arith.constant 3 : index
    %c0_126 = arith.constant 0 : index
    %c0_127 = arith.constant 0 : index
    %195 = vector.load %arg8[%c3_125, %c0_126, %c0_127] : memref<9x16x512xbf16, #tpu.memory_space<vmem>>, vector<1x16x512xbf16>
    %196 = vector.shape_cast %195 : vector<1x16x512xbf16> to vector<16x512xbf16>
    %cst_128 = arith.constant dense<0.000000e+00> : vector<16x512xf32>
    %197 = tpu.matmul %194, %196, %cst_128 {dimension_numbers = #tpu.dot_dimension_numbers<[1], [0], [0], [1], [0, 0, 1, 1], [], []>} : vector<16x16xbf16>, vector<16x512xbf16>, vector<16x512xf32> -> vector<16x512xf32>
    %198 = arith.addf %191, %197 : vector<16x512xf32>
    %199 = vector.extract_strided_slice %169 {offsets = [1, 1, 0], sizes = [4, 4, 16], strides = [1, 1, 1]} : vector<6x6x16xf32> to vector<4x4x16xf32>
    %200 = vector.shape_cast %199 : vector<4x4x16xf32> to vector<16x16xf32>
    %201 = arith.truncf %200 : vector<16x16xf32> to vector<16x16xbf16>
    %c4_129 = arith.constant 4 : index
    %c0_130 = arith.constant 0 : index
    %c0_131 = arith.constant 0 : index
    %202 = vector.load %arg8[%c4_129, %c0_130, %c0_131] : memref<9x16x512xbf16, #tpu.memory_space<vmem>>, vector<1x16x512xbf16>
    %203 = vector.shape_cast %202 : vector<1x16x512xbf16> to vector<16x512xbf16>
    %cst_132 = arith.constant dense<0.000000e+00> : vector<16x512xf32>
    %204 = tpu.matmul %201, %203, %cst_132 {dimension_numbers = #tpu.dot_dimension_numbers<[1], [0], [0], [1], [0, 0, 1, 1], [], []>} : vector<16x16xbf16>, vector<16x512xbf16>, vector<16x512xf32> -> vector<16x512xf32>
    %205 = arith.addf %198, %204 : vector<16x512xf32>
    %206 = vector.extract_strided_slice %169 {offsets = [1, 2, 0], sizes = [4, 4, 16], strides = [1, 1, 1]} : vector<6x6x16xf32> to vector<4x4x16xf32>
    %207 = vector.shape_cast %206 : vector<4x4x16xf32> to vector<16x16xf32>
    %208 = arith.truncf %207 : vector<16x16xf32> to vector<16x16xbf16>
    %c5_133 = arith.constant 5 : index
    %c0_134 = arith.constant 0 : index
    %c0_135 = arith.constant 0 : index
    %209 = vector.load %arg8[%c5_133, %c0_134, %c0_135] : memref<9x16x512xbf16, #tpu.memory_space<vmem>>, vector<1x16x512xbf16>
    %210 = vector.shape_cast %209 : vector<1x16x512xbf16> to vector<16x512xbf16>
    %cst_136 = arith.constant dense<0.000000e+00> : vector<16x512xf32>
    %211 = tpu.matmul %208, %210, %cst_136 {dimension_numbers = #tpu.dot_dimension_numbers<[1], [0], [0], [1], [0, 0, 1, 1], [], []>} : vector<16x16xbf16>, vector<16x512xbf16>, vector<16x512xf32> -> vector<16x512xf32>
    %212 = arith.addf %205, %211 : vector<16x512xf32>
    %213 = vector.extract_strided_slice %169 {offsets = [2, 0, 0], sizes = [4, 4, 16], strides = [1, 1, 1]} : vector<6x6x16xf32> to vector<4x4x16xf32>
    %214 = vector.shape_cast %213 : vector<4x4x16xf32> to vector<16x16xf32>
    %215 = arith.truncf %214 : vector<16x16xf32> to vector<16x16xbf16>
    %c6_137 = arith.constant 6 : index
    %c0_138 = arith.constant 0 : index
    %c0_139 = arith.constant 0 : index
    %216 = vector.load %arg8[%c6_137, %c0_138, %c0_139] : memref<9x16x512xbf16, #tpu.memory_space<vmem>>, vector<1x16x512xbf16>
    %217 = vector.shape_cast %216 : vector<1x16x512xbf16> to vector<16x512xbf16>
    %cst_140 = arith.constant dense<0.000000e+00> : vector<16x512xf32>
    %218 = tpu.matmul %215, %217, %cst_140 {dimension_numbers = #tpu.dot_dimension_numbers<[1], [0], [0], [1], [0, 0, 1, 1], [], []>} : vector<16x16xbf16>, vector<16x512xbf16>, vector<16x512xf32> -> vector<16x512xf32>
    %219 = arith.addf %212, %218 : vector<16x512xf32>
    %220 = vector.extract_strided_slice %169 {offsets = [2, 1, 0], sizes = [4, 4, 16], strides = [1, 1, 1]} : vector<6x6x16xf32> to vector<4x4x16xf32>
    %221 = vector.shape_cast %220 : vector<4x4x16xf32> to vector<16x16xf32>
    %222 = arith.truncf %221 : vector<16x16xf32> to vector<16x16xbf16>
    %c7_141 = arith.constant 7 : index
    %c0_142 = arith.constant 0 : index
    %c0_143 = arith.constant 0 : index
    %223 = vector.load %arg8[%c7_141, %c0_142, %c0_143] : memref<9x16x512xbf16, #tpu.memory_space<vmem>>, vector<1x16x512xbf16>
    %224 = vector.shape_cast %223 : vector<1x16x512xbf16> to vector<16x512xbf16>
    %cst_144 = arith.constant dense<0.000000e+00> : vector<16x512xf32>
    %225 = tpu.matmul %222, %224, %cst_144 {dimension_numbers = #tpu.dot_dimension_numbers<[1], [0], [0], [1], [0, 0, 1, 1], [], []>} : vector<16x16xbf16>, vector<16x512xbf16>, vector<16x512xf32> -> vector<16x512xf32>
    %226 = arith.addf %219, %225 : vector<16x512xf32>
    %227 = vector.extract_strided_slice %169 {offsets = [2, 2, 0], sizes = [4, 4, 16], strides = [1, 1, 1]} : vector<6x6x16xf32> to vector<4x4x16xf32>
    %228 = vector.shape_cast %227 : vector<4x4x16xf32> to vector<16x16xf32>
    %229 = arith.truncf %228 : vector<16x16xf32> to vector<16x16xbf16>
    %c8_145 = arith.constant 8 : index
    %c0_146 = arith.constant 0 : index
    %c0_147 = arith.constant 0 : index
    %230 = vector.load %arg8[%c8_145, %c0_146, %c0_147] : memref<9x16x512xbf16, #tpu.memory_space<vmem>>, vector<1x16x512xbf16>
    %231 = vector.shape_cast %230 : vector<1x16x512xbf16> to vector<16x512xbf16>
    %cst_148 = arith.constant dense<0.000000e+00> : vector<16x512xf32>
    %232 = tpu.matmul %229, %231, %cst_148 {dimension_numbers = #tpu.dot_dimension_numbers<[1], [0], [0], [1], [0, 0, 1, 1], [], []>} : vector<16x16xbf16>, vector<16x512xbf16>, vector<16x512xf32> -> vector<16x512xf32>
    %233 = arith.addf %226, %232 : vector<16x512xf32>
    %c0_149 = arith.constant 0 : index
    %c0_150 = arith.constant 0 : index
    %234 = vector.load %arg9[%c0_149, %c0_150] : memref<1x512xf32, #tpu.memory_space<vmem>>, vector<1x512xf32>
    %235 = vector.broadcast %234 : vector<1x512xf32> to vector<16x512xf32>
    %236 = arith.mulf %233, %235 : vector<16x512xf32>
    %c0_151 = arith.constant 0 : index
    %c0_152 = arith.constant 0 : index
    %237 = vector.load %arg10[%c0_151, %c0_152] : memref<1x512xf32, #tpu.memory_space<vmem>>, vector<1x512xf32>
    %238 = vector.broadcast %237 : vector<1x512xf32> to vector<16x512xf32>
    %239 = arith.addf %236, %238 : vector<16x512xf32>
    %cst_153 = arith.constant 0.000000e+00 : f32
    %240 = vector.broadcast %cst_153 : f32 to vector<16x512xf32>
    %241 = arith.maximumf %239, %240 : vector<16x512xf32>
    %242 = vector.shape_cast %241 : vector<16x512xf32> to vector<4x4x512xf32>
    %243 = vector.shape_cast %242 : vector<4x4x512xf32> to vector<16x512xf32>
    %cst_154 = arith.constant dense<0.000000e+00> : vector<512xf32>
    %244 = vector.multi_reduction <add>, %243, %cst_154 [0] : vector<16x512xf32> to vector<512xf32>
    %245 = vector.shape_cast %244 : vector<512xf32> to vector<1x512xf32>
    %cst_155 = arith.constant 1.600000e+01 : f32
    %246 = vector.broadcast %cst_155 : f32 to vector<1x512xf32>
    %247 = arith.divf %245, %246 : vector<1x512xf32>
    %c0_156 = arith.constant 0 : index
    %c0_157 = arith.constant 0 : index
    %248 = vector.load %arg11[%c0_156, %c0_157] : memref<512x1xf32, #tpu.memory_space<vmem>>, vector<512x1xf32>
    %cst_158 = arith.constant dense<0.000000e+00> : vector<1x1xf32>
    %249 = tpu.matmul %247, %248, %cst_158 {dimension_numbers = #tpu.dot_dimension_numbers<[1], [0], [0], [1], [0, 0, 1, 1], [], []>} : vector<1x512xf32>, vector<512x1xf32>, vector<1x1xf32> -> vector<1x1xf32>
    %c0_159 = arith.constant 0 : index
    %c0_160 = arith.constant 0 : index
    %250 = vector.load %arg12[%c0_159, %c0_160] : memref<1x1xf32, #tpu.memory_space<vmem>>, vector<1x1xf32>
    %251 = arith.addf %249, %250 : vector<1x1xf32>
    %cst_161 = arith.constant 0.000000e+00 : f32
    %252 = vector.broadcast %cst_161 : f32 to vector<1x1xf32>
    %253 = arith.subf %252, %251 : vector<1x1xf32>
    %254 = math.exp %253 : vector<1x1xf32>
    %cst_162 = arith.constant 1.000000e+00 : f32
    %255 = vector.broadcast %cst_162 : f32 to vector<1x1xf32>
    %256 = arith.addf %255, %254 : vector<1x1xf32>
    %cst_163 = arith.constant 1.000000e+00 : f32
    %257 = vector.broadcast %cst_163 : f32 to vector<1x1xf32>
    %258 = arith.divf %257, %256 : vector<1x1xf32>
    %c0_164 = arith.constant 0 : index
    %c0_165 = arith.constant 0 : index
    %c0_166 = arith.constant 0 : index
    %259 = vector.load %arg13[%c0_164, %c0_165, %c0_166] : memref<1x1x1xf32, #tpu.memory_space<vmem>>, vector<1x1x1xf32>
    %260 = vector.shape_cast %259 : vector<1x1x1xf32> to vector<1x1xf32>
    %261 = vector.shape_cast %258 : vector<1x1xf32> to vector<1x1x1xf32>
    tpu.vector_store %arg13[%c0_164, %c0_165, %c0_166], %261 {strides = array<i32>} : memref<1x1x1xf32, #tpu.memory_space<vmem>>, vector<1x1x1xf32>,
    return
  }
  func.func @transform_0(%arg0: i32) -> (i32, i32, i32, i32) {
    %c0_i32 = arith.constant 0 : i32
    %c0_i32_0 = arith.constant 0 : i32
    %c0_i32_1 = arith.constant 0 : i32
    %c0_i32_2 = arith.constant 0 : i32
    return %arg0, %c0_i32, %c0_i32_0, %c0_i32_1 : i32, i32, i32, i32
  }
  func.func @transform_1(%arg0: i32) -> (i32, i32, i32) {
    %c0_i32 = arith.constant 0 : i32
    %c0_i32_0 = arith.constant 0 : i32
    %c0_i32_1 = arith.constant 0 : i32
    %c0_i32_2 = arith.constant 0 : i32
    return %c0_i32, %c0_i32_0, %c0_i32_1 : i32, i32, i32
  }
  func.func @transform_2(%arg0: i32) -> (i32, i32) {
    %c0_i32 = arith.constant 0 : i32
    %c0_i32_0 = arith.constant 0 : i32
    %c0_i32_1 = arith.constant 0 : i32
    return %c0_i32, %c0_i32_0 : i32, i32
  }
  func.func @transform_3(%arg0: i32) -> (i32, i32) {
    %c0_i32 = arith.constant 0 : i32
    %c0_i32_0 = arith.constant 0 : i32
    %c0_i32_1 = arith.constant 0 : i32
    return %c0_i32, %c0_i32_0 : i32, i32
  }
  func.func @transform_4(%arg0: i32) -> (i32, i32, i32) {
    %c0_i32 = arith.constant 0 : i32
    %c0_i32_0 = arith.constant 0 : i32
    %c0_i32_1 = arith.constant 0 : i32
    %c0_i32_2 = arith.constant 0 : i32
    return %c0_i32, %c0_i32_0, %c0_i32_1 : i32, i32, i32
  }
  func.func @transform_5(%arg0: i32) -> (i32, i32) {
    %c0_i32 = arith.constant 0 : i32
    %c0_i32_0 = arith.constant 0 : i32
    %c0_i32_1 = arith.constant 0 : i32
    return %c0_i32, %c0_i32_0 : i32, i32
  }
  func.func @transform_6(%arg0: i32) -> (i32, i32) {
    %c0_i32 = arith.constant 0 : i32
    %c0_i32_0 = arith.constant 0 : i32
    %c0_i32_1 = arith.constant 0 : i32
    return %c0_i32, %c0_i32_0 : i32, i32
  }
  func.func @transform_7(%arg0: i32) -> (i32, i32, i32) {
    %c0_i32 = arith.constant 0 : i32
    %c0_i32_0 = arith.constant 0 : i32
    %c0_i32_1 = arith.constant 0 : i32
    %c0_i32_2 = arith.constant 0 : i32
    return %c0_i32, %c0_i32_0, %c0_i32_1 : i32, i32, i32
  }
  func.func @transform_8(%arg0: i32) -> (i32, i32) {
    %c0_i32 = arith.constant 0 : i32
    %c0_i32_0 = arith.constant 0 : i32
    %c0_i32_1 = arith.constant 0 : i32
    return %c0_i32, %c0_i32_0 : i32, i32
  }
  func.func @transform_9(%arg0: i32) -> (i32, i32) {
    %c0_i32 = arith.constant 0 : i32
    %c0_i32_0 = arith.constant 0 : i32
    %c0_i32_1 = arith.constant 0 : i32
    return %c0_i32, %c0_i32_0 : i32, i32
  }
  func.func @transform_10(%arg0: i32) -> (i32, i32) {
    %c0_i32 = arith.constant 0 : i32
    %c0_i32_0 = arith.constant 0 : i32
    %c0_i32_1 = arith.constant 0 : i32
    return %c0_i32, %c0_i32_0 : i32, i32
  }
  func.func @transform_11(%arg0: i32) -> (i32, i32) {
    %c0_i32 = arith.constant 0 : i32
    %c0_i32_0 = arith.constant 0 : i32
    %c0_i32_1 = arith.constant 0 : i32
    return %c0_i32, %c0_i32_0 : i32, i32
  }
  func.func @transform_12(%arg0: i32) -> (i32, i32, i32) {
    %c0_i32 = arith.constant 0 : i32
    %c0_i32_0 = arith.constant 0 : i32
    %c0_i32_1 = arith.constant 0 : i32
    return %arg0, %c0_i32, %c0_i32_0 : i32, i32, i32
  }
}

</mosaic_0001>

<bundles_post_ra>
// kernel: _lambda_.1
= control target key start
LH: loop header
LB: loop body
LE: loop exit
PB: predicated region body
PF: predicated region fallthrough
CT: control target
= control target key end

     0   :  { %s12198_s0 = inlined_call_operand.vmem [shape: f32[2,16,16,3], index: 0, kind: input, shape index: {}]   ;;  %s12199_s1 = inlined_call_operand.vmem [shape: bf16[9,3,8], index: 1, kind: input, shape index: {}]   ;;  %s12200_s2 = inlined_call_operand.vmem [shape: f32[1,8], index: 2, kind: input, shape index: {}]   ;;  %s12201_s3 = inlined_call_operand.vmem [shape: f32[1,8], index: 3, kind: input, shape index: {}]   ;;  %s12202_s4 = inlined_call_operand.vmem [shape: bf16[9,8,16], index: 4, kind: input, shape index: {}]   ;;  %s12203_s5 = inlined_call_operand.vmem [shape: f32[1,16], index: 5, kind: input, shape index: {}]   ;;  %s12204_s6 = inlined_call_operand.vmem [shape: f32[1,16], index: 6, kind: input, shape index: {}]   ;;  %s12205_s7 = inlined_call_operand.hbm [shape: bf16[9,16,512], index: 7, kind: input, shape index: {}]   ;;  %s12206_s8 = inlined_call_operand.vmem [shape: f32[1,512], index: 8, kind: input, shape index: {}]   ;;  %s12207_s9 = inlined_call_operand.vmem [shape: f32[1,512], index: 9, kind: input, shape index: {}]   ;;  %s12208_s10 = inlined_call_operand.vmem [shape: f32[512,1], index: 10, kind: input, shape index: {}]   ;;  %s12209_s11 = inlined_call_operand.<no memory space> [shape: f32[1,1], index: 11, kind: input, shape index: {}]   ;;  %s12210_s12 = inlined_call_operand.vmem [shape: f32[2,1,1], index: 12, kind: output, shape index: {}]  }
   0x1   :  { %v17_v0 = vstv %s12209_s11 }
   0x2   :  { %18 = vst [vmem:[#allocation5] sm:$0x1] %v17_v0 }
   0x3   :  { %19 = vsyncpa [#allocation7], 0  ;;  %s9089_s23 = smov 0  }
   0x4 LB: > { %s9095_s24 = sadd.s32 4294967295, %s9012_s23   ;;  %p7929_p0 = scmp.ge.s32.totalorder %s9012_s23, 1  ;;  %s9012_s23 = sphi %s9089_s23, %s25_s23  }
   0x5   : > { %p313_p1 = scmp.lt.s32.totalorder %s9012_s23, 3  ;;  %s9014_s25 = smov [#allocation6]  }
   0x6   : > { %s343_s11 = sshll.u32 %s9014_s25, 4  ;;  %p8886_p3 = scmp.eq.s32.totalorder %s9095_s24, 0  ;;  %s344_s11 = int_to_ptr.vmem [resolvable:$true] %s343_s11 }
   0x7   : > { %p9099_p2 = pnand %p7929_p0, %p313_p1  ;;  %s8987_s27 = scalar_lea.vmem %s344_s11, 4608 }
   0x8   : > { %p8988_p7 = scmp.ne.s32.totalorder %s344_s11, %s8987_s27  ;;  %p8995_p10 = scmp.lt.s32.totalorder %s344_s11, %s344_s11 }
   0x9   : > { %p8882_p4 = pneg %p9099_p2  ;;  %p8996_p11 = scmp.lt.s32.totalorder %s8987_s27, %s8987_s27 }
   0xb   : > { %p8883_p5 = pnand %p8886_p3, %p8882_p4  ;;  %p8997_p12 = por %p8996_p11, %p8995_p10 }
   0xd   : > { %p8978_p6 = pneg %p8883_p5 }
   0xf   : > { %p8990_p8 = pnand %p8988_p7, %p8978_p6 }
  0x11   : > { %p8991_p9 = pneg %p8990_p8 }
  0x13   : > { %p8998_p13 = pnand %p8997_p12, %p8991_p9 }
  0x15   : > { %9001 = shalt.err (!%p8998_p13)
}
  0x16   : > { %s9015_s28 = smov 256   ;;  %s9016_s29 = smov 16  }
  0x17   : > { %8885 = dma.hbm_to_vmem [thread:$0]  (!%p8883_p5), %s12205_s7, 4608, %s344_s11, [#allocation7], %s9015_s28, %s9015_s28, %s9016_s29  }
  0x18   : > { %379 = sbr.rel (%p9099_p2) target bundleno = 1794 (0x702), region = 68 }
  0x1d   : > { %9007 = dma.done.wait (%p8886_p3), [#allocation7], 4608  }
  0x1e   : > { %9009 = vsyncadd (%p8886_p3), [#allocation7], 4294962688  ;;  %vm847_vm0 = vcmask 1040384   ;;  %vm460_vm1 = vcmask 23552   ;;  %vm463_vm2 = vcmask 17408   ;;  %p419_p0 = scmp.lt.s32.totalorder %s9095_s24, 1 }
  0x1f   : > { %vm848_vm3 = vcmask 1041408   ;;  %v9017_v1 = vmov 65535   ;;  %v12211_v3 = vmov 0.0   ;;  %v7936_v5 = vld [vmem:[%s12199_s1 + $0x2] sm:$0x3]  ;;  %vm668_vm4 = vcmask 1046528  }
  0x20   : > { %v849_v2 = vsel %vm847_vm0, 4294967295, %v9017_v1  ;;  %461 = vst.msk [vmem:[#allocation2] sm:$0xff] %vm460_vm1, %v12211_v3  ;;  %462 = vst.msk [vmem:[#allocation2 + $0x8] sm:$0xff] %vm460_vm1, %v12211_v3  ;;  %s12375_s24 = smov (!%p419_p0, %s9095_s24), 1  ;;  %v619_v6 = vld [vmem:[%s12199_s1] sm:$0x3] }
  0x21   : > { %464 = vst.msk [vmem:[#allocation2 + $0x10] sm:$0x3] %vm463_vm2, %v12211_v3  ;;  %467 = vst.msk [vmem:[#allocation2 + $0x28] sm:$0x3] %vm463_vm2, %v12211_v3  ;;  %v9232_v4 = vsel %vm848_vm3, %v849_v2, 0  ;;  %s8204_s14 = sshll.u32 %s12375_s24, 8 }
  0x22   : > { %465 = vst.msk [vmem:[#allocation2 + $0x18] sm:$0xff] %vm460_vm1, %v12211_v3  ;;  %466 = vst.msk [vmem:[#allocation2 + $0x20] sm:$0xff] %vm460_vm1, %v12211_v3  ;;  %s9238_s17 = scalar_lea.vmem %s12198_s0, %s8204_s14  ;;  %v7969_v7 = vld [vmem:[%s12199_s1 + $0x4] sm:$0x3]  ;;  %v852_v8 = vand.u32 %v7936_v5, %v9232_v4  ;;  %v1064_v9 = vand.u32 %v9232_v4, %v619_v6  ;;  %vm1227_vm5 = vcmask 1045504   ;;  %vm3662_vm6 = vcmask 58368  }
  0x23   : > { %468 = vst.msk [vmem:[#allocation2 + $0x30] sm:$0xff] %vm460_vm1, %v12211_v3  ;;  %469 = vst.msk [vmem:[#allocation2 + $0x38] sm:$0xff] %vm460_vm1, %v12211_v3  ;;  %v9252_v10 = vand.u32 %v7969_v7, %v9232_v4  ;;  %v428_v11 = vld [vmem:[%s9238_s17] sm:$0xff]  ;;  %v429_v12 = vld [vmem:[%s9238_s17 + $0x8] sm:$0xff]  ;;  %vm4559_vm7 = vcmask 64512   ;;  %vm4836_vm8 = vcmask 1041409  }
  0x24   : > { %470 = vst.msk [vmem:[#allocation2 + $0x40] sm:$0x3] %vm463_vm2, %v12211_v3  ;;  %473 = vst.msk [vmem:[#allocation2 + $0x58] sm:$0x3] %vm463_vm2, %v12211_v3  ;;  %v430_v13 = vld [vmem:[%s9238_s17 + $0x10] sm:$0xff]  ;;  %8473 = vmatprep.subr.bf16.mxu0 %v852_v8  ;;  %8507 = vmatprep.subr.bf16.mxu1 %v1064_v9  ;;  %v431_v21 = vld [vmem:[%s9238_s17 + $0x18] sm:$0xff] }
  0x25   : > { %471 = vst.msk [vmem:[#allocation2 + $0x48] sm:$0xff] %vm460_vm1, %v12211_v3  ;;  %472 = vst.msk [vmem:[#allocation2 + $0x50] sm:$0xff] %vm460_vm1, %v12211_v3  ;;  %v432_v22 = vld [vmem:[%s9238_s17 + $0x20] sm:$0xff]  ;;  %8474 = vmatpush3.bf16.msra.mxu0 %v852_v8  ;;  %8508 = vmatpush3.bf16.msra.mxu1 %v1064_v9  ;;  %v433_v26 = vld [vmem:[%s9238_s17 + $0x28] sm:$0xff]  ;;  %vm4838_vm9 = vcmask 1042434   ;;  %vm4840_vm10 = vcmask 1043459  }
  0x26   : > { %474 = vst.msk [vmem:[#allocation2 + $0x60] sm:$0xff] %vm460_vm1, %v12211_v3  ;;  %475 = vst.msk [vmem:[#allocation2 + $0x68] sm:$0xff] %vm460_vm1, %v12211_v3  ;;  %v434_v27 = vld [vmem:[%s9238_s17 + $0x30] sm:$0xff]  ;;  %v435_v28 = vld [vmem:[%s9238_s17 + $0x38] sm:$0xff]  ;;  %8541 = vmatprep.subr.bf16.mxu0 %v9252_v10  ;;  %vm4842_vm11 = vcmask 1044484   ;;  %vm4844_vm12 = vcmask 1045509  }
  0x27   : > { %476 = vst.msk [vmem:[#allocation2 + $0x70] sm:$0x3] %vm463_vm2, %v12211_v3  ;;  %479 = vst.msk [vmem:[#allocation2 + $0x88] sm:$0x3] %vm463_vm2, %v12211_v3  ;;  %v549_v14 = vld [vmem:[#allocation2] sm:$0xff]  ;;  %v550_v15 = vld [vmem:[#allocation2 + $0x8] sm:$0xff] }
  0x28   : > { %477 = vst.msk [vmem:[#allocation2 + $0x78] sm:$0xff] %vm460_vm1, %v12211_v3  ;;  %478 = vst.msk [vmem:[#allocation2 + $0x80] sm:$0xff] %vm460_vm1, %v12211_v3  ;;  %v551_v16 = vld [vmem:[#allocation2 + $0x10] sm:$0x3]  ;;  %v669_v17 = vrot.slane %v549_v14, 1  ;;  %v670_v18 = vrot.slane %v550_v15, 1  ;;  %v603_v25 = vpack.c.bf16 %v550_v15, %v549_v14 }
  0x29   : > { %480 = vst.msk [vmem:[#allocation2 + $0x90] sm:$0xff] %vm460_vm1, %v12211_v3  ;;  %481 = vst.msk [vmem:[#allocation2 + $0x98] sm:$0xff] %vm460_vm1, %v12211_v3  ;;  %v672_v19 = vrot.slane %v551_v16, 1  ;;  %v1228_v20 = vrot.slane %v549_v14, 2  ;;  %v1229_v23 = vrot.slane %v550_v15, 2  ;;  %v1231_v24 = vrot.slane %v551_v16, 2 }
  0x2a   : > { %482 = vst.msk [vmem:[#allocation2 + $0xa0] sm:$0x3] %vm463_vm2, %v12211_v3  ;;  %485 = vst.msk [vmem:[#allocation2 + $0xb8] sm:$0x3] %vm463_vm2, %v12211_v3  ;;  %v671_v29 = vsel %vm668_vm4, %v669_v17, %v670_v18  ;;  %v436_v31 = vld [vmem:[%s9238_s17 + $0x40] sm:$0xff]  ;;  %v437_v32 = vld [vmem:[%s9238_s17 + $0x48] sm:$0xff]  ;;  %8509 = vmatprep.mubr.msk.bf16.mxu1 %vm460_vm1, %v603_v25 }
  0x2b   : > { %483 = vst.msk [vmem:[#allocation2 + $0xa8] sm:$0xff] %vm460_vm1, %v12211_v3  ;;  %484 = vst.msk [vmem:[#allocation2 + $0xb0] sm:$0xff] %vm460_vm1, %v12211_v3  ;;  %v673_v30 = vsel %vm668_vm4, %v670_v18, %v672_v19  ;;  %v438_v33 = vld [vmem:[%s9238_s17 + $0x50] sm:$0xff]  ;;  %v439_v35 = vld [vmem:[%s9238_s17 + $0x58] sm:$0xff]  ;;  %v9284_v38 = vsel %vm1227_vm5, %v1228_v20, %v1229_v23  ;;  %v9287_v39 = vsel %vm1227_vm5, %v1229_v23, %v1231_v24  ;;  %vm4846_vm13 = vcmask 1046534  }
  0x2c   : > { %486 = vst.msk [vmem:[#allocation2 + $0xc0] sm:$0xff] %vm460_vm1, %v12211_v3  ;;  %487 = vst.msk [vmem:[#allocation2 + $0xc8] sm:$0xff] %vm460_vm1, %v12211_v3  ;;  %v781_v34 = vpack.c.bf16 %v673_v30, %v671_v29  ;;  %v440_v36 = vld [vmem:[%s9238_s17 + $0x60] sm:$0xff]  ;;  %v441_v37 = vld [vmem:[%s9238_s17 + $0x68] sm:$0xff]  ;;  %vm4848_vm14 = vcmask 1047559   ;;  %vm5007_vm15 = vcmask 1043456  }
  0x2d   : > { %488 = vst.msk [vmem:[#allocation2 + $0xd0] sm:$0x3] %vm463_vm2, %v12211_v3  ;;  %491 = vst.msk [vmem:[#allocation2 + $0xe8] sm:$0x3] %vm463_vm2, %v12211_v3  ;;  %v442_v40 = vld [vmem:[%s9238_s17 + $0x70] sm:$0xff]  ;;  %v443_v41 = vld [vmem:[%s9238_s17 + $0x78] sm:$0xff] }
  0x2e   : > { %489 = vst.msk [vmem:[#allocation2 + $0xd8] sm:$0xff] %vm460_vm1, %v12211_v3  ;;  %490 = vst.msk [vmem:[#allocation2 + $0xe0] sm:$0xff] %vm460_vm1, %v12211_v3  ;;  %v444_v42 = vld [vmem:[%s9238_s17 + $0x80] sm:$0xff]  ;;  %8475 = vmatprep.mubr.msk.bf16.mxu0 %vm460_vm1, %v781_v34  ;;  %v445_v44 = vld [vmem:[%s9238_s17 + $0x88] sm:$0xff]  ;;  %vm6318_vm0 = vcmask 128000  }
  0x2f   : > { %492 = vst.msk [vmem:[#allocation2 + $0xf0] sm:$0xff] %vm460_vm1, %v12211_v3  ;;  %493 = vst.msk [vmem:[#allocation2 + $0xf8] sm:$0xff] %vm460_vm1, %v12211_v3  ;;  %v446_v45 = vld [vmem:[%s9238_s17 + $0x90] sm:$0xff]  ;;  %v447_v46 = vld [vmem:[%s9238_s17 + $0x98] sm:$0xff] }
  0x30   : > { %494 = vst.msk [vmem:[#allocation2 + $0x100] sm:$0x3] %vm463_vm2, %v12211_v3  ;;  %497 = vst.msk [vmem:[#allocation2 + $0x118] sm:$0x3] %vm463_vm2, %v12211_v3  ;;  %v448_v54 = vld [vmem:[%s9238_s17 + $0xa0] sm:$0xff] }
  0x31   : > { %495 = vst.msk [vmem:[#allocation2 + $0x108] sm:$0xff] %vm460_vm1, %v12211_v3  ;;  %496 = vst.msk [vmem:[#allocation2 + $0x110] sm:$0xff] %vm460_vm1, %v12211_v3 }
  0x32   : > { %498 = vst.msk [vmem:[#allocation2 + $0x120] sm:$0xff] %vm460_vm1, %v12211_v3  ;;  %499 = vst.msk [vmem:[#allocation2 + $0x128] sm:$0xff] %vm460_vm1, %v12211_v3 }
  0x33   : > { %500 = vst.msk [vmem:[#allocation2 + $0x130] sm:$0x3] %vm463_vm2, %v12211_v3  ;;  %503 = vst.msk [vmem:[#allocation2 + $0x148] sm:$0x3] %vm463_vm2, %v12211_v3 }
  0x34   : > { %501 = vst.msk [vmem:[#allocation2 + $0x138] sm:$0xff] %vm460_vm1, %v12211_v3  ;;  %502 = vst.msk [vmem:[#allocation2 + $0x140] sm:$0xff] %vm460_vm1, %v12211_v3 }
  0x35   : > { %504 = vst.msk [vmem:[#allocation2 + $0x150] sm:$0xff] %vm460_vm1, %v12211_v3  ;;  %505 = vst.msk [vmem:[#allocation2 + $0x158] sm:$0xff] %vm460_vm1, %v12211_v3 }
  0x36   : > { %506 = vst.msk [vmem:[#allocation2 + $0x160] sm:$0x3] %vm463_vm2, %v12211_v3  ;;  %509 = vst.msk [vmem:[#allocation2 + $0x178] sm:$0x3] %vm463_vm2, %v12211_v3 }
  0x37   : > { %507 = vst.msk [vmem:[#allocation2 + $0x168] sm:$0xff] %vm460_vm1, %v12211_v3  ;;  %508 = vst.msk [vmem:[#allocation2 + $0x170] sm:$0xff] %vm460_vm1, %v12211_v3 }
  0x38   : > { %510 = vst.msk [vmem:[#allocation2 + $0x180] sm:$0xff] %vm460_vm1, %v12211_v3  ;;  %511 = vst.msk [vmem:[#allocation2 + $0x188] sm:$0xff] %vm460_vm1, %v12211_v3 }
  0x39   : > { %512 = vst.msk [vmem:[#allocation2 + $0x190] sm:$0x3] %vm463_vm2, %v12211_v3  ;;  %515 = vst.msk [vmem:[#allocation2 + $0x1a8] sm:$0x3] %vm463_vm2, %v12211_v3  ;;  %vm6269_vm2 = vcmask 130048  }
  0x3a   : > { %513 = vst.msk [vmem:[#allocation2 + $0x198] sm:$0xff] %vm460_vm1, %v12211_v3  ;;  %514 = vst.msk [vmem:[#allocation2 + $0x1a0] sm:$0xff] %vm460_vm1, %v12211_v3 }
  0x3b   : > { %12248 = vst [vmem:[#allocation9_spill] sm:$0xff] %v9232_v4  ;;  %517 = vst.msk [vmem:[#allocation2 + $0x19] sm:$0xff] %vm460_vm1, %v428_v11 }
  0x3c   : > { %518 = vst.msk [vmem:[#allocation2 + $0x21] sm:$0xff] %vm460_vm1, %v429_v12  ;;  %519 = vst.msk [vmem:[#allocation2 + $0x31] sm:$0xff] %vm460_vm1, %v430_v13 }
  0x3d   : > { %520 = vst.msk [vmem:[#allocation2 + $0x39] sm:$0xff] %vm460_vm1, %v431_v21  ;;  %521 = vst.msk [vmem:[#allocation2 + $0x49] sm:$0xff] %vm460_vm1, %v432_v22 }
  0x3e   : > { %522 = vst.msk [vmem:[#allocation2 + $0x51] sm:$0xff] %vm460_vm1, %v433_v26  ;;  %523 = vst.msk [vmem:[#allocation2 + $0x61] sm:$0xff] %vm460_vm1, %v434_v27 }
  0x3f   : > { %524 = vst.msk [vmem:[#allocation2 + $0x69] sm:$0xff] %vm460_vm1, %v435_v28  ;;  %525 = vst.msk [vmem:[#allocation2 + $0x79] sm:$0xff] %vm460_vm1, %v436_v31 }
  0x40   : > { %526 = vst.msk [vmem:[#allocation2 + $0x81] sm:$0xff] %vm460_vm1, %v437_v32  ;;  %527 = vst.msk [vmem:[#allocation2 + $0x91] sm:$0xff] %vm460_vm1, %v438_v33 }
  0x41   : > { %12249 = vst [vmem:[#allocation10_spill] sm:$0xff] %v9284_v38  ;;  %12250 = vst [vmem:[#allocation11_spill] sm:$0xff] %v9287_v39 }
  0x42   : > { %528 = vst.msk [vmem:[#allocation2 + $0x99] sm:$0xff] %vm460_vm1, %v439_v35  ;;  %529 = vst.msk [vmem:[#allocation2 + $0xa9] sm:$0xff] %vm460_vm1, %v440_v36  ;;  %v9304_v47 = vld [vmem:[#allocation2 + $0x18] sm:$0xff] }
  0x43   : > { %530 = vst.msk [vmem:[#allocation2 + $0xb1] sm:$0xff] %vm460_vm1, %v441_v37  ;;  %531 = vst.msk [vmem:[#allocation2 + $0xc1] sm:$0xff] %vm460_vm1, %v442_v40  ;;  %v9306_v48 = vld [vmem:[#allocation2 + $0x20] sm:$0xff]  ;;  %v9308_v49 = vld [vmem:[#allocation2 + $0x28] sm:$0x3]  ;;  %v674_v50 = vrot.slane %v9304_v47, 1 }
  0x44   : > { %532 = vst.msk [vmem:[#allocation2 + $0xc9] sm:$0xff] %vm460_vm1, %v443_v41  ;;  %533 = vst.msk [vmem:[#allocation2 + $0xd9] sm:$0xff] %vm460_vm1, %v444_v42  ;;  %v675_v51 = vrot.slane %v9306_v48, 1  ;;  %v677_v52 = vrot.slane %v9308_v49, 1  ;;  %v9316_v53 = vld [vmem:[#allocation2 + $0x30] sm:$0xff]  ;;  %v9321_v55 = vpack.c.bf16 %v9306_v48, %v9304_v47  ;;  %v9323_v56 = vld [vmem:[#allocation2 + $0x38] sm:$0xff] }
  0x45   : > { %534 = vst.msk [vmem:[#allocation2 + $0xe1] sm:$0xff] %vm460_vm1, %v445_v44  ;;  %535 = vst.msk [vmem:[#allocation2 + $0xf1] sm:$0xff] %vm460_vm1, %v446_v45  ;;  %v9325_v57 = vld [vmem:[#allocation2 + $0x40] sm:$0x3]  ;;  %v679_v58 = vrot.slane %v9316_v53, 1  ;;  %v680_v61 = vrot.slane %v9323_v56, 1  ;;  %v9345_v5 = vpack.c.bf16 %v9323_v56, %v9316_v53 }
  0x46   : > { %536 = vst.msk [vmem:[#allocation2 + $0xf9] sm:$0xff] %vm460_vm1, %v447_v46  ;;  %12251 = vst [vmem:[#allocation12_spill] sm:$0xff] %v9316_v53  ;;  %v676_v59 = vsel %vm668_vm4, %v674_v50, %v675_v51  ;;  %v678_v60 = vsel %vm668_vm4, %v675_v51, %v677_v52  ;;  %v682_v62 = vrot.slane %v9325_v57, 1  ;;  %v9333_v63 = vld [vmem:[#allocation2 + $0x48] sm:$0xff]  ;;  %v9335_v0 = vld [vmem:[#allocation2 + $0x50] sm:$0xff]  ;;  %8510 = vmatmul.mubr.msk.bf16.vlgmr.msra.gmra.mxu1 %vm460_vm1, %v9321_v55 }
  0x47   : > { %12252 = vst [vmem:[#allocation13_spill] sm:$0xff] %v9321_v55  ;;  %12253 = vst [vmem:[#allocation14_spill] sm:$0xff] %v9323_v56  ;;  %v9337_v1 = vld [vmem:[#allocation2 + $0x58] sm:$0x3]  ;;  %v9339_v2 = vpack.c.bf16 %v678_v60, %v676_v59  ;;  %v684_v6 = vrot.slane %v9333_v63, 1  ;;  %v685_v7 = vrot.slane %v9335_v0, 1  ;;  %v681_v12 = vsel %vm668_vm4, %v679_v58, %v680_v61  ;;  %8513 = vmatprep.mubr.msk.bf16.mxu1 %vm460_vm1, %v9345_v5 }
  0x48   : > { %12254 = vst [vmem:[#allocation15_spill] sm:$0xff] %v9325_v57  ;;  %537 = vst.msk [vmem:[#allocation2 + $0x109] sm:$0xff] %vm460_vm1, %v448_v54  ;;  %v9349_v8 = vld [vmem:[#allocation2 + $0x60] sm:$0xff]  ;;  %v9351_v9 = vld [vmem:[#allocation2 + $0x68] sm:$0xff]  ;;  %v683_v13 = vsel %vm668_vm4, %v680_v61, %v682_v62  ;;  %v687_v14 = vrot.slane %v9337_v1, 1  ;;  %v9382_v25 = vpack.c.bf16 %v9335_v0, %v9333_v63 }
  0x49   : > { %12255 = vst [vmem:[#allocation16_spill] sm:$0xff] %v9339_v2  ;;  %12256 = vst [vmem:[#allocation17_spill] sm:$0xff] %v9345_v5  ;;  %v9353_v11 = vld [vmem:[#allocation2 + $0x70] sm:$0x3]  ;;  %8476 = vmatmul.mubr.msk.bf16.vlgmr.msra.gmra.mxu0 %vm460_vm1, %v9339_v2  ;;  %v9360_v15 = vpack.c.bf16 %v683_v13, %v681_v12  ;;  %v689_v16 = vrot.slane %v9349_v8, 1  ;;  %v690_v17 = vrot.slane %v9351_v9, 1  ;;  %v686_v20 = vsel %vm668_vm4, %v684_v6, %v685_v7 }
  0x4a   : > { %v9366_v18 = vld [vmem:[#allocation2 + $0x78] sm:$0xff]  ;;  %v9368_v19 = vld [vmem:[#allocation2 + $0x80] sm:$0xff]  ;;  %8542 = vmatpush3.bf16.msra.mxu0 %v9252_v10  ;;  %v688_v21 = vsel %vm668_vm4, %v685_v7, %v687_v14  ;;  %v692_v22 = vrot.slane %v9353_v11, 1  ;;  %v9374_v23 = vld [vmem:[#allocation2 + $0x88] sm:$0x3]  ;;  %12258 = vst [vmem:[#allocation19_spill] sm:$0xff] %v9382_v25  ;;  %v9392_v29 = vpack.c.bf16 %v9351_v9, %v9349_v8 }
  0x4b   : > { %12257 = vst [vmem:[#allocation18_spill] sm:$0xff] %v9360_v15  ;;  %v9376_v24 = vld [vmem:[#allocation2 + $0x90] sm:$0xff]  ;;  %8479 = vmatprep.mubr.msk.bf16.mxu0 %vm460_vm1, %v9360_v15  ;;  %v691_v26 = vsel %vm668_vm4, %v689_v16, %v690_v17  ;;  %v9385_v10 = vld [vmem:[#allocation2 + $0x98] sm:$0xff]  ;;  %v9387_v27 = vld [vmem:[#allocation2 + $0xa0] sm:$0x3]  ;;  %v694_v30 = vrot.slane %v9366_v18, 1  ;;  %v9400_v34 = vpack.c.bf16 %v688_v21, %v686_v20  ;;  %v9444_v16 = vpack.c.bf16 %v9368_v19, %v9366_v18 }
  0x4c   : > { %v693_v28 = vsel %vm668_vm4, %v690_v17, %v692_v22  ;;  %12259 = vst [vmem:[#allocation20_spill] sm:$0xff] %v9392_v29  ;;  %v695_v31 = vrot.slane %v9368_v19, 1  ;;  %v9396_v32 = vld [vmem:[#allocation2 + $0xa8] sm:$0xff]  ;;  %v9398_v33 = vld [vmem:[#allocation2 + $0xb0] sm:$0xff]  ;;  %v697_v35 = vrot.slane %v9374_v23, 1  ;;  %v699_v36 = vrot.slane %v9376_v24, 1 }
  0x4d   : > { %12260 = vst [vmem:[#allocation21_spill] sm:$0xff] %v9400_v34  ;;  %v9404_v37 = vld [vmem:[#allocation2 + $0xb8] sm:$0x3]  ;;  %v9406_v40 = vld [vmem:[#allocation2 + $0xc0] sm:$0xff]  ;;  %v9408_v41 = vld [vmem:[#allocation2 + $0xc8] sm:$0xff]  ;;  %v9410_v42 = vpack.c.bf16 %v693_v28, %v691_v26  ;;  %v700_v44 = vrot.slane %v9385_v10, 1 }
  0x4e   : > { %v702_v45 = vrot.slane %v9387_v27, 1  ;;  %v9414_v46 = vld [vmem:[#allocation2 + $0xd0] sm:$0x3]  ;;  %v9416_v50 = vld [vmem:[#allocation2 + $0xd8] sm:$0xff]  ;;  %v9418_v51 = vld [vmem:[#allocation2 + $0xe0] sm:$0xff]  ;;  %8514 = vmatmul.mubr.msk.bf16.gmra.mxu1 %vm460_vm1, %v9382_v25  ;;  %v1233_v12 = vrot.slane %v9304_v47, 2  ;;  %v696_v14 = vsel %vm668_vm4, %v694_v30, %v695_v31  ;;  %v698_v21 = vsel %vm668_vm4, %v695_v31, %v697_v35 }
  0x4f   : > { %12261 = vst [vmem:[#allocation22_spill] sm:$0xff] %v9410_v42  ;;  %v9420_v52 = vld [vmem:[#allocation2 + $0xe8] sm:$0x3]  ;;  %v450_v58 = vld [vmem:[%s9238_s17 + $0xb0] sm:$0xff]  ;;  %v9428_v60 = vld [vmem:[#allocation2 + $0xf8] sm:$0xff]  ;;  %8517 = vmatprep.mubr.msk.bf16.mxu1 %vm460_vm1, %v9392_v29  ;;  %v704_v22 = vrot.slane %v9396_v32, 1  ;;  %v701_v31 = vsel %vm668_vm4, %v699_v36, %v700_v44 }
  0x50   : > { %v449_v54 = vld [vmem:[%s9238_s17 + $0xa8] sm:$0xff]  ;;  %v9426_v59 = vld [vmem:[#allocation2 + $0xf0] sm:$0xff]  ;;  %v9430_v61 = vld [vmem:[#allocation2 + $0x100] sm:$0x3]  ;;  %539 = vst.msk [vmem:[#allocation2 + $0x121] sm:$0xff] %vm460_vm1, %v450_v58  ;;  %v705_v26 = vrot.slane %v9398_v33, 1  ;;  %v703_v35 = vsel %vm668_vm4, %v700_v44, %v702_v45 }
  0x51   : > { %538 = vst.msk [vmem:[#allocation2 + $0x111] sm:$0xff] %vm460_vm1, %v449_v54  ;;  %v451_v62 = vld [vmem:[%s9238_s17 + $0xb8] sm:$0xff]  ;;  %v452_v6 = vld [vmem:[%s9238_s17 + $0xc0] sm:$0xff]  ;;  %v453_v7 = vld [vmem:[%s9238_s17 + $0xc8] sm:$0xff]  ;;  %8480 = vmatmul.mubr.msk.bf16.gmra.mxu0 %vm460_vm1, %v9400_v34  ;;  %v707_v28 = vrot.slane %v9404_v37, 1  ;;  %v709_v58 = vrot.slane %v9406_v40, 1  ;;  %v9494_v34 = vpack.c.bf16 %v703_v35, %v701_v31 }
  0x52   : > { %12262 = vst [vmem:[#allocation23_spill] sm:$0xff] %v9444_v16  ;;  %540 = vst.msk [vmem:[#allocation2 + $0x129] sm:$0xff] %vm460_vm1, %v451_v62  ;;  %v454_v17 = vld [vmem:[%s9238_s17 + $0xd0] sm:$0xff]  ;;  %v455_v47 = vld [vmem:[%s9238_s17 + $0xd8] sm:$0xff]  ;;  %8483 = vmatprep.mubr.msk.bf16.mxu0 %vm460_vm1, %v9410_v42  ;;  %v710_v62 = vrot.slane %v9408_v41, 1  ;;  %v715_v36 = vrot.slane %v9418_v51, 1  ;;  %v9492_v42 = vpack.c.bf16 %v698_v21, %v696_v14 }
  0x53   : > { %541 = vst.msk [vmem:[#allocation2 + $0x139] sm:$0xff] %vm460_vm1, %v452_v6  ;;  %542 = vst.msk [vmem:[#allocation2 + $0x141] sm:$0xff] %vm460_vm1, %v453_v7  ;;  %v456_v20 = vld [vmem:[%s9238_s17 + $0xe0] sm:$0xff]  ;;  %v457_v30 = vld [vmem:[%s9238_s17 + $0xe8] sm:$0xff]  ;;  %v717_v44 = vrot.slane %v9420_v52, 1  ;;  %v719_v3 = vrot.slane %v9426_v59, 1  ;;  %v708_v2 = vsel %vm668_vm4, %v705_v26, %v707_v28 }
  0x54   : > { %543 = vst.msk [vmem:[#allocation2 + $0x151] sm:$0xff] %vm460_vm1, %v454_v17  ;;  %544 = vst.msk [vmem:[#allocation2 + $0x159] sm:$0xff] %vm460_vm1, %v455_v47  ;;  %v7986_v54 = vld [vmem:[%s12199_s1 + $0x6] sm:$0x3]  ;;  %v8003_v6 = vld [vmem:[%s12199_s1 + $0x8] sm:$0x3]  ;;  %v711_v29 = vsel %vm668_vm4, %v709_v58, %v710_v62 }
  0x55   : > { %545 = vst.msk [vmem:[#allocation2 + $0x169] sm:$0xff] %vm460_vm1, %v456_v20  ;;  %546 = vst.msk [vmem:[#allocation2 + $0x171] sm:$0xff] %vm460_vm1, %v457_v30  ;;  %v458_v7 = vld [vmem:[%s9238_s17 + $0xf0] sm:$0xff]  ;;  %v459_v17 = vld [vmem:[%s9238_s17 + $0xf8] sm:$0xff]  ;;  %v712_v47 = vrot.slane %v9414_v46, 1  ;;  %v714_v20 = vrot.slane %v9416_v50, 1  ;;  %v9487_v30 = vpack.c.bf16 %v9385_v10, %v9376_v24  ;;  %v1609_v15 = vand.u32 %v7986_v54, %v9232_v4  ;;  %s426_s17 = scalar_lea.vmem %s12210_s12, %s12375_s24 }
  0x56   : > { %v9481_v45 = vld [vmem:[#allocation2 + $0x108] sm:$0xff]  ;;  %547 = vst.msk [vmem:[#allocation2 + $0x181] sm:$0xff] %vm460_vm1, %v458_v7  ;;  %548 = vst.msk [vmem:[#allocation2 + $0x189] sm:$0xff] %vm460_vm1, %v459_v17  ;;  %v720_v43 = vrot.slane %v9428_v60, 1  ;;  %v722_v13 = vrot.slane %v9430_v61, 1  ;;  %v9498_v7 = vand.u32 %v8003_v6, %v9232_v4  ;;  %v706_v17 = vsel %vm668_vm4, %v704_v22, %v705_v26  ;;  %8518 = vmatmul.mubr.msk.bf16.gmra.mxu1 %vm460_vm1, %v9444_v16 }
  0x57   : > { %12263 = vst [vmem:[#allocation24_spill] sm:$0xff] %v9487_v30  ;;  %12264 = vst [vmem:[#allocation25_spill] sm:$0xff] %v9492_v42  ;;  %v9507_v38 = vld [vmem:[#allocation2 + $0x120] sm:$0xff]  ;;  %v12267_v14 = vrot.slane %v9306_v48, 2  ;;  %v713_v54 = vsel %vm668_vm4, %v710_v62, %v712_v47  ;;  %v716_v22 = vsel %vm668_vm4, %v714_v20, %v715_v36  ;;  %v718_v26 = vsel %vm668_vm4, %v715_v36, %v717_v44 }
  0x58   : > { %12265 = vst [vmem:[#allocation26_spill] sm:$0xff] %v9494_v34  ;;  %12266 = vst [vmem:[#allocation27_spill] sm:$0xff] %v9498_v7  ;;  %v9503_v25 = vld [vmem:[#allocation2 + $0x110] sm:$0xff]  ;;  %v9505_v5 = vld [vmem:[#allocation2 + $0x118] sm:$0x3]  ;;  %8575 = vmatprep.subr.bf16.mxu1 %v1609_v15  ;;  %8521 = vmatprep.mubr.msk.bf16.mxu1 %vm460_vm1, %v9487_v30  ;;  %v721_v35 = vsel %vm668_vm4, %v719_v3, %v720_v43  ;;  %v724_v58 = vrot.slane %v9481_v45, 1  ;;  %v9553_v30 = vpack.c.bf16 %v708_v2, %v706_v17 }
  0x59   : > { %v1235_v21 = vsel %vm1227_vm5, %v1233_v12, %v12267_v14  ;;  %v9517_v28 = vld [vmem:[#allocation2 + $0x128] sm:$0xff]  ;;  %v9519_v31 = vld [vmem:[#allocation2 + $0x130] sm:$0x3]  ;;  %v723_v12 = vsel %vm668_vm4, %v720_v43, %v722_v13  ;;  %v725_v62 = vrot.slane %v9503_v25, 1  ;;  %8576 = vmatpush3.bf16.msra.mxu1 %v1609_v15  ;;  %8484 = vmatmul.mubr.msk.bf16.gmra.mxu0 %vm460_vm1, %v9492_v42  ;;  %v727_v6 = vrot.slane %v9505_v5, 1 }
  0x5a   : > { %12268 = vst [vmem:[#allocation28_spill] sm:$0xff] %v9519_v31  ;;  %v729_v47 = vrot.slane %v9507_v38, 1  ;;  %v730_v20 = vrot.slane %v9517_v28, 1  ;;  %v732_v36 = vrot.slane %v9519_v31, 1  ;;  %v9533_v44 = vld [vmem:[#allocation2 + $0x138] sm:$0xff]  ;;  %v9535_v3 = vld [vmem:[#allocation2 + $0x140] sm:$0xff]  ;;  %8609 = vmatprep.subr.bf16.mxu0 %v9498_v7  ;;  %8487 = vmatprep.mubr.msk.bf16.mxu0 %vm460_vm1, %v9494_v34  ;;  %v9543_v15 = vpack.c.bf16 %v9398_v33, %v9396_v32 }
  0x5b   : > { %v1236_v43 = vrot.slane %v9308_v49, 2  ;;  %v9547_v13 = vpack.c.bf16 %v9408_v41, %v9406_v40  ;;  %v9549_v14 = vld [vmem:[#allocation2 + $0x148] sm:$0x3]  ;;  %v9551_v42 = vld [vmem:[#allocation2 + $0x150] sm:$0xff]  ;;  %v9555_v16 = vpack.c.bf16 %v713_v54, %v711_v29  ;;  %v9559_v49 = vpack.c.bf16 %v9418_v51, %v9416_v50  ;;  %v9565_v7 = vld [vmem:[#allocation2 + $0x158] sm:$0xff] }
  0x5c   : > { %v9563_v34 = vpack.c.bf16 %v9428_v60, %v9426_v59  ;;  %v9567_v39 = vld [vmem:[#allocation2 + $0x160] sm:$0x3]  ;;  %v9569_v55 = vpack.c.bf16 %v718_v26, %v716_v22  ;;  %v9571_v57 = vpack.c.bf16 %v723_v12, %v721_v35  ;;  %v734_v2 = vrot.slane %v9533_v44, 1 }
  0x5d   : > { %v735_v29 = vrot.slane %v9535_v3, 1  ;;  %v726_v17 = vsel %vm668_vm4, %v724_v58, %v725_v62  ;;  %v728_v54 = vsel %vm668_vm4, %v725_v62, %v727_v6  ;;  %v731_v56 = vsel %vm668_vm4, %v729_v47, %v730_v20 }
  0x5e   : > { %v733_v53 = vsel %vm668_vm4, %v730_v20, %v732_v36  ;;  %v737_v4 = vrot.slane %v9549_v14, 1  ;;  %v739_v31 = vrot.slane %v9551_v42, 1  ;;  %v740_v22 = vrot.slane %v9565_v7, 1  ;;  %8522 = vmatmul.mubr.msk.bf16.gmra.mxu1 %vm460_vm1, %v9543_v15 }
  0x5f   : > { %v12269_v26 = vrot.slane %v9306_v48, 2  ;;  %v9589_v12 = vpack.c.bf16 %v9503_v25, %v9481_v45  ;;  %v9593_v58 = vpack.c.bf16 %v9517_v28, %v9507_v38  ;;  %v742_v62 = vrot.slane %v9567_v39, 1  ;;  %8525 = vmatprep.mubr.msk.bf16.mxu1 %vm460_vm1, %v9547_v13 }
  0x60   : > { %v9600_v48 = vpack.c.bf16 %v728_v54, %v726_v17  ;;  %v9602_v47 = vpack.c.bf16 %v733_v53, %v731_v56  ;;  %v9605_v20 = vsel %vm668_vm4, %v734_v2, %v735_v29  ;;  %v9609_v36 = vpack.c.bf16 %v9535_v3, %v9533_v44 }
  0x61   : > { %v1237_v35 = vsel %vm1227_vm5, %v12269_v26, %v1236_v43  ;;  %8488 = vmatmul.mubr.msk.bf16.gmra.mxu0 %vm460_vm1, %v9553_v30  ;;  %v1244_v43 = vrot.slane %v9335_v0, 2  ;;  %v1246_v26 = vrot.slane %v9337_v1, 2  ;;  %v1248_v17 = vrot.slane %v9349_v8, 2 }
  0x62   : > { %v9596_v6 = vpack.c.bf16 %v1237_v35, %v1235_v21  ;;  %v1243_v21 = vrot.slane %v9333_v63, 2  ;;  %8491 = vmatprep.mubr.msk.bf16.mxu0 %vm460_vm1, %v9555_v16  ;;  %v9620_v53 = vsel %vm668_vm4, %v735_v29, %v737_v4  ;;  %v9623_v56 = vsel %vm668_vm4, %v739_v31, %v740_v22 }
  0x63   : > { %v1249_v2 = vrot.slane %v9351_v9, 2  ;;  %v1251_v54 = vrot.slane %v9353_v11, 2  ;;  %v9628_v63 = vsel %vm668_vm4, %v740_v22, %v742_v62  ;;  %v1247_v1 = vsel %vm1227_vm5, %v1244_v43, %v1246_v26 }
  0x64   : > { %v1245_v0 = vsel %vm1227_vm5, %v1243_v21, %v1244_v43  ;;  %v1253_v8 = vrot.slane %v9366_v18, 2  ;;  %v1254_v29 = vrot.slane %v9368_v19, 2  ;;  %v1256_v11 = vrot.slane %v9374_v23, 2 }
  0x65   : > { %v9633_v35 = vpack.c.bf16 %v1247_v1, %v1245_v0  ;;  %v1250_v4 = vsel %vm1227_vm5, %v1248_v17, %v1249_v2  ;;  %v1252_v31 = vsel %vm1227_vm5, %v1249_v2, %v1251_v54  ;;  %v1258_v22 = vrot.slane %v9376_v24, 2 }
  0x66   : > { %v9638_v9 = vpack.c.bf16 %v1252_v31, %v1250_v4  ;;  %v1259_v62 = vrot.slane %v9385_v10, 2  ;;  %v1255_v21 = vsel %vm1227_vm5, %v1253_v8, %v1254_v29  ;;  %v1261_v18 = vrot.slane %v9387_v27, 2  ;;  %8526 = vmatmul.mubr.msk.bf16.gmra.mxu1 %vm460_vm1, %v9559_v49 }
  0x67   : > { %v1263_v43 = vrot.slane %v9396_v32, 2  ;;  %v1264_v26 = vrot.slane %v9398_v33, 2  ;;  %v1257_v19 = vsel %vm1227_vm5, %v1254_v29, %v1256_v11  ;;  %v1266_v23 = vrot.slane %v9404_v37, 2  ;;  %8529 = vmatprep.mubr.msk.bf16.mxu1 %vm460_vm1, %v9563_v34 }
  0x68   : > { %v1260_v17 = vsel %vm1227_vm5, %v1258_v22, %v1259_v62  ;;  %v1268_v24 = vrot.slane %v9406_v40, 2  ;;  %v9655_v10 = vpack.c.bf16 %v1257_v19, %v1255_v21  ;;  %v1262_v27 = vsel %vm1227_vm5, %v1259_v62, %v1261_v18 }
  0x69   : > { %v1265_v32 = vsel %vm1227_vm5, %v1263_v43, %v1264_v26  ;;  %v1269_v33 = vrot.slane %v9408_v41, 2  ;;  %8492 = vmatmul.mubr.msk.bf16.gmra.mxu0 %vm460_vm1, %v9569_v55  ;;  %v9662_v2 = vpack.c.bf16 %v1262_v27, %v1260_v17  ;;  %v1267_v37 = vsel %vm1227_vm5, %v1264_v26, %v1266_v23  ;;  %v12270_v26 = vld [vmem:[#allocation28_spill] sm:$0xff] }
  0x6a   : > { %v1271_v40 = vrot.slane %v9414_v46, 2  ;;  %v1273_v54 = vrot.slane %v9416_v50, 2  ;;  %8495 = vmatprep.mubr.msk.bf16.mxu0 %vm460_vm1, %v9571_v57  ;;  %v9669_v0 = vpack.c.bf16 %v1267_v37, %v1265_v32  ;;  %v1274_v41 = vrot.slane %v9418_v51, 2  ;;  %v596_v37 = vld [vmem:[#allocation2 + $0x178] sm:$0x3] }
  0x6b   : > { %v1270_v1 = vsel %vm1227_vm5, %v1268_v24, %v1269_v33  ;;  %v1276_v8 = vrot.slane %v9420_v52, 2  ;;  %v1278_v31 = vrot.slane %v9426_v59, 2  ;;  %v1279_v29 = vrot.slane %v9428_v60, 2  ;;  %v594_v24 = vld [vmem:[#allocation2 + $0x168] sm:$0xff] }
  0x6c   : > { %v1272_v4 = vsel %vm1227_vm5, %v1269_v33, %v1271_v40  ;;  %v1281_v46 = vrot.slane %v9430_v61, 2  ;;  %v1275_v11 = vsel %vm1227_vm5, %v1273_v54, %v1274_v41  ;;  %v1283_v62 = vrot.slane %v9481_v45, 2  ;;  %v595_v33 = vld [vmem:[#allocation2 + $0x170] sm:$0xff] }
  0x6d   : > { %v9678_v50 = vpack.c.bf16 %v1272_v4, %v1270_v1  ;;  %v1277_v22 = vsel %vm1227_vm5, %v1274_v41, %v1276_v8  ;;  %v1280_v51 = vsel %vm1227_vm5, %v1278_v31, %v1279_v29  ;;  %v1284_v59 = vrot.slane %v9503_v25, 2 }
  0x6e   : > { %v9683_v21 = vpack.c.bf16 %v1277_v22, %v1275_v11  ;;  %v1282_v52 = vsel %vm1227_vm5, %v1279_v29, %v1281_v46  ;;  %v1286_v60 = vrot.slane %v9505_v5, 2  ;;  %v1288_v61 = vrot.slane %v9507_v38, 2  ;;  %8530 = vmatmul.mubr.msk.bf16.gmra.mxu1 %vm460_vm1, %v9589_v12  ;;  %v8020_v29 = vld [vmem:[%s12199_s1 + $0xa] sm:$0x3] }
  0x6f   : > { %v9688_v18 = vpack.c.bf16 %v1282_v52, %v1280_v51  ;;  %v1289_v43 = vrot.slane %v9517_v28, 2  ;;  %v1285_v45 = vsel %vm1227_vm5, %v1283_v62, %v1284_v59  ;;  %v1291_v19 = vrot.slane %v12270_v26, 2  ;;  %8533 = vmatprep.mubr.msk.bf16.mxu1 %vm460_vm1, %v9593_v58 }
  0x70   : > { %v1293_v17 = vrot.slane %v9533_v44, 2  ;;  %v1294_v23 = vrot.slane %v9535_v3, 2  ;;  %v1287_v5 = vsel %vm1227_vm5, %v1284_v59, %v1286_v60  ;;  %v1296_v25 = vrot.slane %v9549_v14, 2 }
  0x71   : > { %v1290_v38 = vsel %vm1227_vm5, %v1288_v61, %v1289_v43  ;;  %v1298_v28 = vrot.slane %v9551_v42, 2  ;;  %8496 = vmatmul.mubr.msk.bf16.gmra.mxu0 %vm460_vm1, %v9600_v48  ;;  %v9707_v27 = vpack.c.bf16 %v1287_v5, %v1285_v45  ;;  %v1292_v44 = vsel %vm1227_vm5, %v1289_v43, %v1291_v19  ;;  %v12271_v61 = vld [vmem:[#allocation9_spill] sm:$0xff]  ;;  %v12272_v45 = vld [vmem:[#allocation12_spill] sm:$0xff]  ;;  %v12273_v19 = vld [vmem:[#allocation14_spill] sm:$0xff] }
  0x72   : > { %v1295_v3 = vsel %vm1227_vm5, %v1293_v17, %v1294_v23  ;;  %v1299_v32 = vrot.slane %v9565_v7, 2  ;;  %8499 = vmatprep.mubr.msk.bf16.mxu0 %vm460_vm1, %v9602_v47  ;;  %v9714_v14 = vpack.c.bf16 %v1292_v44, %v1290_v38  ;;  %v1297_v40 = vsel %vm1227_vm5, %v1294_v23, %v1296_v25  ;;  %v12274_v23 = vld [vmem:[#allocation15_spill] sm:$0xff]  ;;  %v12275_v38 = vld [vmem:[#allocation13_spill] sm:$0xff]  ;;  %v8054_v44 = vld [vmem:[%s12199_s1 + $0xe] sm:$0x3] }
  0x73   : > { %v1301_v54 = vrot.slane %v9567_v39, 2  ;;  %v1303_v1 = vrot.slane %v594_v24, 2  ;;  %v9718_v41 = vpack.c.bf16 %v1297_v40, %v1295_v3  ;;  %v1304_v4 = vrot.slane %v595_v33, 2  ;;  %v12276_v25 = vld [vmem:[#allocation11_spill] sm:$0xff] }
  0x74   : > { %v1300_v8 = vsel %vm1227_vm5, %v1298_v28, %v1299_v32  ;;  %v1306_v31 = vrot.slane %v596_v37, 2  ;;  %v9726_v46 = vpack.c.bf16 %v9620_v53, %v9605_v20  ;;  %v9730_v11 = vpack.c.bf16 %v9565_v7, %v9551_v42  ;;  %v12277_v28 = vld [vmem:[#allocation10_spill] sm:$0xff] }
  0x75   : > { %v744_v39 = vrot.slane %v594_v24, 1  ;;  %v1302_v22 = vsel %vm1227_vm5, %v1299_v32, %v1301_v54  ;;  %v745_v62 = vrot.slane %v595_v33, 1  ;;  %v1305_v52 = vsel %vm1227_vm5, %v1303_v1, %v1304_v4  ;;  %v12279_v54 = vld [vmem:[#allocation17_spill] sm:$0xff] }
  0x76   : > { %v9733_v51 = vpack.c.bf16 %v1302_v22, %v1300_v8  ;;  %v1307_v59 = vsel %vm1227_vm5, %v1304_v4, %v1306_v31  ;;  %v9739_v60 = vpack.c.bf16 %v9628_v63, %v9623_v56  ;;  %v747_v20 = vrot.slane %v596_v37, 1  ;;  %8534 = vmatmul.mubr.msk.bf16.gmra.mxu1 %vm460_vm1, %v9609_v36  ;;  %v12280_v8 = vld [vmem:[#allocation19_spill] sm:$0xff]  ;;  %v12282_v31 = vld [vmem:[#allocation20_spill] sm:$0xff] }
  0x77   : > { %v9741_v53 = vpack.c.bf16 %v1307_v59, %v1305_v52  ;;  %v2030_v42 = vand.u32 %v8020_v29, %v12271_v61  ;;  %8537 = vmatprep.mubr.msk.bf16.mxu1 %vm460_vm1, %v9730_v11  ;;  %v746_v7 = vsel %vm668_vm4, %v744_v39, %v745_v62  ;;  %v9754_v63 = vpack.c.bf16 %v595_v33, %v594_v24  ;;  %v8037_v33 = vld [vmem:[%s12199_s1 + $0xc] sm:$0x3]  ;;  %v12281_v4 = vld [vmem:[#allocation27_spill] sm:$0xff]  ;;  %v12284_v39 = vld [vmem:[#allocation24_spill] sm:$0xff] }
  0x78   : > { %v748_v56 = vsel %vm668_vm4, %v745_v62, %v747_v20  ;;  %v1238_v26 = vrot.slane %v12272_v45, 2  ;;  %v1239_v17 = vrot.slane %v12273_v19, 2  ;;  %v1241_v5 = vrot.slane %v12274_v23, 2  ;;  %v12283_v29 = vld [vmem:[#allocation23_spill] sm:$0xff]  ;;  %v597_v22 = vld [vmem:[#allocation2 + $0x180] sm:$0xff]  ;;  %v598_v62 = vld [vmem:[#allocation2 + $0x188] sm:$0xff] }
  0x79   : > { %8643 = vmatprep.subr.bf16.mxu1 %v2030_v42  ;;  %8500 = vmatmul.mubr.msk.bf16.gmra.mxu0 %vm460_vm1, %v9726_v46  ;;  %v9756_v43 = vpack.c.bf16 %v748_v56, %v746_v7  ;;  %v12278_v24 = vpack.c.bf16 %v12276_v25, %v12277_v28  ;;  %v2444_v37 = vand.u32 %v8054_v44, %v12271_v61  ;;  %v12285_v59 = vld [vmem:[#allocation16_spill] sm:$0xff]  ;;  %v8071_v20 = vld [vmem:[%s12199_s1 + $0x10] sm:$0x3]  ;;  %v12287_v7 = vld [vmem:[#allocation21_spill] sm:$0xff]  ;;  %v2016_v19 = vrot.slane %v597_v22, 2 }
  0x7a   : > { %8503 = vmatprep.mubr.msk.bf16.mxu0 %vm460_vm1, %v9739_v60  ;;  %v1240_v3 = vsel %vm1227_vm5, %v1238_v26, %v1239_v17  ;;  %v1242_v32 = vsel %vm1227_vm5, %v1239_v17, %v1241_v5  ;;  %v2232_v1 = vand.u32 %v8037_v33, %v12271_v61  ;;  %v9840_v52 = vpack.c.bf16 %v598_v62, %v597_v22  ;;  %v12289_v56 = vld [vmem:[#allocation25_spill] sm:$0xff]  ;;  %v12290_v45 = vld [vmem:[#allocation26_spill] sm:$0xff]  ;;  %v9913_v44 = vld [vmem:[#allocation2 + $0x198] sm:$0xff] }
  0x7b   : > { %v9780_v40 = vpack.c.bf16 %v1242_v32, %v1240_v3  ;;  %v599_v26 = vld [vmem:[#allocation2 + $0x190] sm:$0x3]  ;;  %v2017_v17 = vrot.slane %v598_v62, 2  ;;  %v1807_v5 = vrot.slane %v597_v22, 1  ;;  %v9915_v3 = vld [vmem:[#allocation2 + $0x1a0] sm:$0xff] }
  0x7c   : > { %v2019_v23 = vrot.slane %v599_v26, 2  ;;  %v1810_v25 = vrot.slane %v599_v26, 1  ;;  %v9925_v22 = vld [vmem:[#allocation2 + $0x1a8] sm:$0x3] }
  0x7d   : > { %v2018_v28 = vsel %vm1227_vm5, %v2016_v19, %v2017_v17 }
  0x7e   : > { %8538 = vmatmul.mubr.msk.bf16.gmra.mxu1 %vm460_vm1, %v9754_v63 }
  0x7f   : > { %8577 = vmatprep.mubr.msk.bf16.mxu1 %vm460_vm1, %v12275_v38  ;;  %v1808_v38 = vrot.slane %v598_v62, 1  ;;  %v2642_v62 = vrot.slane %v9925_v22, 2 }
  0x81   : > { %8504 = vmatmul.mubr.msk.bf16.gmra.mxu0 %vm460_vm1, %v9756_v43  ;;  %v1809_v32 = vsel %vm668_vm4, %v1807_v5, %v1808_v38  ;;  %v1811_v33 = vsel %vm668_vm4, %v1808_v38, %v1810_v25 }
  0x82   : > { %8543 = vmatprep.mubr.msk.bf16.mxu0 %vm460_vm1, %v12278_v24  ;;  %v2020_v24 = vsel %vm1227_vm5, %v2017_v17, %v2019_v23 }
  0x86   : > { %8578 = vmatmul.mubr.msk.bf16.vlgmr.msra.gmra.mxu1 %vm460_vm1, %v12279_v54 }
  0x87   : > { %8581 = vmatprep.mubr.msk.bf16.mxu1 %vm460_vm1, %v12280_v8  ;;  %8644 = vmatpush3.bf16.msra.mxu1 %v2030_v42  ;;  %v9856_v42 = vand.u32 %v8071_v20, %v12271_v61  ;;  %v12288_v61 = vld [vmem:[#allocation22_spill] sm:$0xff] }
  0x88   : > { %8711 = vmatprep.subr.bf16.mxu1 %v2444_v37 }
  0x89   : > { %8544 = vmatmul.mubr.msk.bf16.vlgmr.msra.gmra.mxu0 %vm460_vm1, %v9596_v6 }
  0x8a   : > { %8610 = vmatpush3.bf16.msra.mxu0 %v12281_v4  ;;  %8547 = vmatprep.mubr.msk.bf16.mxu0 %vm460_vm1, %v9780_v40  ;;  %v9923_v4 = vpack.c.bf16 %v2020_v24, %v2018_v28 }
  0x8b   : > { %8677 = vmatprep.subr.bf16.mxu0 %v2232_v1 }
  0x8e   : > { %8582 = vmatmul.mubr.msk.bf16.gmra.mxu1 %vm460_vm1, %v12282_v31 }
  0x8f   : > { %8585 = vmatprep.mubr.msk.bf16.mxu1 %vm460_vm1, %v12283_v29 }
  0x91   : > { %8548 = vmatmul.mubr.msk.bf16.gmra.mxu0 %vm460_vm1, %v9633_v35 }
  0x92   : > { %8551 = vmatprep.mubr.msk.bf16.mxu0 %vm460_vm1, %v9638_v9 }
  0x96   : > { %8586 = vmatmul.mubr.msk.bf16.gmra.mxu1 %vm460_vm1, %v12284_v39 }
  0x97   : > { %8589 = vmatprep.mubr.msk.bf16.mxu1 %vm460_vm1, %v9543_v15 }
  0x99   : > { %8552 = vmatmul.mubr.msk.bf16.gmra.mxu0 %vm460_vm1, %v9655_v10 }
  0x9a   : > { %8555 = vmatprep.mubr.msk.bf16.mxu0 %vm460_vm1, %v9662_v2 }
  0x9e   : > { %8590 = vmatmul.mubr.msk.bf16.gmra.mxu1 %vm460_vm1, %v9547_v13 }
  0x9f   : > { %8593 = vmatprep.mubr.msk.bf16.mxu1 %vm460_vm1, %v9559_v49 }
  0xa1   : > { %8556 = vmatmul.mubr.msk.bf16.gmra.mxu0 %vm460_vm1, %v9669_v0 }
  0xa2   : > { %8559 = vmatprep.mubr.msk.bf16.mxu0 %vm460_vm1, %v9678_v50 }
  0xa6   : > { %8594 = vmatmul.mubr.msk.bf16.gmra.mxu1 %vm460_vm1, %v9563_v34 }
  0xa7   : > { %8597 = vmatprep.mubr.msk.bf16.mxu1 %vm460_vm1, %v9589_v12 }
  0xa9   : > { %8560 = vmatmul.mubr.msk.bf16.gmra.mxu0 %vm460_vm1, %v9683_v21 }
  0xaa   : > { %8563 = vmatprep.mubr.msk.bf16.mxu0 %vm460_vm1, %v9688_v18 }
  0xae   : > { %8598 = vmatmul.mubr.msk.bf16.gmra.mxu1 %vm460_vm1, %v9593_v58 }
  0xaf   : > { %8601 = vmatprep.mubr.msk.bf16.mxu1 %vm460_vm1, %v9609_v36 }
  0xb1   : > { %8564 = vmatmul.mubr.msk.bf16.gmra.mxu0 %vm460_vm1, %v9707_v27 }
  0xb2   : > { %8567 = vmatprep.mubr.msk.bf16.mxu0 %vm460_vm1, %v9714_v14 }
  0xb6   : > { %8602 = vmatmul.mubr.msk.bf16.gmra.mxu1 %vm460_vm1, %v9730_v11 }
  0xb7   : > { %8605 = vmatprep.mubr.msk.bf16.mxu1 %vm460_vm1, %v9754_v63 }
  0xb9   : > { %8568 = vmatmul.mubr.msk.bf16.gmra.mxu0 %vm460_vm1, %v9718_v41 }
  0xba   : > { %8571 = vmatprep.mubr.msk.bf16.mxu0 %vm460_vm1, %v9733_v51 }
  0xbe   : > { %8606 = vmatmul.mubr.msk.bf16.gmra.mxu1 %vm460_vm1, %v9840_v52 }
  0xbf   : > { %8645 = vmatprep.mubr.msk.bf16.mxu1 %vm460_vm1, %v9596_v6  ;;  %v12286_v6 = vld [vmem:[#allocation18_spill] sm:$0xff] }
  0xc1   : > { %8572 = vmatmul.mubr.msk.bf16.gmra.mxu0 %vm460_vm1, %v9741_v53 }
  0xc2   : > { %8611 = vmatprep.mubr.msk.bf16.mxu0 %vm460_vm1, %v12285_v59  ;;  %v9928_v59 = vpack.c.bf16 %v1811_v33, %v1809_v32 }
  0xc6   : > { %8646 = vmatmul.mubr.msk.bf16.vlgmr.msra.gmra.mxu1 %vm460_vm1, %v9780_v40 }
  0xc7   : > { %8649 = vmatprep.mubr.msk.bf16.mxu1 %vm460_vm1, %v9633_v35  ;;  %8712 = vmatpush3.bf16.msra.mxu1 %v2444_v37  ;;  %v2639_v37 = vrot.slane %v9913_v44, 2 }
  0xc9   : > { %8612 = vmatmul.mubr.msk.bf16.vlgmr.msra.gmra.mxu0 %vm460_vm1, %v12286_v6 }
  0xca   : > { %8678 = vmatpush3.bf16.msra.mxu0 %v2232_v1  ;;  %8615 = vmatprep.mubr.msk.bf16.mxu0 %vm460_vm1, %v12287_v7  ;;  %v2640_v1 = vrot.slane %v9915_v3, 2 }
  0xcb   : > { %8745 = vmatprep.subr.bf16.mxu0 %v9856_v42 }
  0xcc   : > { %v9931_v20 = vsel %vm1227_vm5, %v2639_v37, %v2640_v1  ;;  %v9934_v26 = vsel %vm1227_vm5, %v2640_v1, %v2642_v62 }
  0xce   : > { %8650 = vmatmul.mubr.msk.bf16.gmra.mxu1 %vm460_vm1, %v9638_v9 }
  0xcf   : > { %8653 = vmatprep.mubr.msk.bf16.mxu1 %vm460_vm1, %v9655_v10 }
  0xd1   : > { %8616 = vmatmul.mubr.msk.bf16.gmra.mxu0 %vm460_vm1, %v12288_v61 }
  0xd2   : > { %8619 = vmatprep.mubr.msk.bf16.mxu0 %vm460_vm1, %v12289_v56 }
  0xd6   : > { %8654 = vmatmul.mubr.msk.bf16.gmra.mxu1 %vm460_vm1, %v9662_v2 }
  0xd7   : > { %8657 = vmatprep.mubr.msk.bf16.mxu1 %vm460_vm1, %v9669_v0 }
  0xd9   : > { %8620 = vmatmul.mubr.msk.bf16.gmra.mxu0 %vm460_vm1, %v12290_v45 }
  0xda   : > { %8623 = vmatprep.mubr.msk.bf16.mxu0 %vm460_vm1, %v9553_v30 }
  0xde   : > { %8658 = vmatmul.mubr.msk.bf16.gmra.mxu1 %vm460_vm1, %v9678_v50 }
  0xdf   : > { %8661 = vmatprep.mubr.msk.bf16.mxu1 %vm460_vm1, %v9683_v21 }
  0xe1   : > { %8624 = vmatmul.mubr.msk.bf16.gmra.mxu0 %vm460_vm1, %v9555_v16 }
  0xe2   : > { %8627 = vmatprep.mubr.msk.bf16.mxu0 %vm460_vm1, %v9569_v55 }
  0xe6   : > { %8662 = vmatmul.mubr.msk.bf16.gmra.mxu1 %vm460_vm1, %v9688_v18 }
  0xe7   : > { %8665 = vmatprep.mubr.msk.bf16.mxu1 %vm460_vm1, %v9707_v27 }
  0xe9   : > { %8628 = vmatmul.mubr.msk.bf16.gmra.mxu0 %vm460_vm1, %v9571_v57 }
  0xea   : > { %8631 = vmatprep.mubr.msk.bf16.mxu0 %vm460_vm1, %v9600_v48 }
  0xee   : > { %8666 = vmatmul.mubr.msk.bf16.gmra.mxu1 %vm460_vm1, %v9714_v14 }
  0xef   : > { %8669 = vmatprep.mubr.msk.bf16.mxu1 %vm460_vm1, %v9718_v41 }
  0xf1   : > { %8632 = vmatmul.mubr.msk.bf16.gmra.mxu0 %vm460_vm1, %v9602_v47 }
  0xf2   : > { %8635 = vmatprep.mubr.msk.bf16.mxu0 %vm460_vm1, %v9726_v46 }
  0xf6   : > { %8670 = vmatmul.mubr.msk.bf16.gmra.mxu1 %vm460_vm1, %v9733_v51 }
  0xf7   : > { %8673 = vmatprep.mubr.msk.bf16.mxu1 %vm460_vm1, %v9741_v53 }
  0xf9   : > { %8636 = vmatmul.mubr.msk.bf16.gmra.mxu0 %vm460_vm1, %v9739_v60 }
  0xfa   : > { %8639 = vmatprep.mubr.msk.bf16.mxu0 %vm460_vm1, %v9756_v43 }
  0xfe   : > { %8674 = vmatmul.mubr.msk.bf16.gmra.mxu1 %vm460_vm1, %v9923_v4 }
  0xff   : > { %8713 = vmatprep.mubr.msk.bf16.mxu1 %vm460_vm1, %v12286_v6 }
 0x101   : > { %8640 = vmatmul.mubr.msk.bf16.gmra.mxu0 %vm460_vm1, %v9928_v59 }
 0x102   : > { %8679 = vmatprep.mubr.msk.bf16.mxu0 %vm460_vm1, %v12279_v54 }
 0x106   : > { %v8511_v17 = vpop.f32.mrf.mxu1  ;;  %8714 = vmatmul.mubr.msk.bf16.vlgmr.msra.gmra.mxu1 %vm460_vm1, %v12287_v7 }
 0x107   : > { %8717 = vmatprep.mubr.msk.bf16.mxu1 %vm460_vm1, %v12288_v61 }
 0x108   : > { %v1100_v5 = vpop.f32.mrf.mxu1 }
 0x109   : > { %v8477_v23 = vpop.f32.mrf.mxu0  ;;  %8680 = vmatmul.mubr.msk.bf16.vlgmr.msra.gmra.mxu0 %vm460_vm1, %v12280_v8 }
 0x10a   : > { %v9952_v38 = vadd.f32 %v8511_v17, %v8477_v23  ;;  %8746 = vmatpush3.bf16.msra.mxu0 %v9856_v42  ;;  %8683 = vmatprep.mubr.msk.bf16.mxu0 %vm460_vm1, %v12282_v31  ;;  %v8512_v6 = vpop.f32.mrf.mxu1 }
 0x10b   : > { %v888_v54 = vpop.f32.mrf.mxu0 }
 0x10c   : > { %v9957_v25 = vadd.f32 %v1100_v5, %v888_v54  ;;  %v1103_v28 = vpop.f32.mrf.mxu1 }
 0x10d   : > { %v8478_v7 = vpop.f32.mrf.mxu0 }
 0x10e   : > { %v9959_v24 = vadd.f32 %v8512_v6, %v8478_v7  ;;  %v8515_v32 = vpop.f32.mrf.mxu1  ;;  %8718 = vmatmul.mubr.msk.bf16.gmra.mxu1 %vm460_vm1, %v12289_v56 }
 0x10f   : > { %v891_v61 = vpop.f32.mrf.mxu0  ;;  %8721 = vmatprep.mubr.msk.bf16.mxu1 %vm460_vm1, %v12290_v45 }
 0x110   : > { %v9963_v8 = vadd.f32 %v1103_v28, %v891_v61  ;;  %v1116_v31 = vpop.f32.mrf.mxu1 }
 0x111   : > { %v8481_v42 = vpop.f32.mrf.mxu0  ;;  %8684 = vmatmul.mubr.msk.bf16.gmra.mxu0 %vm460_vm1, %v12283_v29 }
 0x112   : > { %v9969_v33 = vadd.f32 %v8515_v32, %v8481_v42  ;;  %8687 = vmatprep.mubr.msk.bf16.mxu0 %vm460_vm1, %v12284_v39  ;;  %v8516_v1 = vpop.f32.mrf.mxu1 }
 0x113   : > { %v904_v37 = vpop.f32.mrf.mxu0 }
 0x114   : > { %v9973_v62 = vadd.f32 %v1116_v31, %v904_v37  ;;  %v1119_v17 = vpop.f32.mrf.mxu1 }
 0x115   : > { %v8482_v56 = vpop.f32.mrf.mxu0 }
 0x116   : > { %v9975_v23 = vadd.f32 %v8516_v1, %v8482_v56  ;;  %v8519_v45 = vpop.f32.mrf.mxu1  ;;  %8722 = vmatmul.mubr.msk.bf16.gmra.mxu1 %vm460_vm1, %v9553_v30 }
 0x117   : > { %v907_v5 = vpop.f32.mrf.mxu0  ;;  %8725 = vmatprep.mubr.msk.bf16.mxu1 %vm460_vm1, %v9555_v16 }
 0x118   : > { %v9979_v29 = vadd.f32 %v1119_v17, %v907_v5  ;;  %v1132_v39 = vpop.f32.mrf.mxu1 }
 0x119   : > { %v8485_v54 = vpop.f32.mrf.mxu0  ;;  %8688 = vmatmul.mubr.msk.bf16.gmra.mxu0 %vm460_vm1, %v9543_v15 }
 0x11a   : > { %v9985_v6 = vadd.f32 %v8519_v45, %v8485_v54  ;;  %8691 = vmatprep.mubr.msk.bf16.mxu0 %vm460_vm1, %v9547_v13  ;;  %v8520_v28 = vpop.f32.mrf.mxu1 }
 0x11b   : > { %v920_v7 = vpop.f32.mrf.mxu0 }
 0x11c   : > { %v9989_v61 = vadd.f32 %v1132_v39, %v920_v7  ;;  %v1135_v32 = vpop.f32.mrf.mxu1 }
 0x11d   : > { %v8486_v30 = vpop.f32.mrf.mxu0 }
 0x11e   : > { %v9991_v42 = vadd.f32 %v8520_v28, %v8486_v30  ;;  %v8523_v16 = vpop.f32.mrf.mxu1  ;;  %8726 = vmatmul.mubr.msk.bf16.gmra.mxu1 %vm460_vm1, %v9569_v55 }
 0x11f   : > { %v923_v31 = vpop.f32.mrf.mxu0  ;;  %8729 = vmatprep.mubr.msk.bf16.mxu1 %vm460_vm1, %v9571_v57 }
 0x120   : > { %v9995_v15 = vadd.f32 %v1135_v32, %v923_v31  ;;  %v1148_v13 = vpop.f32.mrf.mxu1 }
 0x121   : > { %v8489_v37 = vpop.f32.mrf.mxu0  ;;  %8692 = vmatmul.mubr.msk.bf16.gmra.mxu0 %vm460_vm1, %v9559_v49 }
 0x122   : > { %v10001_v1 = vadd.f32 %v8523_v16, %v8489_v37  ;;  %8695 = vmatprep.mubr.msk.bf16.mxu0 %vm460_vm1, %v9563_v34  ;;  %v8524_v17 = vpop.f32.mrf.mxu1 }
 0x123   : > { %v936_v56 = vpop.f32.mrf.mxu0 }
 0x124   : > { %v10005_v5 = vadd.f32 %v1148_v13, %v936_v56  ;;  %v1151_v45 = vpop.f32.mrf.mxu1 }
 0x125   : > { %v8490_v55 = vpop.f32.mrf.mxu0 }
 0x126   : > { %v10007_v54 = vadd.f32 %v8524_v17, %v8490_v55  ;;  %v8527_v57 = vpop.f32.mrf.mxu1  ;;  %8730 = vmatmul.mubr.msk.bf16.gmra.mxu1 %vm460_vm1, %v9600_v48 }
 0x127   : > { %v939_v39 = vpop.f32.mrf.mxu0  ;;  %8733 = vmatprep.mubr.msk.bf16.mxu1 %vm460_vm1, %v9602_v47 }
 0x128   : > { %v10011_v49 = vadd.f32 %v1151_v45, %v939_v39  ;;  %v1164_v34 = vpop.f32.mrf.mxu1  ;;  %v2430_v39 = vrot.slane %v9913_v44, 1 }
 0x129   : > { %v8493_v7 = vpop.f32.mrf.mxu0  ;;  %8696 = vmatmul.mubr.msk.bf16.gmra.mxu0 %vm460_vm1, %v9589_v12 }
 0x12a   : > { %v10017_v28 = vadd.f32 %v8527_v57, %v8493_v7  ;;  %8699 = vmatprep.mubr.msk.bf16.mxu0 %vm460_vm1, %v9593_v58  ;;  %v8528_v32 = vpop.f32.mrf.mxu1 }
 0x12b   : > { %v952_v30 = vpop.f32.mrf.mxu0 }
 0x12c   : > { %v10021_v31 = vadd.f32 %v1164_v34, %v952_v30  ;;  %v10023_v16 = vpop.f32.mrf.mxu1 }
 0x12d   : > { %v8494_v48 = vpop.f32.mrf.mxu0 }
 0x12e   : > { %v10025_v37 = vadd.f32 %v8528_v32, %v8494_v48  ;;  %v8531_v13 = vpop.f32.mrf.mxu1  ;;  %8734 = vmatmul.mubr.msk.bf16.gmra.mxu1 %vm460_vm1, %v9726_v46  ;;  %v2431_v46 = vrot.slane %v9915_v3, 1 }
 0x12f   : > { %v10027_v47 = vpop.f32.mrf.mxu0  ;;  %8737 = vmatprep.mubr.msk.bf16.mxu1 %vm460_vm1, %v9739_v60  ;;  %v2433_v60 = vrot.slane %v9925_v22, 1 }
 0x130   : > { %v1180_v58 = vpop.f32.mrf.mxu1 }
 0x131   : > { %v8497_v12 = vpop.f32.mrf.mxu0  ;;  %8700 = vmatmul.mubr.msk.bf16.gmra.mxu0 %vm460_vm1, %v9609_v36  ;;  %v2434_v32 = vsel %vm668_vm4, %v2431_v46, %v2433_v60 }
 0x132   : > { %v10035_v56 = vadd.f32 %v8531_v13, %v8497_v12  ;;  %8703 = vmatprep.mubr.msk.bf16.mxu0 %vm460_vm1, %v9730_v11  ;;  %v8532_v55 = vpop.f32.mrf.mxu1  ;;  %v2432_v11 = vsel %vm668_vm4, %v2430_v39, %v2431_v46  ;;  %v2225_v39 = vpack.c.bf16 %v9915_v3, %v9913_v44 }
 0x133   : > { %v968_v17 = vpop.f32.mrf.mxu0 }
 0x134   : > { %v10039_v45 = vadd.f32 %v1180_v58, %v968_v17  ;;  %v10044_v7 = vpop.f32.mrf.mxu1 }
 0x135   : > { %v8498_v57 = vpop.f32.mrf.mxu0 }
 0x136   : > { %v10046_v36 = vadd.f32 %v8532_v55, %v8498_v57  ;;  %v8535_v30 = vpop.f32.mrf.mxu1  ;;  %8738 = vmatmul.mubr.msk.bf16.gmra.mxu1 %vm460_vm1, %v9756_v43  ;;  %v2437_v43 = vpack.c.bf16 %v2434_v32, %v2432_v11 }
 0x137   : > { %v10048_v34 = vpop.f32.mrf.mxu0  ;;  %8741 = vmatprep.mubr.msk.bf16.mxu1 %vm460_vm1, %v9928_v59 }
 0x138   : > { %v1196_v22 = vpop.f32.mrf.mxu1 }
 0x139   : > { %v8501_v48 = vpop.f32.mrf.mxu0  ;;  %8704 = vmatmul.mubr.msk.bf16.gmra.mxu0 %vm460_vm1, %v9754_v63 }
 0x13a   : > { %v10058_v13 = vadd.f32 %v8535_v30, %v8501_v48  ;;  %8707 = vmatprep.mubr.msk.bf16.mxu0 %vm460_vm1, %v9840_v52  ;;  %v8536_v58 = vpop.f32.mrf.mxu1 }
 0x13b   : > { %v984_v12 = vpop.f32.mrf.mxu0 }
 0x13c   : > { %v10062_v17 = vadd.f32 %v1196_v22, %v984_v12  ;;  %v10064_v55 = vpop.f32.mrf.mxu1 }
 0x13d   : > { %v8502_v59 = vpop.f32.mrf.mxu0 }
 0x13e   : > { %v10068_v46 = vadd.f32 %v8536_v58, %v8502_v59  ;;  %v8539_v60 = vpop.f32.mrf.mxu1  ;;  %8742 = vmatmul.mubr.msk.bf16.gmra.mxu1 %vm460_vm1, %v2437_v43 }
 0x13f   : > { %v10070_v63 = vpop.f32.mrf.mxu0 }
 0x140   : > { %v1212_v52 = vpop.f32.mrf.mxu1 }
 0x141   : > { %v8505_v57 = vpop.f32.mrf.mxu0  ;;  %8708 = vmatmul.mubr.msk.bf16.gmra.mxu0 %vm460_vm1, %v2225_v39 }
 0x142   : > { %v10074_v30 = vadd.f32 %v8539_v60, %v8505_v57  ;;  %8747 = vmatprep.mubr.msk.bf16.mxu0 %vm460_vm1, %v9780_v40  ;;  %v8540_v32 = vpop.f32.mrf.mxu1 }
 0x143   : > { %v1000_v11 = vpop.f32.mrf.mxu0 }
 0x144   : > { %v10078_v48 = vadd.f32 %v1212_v52, %v1000_v11  ;;  %v10080_v3 = vpop.f32.mrf.mxu1 }
 0x145   : > { %v8506_v44 = vpop.f32.mrf.mxu0  ;;  %12291 = vst [vmem:[#allocation28_spill] sm:$0xff] %v10080_v3 }
 0x146   : > { %v10082_v22 = vadd.f32 %v8540_v32, %v8506_v44  ;;  %v8579_v58 = vpop.f32.mrf.mxu1 }
 0x147   : > { %v10084_v12 = vpop.f32.mrf.mxu0 }
 0x148   : > { %v1645_v59 = vpop.f32.mrf.mxu1 }
 0x149   : > { %v8545_v43 = vpop.f32.mrf.mxu0  ;;  %8748 = vmatmul.mubr.msk.bf16.vlgmr.msra.gmra.mxu0 %vm460_vm1, %v9633_v35 }
 0x14a   : > { %v1572_v39 = vadd.f32 %v8545_v43, %v9952_v38  ;;  %8751 = vmatprep.mubr.msk.bf16.mxu0 %vm460_vm1, %v9638_v9  ;;  %v8580_v60 = vpop.f32.mrf.mxu1 }
 0x14b   : > { %v1443_v40 = vpop.f32.mrf.mxu0 }
 0x14c   : > { %v1570_v57 = vadd.f32 %v1443_v40, %v9957_v25  ;;  %v10092_v52 = vadd.f32 %v8579_v58, %v1572_v39  ;;  %v10094_v32 = vpop.f32.mrf.mxu1 }
 0x14d   : > { %v8546_v11 = vpop.f32.mrf.mxu0  ;;  %12292 = vst [vmem:[#allocation9_spill] sm:$0xff] %v10094_v32 }
 0x14e   : > { %v1573_v44 = vadd.f32 %v8546_v11, %v9959_v24  ;;  %v10097_v19 = vadd.f32 %v1645_v59, %v1570_v57  ;;  %v8583_v3 = vpop.f32.mrf.mxu1 }
 0x14f   : > { %v1446_v35 = vpop.f32.mrf.mxu0 }
 0x150   : > { %v10100_v38 = vadd.f32 %v1446_v35, %v9963_v8  ;;  %v10102_v43 = vadd.f32 %v8580_v60, %v1573_v44  ;;  %v1661_v25 = vpop.f32.mrf.mxu1 }
 0x151   : > { %v8549_v9 = vpop.f32.mrf.mxu0  ;;  %8752 = vmatmul.mubr.msk.bf16.gmra.mxu0 %vm460_vm1, %v9655_v10 }
 0x152   : > { %v1576_v58 = vadd.f32 %v8549_v9, %v9969_v33  ;;  %8755 = vmatprep.mubr.msk.bf16.mxu0 %vm460_vm1, %v9662_v2  ;;  %v8584_v59 = vpop.f32.mrf.mxu1 }
 0x153   : > { %v1459_v24 = vpop.f32.mrf.mxu0 }
 0x154   : > { %v1574_v39 = vadd.f32 %v1459_v24, %v9973_v62  ;;  %v10110_v40 = vadd.f32 %v8583_v3, %v1576_v58  ;;  %v10112_v57 = vpop.f32.mrf.mxu1 }
 0x155   : > { %v8550_v8 = vpop.f32.mrf.mxu0  ;;  %12293 = vst [vmem:[#allocation12_spill] sm:$0xff] %v10112_v57 }
 0x156   : > { %v1577_v60 = vadd.f32 %v8550_v8, %v9975_v23  ;;  %v10115_v11 = vadd.f32 %v1661_v25, %v1574_v39  ;;  %v8587_v44 = vpop.f32.mrf.mxu1 }
 0x157   : > { %v1462_v10 = vpop.f32.mrf.mxu0 }
 0x158   : > { %v10118_v33 = vadd.f32 %v1462_v10, %v9979_v29  ;;  %v10120_v35 = vadd.f32 %v8584_v59, %v1577_v60  ;;  %v1677_v62 = vpop.f32.mrf.mxu1 }
 0x159   : > { %v8553_v2 = vpop.f32.mrf.mxu0  ;;  %8756 = vmatmul.mubr.msk.bf16.gmra.mxu0 %vm460_vm1, %v9669_v0 }
 0x15a   : > { %12294 = vst [vmem:[#allocation14_spill] sm:$0xff] %v10118_v33  ;;  %v1580_v3 = vadd.f32 %v8553_v2, %v9985_v6  ;;  %8759 = vmatprep.mubr.msk.bf16.mxu0 %vm460_vm1, %v9678_v50  ;;  %v8588_v9 = vpop.f32.mrf.mxu1 }
 0x15b   : > { %v1475_v23 = vpop.f32.mrf.mxu0 }
 0x15c   : > { %v1578_v25 = vadd.f32 %v1475_v23, %v9989_v61  ;;  %v10128_v58 = vadd.f32 %v8587_v44, %v1580_v3  ;;  %v10130_v24 = vpop.f32.mrf.mxu1 }
 0x15d   : > { %v8554_v29 = vpop.f32.mrf.mxu0 }
 0x15e   : > { %v1581_v59 = vadd.f32 %v8554_v29, %v9991_v42  ;;  %v10133_v39 = vadd.f32 %v1677_v62, %v1578_v25  ;;  %v8591_v8 = vpop.f32.mrf.mxu1 }
 0x15f   : > { %v1478_v0 = vpop.f32.mrf.mxu0 }
 0x160   : > { %v10136_v6 = vadd.f32 %v1478_v0, %v9995_v15  ;;  %v10138_v60 = vadd.f32 %v8588_v9, %v1581_v59  ;;  %v1693_v61 = vpop.f32.mrf.mxu1 }
 0x161   : > { %v8557_v50 = vpop.f32.mrf.mxu0  ;;  %8760 = vmatmul.mubr.msk.bf16.gmra.mxu0 %vm460_vm1, %v9683_v21 }
 0x162   : > { %v1584_v10 = vadd.f32 %v8557_v50, %v10001_v1  ;;  %8763 = vmatprep.mubr.msk.bf16.mxu0 %vm460_vm1, %v9688_v18  ;;  %v8592_v44 = vpop.f32.mrf.mxu1 }
 0x163   : > { %v1491_v42 = vpop.f32.mrf.mxu0 }
 0x164   : > { %v1582_v2 = vadd.f32 %v1491_v42, %v10005_v5  ;;  %v10146_v62 = vadd.f32 %v8591_v8, %v1584_v10  ;;  %v10148_v3 = vpop.f32.mrf.mxu1 }
 0x165   : > { %v8558_v15 = vpop.f32.mrf.mxu0 }
 0x166   : > { %v1585_v23 = vadd.f32 %v8558_v15, %v10007_v54  ;;  %v10151_v9 = vadd.f32 %v1693_v61, %v1582_v2  ;;  %v8595_v25 = vpop.f32.mrf.mxu1 }
 0x167   : > { %v1494_v21 = vpop.f32.mrf.mxu0 }
 0x168   : > { %v10154_v1 = vadd.f32 %v1494_v21, %v10011_v49  ;;  %v10156_v29 = vadd.f32 %v8592_v44, %v1585_v23  ;;  %v1709_v5 = vpop.f32.mrf.mxu1 }
 0x169   : > { %v8561_v18 = vpop.f32.mrf.mxu0  ;;  %8764 = vmatmul.mubr.msk.bf16.gmra.mxu0 %vm460_vm1, %v9707_v27 }
 0x16a   : > { %v1588_v59 = vadd.f32 %v8561_v18, %v10017_v28  ;;  %8767 = vmatprep.mubr.msk.bf16.mxu0 %vm460_vm1, %v9714_v14  ;;  %v8596_v0 = vpop.f32.mrf.mxu1 }
 0x16b   : > { %v1507_v54 = vpop.f32.mrf.mxu0 }
 0x16c   : > { %v1586_v8 = vadd.f32 %v1507_v54, %v10021_v31  ;;  %v10164_v50 = vadd.f32 %v8595_v25, %v1588_v59  ;;  %v10166_v61 = vpop.f32.mrf.mxu1 }
 0x16d   : > { %v8562_v49 = vpop.f32.mrf.mxu0 }
 0x16e   : > { %v1589_v10 = vadd.f32 %v8562_v49, %v10025_v37  ;;  %v10169_v42 = vadd.f32 %v1709_v5, %v1586_v8  ;;  %v8599_v44 = vpop.f32.mrf.mxu1 }
 0x16f   : > { %v10171_v27 = vpop.f32.mrf.mxu0 }
 0x170   : > { %v10173_v28 = vadd.f32 %v8596_v0, %v1589_v10  ;;  %v1725_v14 = vpop.f32.mrf.mxu1 }
 0x171   : > { %v8565_v2 = vpop.f32.mrf.mxu0  ;;  %8768 = vmatmul.mubr.msk.bf16.gmra.mxu0 %vm460_vm1, %v9718_v41 }
 0x172   : > { %v1592_v31 = vadd.f32 %v8565_v2, %v10035_v56  ;;  %8771 = vmatprep.mubr.msk.bf16.mxu0 %vm460_vm1, %v9733_v51  ;;  %v8600_v23 = vpop.f32.mrf.mxu1 }
 0x173   : > { %v1523_v15 = vpop.f32.mrf.mxu0 }
 0x174   : > { %v1590_v37 = vadd.f32 %v1523_v15, %v10039_v45  ;;  %v10181_v21 = vadd.f32 %v8599_v44, %v1592_v31  ;;  %v10183_v18 = vpop.f32.mrf.mxu1 }
 0x175   : > { %v8566_v25 = vpop.f32.mrf.mxu0 }
 0x176   : > { %v1593_v5 = vadd.f32 %v8566_v25, %v10046_v36  ;;  %v10186_v59 = vadd.f32 %v1725_v14, %v1590_v37  ;;  %v8603_v54 = vpop.f32.mrf.mxu1 }
 0x177   : > { %v10188_v41 = vpop.f32.mrf.mxu0 }
 0x178   : > { %v10190_v56 = vadd.f32 %v8600_v23, %v1593_v5  ;;  %v1741_v51 = vpop.f32.mrf.mxu1 }
 0x179   : > { %v8569_v0 = vpop.f32.mrf.mxu0  ;;  %8772 = vmatmul.mubr.msk.bf16.gmra.mxu0 %vm460_vm1, %v9741_v53 }
 0x17a   : > { %v1596_v45 = vadd.f32 %v8569_v0, %v10058_v13  ;;  %8775 = vmatprep.mubr.msk.bf16.mxu0 %vm460_vm1, %v9923_v4  ;;  %v8604_v49 = vpop.f32.mrf.mxu1  ;;  %v12295_v4 = vpack.c.bf16 %v9934_v26, %v9931_v20 }
 0x17b   : > { %v1539_v8 = vpop.f32.mrf.mxu0 }
 0x17c   : > { %v1594_v36 = vadd.f32 %v1539_v8, %v10062_v17  ;;  %v10198_v10 = vadd.f32 %v8603_v54, %v1596_v45  ;;  %v10200_v2 = vpop.f32.mrf.mxu1 }
 0x17d   : > { %v8570_v44 = vpop.f32.mrf.mxu0 }
 0x17e   : > { %v1597_v14 = vadd.f32 %v8570_v44, %v10068_v46  ;;  %v10203_v31 = vadd.f32 %v1741_v51, %v1594_v36  ;;  %v8607_v15 = vpop.f32.mrf.mxu1 }
 0x17f   : > { %v10205_v53 = vpop.f32.mrf.mxu0 }
 0x180   : > { %v10207_v13 = vadd.f32 %v8604_v49, %v1597_v14  ;;  %v1757_v17 = vpop.f32.mrf.mxu1 }
 0x181   : > { %v8573_v23 = vpop.f32.mrf.mxu0  ;;  %8776 = vmatmul.mubr.msk.bf16.gmra.mxu0 %vm460_vm1, %v12295_v4  ;;  %vm6044_vm1 = vcmask 123904  }
 0x182   : > { %v1600_v37 = vadd.f32 %v8573_v23, %v10074_v30  ;;  %v8608_v5 = vpop.f32.mrf.mxu1 }
 0x183   : > { %v1555_v25 = vpop.f32.mrf.mxu0 }
 0x184   : > { %v1598_v46 = vadd.f32 %v1555_v25, %v10078_v48  ;;  %v10215_v54 = vadd.f32 %v8607_v15, %v1600_v37  ;;  %v10217_v51 = vpop.f32.mrf.mxu1 }
 0x185   : > { %v8574_v0 = vpop.f32.mrf.mxu0  ;;  %12296 = vst [vmem:[#allocation15_spill] sm:$0xff] %v10217_v51 }
 0x186   : > { %v1601_v45 = vadd.f32 %v8574_v0, %v10082_v22  ;;  %v10220_v8 = vadd.f32 %v1757_v17, %v1598_v46  ;;  %v10224_v20 = vpop.f32.mrf.mxu1 }
 0x187   : > { %v10222_v49 = vpop.f32.mrf.mxu0  ;;  %12297 = vst [vmem:[#allocation13_spill] sm:$0xff] %v10224_v20 }
 0x188   : > { %v10226_v26 = vadd.f32 %v8608_v5, %v1601_v45  ;;  %v10228_v36 = vpop.f32.mrf.mxu1 }
 0x189   : > { %v8613_v30 = vpop.f32.mrf.mxu0  ;;  %12298 = vst [vmem:[#allocation11_spill] sm:$0xff] %v10228_v36 }
 0x18a   : > { %v10231_v48 = vadd.f32 %v8613_v30, %v10092_v52  ;;  %v10233_v14 = vpop.f32.mrf.mxu1  ;;  %v12305_v30 = vmov 0.0  }
 0x18b   : > { %v1857_v44 = vpop.f32.mrf.mxu0  ;;  %12300 = vst [vmem:[#allocation17_spill] sm:$0xff] %v10233_v14  ;;  %4753 = vst.msk [vmem:[#allocation3 + $0x8] sm:$0x3] %vm3662_vm6, %v12305_v30 }
 0x18c   : > { %12299 = vst [vmem:[#allocation10_spill] sm:$0xff] %v10231_v48  ;;  %v10236_v15 = vadd.f32 %v1857_v44, %v10097_v19  ;;  %v10238_v23 = vpop.f32.mrf.mxu1  ;;  %4755 = vst.msk [vmem:[#allocation3 + $0x18] sm:$0x3] %vm3662_vm6, %v12305_v30 }
 0x18d   : > { %v8614_v22 = vpop.f32.mrf.mxu0  ;;  %12302 = vst [vmem:[#allocation27_spill] sm:$0xff] %v10238_v23  ;;  %4757 = vst.msk [vmem:[#allocation3 + $0x28] sm:$0x3] %vm3662_vm6, %v12305_v30 }
 0x18e   : > { %12301 = vst [vmem:[#allocation19_spill] sm:$0xff] %v10236_v15  ;;  %v10241_v4 = vadd.f32 %v8614_v22, %v10102_v43  ;;  %v8651_v37 = vpop.f32.mrf.mxu1  ;;  %4759 = vst.msk [vmem:[#allocation3 + $0x38] sm:$0x3] %vm3662_vm6, %v12305_v30 }
 0x18f   : > { %v10243_v17 = vpop.f32.mrf.mxu0  ;;  %4761 = vst.msk [vmem:[#allocation3 + $0x48] sm:$0x3] %vm3662_vm6, %v12305_v30  ;;  %4763 = vst.msk [vmem:[#allocation3 + $0x58] sm:$0x3] %vm3662_vm6, %v12305_v30 }
 0x190   : > { %12303 = vst [vmem:[#allocation20_spill] sm:$0xff] %v10241_v4  ;;  %12304 = vst [vmem:[#allocation23_spill] sm:$0xff] %v10243_v17  ;;  %v2082_v5 = vpop.f32.mrf.mxu1 }
 0x191   : > { %v8617_v25 = vpop.f32.mrf.mxu0  ;;  %4765 = vst.msk [vmem:[#allocation3 + $0x68] sm:$0x3] %vm3662_vm6, %v12305_v30  ;;  %4767 = vst.msk [vmem:[#allocation3 + $0x78] sm:$0x3] %vm3662_vm6, %v12305_v30 }
 0x192   : > { %v1990_v52 = vadd.f32 %v8617_v25, %v10110_v40  ;;  %v8652_v0 = vpop.f32.mrf.mxu1  ;;  %4769 = vst.msk [vmem:[#allocation3 + $0x88] sm:$0x3] %vm3662_vm6, %v12305_v30  ;;  %4771 = vst.msk [vmem:[#allocation3 + $0x98] sm:$0x3] %vm3662_vm6, %v12305_v30 }
 0x193   : > { %v1873_v46 = vpop.f32.mrf.mxu0  ;;  %4752 = vst.msk [vmem:[#allocation3] sm:$0xff] %vm4559_vm7, %v12305_v30  ;;  %4754 = vst.msk [vmem:[#allocation3 + $0x10] sm:$0xff] %vm4559_vm7, %v12305_v30 }
 0x194   : > { %v1988_v45 = vadd.f32 %v1873_v46, %v10115_v11  ;;  %v10247_v19 = vadd.f32 %v8651_v37, %v1990_v52  ;;  %v10269_v40 = vpop.f32.mrf.mxu1  ;;  %4756 = vst.msk [vmem:[#allocation3 + $0x20] sm:$0xff] %vm4559_vm7, %v12305_v30  ;;  %4758 = vst.msk [vmem:[#allocation3 + $0x30] sm:$0xff] %vm4559_vm7, %v12305_v30 }
 0x195   : > { %v8618_v43 = vpop.f32.mrf.mxu0  ;;  %12306 = vst [vmem:[#allocation24_spill] sm:$0xff] %v10269_v40  ;;  %4760 = vst.msk [vmem:[#allocation3 + $0x40] sm:$0xff] %vm4559_vm7, %v12305_v30 }
 0x196   : > { %v1991_v11 = vadd.f32 %v8618_v43, %v10120_v35  ;;  %v10272_v44 = vadd.f32 %v2082_v5, %v1988_v45  ;;  %v8655_v37 = vpop.f32.mrf.mxu1  ;;  %4762 = vst.msk [vmem:[#allocation3 + $0x50] sm:$0xff] %vm4559_vm7, %v12305_v30  ;;  %4764 = vst.msk [vmem:[#allocation3 + $0x60] sm:$0xff] %vm4559_vm7, %v12305_v30 }
 0x197   : > { %v10274_v22 = vpop.f32.mrf.mxu0  ;;  %4766 = vst.msk [vmem:[#allocation3 + $0x70] sm:$0xff] %vm4559_vm7, %v12305_v30  ;;  %4768 = vst.msk [vmem:[#allocation3 + $0x80] sm:$0xff] %vm4559_vm7, %v12305_v30 }
 0x198   : > { %12307 = vst [vmem:[#allocation16_spill] sm:$0xff] %v10274_v22  ;;  %v10276_v25 = vadd.f32 %v8652_v0, %v1991_v11  ;;  %v2098_v46 = vpop.f32.mrf.mxu1  ;;  %4770 = vst.msk [vmem:[#allocation3 + $0x90] sm:$0xff] %vm4559_vm7, %v12305_v30 }
 0x199   : > { %v8621_v52 = vpop.f32.mrf.mxu0 }
 0x19a   : > { %v1994_v23 = vadd.f32 %v8621_v52, %v10128_v58  ;;  %v8656_v4 = vpop.f32.mrf.mxu1 }
 0x19b   : > { %v1889_v14 = vpop.f32.mrf.mxu0 }
 0x19c   : > { %v1992_v36 = vadd.f32 %v1889_v14, %v10133_v39  ;;  %v10280_v15 = vadd.f32 %v8655_v37, %v1994_v23  ;;  %v10282_v20 = vpop.f32.mrf.mxu1 }
 0x19d   : > { %v8622_v40 = vpop.f32.mrf.mxu0 }
 0x19e   : > { %v1995_v35 = vadd.f32 %v8622_v40, %v10138_v60  ;;  %v10285_v5 = vadd.f32 %v2098_v46, %v1992_v36  ;;  %v8659_v0 = vpop.f32.mrf.mxu1 }
 0x19f   : > { %v10287_v45 = vpop.f32.mrf.mxu0 }
 0x1a0   : > { %12308 = vst [vmem:[#allocation18_spill] sm:$0xff] %v10285_v5  ;;  %v10289_v43 = vadd.f32 %v8656_v4, %v1995_v35  ;;  %v2114_v11 = vpop.f32.mrf.mxu1 }
 0x1a1   : > { %v8625_v58 = vpop.f32.mrf.mxu0 }
 0x1a2   : > { %v1998_v39 = vadd.f32 %v8625_v58, %v10146_v62  ;;  %v8660_v36 = vpop.f32.mrf.mxu1 }
 0x1a3   : > { %v1905_v60 = vpop.f32.mrf.mxu0 }
 0x1a4   : > { %v1996_v14 = vadd.f32 %v1905_v60, %v10151_v9  ;;  %v10313_v23 = vadd.f32 %v8659_v0, %v1998_v39  ;;  %v10315_v40 = vpop.f32.mrf.mxu1 }
 0x1a5   : > { %v8626_v4 = vpop.f32.mrf.mxu0 }
 0x1a6   : > { %v1999_v37 = vadd.f32 %v8626_v4, %v10156_v29  ;;  %v10318_v52 = vadd.f32 %v2114_v11, %v1996_v14  ;;  %v8663_v35 = vpop.f32.mrf.mxu1 }
 0x1a7   : > { %v10320_v46 = vpop.f32.mrf.mxu0 }
 0x1a8   : > { %v10322_v5 = vadd.f32 %v8660_v36, %v1999_v37  ;;  %v2130_v62 = vpop.f32.mrf.mxu1 }
 0x1a9   : > { %v8629_v30 = vpop.f32.mrf.mxu0 }
 0x1aa   : > { %v2002_v58 = vadd.f32 %v8629_v30, %v10164_v50  ;;  %v8664_v9 = vpop.f32.mrf.mxu1 }
 0x1ab   : > { %v1921_v48 = vpop.f32.mrf.mxu0 }
 0x1ac   : > { %v2000_v0 = vadd.f32 %v1921_v48, %v10169_v42  ;;  %v10326_v39 = vadd.f32 %v8663_v35, %v2002_v58  ;;  %v10328_v22 = vpop.f32.mrf.mxu1 }
 0x1ad   : > { %v8630_v60 = vpop.f32.mrf.mxu0 }
 0x1ae   : > { %v2003_v29 = vadd.f32 %v8630_v60, %v10173_v28  ;;  %v10331_v11 = vadd.f32 %v2130_v62, %v2000_v0  ;;  %v8667_v36 = vpop.f32.mrf.mxu1 }
 0x1af   : > { %v10333_v14 = vpop.f32.mrf.mxu0 }
 0x1b0   : > { %v10335_v4 = vadd.f32 %v8664_v9, %v2003_v29  ;;  %v2146_v50 = vpop.f32.mrf.mxu1 }
 0x1b1   : > { %v8633_v37 = vpop.f32.mrf.mxu0 }
 0x1b2   : > { %v2006_v30 = vadd.f32 %v8633_v37, %v10181_v21  ;;  %v8668_v42 = vpop.f32.mrf.mxu1 }
 0x1b3   : > { %v1937_v51 = vpop.f32.mrf.mxu0 }
 0x1b4   : > { %v2004_v48 = vadd.f32 %v1937_v51, %v10186_v59  ;;  %v10339_v35 = vadd.f32 %v8667_v36, %v2006_v30  ;;  %v10341_v17 = vpop.f32.mrf.mxu1 }
 0x1b5   : > { %v8634_v58 = vpop.f32.mrf.mxu0 }
 0x1b6   : > { %v2007_v28 = vadd.f32 %v8634_v58, %v10190_v56  ;;  %v10344_v62 = vadd.f32 %v2146_v50, %v2004_v48  ;;  %v8671_v9 = vpop.f32.mrf.mxu1 }
 0x1b7   : > { %v10346_v0 = vpop.f32.mrf.mxu0 }
 0x1b8   : > { %v10348_v60 = vadd.f32 %v8668_v42, %v2007_v28  ;;  %v2162_v21 = vpop.f32.mrf.mxu1 }
 0x1b9   : > { %v8637_v29 = vpop.f32.mrf.mxu0 }
 0x1ba   : > { %v2010_v37 = vadd.f32 %v8637_v29, %v10198_v10  ;;  %v8672_v59 = vpop.f32.mrf.mxu1 }
 0x1bb   : > { %v1953_v57 = vpop.f32.mrf.mxu0 }
 0x1bc   : > { %v2008_v51 = vadd.f32 %v1953_v57, %v10203_v31  ;;  %v10352_v36 = vadd.f32 %v8671_v9, %v2010_v37  ;;  %v10354_v33 = vpop.f32.mrf.mxu1 }
 0x1bd   : > { %v8638_v30 = vpop.f32.mrf.mxu0  ;;  %12309 = vst [vmem:[#allocation21_spill] sm:$0xff] %v10354_v33 }
 0x1be   : > { %v2011_v56 = vadd.f32 %v8638_v30, %v10207_v13  ;;  %v10357_v50 = vadd.f32 %v2162_v21, %v2008_v51  ;;  %v8675_v42 = vpop.f32.mrf.mxu1 }
 0x1bf   : > { %v10359_v48 = vpop.f32.mrf.mxu0 }
 0x1c0   : > { %v10361_v58 = vadd.f32 %v8672_v59, %v2011_v56  ;;  %v2178_v10 = vpop.f32.mrf.mxu1 }
 0x1c1   : > { %v8641_v28 = vpop.f32.mrf.mxu0 }
 0x1c2   : > { %v2014_v29 = vadd.f32 %v8641_v28, %v10215_v54  ;;  %v8676_v57 = vpop.f32.mrf.mxu1 }
 0x1c3   : > { %v1969_v32 = vpop.f32.mrf.mxu0 }
 0x1c4   : > { %v2012_v31 = vadd.f32 %v1969_v32, %v10220_v8  ;;  %v10365_v9 = vadd.f32 %v8675_v42, %v2014_v29  ;;  %v10367_v33 = vpop.f32.mrf.mxu1 }
 0x1c5   : > { %v8642_v37 = vpop.f32.mrf.mxu0 }
 0x1c6   : > { %v2015_v13 = vadd.f32 %v8642_v37, %v10226_v26  ;;  %v10370_v21 = vadd.f32 %v2178_v10, %v2012_v31  ;;  %v10374_v59 = vpop.f32.mrf.mxu1 }
 0x1c7   : > { %v10372_v51 = vpop.f32.mrf.mxu0  ;;  %12310 = vst [vmem:[#allocation22_spill] sm:$0xff] %v10374_v59 }
 0x1c8   : > { %v10376_v30 = vadd.f32 %v8676_v57, %v2015_v13  ;;  %v10380_v56 = vpop.f32.mrf.mxu1 }
 0x1c9   : > { %v10378_v54 = vpop.f32.mrf.mxu0  ;;  %12312 = vst [vmem:[#allocation26_spill] sm:$0xff] %v10380_v56 }
 0x1ca   : > { %12311 = vst [vmem:[#allocation25_spill] sm:$0xff] %v10376_v30  ;;  %v10384_v8 = vpop.f32.mrf.mxu1 }
 0x1cb   : > { %v10382_v32 = vpop.f32.mrf.mxu0  ;;  %12313 = vst [vmem:[#allocation29_spill] sm:$0xff] %v10384_v8 }
 0x1cc   : > { %v10388_v28 = vpop.f32.mrf.mxu1 }
 0x1cd   : > { %v10386_v42 = vpop.f32.mrf.mxu0  ;;  %12314 = vst [vmem:[#allocation30_spill] sm:$0xff] %v10388_v28 }
 0x1ce   : > { %v10392_v10 = vpop.f32.mrf.mxu1 }
 0x1cf   : > { %v10390_v26 = vpop.f32.mrf.mxu0  ;;  %12315 = vst [vmem:[#allocation31_spill] sm:$0xff] %v10392_v10 }
 0x1d0   : > { %v10394_v31 = vpop.f32.mrf.mxu1 }
 0x1d1   : > { %v8685_v29 = vpop.f32.mrf.mxu0  ;;  %12316 = vst [vmem:[#allocation32_spill] sm:$0xff] %v10394_v31 }
 0x1d2   : > { %v10397_v57 = vadd.f32 %v8685_v29, %v10247_v19  ;;  %v10399_v13 = vpop.f32.mrf.mxu1  ;;  %v1781_v19 = vadd.f32 %v10130_v24, %v10136_v6 }
 0x1d3   : > { %v2284_v37 = vpop.f32.mrf.mxu0  ;;  %12317 = vst [vmem:[#allocation33_spill] sm:$0xff] %v10399_v13 }
 0x1d4   : > { %v10402_v56 = vadd.f32 %v2284_v37, %v10272_v44  ;;  %v10404_v59 = vpop.f32.mrf.mxu1  ;;  %v1993_v13 = vadd.f32 %v10287_v45, %v1781_v19  ;;  %v1785_v45 = vadd.f32 %v10148_v3, %v10154_v1 }
 0x1d5   : > { %v8686_v8 = vpop.f32.mrf.mxu0  ;;  %12318 = vst [vmem:[#allocation34_spill] sm:$0xff] %v10404_v59 }
 0x1d6   : > { %v10407_v28 = vadd.f32 %v8686_v8, %v10276_v25  ;;  %v10411_v10 = vpop.f32.mrf.mxu1 }
 0x1d7   : > { %v10409_v30 = vpop.f32.mrf.mxu0  ;;  %12320 = vst [vmem:[#allocation36_spill] sm:$0xff] %v10411_v10  ;;  %v2202_v10 = vadd.f32 %v10282_v20, %v1993_v13 }
 0x1d8   : > { %12319 = vst [vmem:[#allocation35_spill] sm:$0xff] %v10407_v28  ;;  %v10415_v31 = vpop.f32.mrf.mxu1 }
 0x1d9   : > { %v8689_v29 = vpop.f32.mrf.mxu0 }
 0x1da   : > { %v10419_v44 = vadd.f32 %v8689_v29, %v10280_v15  ;;  %v10423_v59 = vpop.f32.mrf.mxu1 }
 0x1db   : > { %v10421_v37 = vpop.f32.mrf.mxu0  ;;  %12321 = vst [vmem:[#allocation37_spill] sm:$0xff] %v10423_v59  ;;  %v1168_v59 = vadd.f32 %v10023_v16, %v10027_v47 }
 0x1dc   : > { %v10425_v8 = vpop.f32.mrf.mxu1 }
 0x1dd   : > { %v8690_v25 = vpop.f32.mrf.mxu0  ;;  %12322 = vst [vmem:[#allocation38_spill] sm:$0xff] %v10425_v8  ;;  %v1997_v8 = vadd.f32 %v10320_v46, %v1785_v45 }
 0x1de   : > { %v10429_v28 = vadd.f32 %v8690_v25, %v10289_v43  ;;  %v10431_v6 = vpop.f32.mrf.mxu1  ;;  %v1587_v25 = vadd.f32 %v10171_v27, %v1168_v59 }
 0x1df   : > { %v2303_v24 = vpop.f32.mrf.mxu0 }
 0x1e0   : > { %v10435_v15 = vadd.f32 %v2303_v24, %v2202_v10  ;;  %v10437_v29 = vpop.f32.mrf.mxu1  ;;  %v2206_v24 = vadd.f32 %v10315_v40, %v1997_v8 }
 0x1e1   : > { %v8693_v19 = vpop.f32.mrf.mxu0 }
 0x1e2   : > { %v10443_v20 = vadd.f32 %v8693_v19, %v10313_v23  ;;  %v10445_v13 = vpop.f32.mrf.mxu1  ;;  %v1789_v23 = vadd.f32 %v10166_v61, %v1587_v25 }
 0x1e3   : > { %v2316_v43 = vpop.f32.mrf.mxu0 }
 0x1e4   : > { %v10449_v3 = vadd.f32 %v2316_v43, %v10318_v52  ;;  %v10451_v10 = vpop.f32.mrf.mxu1  ;;  %v1184_v52 = vadd.f32 %v10044_v7, %v10048_v34  ;;  %v2001_v59 = vadd.f32 %v10333_v14, %v1789_v23 }
 0x1e5   : > { %v8694_v1 = vpop.f32.mrf.mxu0 }
 0x1e6   : > { %v10455_v16 = vadd.f32 %v8694_v1, %v10322_v5  ;;  %v10457_v46 = vpop.f32.mrf.mxu1  ;;  %v1591_v43 = vadd.f32 %v10188_v41, %v1184_v52  ;;  %v1200_v41 = vadd.f32 %v10064_v55, %v10070_v63 }
 0x1e7   : > { %v2319_v47 = vpop.f32.mrf.mxu0 }
 0x1e8   : > { %v10460_v45 = vadd.f32 %v2319_v47, %v2206_v24  ;;  %v10462_v27 = vpop.f32.mrf.mxu1  ;;  %v2210_v24 = vadd.f32 %v10328_v22, %v2001_v59 }
 0x1e9   : > { %v8697_v19 = vpop.f32.mrf.mxu0 }
 0x1ea   : > { %v10468_v40 = vadd.f32 %v8697_v19, %v10326_v39  ;;  %v10470_v8 = vpop.f32.mrf.mxu1  ;;  %v1793_v39 = vadd.f32 %v10183_v18, %v1591_v43 }
 0x1eb   : > { %v2332_v5 = vpop.f32.mrf.mxu0 }
 0x1ec   : > { %v10474_v61 = vadd.f32 %v2332_v5, %v10331_v11  ;;  %v10476_v1 = vpop.f32.mrf.mxu1  ;;  %v2005_v11 = vadd.f32 %v10346_v0, %v1793_v39 }
 0x1ed   : > { %v8698_v25 = vpop.f32.mrf.mxu0 }
 0x1ee   : > { %v10480_v7 = vadd.f32 %v8698_v25, %v10335_v4  ;;  %v10485_v47 = vpop.f32.mrf.mxu1  ;;  %v1595_v4 = vadd.f32 %v10205_v53, %v1200_v41  ;;  %v2214_v5 = vadd.f32 %v10341_v17, %v2005_v11  ;;  %v12323_v53 = vld [vmem:[#allocation28_spill] sm:$0xff] }
 0x1ef   : > { %v2335_v34 = vpop.f32.mrf.mxu0 }
 0x1f0   : > { %v10483_v14 = vadd.f32 %v2335_v34, %v2210_v24  ;;  %v10497_v18 = vpop.f32.mrf.mxu1  ;;  %v1797_v63 = vadd.f32 %v10200_v2, %v1595_v4  ;;  %v12328_v4 = vld [vmem:[#allocation12_spill] sm:$0xff] }
 0x1f1   : > { %v8701_v23 = vpop.f32.mrf.mxu0 }
 0x1f2   : > { %v10491_v19 = vadd.f32 %v8701_v23, %v10339_v35  ;;  %v10506_v35 = vpop.f32.mrf.mxu1  ;;  %v2009_v24 = vadd.f32 %v10359_v48, %v1797_v63  ;;  %v12326_v23 = vld [vmem:[#allocation9_spill] sm:$0xff]  ;;  %v9019_v63 = vmov 1983009808  }
 0x1f3   : > { %v2348_v22 = vpop.f32.mrf.mxu0  ;;  %v1773_v41 = vadd.f32 %v12326_v23, %v10100_v38  ;;  %v2994_v23 = vlaneseq }
 0x1f4   : > { %v10495_v52 = vadd.f32 %v2348_v22, %v10344_v62  ;;  %v1216_v62 = vadd.f32 %v12323_v53, %v10084_v12  ;;  %v10515_v39 = vpop.f32.mrf.mxu1  ;;  %v12327_v22 = vld [vmem:[#allocation14_spill] sm:$0xff]  ;;  %v12332_v53 = vld [vmem:[#allocation15_spill] sm:$0xff] }
 0x1f5   : > { %v8702_v59 = vpop.f32.mrf.mxu0  ;;  %v1777_v12 = vadd.f32 %v12328_v4, %v12327_v22  ;;  %v12336_v4 = vld [vmem:[#allocation10_spill] sm:$0xff] }
 0x1f6   : > { %v10501_v43 = vadd.f32 %v8702_v59, %v10348_v60  ;;  %v1599_v60 = vadd.f32 %v10222_v49, %v1216_v62  ;;  %v12329_v59 = vld [vmem:[#allocation21_spill] sm:$0xff]  ;;  %v12333_v62 = vld [vmem:[#allocation16_spill] sm:$0xff] }
 0x1f7   : > { %v2351_v55 = vpop.f32.mrf.mxu0  ;;  %v2218_v48 = vadd.f32 %v12329_v59, %v2009_v24  ;;  %v12337_v24 = vld [vmem:[#allocation13_spill] sm:$0xff] }
 0x1f8   : > { %v10504_v0 = vadd.f32 %v2351_v55, %v2214_v5  ;;  %v12331_v5 = vld [vmem:[#allocation23_spill] sm:$0xff]  ;;  %v2195_v59 = vadd.f32 %v12337_v24, %v12336_v4 }
 0x1f9   : > { %v8705_v25 = vpop.f32.mrf.mxu0  ;;  %v1985_v55 = vadd.f32 %v12331_v5, %v1773_v41  ;;  %v12339_v5 = vld [vmem:[#allocation11_spill] sm:$0xff] }
 0x1fa   : > { %v10512_v34 = vadd.f32 %v8705_v25, %v10352_v36  ;;  %v2992_v25 = vunpack.c.l.s4 %v9019_v63 }
 0x1fb   : > { %v2364_v17 = vpop.f32.mrf.mxu0 }
 0x1fc   : > { %12324 = vst [vmem:[#allocation28_spill] sm:$0xff] %v10512_v34  ;;  %v10518_v2 = vadd.f32 %v2364_v17, %v10357_v50  ;;  %v1801_v50 = vadd.f32 %v12332_v53, %v1599_v60  ;;  %v1989_v17 = vadd.f32 %v12333_v62, %v1777_v12  ;;  %v12340_v60 = vld [vmem:[#allocation20_spill] sm:$0xff]  ;;  %v12341_v53 = vld [vmem:[#allocation17_spill] sm:$0xff]  ;;  %v12342_v62 = vld [vmem:[#allocation27_spill] sm:$0xff]  ;;  %v2397_v34 = vadd.f32 %v10378_v54, %v2195_v59 }
 0x1fd   : > { %v8706_v11 = vpop.f32.mrf.mxu0  ;;  %v2196_v12 = vadd.f32 %v12341_v53, %v12340_v60  ;;  %v12347_v54 = vld [vmem:[#allocation18_spill] sm:$0xff] }
 0x1fe   : > { %12325 = vst [vmem:[#allocation39_spill] sm:$0xff] %v10518_v2  ;;  %v10526_v36 = vadd.f32 %v8706_v11, %v10361_v58  ;;  %v10531_v2 = vpop.f32.mrf.mxu1  ;;  %v2013_v58 = vadd.f32 %v10372_v51, %v1801_v50  ;;  %v12338_v11 = vld [vmem:[#allocation19_spill] sm:$0xff] }
 0x1ff   : > { %v2367_v49 = vpop.f32.mrf.mxu0  ;;  %12334 = vst [vmem:[#allocation14_spill] sm:$0xff] %v10531_v2  ;;  %v2193_v63 = vadd.f32 %v12339_v5, %v12338_v11 }
 0x200   : > { %12330 = vst [vmem:[#allocation9_spill] sm:$0xff] %v10526_v36  ;;  %v10533_v38 = vadd.f32 %v2367_v49, %v2218_v48  ;;  %v2194_v36 = vadd.f32 %v12342_v62, %v1985_v55  ;;  %v2993_v49 = vunpack.c.0.s8 %v2992_v25  ;;  %v2576_v4 = vpop.f32.mrf.mxu1  ;;  %v2222_v55 = vadd.f32 %v10367_v33, %v2013_v58  ;;  %v12351_v33 = vld [vmem:[#allocation29_spill] sm:$0xff] }
 0x201   : > { %v8709_v22 = vpop.f32.mrf.mxu0  ;;  %v2395_v50 = vadd.f32 %v10382_v32, %v2193_v63  ;;  %v12353_v63 = vld [vmem:[#allocation31_spill] sm:$0xff] }
 0x202   : > { %12335 = vst [vmem:[#allocation12_spill] sm:$0xff] %v10533_v38  ;;  %v10539_v41 = vadd.f32 %v8709_v22, %v10365_v9  ;;  %v12343_v38 = vld [vmem:[#allocation24_spill] sm:$0xff]  ;;  %v10551_v9 = vshrl.u32 %v2994_v23, 7  ;;  %v2398_v22 = vadd.f32 %v10386_v42, %v2196_v12  ;;  %v2396_v24 = vadd.f32 %v10390_v26, %v2194_v36  ;;  %v12348_v23 = vld [vmem:[#allocation22_spill] sm:$0xff]  ;;  %v8740_v60 = vpop.f32.mrf.mxu1 }
 0x203   : > { %v2380_v48 = vpop.f32.mrf.mxu0  ;;  %v2198_v2 = vadd.f32 %v12343_v38, %v1989_v17  ;;  %v12345_v17 = vld [vmem:[#allocation25_spill] sm:$0xff]  ;;  %v2609_v5 = vadd.f32 %v12348_v23, %v2397_v34  ;;  %v12350_v26 = vld [vmem:[#allocation26_spill] sm:$0xff]  ;;  %v2613_v53 = vadd.f32 %v12353_v63, %v10397_v57  ;;  %v12354_v34 = vld [vmem:[#allocation32_spill] sm:$0xff] }
 0x204   : > { %v10549_v51 = vadd.f32 %v2380_v48, %v10370_v21  ;;  %12344 = vst [vmem:[#allocation21_spill] sm:$0xff] %v10551_v9  ;;  %v2403_v21 = vadd.f32 %v10421_v37, %v12347_v54  ;;  %v10567_v42 = vsub.s32 %v2993_v49, %v10551_v9  ;;  %v2607_v36 = vadd.f32 %v12350_v26, %v2395_v50  ;;  %v10577_v37 = vld [vmem:[%s12200_s2] ss:$0 sm:$0xff]  ;;  %v12355_v48 = vld [vmem:[#allocation35_spill] sm:$0xff]  ;;  %v12356_v49 = vld [vmem:[#allocation33_spill] sm:$0xff] }
 0x205   : > { %v8710_v11 = vpop.f32.mrf.mxu0  ;;  %v2400_v25 = vadd.f32 %v10409_v30, %v2198_v2  ;;  %v2610_v58 = vadd.f32 %v12351_v33, %v2398_v22  ;;  %v12352_v30 = vld [vmem:[#allocation30_spill] sm:$0xff]  ;;  %v10581_v62 = vadd.f32 %v12354_v34, %v10402_v56  ;;  %v10585_v50 = vadd.f32 %v12356_v49, %v12355_v48  ;;  %v12358_v57 = vld [vmem:[#allocation36_spill] sm:$0xff]  ;;  %v12359_v54 = vld [vmem:[#allocation37_spill] sm:$0xff] }
 0x206   : > { %v10559_v38 = vadd.f32 %v8710_v11, %v12345_v17  ;;  %v2608_v2 = vadd.f32 %v12352_v30, %v2396_v24  ;;  %v12357_v22 = vld [vmem:[#allocation34_spill] sm:$0xff]  ;;  %v10595_v17 = vadd.f32 %v10415_v31, %v2403_v21  ;;  %v10616_v31 = vadd.f32 %v10437_v29, %v10449_v3 }
 0x207   : > { %v2383_v59 = vpop.f32.mrf.mxu0  ;;  %v10588_v11 = vadd.f32 %v12357_v22, %v2400_v25  ;;  %v12360_v56 = vld [vmem:[#allocation38_spill] sm:$0xff]  ;;  %v10608_v25 = vld [vmem:[%s12201_s3] ss:$0 sm:$0xff]  ;;  %v10625_v33 = vadd.f32 %v10451_v10, %v10460_v45  ;;  %v10633_v29 = vadd.f32 %v10462_v27, %v10474_v61  ;;  %v10637_v3 = vadd.f32 %v10470_v8, %v10480_v7 }
 0x208   : > { %12346 = vst [vmem:[#allocation23_spill] sm:$0xff] %v10559_v38  ;;  %v10564_v32 = vadd.f32 %v2383_v59, %v2222_v55  ;;  %v10592_v55 = vadd.f32 %v12358_v57, %v10419_v44  ;;  %v10599_v59 = vadd.f32 %v12359_v54, %v10429_v28  ;;  %v10603_v23 = vadd.f32 %v12360_v56, %v10435_v15  ;;  %v2579_v28 = vpop.f32.mrf.mxu1 }
 0x209   : > { %v8749_v12 = vpop.f32.mrf.mxu0  ;;  %v10612_v44 = vadd.f32 %v10431_v6, %v10443_v20  ;;  %v10621_v15 = vadd.f32 %v10445_v13, %v10455_v16  ;;  %v10629_v6 = vadd.f32 %v10457_v46, %v10468_v40  ;;  %v10643_v10 = vadd.f32 %v10476_v1, %v10483_v14  ;;  %v12365_v49 = vld [vmem:[#allocation12_spill] sm:$0xff] }
 0x20a   : > { %12349 = vst [vmem:[#allocation15_spill] sm:$0xff] %v10564_v32  ;;  %v2818_v24 = vadd.f32 %v8749_v12, %v2609_v5  ;;  %v10647_v46 = vadd.f32 %v10485_v47, %v10491_v19  ;;  %v10651_v45 = vadd.f32 %v10497_v18, %v10495_v52  ;;  %v10655_v27 = vadd.f32 %v10506_v35, %v10501_v43  ;;  %v8743_v8 = vpop.f32.mrf.mxu1  ;;  %v12361_v19 = vld [vmem:[#allocation28_spill] sm:$0xff]  ;;  %v12363_v18 = vld [vmem:[#allocation39_spill] sm:$0xff]  ;;  %v12364_v43 = vld [vmem:[#allocation9_spill] sm:$0xff] }
 0x20b   : > { %v2689_v5 = vpop.f32.mrf.mxu0  ;;  %v10661_v47 = vadd.f32 %v10515_v39, %v10504_v0  ;;  %v10668_v30 = vadd.f32 %v2576_v4, %v12363_v18  ;;  %v10671_v35 = vadd.f32 %v8740_v60, %v12364_v43  ;;  %v10676_v0 = vadd.f32 %v2579_v28, %v12365_v49 }
 0x20c   : > { %v2857_v21 = vmul.f32 %v10577_v37, %v2818_v24  ;;  %v2816_v26 = vadd.f32 %v2689_v5, %v2607_v36  ;;  %v10679_v39 = vadd.f32 %v8743_v8, %v10539_v41 }
 0x20d   : > { %v8750_v20 = vpop.f32.mrf.mxu0 }
 0x20e   : > { %v2896_v13 = vadd.f32 %v10608_v25, %v2857_v21  ;;  %v2855_v16 = vmul.f32 %v10577_v37, %v2816_v26  ;;  %v2819_v36 = vadd.f32 %v8750_v20, %v2610_v58  ;;  %v12362_v58 = vld [vmem:[#allocation14_spill] sm:$0xff] }
 0x20f   : > { %v2692_v40 = vpop.f32.mrf.mxu0  ;;  %v10665_v52 = vadd.f32 %v12362_v58, %v12361_v19 }
 0x210   : > { %v2928_v61 = vmax.f32 %v2896_v13, 0.0  ;;  %v2894_v7 = vadd.f32 %v10608_v25, %v2855_v16  ;;  %v2858_v1 = vmul.f32 %v10577_v37, %v2819_v36  ;;  %v2817_v14 = vadd.f32 %v2692_v40, %v2608_v2 }
 0x211   : > { %v8753_v63 = vpop.f32.mrf.mxu0 }
 0x212   : > { %v3024_v12 = vcombine.high %v2928_v61, %v2928_v61  ;;  %v3031_v34 = vrot.slane %v2928_v61, %v10567_v42  ;;  %v2926_v48 = vmax.f32 %v2894_v7, 0.0  ;;  %v2897_v2 = vadd.f32 %v10608_v25, %v2858_v1 }
 0x213   : > { %v2856_v22 = vmul.f32 %v10577_v37, %v2817_v14  ;;  %v10682_v4 = vadd.f32 %v8753_v63, %v2613_v53 }
 0x214   : > { %v3038_v60 = vrot.slane %v3024_v12, %v10567_v42  ;;  %v3039_v24 = vcombine.high %v3031_v34, %v3031_v34  ;;  %v3719_v57 = vsel %vm3662_vm6, %v3031_v34, -inf  ;;  %v2990_v54 = vcombine.high %v2926_v48, %v2926_v48 }
 0x215   : > { %v3720_v56 = vrot.slane %v3719_v57, 4  ;;  %v2997_v5 = vrot.slane %v2926_v48, %v10567_v42  ;;  %v10687_v21 = vmax.f32 %v2897_v2, 0.0  ;;  %v10690_v28 = vadd.f32 %v10608_v25, %v2856_v22 }
 0x216   : > { %v3040_v41 = vcombine.high %v3038_v60, %v3038_v60  ;;  %v3726_v26 = vsel %vm3662_vm6, %v3039_v24, -inf  ;;  %v3733_v53 = vsel %vm3662_vm6, %v3038_v60, -inf  ;;  %v3004_v20 = vrot.slane %v2990_v54, %v10567_v42 }
 0x217   : > { %v3721_v13 = vmax.f32 %v3719_v57, %v3720_v56  ;;  %v3727_v16 = vrot.slane %v3726_v26, 4  ;;  %v3734_v36 = vrot.slane %v3733_v53, 4  ;;  %v3005_v40 = vcombine.high %v2997_v5, %v2997_v5 }
 0x218   : > { %v3740_v8 = vsel %vm3662_vm6, %v3040_v41, -inf  ;;  %v3006_v61 = vcombine.high %v3004_v20, %v3004_v20  ;;  %v3663_v7 = vsel %vm3662_vm6, %v2997_v5, -inf  ;;  %v3677_v1 = vsel %vm3662_vm6, %v3004_v20, -inf }
 0x219   : > { %v3722_v14 = vrot.slane %v3721_v13, 2  ;;  %v3728_v19 = vmax.f32 %v3726_v26, %v3727_v16  ;;  %v3735_v58 = vmax.f32 %v3733_v53, %v3734_v36  ;;  %v3741_v18 = vrot.slane %v3740_v8, 4 }
 0x21a   : > { %v3664_v43 = vrot.slane %v3663_v7, 4  ;;  %v3670_v63 = vsel %vm3662_vm6, %v3005_v40, -inf  ;;  %v3678_v12 = vrot.slane %v3677_v1, 4  ;;  %v3684_v34 = vsel %vm3662_vm6, %v3006_v61, -inf }
 0x21b   : > { %v3723_v48 = vmax.f32 %v3721_v13, %v3722_v14  ;;  %v3729_v2 = vrot.slane %v3728_v19, 2  ;;  %v3736_v49 = vrot.slane %v3735_v58, 2  ;;  %v3742_v22 = vmax.f32 %v3740_v8, %v3741_v18 }
 0x21c   : > { %v3665_v60 = vmax.f32 %v3663_v7, %v3664_v43  ;;  %v3671_v24 = vrot.slane %v3670_v63, 4  ;;  %v3679_v57 = vmax.f32 %v3677_v1, %v3678_v12  ;;  %v3685_v54 = vrot.slane %v3684_v34, 4 }
 0x21d   : > { %v3724_v56 = vrot.slane %v3723_v48, 1  ;;  %v3730_v5 = vmax.f32 %v3728_v19, %v3729_v2  ;;  %v3737_v41 = vmax.f32 %v3735_v58, %v3736_v49  ;;  %v3743_v26 = vrot.slane %v3742_v22, 2 }
 0x21e   : > { %v3666_v53 = vrot.slane %v3665_v60, 2  ;;  %v3672_v20 = vmax.f32 %v3670_v63, %v3671_v24  ;;  %v3680_v16 = vrot.slane %v3679_v57, 2  ;;  %v3686_v36 = vmax.f32 %v3684_v34, %v3685_v54 }
 0x21f   : > { %v3725_v40 = vmax.f32 %v3723_v48, %v3724_v56  ;;  %v3731_v9 = vrot.slane %v3730_v5, 1  ;;  %v3738_v32 = vrot.slane %v3737_v41, 1  ;;  %v3744_v61 = vmax.f32 %v3742_v22, %v3743_v26 }
 0x220   : > { %v3667_v13 = vmax.f32 %v3665_v60, %v3666_v53  ;;  %v3673_v14 = vrot.slane %v3672_v20, 2  ;;  %v3681_v38 = vmax.f32 %v3679_v57, %v3680_v16  ;;  %v3687_v8 = vrot.slane %v3686_v36, 2 }
 0x221   : > { %v3732_v7 = vmax.f32 %v3730_v5, %v3731_v9  ;;  %v3739_v1 = vmax.f32 %v3737_v41, %v3738_v32  ;;  %v3745_v18 = vrot.slane %v3744_v61, 1  ;;  %v4561_v19 = vsel %vm4559_vm7, %v3725_v40, -inf }
 0x222   : > { %v3668_v58 = vrot.slane %v3667_v13, 1  ;;  %v3674_v43 = vmax.f32 %v3672_v20, %v3673_v14  ;;  %v3682_v63 = vrot.slane %v3681_v38, 1  ;;  %v3688_v12 = vmax.f32 %v3686_v36, %v3687_v8 }
 0x223   : > { %v3746_v34 = vmax.f32 %v3744_v61, %v3745_v18  ;;  %v4564_v48 = vsel %vm4559_vm7, %v3732_v7, -inf  ;;  %v4567_v2 = vsel %vm4559_vm7, %v3739_v1, -inf  ;;  %v3041_v49 = vcombine.high %v10687_v21, %v10687_v21 }
 0x224   : > { %v3669_v22 = vmax.f32 %v3667_v13, %v3668_v58  ;;  %v3675_v60 = vrot.slane %v3674_v43, 1  ;;  %v3683_v9 = vmax.f32 %v3681_v38, %v3682_v63  ;;  %v3689_v32 = vrot.slane %v3688_v12, 1 }
 0x225   : > { %v10706_v24 = vsel %vm4559_vm7, %v3746_v34, -inf  ;;  %v3048_v57 = vrot.slane %v10687_v21, %v10567_v42  ;;  %v3055_v54 = vrot.slane %v3041_v49, %v10567_v42  ;;  %v2927_v56 = vmax.f32 %v10690_v28, 0.0 }
 0x226   : > { %v3676_v5 = vmax.f32 %v3674_v43, %v3675_v60  ;;  %v3690_v41 = vmax.f32 %v3688_v12, %v3689_v32  ;;  %v4560_v26 = vsel %vm4559_vm7, %v3669_v22, -inf  ;;  %v4566_v53 = vsel %vm4559_vm7, %v3683_v9, -inf }
 0x227   : > { %v4562_v20 = vmax.f32 %v4560_v26, %v4561_v19  ;;  %v4568_v16 = vmax.f32 %v4566_v53, %v4567_v2  ;;  %v3056_v38 = vcombine.high %v3048_v57, %v3048_v57  ;;  %v3057_v36 = vcombine.high %v3055_v54, %v3055_v54  ;;  %v2705_v53 = vpop.f32.mrf.mxu0 }
 0x228   : > { %v4563_v40 = vsel %vm4559_vm7, %v3676_v5, -inf  ;;  %v10716_v61 = vsel %vm4559_vm7, %v3690_v41, -inf  ;;  %v3747_v21 = vsel %vm3662_vm6, %v3048_v57, -inf  ;;  %v3761_v13 = vsel %vm3662_vm6, %v3055_v54, -inf }
 0x229   : > { %v4565_v28 = vmax.f32 %v4563_v40, %v4564_v48  ;;  %v4571_v14 = vmax.f32 %v10716_v61, %v10706_v24  ;;  %v3748_v8 = vrot.slane %v3747_v21, 4  ;;  %v3754_v7 = vsel %vm3662_vm6, %v3056_v38, -inf }
 0x22a   : > { %v3755_v1 = vrot.slane %v3754_v7, 4  ;;  %v3762_v18 = vrot.slane %v3761_v13, 4  ;;  %v3768_v19 = vsel %vm3662_vm6, %v3057_v36, -inf  ;;  %v3007_v58 = vcombine.high %v2927_v56, %v2927_v56 }
 0x22b   : > { %v4837_v43 = vsel %vm4836_vm8, %v4565_v28, %v4562_v20  ;;  %v3749_v63 = vmax.f32 %v3747_v21, %v3748_v8  ;;  %v3769_v12 = vrot.slane %v3768_v19, 4  ;;  %v3014_v34 = vrot.slane %v2927_v56, %v10567_v42 }
 0x22c   : > { %v4839_v2 = vsel %vm4838_vm9, %v4568_v16, %v4837_v43  ;;  %v3756_v48 = vmax.f32 %v3754_v7, %v3755_v1  ;;  %v3763_v49 = vmax.f32 %v3761_v13, %v3762_v18  ;;  %v3021_v22 = vrot.slane %v3007_v58, %v10567_v42 }
 0x22d   : > { %v3750_v60 = vrot.slane %v3749_v63, 2  ;;  %v3770_v9 = vmax.f32 %v3768_v19, %v3769_v12  ;;  %v3022_v32 = vcombine.high %v3014_v34, %v3014_v34  ;;  %v3691_v57 = vsel %vm3662_vm6, %v3014_v34, -inf }
 0x22e   : > { %v3757_v54 = vrot.slane %v3756_v48, 2  ;;  %v3764_v5 = vrot.slane %v3763_v49, 2  ;;  %v3023_v41 = vcombine.high %v3021_v22, %v3021_v22  ;;  %v3692_v26 = vrot.slane %v3691_v57, 4 }
 0x22f   : > { %v3751_v20 = vmax.f32 %v3749_v63, %v3750_v60  ;;  %v3771_v38 = vrot.slane %v3770_v9, 2  ;;  %v3698_v56 = vsel %vm3662_vm6, %v3022_v32, -inf  ;;  %v3705_v16 = vsel %vm3662_vm6, %v3021_v22, -inf  ;;  %v8754_v63 = vpop.f32.mrf.mxu0 }
 0x230   : > { %v3758_v36 = vmax.f32 %v3756_v48, %v3757_v54  ;;  %v3765_v40 = vmax.f32 %v3763_v49, %v3764_v5  ;;  %v3693_v21 = vmax.f32 %v3691_v57, %v3692_v26  ;;  %v3699_v13 = vrot.slane %v3698_v56, 4 }
 0x231   : > { %v3752_v28 = vrot.slane %v3751_v20, 1  ;;  %v3772_v8 = vmax.f32 %v3770_v9, %v3771_v38  ;;  %v3706_v7 = vrot.slane %v3705_v16, 4  ;;  %v3712_v1 = vsel %vm3662_vm6, %v3023_v41, -inf }
 0x232   : > { %v3759_v18 = vrot.slane %v3758_v36, 1  ;;  %v3766_v19 = vrot.slane %v3765_v40, 1  ;;  %v3694_v58 = vrot.slane %v3693_v21, 2  ;;  %v3700_v43 = vmax.f32 %v3698_v56, %v3699_v13  ;;  %v2708_v13 = vpop.f32.mrf.mxu0 }
 0x233   : > { %v3753_v12 = vmax.f32 %v3751_v20, %v3752_v28  ;;  %v3773_v34 = vrot.slane %v3772_v8, 1  ;;  %v3707_v60 = vmax.f32 %v3705_v16, %v3706_v7  ;;  %v3713_v32 = vrot.slane %v3712_v1, 4 }
 0x234   : > { %v3760_v22 = vmax.f32 %v3758_v36, %v3759_v18  ;;  %v3767_v48 = vmax.f32 %v3765_v40, %v3766_v19  ;;  %v3695_v49 = vmax.f32 %v3693_v21, %v3694_v58  ;;  %v3701_v57 = vrot.slane %v3700_v43, 2 }
 0x235   : > { %v3774_v54 = vmax.f32 %v3772_v8, %v3773_v34  ;;  %v4573_v9 = vsel %vm4559_vm7, %v3753_v12, -inf  ;;  %v3708_v5 = vrot.slane %v3707_v60, 2  ;;  %v3714_v41 = vmax.f32 %v3712_v1, %v3713_v32 }
 0x236   : > { %v4576_v26 = vsel %vm4559_vm7, %v3760_v22, -inf  ;;  %v4579_v38 = vsel %vm4559_vm7, %v3767_v48, -inf  ;;  %v3696_v56 = vrot.slane %v3695_v49, 1  ;;  %v3702_v20 = vmax.f32 %v3700_v43, %v3701_v57 }
 0x237   : > { %v4582_v16 = vsel %vm4559_vm7, %v3774_v54, -inf  ;;  %v3709_v36 = vmax.f32 %v3707_v60, %v3708_v5  ;;  %v3715_v40 = vrot.slane %v3714_v41, 2  ;;  %v4841_v21 = vsel %vm4840_vm10, %v4571_v14, %v4839_v2 }
 0x238   : > { %v3697_v28 = vmax.f32 %v3695_v49, %v3696_v56  ;;  %v3703_v8 = vrot.slane %v3702_v20, 1  ;;  %v2861_v7 = vmul.f32 %v10577_v37, %v10682_v4  ;;  %v2820_v1 = vadd.f32 %v2705_v53, %v10581_v62 }
 0x239   : > { %v3710_v18 = vrot.slane %v3709_v36, 1  ;;  %v3716_v19 = vmax.f32 %v3714_v41, %v3715_v40  ;;  %v2823_v58 = vadd.f32 %v8754_v63, %v10585_v50  ;;  %v2821_v43 = vadd.f32 %v2708_v13, %v10588_v11 }
 0x23a   : > { %v3704_v12 = vmax.f32 %v3702_v20, %v3703_v8  ;;  %v4572_v34 = vsel %vm4559_vm7, %v3697_v28, -inf  ;;  %v2900_v24 = vadd.f32 %v10608_v25, %v2861_v7  ;;  %v2859_v61 = vmul.f32 %v10577_v37, %v2820_v1 }
 0x23b   : > { %v3711_v14 = vmax.f32 %v3709_v36, %v3710_v18  ;;  %v3717_v2 = vrot.slane %v3716_v19, 1  ;;  %v4574_v60 = vmax.f32 %v4572_v34, %v4573_v9  ;;  %v2862_v4 = vmul.f32 %v10577_v37, %v2823_v58 }
 0x23c   : > { %v4575_v62 = vsel %vm4559_vm7, %v3704_v12, -inf  ;;  %v2932_v53 = vmax.f32 %v2900_v24, 0.0  ;;  %v2898_v32 = vadd.f32 %v10608_v25, %v2859_v61  ;;  %v2860_v50 = vmul.f32 %v10577_v37, %v2821_v43 }
 0x23d   : > { %v3718_v11 = vmax.f32 %v3716_v19, %v3717_v2  ;;  %v4577_v63 = vmax.f32 %v4575_v62, %v4576_v26  ;;  %v4578_v22 = vsel %vm4559_vm7, %v3711_v14, -inf  ;;  %v4843_v48 = vsel %vm4842_vm11, %v4574_v60, %v4841_v21 }
 0x23e   : > { %v4580_v49 = vmax.f32 %v4578_v22, %v4579_v38  ;;  %v3092_v57 = vcombine.high %v2932_v53, %v2932_v53  ;;  %v3099_v54 = vrot.slane %v2932_v53, %v10567_v42  ;;  %v2930_v9 = vmax.f32 %v2898_v32, 0.0 }
 0x23f   : > { %v4581_v5 = vsel %vm4559_vm7, %v3718_v11, -inf  ;;  %v4845_v41 = vsel %vm4844_vm12, %v4577_v63, %v4843_v48  ;;  %v2901_v56 = vadd.f32 %v10608_v25, %v2862_v4  ;;  %v10759_v20 = vadd.f32 %v10608_v25, %v2860_v50 }
 0x240   : > { %v4583_v13 = vmax.f32 %v4581_v5, %v4582_v16  ;;  %v4847_v26 = vsel %vm4846_vm13, %v4580_v49, %v4845_v41  ;;  %v3106_v36 = vrot.slane %v3092_v57, %v10567_v42  ;;  %v3107_v40 = vcombine.high %v3099_v54, %v3099_v54 }
 0x241   : > { %v3831_v38 = vsel %vm3662_vm6, %v3099_v54, -inf  ;;  %v3058_v21 = vcombine.high %v2930_v9, %v2930_v9  ;;  %v3065_v28 = vrot.slane %v2930_v9, %v10567_v42  ;;  %v10765_v8 = vmax.f32 %v2901_v56, 0.0 }
 0x242   : > { %v4849_v7 = vsel %vm4848_vm14, %v4583_v13, %v4847_v26  ;;  %v3108_v1 = vcombine.high %v3106_v36, %v3106_v36  ;;  %v3832_v18 = vrot.slane %v3831_v38, 4  ;;  %v3838_v19 = vsel %vm3662_vm6, %v3107_v40, -inf }
 0x243   : > { %4908 = vst.msk [vmem:[#allocation3 + $0x11] sm:$0xff] %vm4559_vm7, %v4849_v7  ;;  %v3839_v16 = vrot.slane %v3838_v19, 4  ;;  %v3845_v58 = vsel %vm3662_vm6, %v3106_v36, -inf  ;;  %v3072_v43 = vrot.slane %v3058_v21, %v10567_v42  ;;  %v3073_v12 = vcombine.high %v3065_v28, %v3065_v28 }
 0x244   : > { %v3833_v34 = vmax.f32 %v3831_v38, %v3832_v18  ;;  %v3846_v24 = vrot.slane %v3845_v58, 4  ;;  %v3852_v61 = vsel %vm3662_vm6, %v3108_v1, -inf  ;;  %v3775_v14 = vsel %vm3662_vm6, %v3065_v28, -inf }
 0x245   : > { %v3840_v2 = vmax.f32 %v3838_v19, %v3839_v16  ;;  %v3853_v60 = vrot.slane %v3852_v61, 4  ;;  %v3074_v4 = vcombine.high %v3072_v43, %v3072_v43  ;;  %v3776_v62 = vrot.slane %v3775_v14, 4 }
 0x246   : > { %v3834_v53 = vrot.slane %v3833_v34, 2  ;;  %v3847_v32 = vmax.f32 %v3845_v58, %v3846_v24  ;;  %v3782_v50 = vsel %vm3662_vm6, %v3073_v12, -inf  ;;  %v3789_v11 = vsel %vm3662_vm6, %v3072_v43, -inf }
 0x247   : > { %v3841_v63 = vrot.slane %v3840_v2, 2  ;;  %v3854_v22 = vmax.f32 %v3852_v61, %v3853_v60  ;;  %v3777_v48 = vmax.f32 %v3775_v14, %v3776_v62  ;;  %v3783_v49 = vrot.slane %v3782_v50, 4 }
 0x248   : > { %v3835_v57 = vmax.f32 %v3833_v34, %v3834_v53  ;;  %v3848_v54 = vrot.slane %v3847_v32, 2  ;;  %v3790_v9 = vrot.slane %v3789_v11, 4  ;;  %v3796_v5 = vsel %vm3662_vm6, %v3074_v4, -inf }
 0x249   : > { %v3842_v41 = vmax.f32 %v3840_v2, %v3841_v63  ;;  %v3855_v56 = vrot.slane %v3854_v22, 2  ;;  %v3778_v13 = vrot.slane %v3777_v48, 2  ;;  %v3784_v26 = vmax.f32 %v3782_v50, %v3783_v49 }
 0x24a   : > { %v3836_v36 = vrot.slane %v3835_v57, 1  ;;  %v3849_v40 = vmax.f32 %v3847_v32, %v3848_v54  ;;  %v3791_v38 = vmax.f32 %v3789_v11, %v3790_v9  ;;  %v3797_v21 = vrot.slane %v3796_v5, 4 }
 0x24b   : > { %v3843_v28 = vrot.slane %v3842_v41, 1  ;;  %v3856_v7 = vmax.f32 %v3854_v22, %v3855_v56  ;;  %v3779_v1 = vmax.f32 %v3777_v48, %v3778_v13  ;;  %v3785_v18 = vrot.slane %v3784_v26, 2 }
 0x24c   : > { %v3837_v19 = vmax.f32 %v3835_v57, %v3836_v36  ;;  %v3850_v16 = vrot.slane %v3849_v40, 1  ;;  %v3792_v58 = vrot.slane %v3791_v38, 2  ;;  %v3798_v43 = vmax.f32 %v3796_v5, %v3797_v21 }
 0x24d   : > { %v3844_v12 = vmax.f32 %v3842_v41, %v3843_v28  ;;  %v3857_v34 = vrot.slane %v3856_v7, 1  ;;  %v3780_v24 = vrot.slane %v3779_v1, 1  ;;  %v3786_v61 = vmax.f32 %v3784_v26, %v3785_v18 }
 0x24e   : > { %v3851_v14 = vmax.f32 %v3849_v40, %v3850_v16  ;;  %v4585_v2 = vsel %vm4559_vm7, %v3837_v19, -inf  ;;  %v3793_v60 = vmax.f32 %v3791_v38, %v3792_v58  ;;  %v3799_v4 = vrot.slane %v3798_v43, 2 }
 0x24f   : > { %v3858_v62 = vmax.f32 %v3856_v7, %v3857_v34  ;;  %v4588_v53 = vsel %vm4559_vm7, %v3844_v12, -inf  ;;  %v3781_v32 = vmax.f32 %v3779_v1, %v3780_v24  ;;  %v3787_v50 = vrot.slane %v3786_v61, 1  ;;  %v8757_v24 = vpop.f32.mrf.mxu0 }
 0x250   : > { %v4591_v11 = vsel %vm4559_vm7, %v3851_v14, -inf  ;;  %v3794_v63 = vrot.slane %v3793_v60, 1  ;;  %v3800_v22 = vmax.f32 %v3798_v43, %v3799_v4  ;;  %v3109_v48 = vcombine.high %v10765_v8, %v10765_v8 }
 0x251   : > { %v4594_v49 = vsel %vm4559_vm7, %v3858_v62, -inf  ;;  %v3788_v57 = vmax.f32 %v3786_v61, %v3787_v50  ;;  %v4584_v54 = vsel %vm4559_vm7, %v3781_v32, -inf  ;;  %v3116_v9 = vrot.slane %v10765_v8, %v10567_v42 }
 0x252   : > { %v3795_v5 = vmax.f32 %v3793_v60, %v3794_v63  ;;  %v3801_v41 = vrot.slane %v3800_v22, 1  ;;  %v4586_v56 = vmax.f32 %v4584_v54, %v4585_v2  ;;  %v3123_v13 = vrot.slane %v3109_v48, %v10567_v42 }
 0x253   : > { %v4587_v26 = vsel %vm4559_vm7, %v3788_v57, -inf  ;;  %v3124_v36 = vcombine.high %v3116_v9, %v3116_v9  ;;  %v3859_v40 = vsel %vm3662_vm6, %v3116_v9, -inf  ;;  %v2931_v38 = vmax.f32 %v10759_v20, 0.0 }
 0x254   : > { %v3802_v21 = vmax.f32 %v3800_v22, %v3801_v41  ;;  %v4589_v28 = vmax.f32 %v4587_v26, %v4588_v53  ;;  %v4590_v7 = vsel %vm4559_vm7, %v3795_v5, -inf  ;;  %v3125_v1 = vcombine.high %v3123_v13, %v3123_v13 }
 0x255   : > { %v4592_v18 = vmax.f32 %v4590_v7, %v4591_v11  ;;  %v3860_v19 = vrot.slane %v3859_v40, 4  ;;  %v3866_v8 = vsel %vm3662_vm6, %v3124_v36, -inf  ;;  %v3873_v16 = vsel %vm3662_vm6, %v3123_v13, -inf }
 0x256   : > { %v4593_v58 = vsel %vm4559_vm7, %v3802_v21, -inf  ;;  %v4850_v43 = vsel %vm4836_vm8, %v4589_v28, %v4586_v56  ;;  %v3867_v12 = vrot.slane %v3866_v8, 4  ;;  %v3874_v34 = vrot.slane %v3873_v16, 4  ;;  %v2721_v56 = vpop.f32.mrf.mxu0 }
 0x257   : > { %v4595_v61 = vmax.f32 %v4593_v58, %v4594_v49  ;;  %v4851_v20 = vsel %vm4838_vm9, %v4592_v18, %v4850_v43  ;;  %v3861_v14 = vmax.f32 %v3859_v40, %v3860_v19  ;;  %v3880_v2 = vsel %vm3662_vm6, %v3125_v1, -inf }
 0x258   : > { %v3868_v60 = vmax.f32 %v3866_v8, %v3867_v12  ;;  %v3875_v4 = vmax.f32 %v3873_v16, %v3874_v34  ;;  %v3881_v62 = vrot.slane %v3880_v2, 4  ;;  %v3075_v53 = vcombine.high %v2931_v38, %v2931_v38  ;;  %v8758_v12 = vpop.f32.mrf.mxu0 }
 0x259   : > { %v3862_v32 = vrot.slane %v3861_v14, 2  ;;  %v3082_v50 = vrot.slane %v2931_v38, %v10567_v42  ;;  %v10799_v11 = vsel %vm4840_vm10, %v4595_v61, %v4851_v20  ;;  %v2826_v63 = vadd.f32 %v8757_v24, %v10592_v55 }
 0x25a   : > { %v3869_v22 = vrot.slane %v3868_v60, 2  ;;  %v3876_v48 = vrot.slane %v3875_v4, 2  ;;  %v3882_v49 = vmax.f32 %v3880_v2, %v3881_v62  ;;  %v3089_v57 = vrot.slane %v3075_v53, %v10567_v42 }
 0x25b   : > { %v3863_v54 = vmax.f32 %v3861_v14, %v3862_v32  ;;  %v3090_v9 = vcombine.high %v3082_v50, %v3082_v50  ;;  %v3803_v5 = vsel %vm3662_vm6, %v3082_v50, -inf  ;;  %v2865_v41 = vmul.f32 %v10577_v37, %v2826_v63 }
 0x25c   : > { %v3870_v13 = vmax.f32 %v3868_v60, %v3869_v22  ;;  %v3877_v26 = vmax.f32 %v3875_v4, %v3876_v48  ;;  %v3883_v36 = vrot.slane %v3882_v49, 2  ;;  %v3091_v40 = vcombine.high %v3089_v57, %v3089_v57 }
 0x25d   : > { %v3864_v38 = vrot.slane %v3863_v54, 1  ;;  %v3804_v21 = vrot.slane %v3803_v5, 4  ;;  %v3810_v55 = vsel %vm3662_vm6, %v3090_v9, -inf  ;;  %v3817_v28 = vsel %vm3662_vm6, %v3089_v57, -inf  ;;  %v2724_v57 = vpop.f32.mrf.mxu0 }
 0x25e   : > { %v3871_v7 = vrot.slane %v3870_v13, 1  ;;  %v3878_v1 = vrot.slane %v3877_v26, 1  ;;  %v3884_v18 = vmax.f32 %v3882_v49, %v3883_v36  ;;  %v3811_v19 = vrot.slane %v3810_v55, 4 }
 0x25f   : > { %v3865_v8 = vmax.f32 %v3863_v54, %v3864_v38  ;;  %v3805_v16 = vmax.f32 %v3803_v5, %v3804_v21  ;;  %v3818_v58 = vrot.slane %v3817_v28, 4  ;;  %v3824_v43 = vsel %vm3662_vm6, %v3091_v40, -inf }
 0x260   : > { %v3872_v34 = vmax.f32 %v3870_v13, %v3871_v7  ;;  %v3879_v24 = vmax.f32 %v3877_v26, %v3878_v1  ;;  %v3885_v61 = vrot.slane %v3884_v18, 1  ;;  %v3812_v20 = vmax.f32 %v3810_v55, %v3811_v19 }
 0x261   : > { %v4597_v14 = vsel %vm4559_vm7, %v3865_v8, -inf  ;;  %v3806_v2 = vrot.slane %v3805_v16, 2  ;;  %v3819_v60 = vmax.f32 %v3817_v28, %v3818_v58  ;;  %v3825_v4 = vrot.slane %v3824_v43, 4 }
 0x262   : > { %v3886_v62 = vmax.f32 %v3884_v18, %v3885_v61  ;;  %v4600_v53 = vsel %vm4559_vm7, %v3872_v34, -inf  ;;  %v4603_v32 = vsel %vm4559_vm7, %v3879_v24, -inf  ;;  %v3813_v50 = vrot.slane %v3812_v20, 2 }
 0x263   : > { %v3807_v63 = vmax.f32 %v3805_v16, %v3806_v2  ;;  %v3820_v22 = vrot.slane %v3819_v60, 2  ;;  %v3826_v48 = vmax.f32 %v3824_v43, %v3825_v4  ;;  %v2904_v49 = vadd.f32 %v10608_v25, %v2865_v41 }
 0x264   : > { %v4606_v54 = vsel %vm4559_vm7, %v3886_v62, -inf  ;;  %v3814_v9 = vmax.f32 %v3812_v20, %v3813_v50  ;;  %v2824_v5 = vadd.f32 %v2721_v56, %v10595_v17  ;;  %v2827_v13 = vadd.f32 %v8758_v12, %v10599_v59 }
 0x265   : > { %v3808_v26 = vrot.slane %v3807_v63, 1  ;;  %v3821_v36 = vmax.f32 %v3819_v60, %v3820_v22  ;;  %v3827_v40 = vrot.slane %v3826_v48, 2  ;;  %v2936_v38 = vmax.f32 %v2904_v49, 0.0 }
 0x266   : > { %v3815_v21 = vrot.slane %v3814_v9, 1  ;;  %v2863_v55 = vmul.f32 %v10577_v37, %v2824_v5  ;;  %v2866_v28 = vmul.f32 %v10577_v37, %v2827_v13  ;;  %v10818_v7 = vadd.f32 %v2724_v57, %v10603_v23 }
 0x267   : > { %v3809_v41 = vmax.f32 %v3807_v63, %v3808_v26  ;;  %v3822_v1 = vrot.slane %v3821_v36, 1  ;;  %v3828_v18 = vmax.f32 %v3826_v48, %v3827_v40  ;;  %v3160_v19 = vcombine.high %v2936_v38, %v2936_v38 }
 0x268   : > { %v3816_v8 = vmax.f32 %v3814_v9, %v3815_v21  ;;  %v3167_v17 = vrot.slane %v2936_v38, %v10567_v42  ;;  %v2902_v59 = vadd.f32 %v10608_v25, %v2863_v55  ;;  %v2905_v56 = vadd.f32 %v10608_v25, %v2866_v28 }
 0x269   : > { %v3823_v16 = vmax.f32 %v3821_v36, %v3822_v1  ;;  %v3829_v58 = vrot.slane %v3828_v18, 1  ;;  %v4596_v43 = vsel %vm4559_vm7, %v3809_v41, -inf  ;;  %v3174_v12 = vrot.slane %v3160_v19, %v10567_v42 }
 0x26a   : > { %v4598_v34 = vmax.f32 %v4596_v43, %v4597_v14  ;;  %v4599_v23 = vsel %vm4559_vm7, %v3816_v8, -inf  ;;  %v3175_v24 = vcombine.high %v3167_v17, %v3167_v17  ;;  %v3943_v61 = vsel %vm3662_vm6, %v3167_v17, -inf }
 0x26b   : > { %v3830_v20 = vmax.f32 %v3828_v18, %v3829_v58  ;;  %v4601_v2 = vmax.f32 %v4599_v23, %v4600_v53  ;;  %v4602_v60 = vsel %vm4559_vm7, %v3823_v16, -inf  ;;  %v3176_v4 = vcombine.high %v3174_v12, %v3174_v12 }
 0x26c   : > { %v4604_v62 = vmax.f32 %v4602_v60, %v4603_v32  ;;  %v4853_v50 = vsel %vm4842_vm11, %v4598_v34, %v10799_v11  ;;  %v3944_v63 = vrot.slane %v3943_v61, 4  ;;  %v3950_v22 = vsel %vm3662_vm6, %v3175_v24, -inf }
 0x26d   : > { %v4605_v48 = vsel %vm4559_vm7, %v3830_v20, -inf  ;;  %v4854_v14 = vsel %vm4844_vm12, %v4601_v2, %v4853_v50  ;;  %v3951_v49 = vrot.slane %v3950_v22, 4  ;;  %v3957_v57 = vsel %vm3662_vm6, %v3174_v12, -inf }
 0x26e   : > { %v4607_v9 = vmax.f32 %v4605_v48, %v4606_v54  ;;  %v4855_v53 = vsel %vm4846_vm13, %v4604_v62, %v4854_v14  ;;  %v3945_v5 = vmax.f32 %v3943_v61, %v3944_v63  ;;  %v3958_v13 = vrot.slane %v3957_v57, 4 }
 0x26f   : > { %v3952_v26 = vmax.f32 %v3950_v22, %v3951_v49  ;;  %v3964_v32 = vsel %vm3662_vm6, %v3176_v4, -inf  ;;  %v2934_v36 = vmax.f32 %v2902_v59, 0.0  ;;  %v2937_v11 = vmax.f32 %v2905_v56, 0.0 }
 0x270   : > { %v4856_v40 = vsel %vm4848_vm14, %v4607_v9, %v4855_v53  ;;  %v3946_v38 = vrot.slane %v3945_v5, 2  ;;  %v3959_v21 = vmax.f32 %v3957_v57, %v3958_v13  ;;  %v3965_v55 = vrot.slane %v3964_v32, 4 }
 0x271   : > { %4909 = vst.msk [vmem:[#allocation3 + $0x21] sm:$0xff] %vm4559_vm7, %v4856_v40  ;;  %v3953_v28 = vrot.slane %v3952_v26, 2  ;;  %v3126_v41 = vcombine.high %v2934_v36, %v2934_v36  ;;  %v3133_v54 = vrot.slane %v2934_v36, %v10567_v42  ;;  %v3177_v1 = vcombine.high %v2937_v11, %v2937_v11 }
 0x272   : > { %v3947_v18 = vmax.f32 %v3945_v5, %v3946_v38  ;;  %v3960_v19 = vrot.slane %v3959_v21, 2  ;;  %v3966_v8 = vmax.f32 %v3964_v32, %v3965_v55  ;;  %v3184_v17 = vrot.slane %v2937_v11, %v10567_v42 }
 0x273   : > { %v3954_v16 = vmax.f32 %v3952_v26, %v3953_v28  ;;  %v3140_v59 = vrot.slane %v3126_v41, %v10567_v42  ;;  %v3141_v56 = vcombine.high %v3133_v54, %v3133_v54  ;;  %v3887_v58 = vsel %vm3662_vm6, %v3133_v54, -inf }
 0x274   : > { %v3948_v43 = vrot.slane %v3947_v18, 1  ;;  %v3961_v12 = vmax.f32 %v3959_v21, %v3960_v19  ;;  %v3967_v34 = vrot.slane %v3966_v8, 2  ;;  %v3888_v23 = vrot.slane %v3887_v58, 4 }
 0x275   : > { %v3955_v24 = vrot.slane %v3954_v16, 1  ;;  %v3142_v61 = vcombine.high %v3140_v59, %v3140_v59  ;;  %v3894_v20 = vsel %vm3662_vm6, %v3141_v56, -inf  ;;  %v3901_v2 = vsel %vm3662_vm6, %v3140_v59, -inf }
 0x276   : > { %v3949_v60 = vmax.f32 %v3947_v18, %v3948_v43  ;;  %v3962_v4 = vrot.slane %v3961_v12, 1  ;;  %v3968_v62 = vmax.f32 %v3966_v8, %v3967_v34  ;;  %v3889_v50 = vmax.f32 %v3887_v58, %v3888_v23 }
 0x277   : > { %v3956_v63 = vmax.f32 %v3954_v16, %v3955_v24  ;;  %v3895_v22 = vrot.slane %v3894_v20, 4  ;;  %v3902_v48 = vrot.slane %v3901_v2, 4  ;;  %v3908_v14 = vsel %vm3662_vm6, %v3142_v61, -inf }
 0x278   : > { %v3963_v49 = vmax.f32 %v3961_v12, %v3962_v4  ;;  %v3969_v57 = vrot.slane %v3968_v62, 1  ;;  %v4609_v9 = vsel %vm4559_vm7, %v3949_v60, -inf  ;;  %v3890_v53 = vrot.slane %v3889_v50, 2 }
 0x279   : > { %v4612_v5 = vsel %vm4559_vm7, %v3956_v63, -inf  ;;  %v3896_v13 = vmax.f32 %v3894_v20, %v3895_v22  ;;  %v3903_v26 = vmax.f32 %v3901_v2, %v3902_v48  ;;  %v3909_v32 = vrot.slane %v3908_v14, 4 }
 0x27a   : > { %v3970_v36 = vmax.f32 %v3968_v62, %v3969_v57  ;;  %v4615_v11 = vsel %vm4559_vm7, %v3963_v49, -inf  ;;  %v3891_v40 = vmax.f32 %v3889_v50, %v3890_v53  ;;  %v3191_v38 = vrot.slane %v3177_v1, %v10567_v42 }
 0x27b   : > { %v3897_v21 = vrot.slane %v3896_v13, 2  ;;  %v3904_v55 = vrot.slane %v3903_v26, 2  ;;  %v3910_v28 = vmax.f32 %v3908_v14, %v3909_v32  ;;  %v3192_v41 = vcombine.high %v3184_v17, %v3184_v17 }
 0x27c   : > { %v4618_v54 = vsel %vm4559_vm7, %v3970_v36, -inf  ;;  %v3892_v18 = vrot.slane %v3891_v40, 1  ;;  %v3193_v19 = vcombine.high %v3191_v38, %v3191_v38  ;;  %v3971_v8 = vsel %vm3662_vm6, %v3184_v17, -inf  ;;  %v8761_v36 = vpop.f32.mrf.mxu0 }
 0x27d   : > { %v3898_v16 = vmax.f32 %v3896_v13, %v3897_v21  ;;  %v3905_v59 = vmax.f32 %v3903_v26, %v3904_v55  ;;  %v3911_v56 = vrot.slane %v3910_v28, 2  ;;  %v3972_v58 = vrot.slane %v3971_v8, 4 }
 0x27e   : > { %v3893_v43 = vmax.f32 %v3891_v40, %v3892_v18  ;;  %v3978_v12 = vsel %vm3662_vm6, %v3192_v41, -inf  ;;  %v3985_v34 = vsel %vm3662_vm6, %v3191_v38, -inf  ;;  %v3992_v1 = vsel %vm3662_vm6, %v3193_v19, -inf }
 0x27f   : > { %v3899_v23 = vrot.slane %v3898_v16, 1  ;;  %v3906_v24 = vrot.slane %v3905_v59, 1  ;;  %v3912_v61 = vmax.f32 %v3910_v28, %v3911_v56  ;;  %v3973_v20 = vmax.f32 %v3971_v8, %v3972_v58 }
 0x280   : > { %v4608_v2 = vsel %vm4559_vm7, %v3893_v43, -inf  ;;  %v3979_v60 = vrot.slane %v3978_v12, 4  ;;  %v3986_v4 = vrot.slane %v3985_v34, 4  ;;  %v3993_v17 = vrot.slane %v3992_v1, 4 }
 0x281   : > { %v3900_v62 = vmax.f32 %v3898_v16, %v3899_v23  ;;  %v3907_v50 = vmax.f32 %v3905_v59, %v3906_v24  ;;  %v3913_v63 = vrot.slane %v3912_v61, 1  ;;  %v4610_v22 = vmax.f32 %v4608_v2, %v4609_v9 }
 0x282   : > { %v3974_v48 = vrot.slane %v3973_v20, 2  ;;  %v3980_v14 = vmax.f32 %v3978_v12, %v3979_v60  ;;  %v3987_v49 = vmax.f32 %v3985_v34, %v3986_v4  ;;  %v3994_v57 = vmax.f32 %v3992_v1, %v3993_v17 }
 0x283   : > { %v3914_v53 = vmax.f32 %v3912_v61, %v3913_v63  ;;  %v4611_v13 = vsel %vm4559_vm7, %v3900_v62, -inf  ;;  %v4614_v26 = vsel %vm4559_vm7, %v3907_v50, -inf  ;;  %v2864_v32 = vmul.f32 %v10577_v37, %v10818_v7 }
 0x284   : > { %v4613_v40 = vmax.f32 %v4611_v13, %v4612_v5  ;;  %v4616_v38 = vmax.f32 %v4614_v26, %v4615_v11  ;;  %v3975_v21 = vmax.f32 %v3973_v20, %v3974_v48  ;;  %v3981_v55 = vrot.slane %v3980_v14, 2  ;;  %v2737_v5 = vpop.f32.mrf.mxu0  ;;  %v10874_v20 = vld [vmem:[%s12200_s2] ss:$0 sm:$0xff] }
 0x285   : > { %v4617_v28 = vsel %vm4559_vm7, %v3914_v53, -inf  ;;  %v3988_v9 = vrot.slane %v3987_v49, 2  ;;  %v3995_v41 = vrot.slane %v3994_v57, 2  ;;  %v2903_v18 = vadd.f32 %v10608_v25, %v2864_v32 }
 0x286   : > { %v4619_v19 = vmax.f32 %v4617_v28, %v4618_v54  ;;  %v4857_v8 = vsel %vm4836_vm8, %v4613_v40, %v4610_v22  ;;  %v3976_v16 = vrot.slane %v3975_v21, 1  ;;  %v3982_v59 = vmax.f32 %v3980_v14, %v3981_v55  ;;  %v10886_v22 = vld [vmem:[%s12201_s3] ss:$0 sm:$0xff]  ;;  %v10903_v28 = vld [vmem:[%s12202_s4 + $0x4] sm:$0xf] }
 0x287   : > { %v4858_v56 = vsel %vm4838_vm9, %v4616_v38, %v4857_v8  ;;  %v3989_v58 = vmax.f32 %v3987_v49, %v3988_v9  ;;  %v3996_v37 = vmax.f32 %v3994_v57, %v3995_v41  ;;  %v2935_v7 = vmax.f32 %v2903_v18, 0.0  ;;  %8869 = vmatprep.subr.msk.bf16.mxu1 %vm5007_vm15, %v10903_v28 }
 0x288   : > { %v3977_v11 = vmax.f32 %v3975_v21, %v3976_v16  ;;  %v3983_v43 = vrot.slane %v3982_v59, 1  ;;  %v10864_v12 = vsel %vm4840_vm10, %v4619_v19, %v4858_v56  ;;  %v2830_v34 = vadd.f32 %v8761_v36, %v10612_v44 }
 0x289   : > { %v3990_v1 = vrot.slane %v3989_v58, 1  ;;  %v3997_v25 = vrot.slane %v3996_v37, 1  ;;  %v3143_v54 = vcombine.high %v2935_v7, %v2935_v7  ;;  %v3150_v23 = vrot.slane %v2935_v7, %v10567_v42 }
 0x28a   : > { %v3984_v24 = vmax.f32 %v3982_v59, %v3983_v43  ;;  %v10869_v61 = vsel %vm4559_vm7, %v3977_v11, -inf  ;;  %v2869_v2 = vmul.f32 %v10874_v20, %v2830_v34  ;;  %v2828_v60 = vadd.f32 %v2737_v5, %v10616_v31 }
 0x28b   : > { %v3991_v4 = vmax.f32 %v3989_v58, %v3990_v1  ;;  %v3998_v44 = vmax.f32 %v3996_v37, %v3997_v25  ;;  %v3157_v17 = vrot.slane %v3143_v54, %v10567_v42  ;;  %v3158_v62 = vcombine.high %v3150_v23, %v3150_v23 }
 0x28c   : > { %v10880_v50 = vsel %vm4559_vm7, %v3984_v24, -inf  ;;  %v3915_v63 = vsel %vm3662_vm6, %v3150_v23, -inf  ;;  %v2908_v48 = vadd.f32 %v10886_v22, %v2869_v2  ;;  %v2867_v14 = vmul.f32 %v10874_v20, %v2828_v60 }
 0x28d   : > { %v10891_v31 = vsel %vm4559_vm7, %v3991_v4, -inf  ;;  %v10894_v49 = vsel %vm4559_vm7, %v3998_v44, -inf  ;;  %v3159_v57 = vcombine.high %v3157_v17, %v3157_v17  ;;  %v3916_v53 = vrot.slane %v3915_v63, 4 }
 0x28e   : > { %v3922_v13 = vsel %vm3662_vm6, %v3158_v62, -inf  ;;  %v3929_v26 = vsel %vm3662_vm6, %v3157_v17, -inf  ;;  %v2940_v32 = vmax.f32 %v2908_v48, 0.0  ;;  %v2906_v36 = vadd.f32 %v10886_v22, %v2867_v14 }
 0x28f   : > { %v3917_v40 = vmax.f32 %v3915_v63, %v3916_v53  ;;  %v3923_v38 = vrot.slane %v3922_v13, 4  ;;  %v3930_v21 = vrot.slane %v3929_v26, 4  ;;  %v3936_v55 = vsel %vm3662_vm6, %v3159_v57, -inf }
 0x290   : > { %v3937_v9 = vrot.slane %v3936_v55, 4  ;;  %v3228_v41 = vcombine.high %v2940_v32, %v2940_v32  ;;  %v3235_v18 = vrot.slane %v2940_v32, %v10567_v42  ;;  %v10906_v19 = vmax.f32 %v2906_v36, 0.0 }
 0x291   : > { %v3918_v8 = vrot.slane %v3917_v40, 2  ;;  %v3924_v16 = vmax.f32 %v3922_v13, %v3923_v38  ;;  %v3931_v59 = vmax.f32 %v3929_v26, %v3930_v21 }
 0x292   : > { %v3938_v56 = vmax.f32 %v3936_v55, %v3937_v9  ;;  %v3242_v58 = vrot.slane %v3228_v41, %v10567_v42  ;;  %v3243_v37 = vcombine.high %v3235_v18, %v3235_v18  ;;  %v4055_v7 = vsel %vm3662_vm6, %v3235_v18, -inf  ;;  %v8762_v9 = vpop.f32.mrf.mxu0 }
 0x293   : > { %v3919_v5 = vmax.f32 %v3917_v40, %v3918_v8  ;;  %v3925_v11 = vrot.slane %v3924_v16, 2  ;;  %v3932_v43 = vrot.slane %v3931_v59, 2  ;;  %v4056_v34 = vrot.slane %v4055_v7, 4 }
 0x294   : > { %v3939_v1 = vrot.slane %v3938_v56, 2  ;;  %v3244_v25 = vcombine.high %v3242_v58, %v3242_v58  ;;  %v4062_v54 = vsel %vm3662_vm6, %v3243_v37, -inf  ;;  %v4069_v23 = vsel %vm3662_vm6, %v3242_v58, -inf }
 0x295   : > { %v3920_v24 = vrot.slane %v3919_v5, 1  ;;  %v3926_v2 = vmax.f32 %v3924_v16, %v3925_v11  ;;  %v3933_v60 = vmax.f32 %v3931_v59, %v3932_v43  ;;  %v4057_v4 = vmax.f32 %v4055_v7, %v4056_v34 }
 0x296   : > { %v3940_v44 = vmax.f32 %v3938_v56, %v3939_v1  ;;  %v4063_v17 = vrot.slane %v4062_v54, 4  ;;  %v4070_v62 = vrot.slane %v4069_v23, 4  ;;  %v4076_v63 = vsel %vm3662_vm6, %v3244_v25, -inf }
 0x297   : > { %v3921_v48 = vmax.f32 %v3919_v5, %v3920_v24  ;;  %v3927_v14 = vrot.slane %v3926_v2, 1  ;;  %v3934_v57 = vrot.slane %v3933_v60, 1  ;;  %v4058_v53 = vrot.slane %v4057_v4, 2 }
 0x298   : > { %v3941_v13 = vrot.slane %v3940_v44, 1  ;;  %v4064_v26 = vmax.f32 %v4062_v54, %v4063_v17  ;;  %v4071_v32 = vmax.f32 %v4069_v23, %v4070_v62  ;;  %v4077_v36 = vrot.slane %v4076_v63, 4  ;;  %v2740_v54 = vpop.f32.mrf.mxu0 }
 0x299   : > { %v3928_v40 = vmax.f32 %v3926_v2, %v3927_v14  ;;  %v3935_v38 = vmax.f32 %v3933_v60, %v3934_v57  ;;  %v4620_v21 = vsel %vm4559_vm7, %v3921_v48, -inf  ;;  %v4059_v55 = vmax.f32 %v4057_v4, %v4058_v53 }
 0x29a   : > { %v3942_v41 = vmax.f32 %v3940_v44, %v3941_v13  ;;  %v4622_v18 = vmax.f32 %v4620_v21, %v10869_v61  ;;  %v4065_v8 = vrot.slane %v4064_v26, 2  ;;  %v4072_v16 = vrot.slane %v4071_v32, 2  ;;  %v8765_v57 = vpop.f32.mrf.mxu0 }
 0x29b   : > { %v4623_v59 = vsel %vm4559_vm7, %v3928_v40, -inf  ;;  %v4626_v56 = vsel %vm4559_vm7, %v3935_v38, -inf  ;;  %v4060_v58 = vrot.slane %v4059_v55, 1  ;;  %v4078_v37 = vmax.f32 %v4076_v63, %v4077_v36 }
 0x29c   : > { %v4625_v7 = vmax.f32 %v4623_v59, %v10880_v50  ;;  %v4628_v5 = vmax.f32 %v4626_v56, %v10891_v31  ;;  %v4629_v11 = vsel %vm4559_vm7, %v3942_v41, -inf  ;;  %v4860_v43 = vsel %vm4842_vm11, %v4622_v18, %v10864_v12 }
 0x29d   : > { %v4631_v34 = vmax.f32 %v4629_v11, %v10894_v49  ;;  %v4061_v61 = vmax.f32 %v4059_v55, %v4060_v58  ;;  %v4066_v1 = vmax.f32 %v4064_v26, %v4065_v8  ;;  %v4073_v25 = vmax.f32 %v4071_v32, %v4072_v16  ;;  %v2753_v58 = vpop.f32.mrf.mxu0 }
 0x29e   : > { %v4861_v23 = vsel %vm4844_vm12, %v4625_v7, %v4860_v43  ;;  %v4079_v24 = vrot.slane %v4078_v37, 2  ;;  %v3194_v2 = vcombine.high %v10906_v19, %v10906_v19  ;;  %v3201_v50 = vrot.slane %v10906_v19, %v10567_v42 }
 0x29f   : > { %v4862_v31 = vsel %vm4846_vm13, %v4628_v5, %v4861_v23  ;;  %v4067_v60 = vrot.slane %v4066_v1, 1  ;;  %v4074_v4 = vrot.slane %v4073_v25, 1  ;;  %v10932_v12 = vsel %vm4559_vm7, %v4061_v61, -inf }
 0x2a0   : > { %v4863_v49 = vsel %vm4848_vm14, %v4631_v34, %v4862_v31  ;;  %v4080_v44 = vmax.f32 %v4078_v37, %v4079_v24  ;;  %v3208_v17 = vrot.slane %v3194_v2, %v10567_v42  ;;  %v3209_v62 = vcombine.high %v3201_v50, %v3201_v50 }
 0x2a1   : > { %4910 = vst.msk [vmem:[#allocation3 + $0x31] sm:$0xff] %vm4559_vm7, %v4863_v49  ;;  %v4068_v63 = vmax.f32 %v4066_v1, %v4067_v60  ;;  %v4075_v48 = vmax.f32 %v4073_v25, %v4074_v4  ;;  %v3999_v14 = vsel %vm3662_vm6, %v3201_v50, -inf  ;;  %v5009_v19 = vsel %vm5007_vm15, %v10903_v28, 0 }
 0x2a2   : > { %v4081_v53 = vrot.slane %v4080_v44, 1  ;;  %v3210_v13 = vcombine.high %v3208_v17, %v3208_v17  ;;  %v4000_v26 = vrot.slane %v3999_v14, 4  ;;  %v4006_v32 = vsel %vm3662_vm6, %v3209_v62, -inf  ;;  %8780 = vmatpush3.bf16.msra.mxu1 %v5009_v19 }
 0x2a3   : > { %v10942_v36 = vsel %vm4559_vm7, %v4068_v63, -inf  ;;  %v10945_v40 = vsel %vm4559_vm7, %v4075_v48, -inf  ;;  %v4007_v38 = vrot.slane %v4006_v32, 4  ;;  %v4013_v21 = vsel %vm3662_vm6, %v3208_v17, -inf }
 0x2a4   : > { %v4082_v55 = vmax.f32 %v4080_v44, %v4081_v53  ;;  %v4001_v41 = vmax.f32 %v3999_v14, %v4000_v26  ;;  %v4014_v18 = vrot.slane %v4013_v21, 4  ;;  %v4020_v28 = vsel %vm3662_vm6, %v3210_v13, -inf }
 0x2a5   : > { %v4008_v8 = vmax.f32 %v4006_v32, %v4007_v38  ;;  %v4021_v16 = vrot.slane %v4020_v28, 4  ;;  %v2831_v59 = vadd.f32 %v8762_v9, %v10621_v15  ;;  %v2829_v56 = vadd.f32 %v2740_v54, %v10625_v33 }
 0x2a6   : > { %v10952_v37 = vsel %vm4559_vm7, %v4082_v55, -inf  ;;  %v4002_v7 = vrot.slane %v4001_v41, 2  ;;  %v4015_v5 = vmax.f32 %v4013_v21, %v4014_v18  ;;  %v2834_v11 = vadd.f32 %v8765_v57, %v10629_v6 }
 0x2a7   : > { %v4009_v43 = vrot.slane %v4008_v8, 2  ;;  %v4022_v34 = vmax.f32 %v4020_v28, %v4021_v16  ;;  %v2870_v61 = vmul.f32 %v10874_v20, %v2831_v59  ;;  %v2868_v1 = vmul.f32 %v10874_v20, %v2829_v56 }
 0x2a8   : > { %v4003_v25 = vmax.f32 %v4001_v41, %v4002_v7  ;;  %v4016_v23 = vrot.slane %v4015_v5, 2  ;;  %v2873_v15 = vmul.f32 %v10874_v20, %v2834_v11  ;;  %v2832_v33 = vadd.f32 %v2753_v58, %v10633_v29 }
 0x2a9   : > { %v4010_v9 = vmax.f32 %v4008_v8, %v4009_v43  ;;  %v4023_v54 = vrot.slane %v4022_v34, 2  ;;  %v2909_v24 = vadd.f32 %v10886_v22, %v2870_v61  ;;  %v2907_v2 = vadd.f32 %v10886_v22, %v2868_v1 }
 0x2aa   : > { %v4004_v50 = vrot.slane %v4003_v25, 1  ;;  %v4017_v6 = vmax.f32 %v4015_v5, %v4016_v23  ;;  %v2912_v31 = vadd.f32 %v10886_v22, %v2873_v15  ;;  %v2871_v60 = vmul.f32 %v10874_v20, %v2832_v33 }
 0x2ab   : > { %v4011_v4 = vrot.slane %v4010_v9, 1  ;;  %v4024_v49 = vmax.f32 %v4022_v34, %v4023_v54  ;;  %v2941_v44 = vmax.f32 %v2909_v24, 0.0  ;;  %v2939_v17 = vmax.f32 %v2907_v2, 0.0 }
 0x2ac   : > { %v4005_v62 = vmax.f32 %v4003_v25, %v4004_v50  ;;  %v4018_v63 = vrot.slane %v4017_v6, 1  ;;  %v10963_v48 = vmax.f32 %v2912_v31, 0.0  ;;  %v10966_v29 = vadd.f32 %v10886_v22, %v2871_v60 }
 0x2ad   : > { %v4012_v14 = vmax.f32 %v4010_v9, %v4011_v4  ;;  %v4025_v19 = vrot.slane %v4024_v49, 1  ;;  %v3245_v57 = vcombine.high %v2941_v44, %v2941_v44  ;;  %v3252_v53 = vrot.slane %v2941_v44, %v10567_v42 }
 0x2ae   : > { %v4019_v13 = vmax.f32 %v4017_v6, %v4018_v63  ;;  %v4632_v26 = vsel %vm4559_vm7, %v4005_v62, -inf  ;;  %v3211_v32 = vcombine.high %v2939_v17, %v2939_v17  ;;  %v3218_v38 = vrot.slane %v2939_v17, %v10567_v42 }
 0x2af   : > { %v4026_v21 = vmax.f32 %v4024_v49, %v4025_v19  ;;  %v4634_v55 = vmax.f32 %v4632_v26, %v10932_v12  ;;  %v4635_v41 = vsel %vm4559_vm7, %v4012_v14, -inf  ;;  %v3259_v18 = vrot.slane %v3245_v57, %v10567_v42 }
 0x2b0   : > { %v4637_v28 = vmax.f32 %v4635_v41, %v10942_v36  ;;  %v4638_v8 = vsel %vm4559_vm7, %v4019_v13, -inf  ;;  %v3260_v16 = vcombine.high %v3252_v53, %v3252_v53  ;;  %v4083_v59 = vsel %vm3662_vm6, %v3252_v53, -inf }
 0x2b1   : > { %v4640_v56 = vmax.f32 %v4638_v8, %v10945_v40  ;;  %v4641_v58 = vsel %vm4559_vm7, %v4026_v21, -inf  ;;  %v3261_v7 = vcombine.high %v3259_v18, %v3259_v18  ;;  %v4084_v5 = vrot.slane %v4083_v59, 4 }
 0x2b2   : > { %v4643_v11 = vmax.f32 %v4641_v58, %v10952_v37  ;;  %v4864_v12 = vsel %vm4836_vm8, %v4637_v28, %v4634_v55  ;;  %v4090_v43 = vsel %vm3662_vm6, %v3260_v16, -inf  ;;  %v4097_v34 = vsel %vm3662_vm6, %v3259_v18, -inf }
 0x2b3   : > { %v4865_v36 = vsel %vm4838_vm9, %v4640_v56, %v4864_v12  ;;  %v4085_v61 = vmax.f32 %v4083_v59, %v4084_v5  ;;  %v4091_v1 = vrot.slane %v4090_v43, 4  ;;  %v4098_v25 = vrot.slane %v4097_v34, 4 }
 0x2b4   : > { %v4104_v23 = vsel %vm3662_vm6, %v3261_v7, -inf  ;;  %v3225_v40 = vrot.slane %v3211_v32, %v10567_v42  ;;  %v3226_v15 = vcombine.high %v3218_v38, %v3218_v38  ;;  %v4027_v33 = vsel %vm3662_vm6, %v3218_v38, -inf }
 0x2b5   : > { %v4086_v9 = vrot.slane %v4085_v61, 2  ;;  %v4092_v37 = vmax.f32 %v4090_v43, %v4091_v1  ;;  %v4099_v54 = vmax.f32 %v4097_v34, %v4098_v25  ;;  %v4105_v24 = vrot.slane %v4104_v23, 4 }
 0x2b6   : > { %v3227_v2 = vcombine.high %v3225_v40, %v3225_v40  ;;  %v4028_v50 = vrot.slane %v4027_v33, 4  ;;  %v4034_v6 = vsel %vm3662_vm6, %v3226_v15, -inf  ;;  %v4041_v31 = vsel %vm3662_vm6, %v3225_v40, -inf }
 0x2b7   : > { %v4087_v60 = vmax.f32 %v4085_v61, %v4086_v9  ;;  %v4093_v4 = vrot.slane %v4092_v37, 2  ;;  %v4100_v49 = vrot.slane %v4099_v54, 2  ;;  %v4106_v44 = vmax.f32 %v4104_v23, %v4105_v24 }
 0x2b8   : > { %v4029_v17 = vmax.f32 %v4027_v33, %v4028_v50  ;;  %v4035_v62 = vrot.slane %v4034_v6, 4  ;;  %v4042_v63 = vrot.slane %v4041_v31, 4  ;;  %v4048_v14 = vsel %vm3662_vm6, %v3227_v2, -inf }
 0x2b9   : > { %v4088_v19 = vrot.slane %v4087_v60, 1  ;;  %v4094_v57 = vmax.f32 %v4092_v37, %v4093_v4  ;;  %v4101_v53 = vmax.f32 %v4099_v54, %v4100_v49  ;;  %v4107_v13 = vrot.slane %v4106_v44, 2 }
 0x2ba   : > { %v4030_v26 = vrot.slane %v4029_v17, 2  ;;  %v4036_v32 = vmax.f32 %v4034_v6, %v4035_v62  ;;  %v4043_v38 = vmax.f32 %v4041_v31, %v4042_v63  ;;  %v4049_v21 = vrot.slane %v4048_v14, 4 }
 0x2bb   : > { %v4089_v55 = vmax.f32 %v4087_v60, %v4088_v19  ;;  %v4095_v41 = vrot.slane %v4094_v57, 1  ;;  %v4102_v18 = vrot.slane %v4101_v53, 1  ;;  %v4108_v28 = vmax.f32 %v4106_v44, %v4107_v13 }
 0x2bc   : > { %v4031_v8 = vmax.f32 %v4029_v17, %v4030_v26  ;;  %v4037_v16 = vrot.slane %v4036_v32, 2  ;;  %v4044_v59 = vrot.slane %v4043_v38, 2  ;;  %v4050_v56 = vmax.f32 %v4048_v14, %v4049_v21 }
 0x2bd   : > { %v4096_v58 = vmax.f32 %v4094_v57, %v4095_v41  ;;  %v4103_v7 = vmax.f32 %v4101_v53, %v4102_v18  ;;  %v4109_v5 = vrot.slane %v4108_v28, 1  ;;  %v4645_v12 = vsel %vm4559_vm7, %v4089_v55, -inf }
 0x2be   : > { %v4032_v43 = vrot.slane %v4031_v8, 1  ;;  %v4038_v34 = vmax.f32 %v4036_v32, %v4037_v16  ;;  %v4045_v61 = vmax.f32 %v4043_v38, %v4044_v59  ;;  %v4051_v1 = vrot.slane %v4050_v56, 2 }
 0x2bf   : > { %v4110_v25 = vmax.f32 %v4108_v28, %v4109_v5  ;;  %v4648_v23 = vsel %vm4559_vm7, %v4096_v58, -inf  ;;  %v4651_v40 = vsel %vm4559_vm7, %v4103_v7, -inf  ;;  %v4866_v15 = vsel %vm4840_vm10, %v4643_v11, %v4865_v36 }
 0x2c0   : > { %v4033_v33 = vmax.f32 %v4031_v8, %v4032_v43  ;;  %v4039_v9 = vrot.slane %v4038_v34, 1  ;;  %v4046_v37 = vrot.slane %v4045_v61, 1  ;;  %v4052_v54 = vmax.f32 %v4050_v56, %v4051_v1 }
 0x2c1   : > { %v4654_v24 = vsel %vm4559_vm7, %v4110_v25, -inf  ;;  %v3296_v2 = vcombine.high %v10963_v48, %v10963_v48  ;;  %v3303_v50 = vrot.slane %v10963_v48, %v10567_v42  ;;  %v2942_v6 = vmax.f32 %v10966_v29, 0.0  ;;  %v8766_v48 = vpop.f32.mrf.mxu0 }
 0x2c2   : > { %v4040_v31 = vmax.f32 %v4038_v34, %v4039_v9  ;;  %v4047_v60 = vmax.f32 %v4045_v61, %v4046_v37  ;;  %v4053_v4 = vrot.slane %v4052_v54, 1  ;;  %v4644_v49 = vsel %vm4559_vm7, %v4033_v33, -inf }
 0x2c3   : > { %v4646_v11 = vmax.f32 %v4644_v49, %v4645_v12  ;;  %v3310_v36 = vrot.slane %v3296_v2, %v10567_v42  ;;  %v3311_v44 = vcombine.high %v3303_v50, %v3303_v50  ;;  %v4167_v17 = vsel %vm3662_vm6, %v3303_v50, -inf  ;;  %v2756_v58 = vpop.f32.mrf.mxu0 }
 0x2c4   : > { %v4054_v62 = vmax.f32 %v4052_v54, %v4053_v4  ;;  %v4647_v63 = vsel %vm4559_vm7, %v4040_v31, -inf  ;;  %v4650_v14 = vsel %vm4559_vm7, %v4047_v60, -inf  ;;  %v4168_v19 = vrot.slane %v4167_v17, 4 }
 0x2c5   : > { %v4649_v57 = vmax.f32 %v4647_v63, %v4648_v23  ;;  %v4652_v29 = vmax.f32 %v4650_v14, %v4651_v40  ;;  %v4867_v53 = vsel %vm4842_vm11, %v4646_v11, %v4866_v15  ;;  %v3312_v13 = vcombine.high %v3310_v36, %v3310_v36 }
 0x2c6   : > { %v4653_v26 = vsel %vm4559_vm7, %v4054_v62, -inf  ;;  %v4169_v32 = vmax.f32 %v4167_v17, %v4168_v19  ;;  %v4174_v38 = vsel %vm3662_vm6, %v3311_v44, -inf  ;;  %v4181_v21 = vsel %vm3662_vm6, %v3310_v36, -inf  ;;  %v8769_v19 = vpop.f32.mrf.mxu0 }
 0x2c7   : > { %v4655_v55 = vmax.f32 %v4653_v26, %v4654_v24  ;;  %v4868_v41 = vsel %vm4844_vm12, %v4649_v57, %v4867_v53  ;;  %v4175_v18 = vrot.slane %v4174_v38, 4  ;;  %v4182_v28 = vrot.slane %v4181_v21, 4 }
 0x2c8   : > { %v4869_v8 = vsel %vm4846_vm13, %v4652_v29, %v4868_v41  ;;  %v4170_v16 = vrot.slane %v4169_v32, 2  ;;  %v4188_v59 = vsel %vm3662_vm6, %v3312_v13, -inf  ;;  %v3262_v56 = vcombine.high %v2942_v6, %v2942_v6 }
 0x2c9   : > { %v4870_v7 = vsel %vm4848_vm14, %v4655_v55, %v4869_v8  ;;  %v4176_v5 = vmax.f32 %v4174_v38, %v4175_v18  ;;  %v4183_v12 = vmax.f32 %v4181_v21, %v4182_v28  ;;  %v4189_v43 = vrot.slane %v4188_v59, 4 }
 0x2ca   : > { %4911 = vst.msk [vmem:[#allocation3 + $0x41] sm:$0xff] %vm4559_vm7, %v4870_v7  ;;  %v4171_v34 = vmax.f32 %v4169_v32, %v4170_v16  ;;  %v3269_v61 = vrot.slane %v2942_v6, %v10567_v42  ;;  %v3276_v1 = vrot.slane %v3262_v56, %v10567_v42  ;;  %v2835_v25 = vadd.f32 %v8766_v48, %v10637_v3  ;;  %v2769_v56 = vpop.f32.mrf.mxu0 }
 0x2cb   : > { %v4177_v23 = vrot.slane %v4176_v5, 2  ;;  %v4184_v40 = vrot.slane %v4183_v12, 2  ;;  %v4190_v15 = vmax.f32 %v4188_v59, %v4189_v43  ;;  %v2833_v33 = vadd.f32 %v2756_v58, %v10643_v10 }
 0x2cc   : > { %v4172_v9 = vrot.slane %v4171_v34, 1  ;;  %v3277_v37 = vcombine.high %v3269_v61, %v3269_v61  ;;  %v3278_v54 = vcombine.high %v3276_v1, %v3276_v1  ;;  %v4111_v24 = vsel %vm3662_vm6, %v3269_v61, -inf }
 0x2cd   : > { %v4178_v2 = vmax.f32 %v4176_v5, %v4177_v23  ;;  %v4185_v50 = vmax.f32 %v4183_v12, %v4184_v40  ;;  %v4191_v31 = vrot.slane %v4190_v15, 2  ;;  %v4112_v60 = vrot.slane %v4111_v24, 4 }
 0x2ce   : > { %v4173_v4 = vmax.f32 %v4171_v34, %v4172_v9  ;;  %v4118_v6 = vsel %vm3662_vm6, %v3277_v37, -inf  ;;  %v4125_v49 = vsel %vm3662_vm6, %v3276_v1, -inf  ;;  %v4132_v3 = vsel %vm3662_vm6, %v3278_v54, -inf }
 0x2cf   : > { %v4179_v11 = vrot.slane %v4178_v2, 1  ;;  %v4186_v36 = vrot.slane %v4185_v50, 1  ;;  %v4192_v44 = vmax.f32 %v4190_v15, %v4191_v31  ;;  %v4113_v10 = vmax.f32 %v4111_v24, %v4112_v60 }
 0x2d0   : > { %v11023_v17 = vsel %vm4559_vm7, %v4173_v4, -inf  ;;  %v4119_v62 = vrot.slane %v4118_v6, 4  ;;  %v4126_v63 = vrot.slane %v4125_v49, 4  ;;  %v4133_v14 = vrot.slane %v4132_v3, 4 }
 0x2d1   : > { %v4180_v48 = vmax.f32 %v4178_v2, %v4179_v11  ;;  %v4187_v57 = vmax.f32 %v4185_v50, %v4186_v36  ;;  %v4193_v29 = vrot.slane %v4192_v44, 1  ;;  %v4114_v53 = vrot.slane %v4113_v10, 2 }
 0x2d2   : > { %v4120_v13 = vmax.f32 %v4118_v6, %v4119_v62  ;;  %v4127_v26 = vmax.f32 %v4125_v49, %v4126_v63  ;;  %v4134_v32 = vmax.f32 %v4132_v3, %v4133_v14  ;;  %v2874_v38 = vmul.f32 %v10874_v20, %v2835_v25 }
 0x2d3   : > { %v4194_v21 = vmax.f32 %v4192_v44, %v4193_v29  ;;  %v4660_v55 = vsel %vm4559_vm7, %v4180_v48, -inf  ;;  %v4663_v41 = vsel %vm4559_vm7, %v4187_v57, -inf  ;;  %v4115_v18 = vmax.f32 %v4113_v10, %v4114_v53 }
 0x2d4   : > { %v4121_v28 = vrot.slane %v4120_v13, 2  ;;  %v4128_v8 = vrot.slane %v4127_v26, 2  ;;  %v4135_v16 = vrot.slane %v4134_v32, 2  ;;  %v2913_v59 = vadd.f32 %v10886_v22, %v2874_v38 }
 0x2d5   : > { %v11030_v58 = vsel %vm4559_vm7, %v4194_v21, -inf  ;;  %v4116_v7 = vrot.slane %v4115_v18, 1  ;;  %v2872_v5 = vmul.f32 %v10874_v20, %v2833_v33  ;;  %v2838_v12 = vadd.f32 %v8769_v19, %v10647_v46 }
 0x2d6   : > { %v4122_v43 = vmax.f32 %v4120_v13, %v4121_v28  ;;  %v4129_v34 = vmax.f32 %v4127_v26, %v4128_v8  ;;  %v4136_v61 = vmax.f32 %v4134_v32, %v4135_v16  ;;  %v2945_v1 = vmax.f32 %v2913_v59, 0.0 }
 0x2d7   : > { %v4117_v25 = vmax.f32 %v4115_v18, %v4116_v7  ;;  %v2911_v23 = vadd.f32 %v10886_v22, %v2872_v5  ;;  %v2877_v40 = vmul.f32 %v10874_v20, %v2838_v12  ;;  %v11037_v15 = vadd.f32 %v2769_v56, %v10651_v45 }
 0x2d8   : > { %v4123_v9 = vrot.slane %v4122_v43, 1  ;;  %v4130_v37 = vrot.slane %v4129_v34, 1  ;;  %v4137_v54 = vrot.slane %v4136_v61, 1  ;;  %v3313_v24 = vcombine.high %v2945_v1, %v2945_v1 }
 0x2d9   : > { %v4656_v33 = vsel %vm4559_vm7, %v4117_v25, -inf  ;;  %v3320_v46 = vrot.slane %v2945_v1, %v10567_v42  ;;  %v2943_v2 = vmax.f32 %v2911_v23, 0.0  ;;  %v11042_v50 = vadd.f32 %v10886_v22, %v2877_v40 }
 0x2da   : > { %v4124_v31 = vmax.f32 %v4122_v43, %v4123_v9  ;;  %v4131_v60 = vmax.f32 %v4129_v34, %v4130_v37  ;;  %v4138_v4 = vmax.f32 %v4136_v61, %v4137_v54  ;;  %v4658_v6 = vmax.f32 %v4656_v33, %v11023_v17 }
 0x2db   : > { %v3327_v45 = vrot.slane %v3313_v24, %v10567_v42  ;;  %v3328_v49 = vcombine.high %v3320_v46, %v3320_v46  ;;  %v4195_v3 = vsel %vm3662_vm6, %v3320_v46, -inf  ;;  %v3279_v11 = vcombine.high %v2943_v2, %v2943_v2 }
 0x2dc   : > { %v4659_v36 = vsel %vm4559_vm7, %v4124_v31, -inf  ;;  %v4662_v44 = vsel %vm4559_vm7, %v4131_v60, -inf  ;;  %v4665_v10 = vsel %vm4559_vm7, %v4138_v4, -inf  ;;  %v4196_v62 = vrot.slane %v4195_v3, 4 }
 0x2dd   : > { %v4661_v63 = vmax.f32 %v4659_v36, %v4660_v55  ;;  %v4664_v14 = vmax.f32 %v4662_v44, %v4663_v41  ;;  %v4667_v19 = vmax.f32 %v4665_v10, %v11030_v58  ;;  %v3329_v48 = vcombine.high %v3327_v45, %v3327_v45 }
 0x2de   : > { %v4197_v57 = vmax.f32 %v4195_v3, %v4196_v62  ;;  %v4202_v17 = vsel %vm3662_vm6, %v3328_v49, -inf  ;;  %v4209_v29 = vsel %vm3662_vm6, %v3327_v45, -inf  ;;  %v3286_v53 = vrot.slane %v2943_v2, %v10567_v42 }
 0x2df   : > { %v4871_v13 = vsel %vm4836_vm8, %v4661_v63, %v4658_v6  ;;  %v4203_v26 = vrot.slane %v4202_v17, 4  ;;  %v4210_v32 = vrot.slane %v4209_v29, 4  ;;  %v4216_v38 = vsel %vm3662_vm6, %v3329_v48, -inf }
 0x2e0   : > { %v4872_v21 = vsel %vm4838_vm9, %v4664_v14, %v4871_v13  ;;  %v4198_v55 = vrot.slane %v4197_v57, 2  ;;  %v4217_v41 = vrot.slane %v4216_v38, 4  ;;  %v3293_v18 = vrot.slane %v3279_v11, %v10567_v42 }
 0x2e1   : > { %v4204_v28 = vmax.f32 %v4202_v17, %v4203_v26  ;;  %v4211_v8 = vmax.f32 %v4209_v29, %v4210_v32  ;;  %v3294_v16 = vcombine.high %v3286_v53, %v3286_v53  ;;  %v4139_v59 = vsel %vm3662_vm6, %v3286_v53, -inf  ;;  %v8770_v29 = vpop.f32.mrf.mxu0 }
 0x2e2   : > { %v4199_v56 = vmax.f32 %v4197_v57, %v4198_v55  ;;  %v4218_v58 = vmax.f32 %v4216_v38, %v4217_v41  ;;  %v3295_v7 = vcombine.high %v3293_v18, %v3293_v18  ;;  %v4140_v5 = vrot.slane %v4139_v59, 4 }
 0x2e3   : > { %v4205_v12 = vrot.slane %v4204_v28, 2  ;;  %v4212_v43 = vrot.slane %v4211_v8, 2  ;;  %v4146_v34 = vsel %vm3662_vm6, %v3294_v16, -inf  ;;  %v4153_v61 = vsel %vm3662_vm6, %v3293_v18, -inf }
 0x2e4   : > { %v4200_v1 = vrot.slane %v4199_v56, 1  ;;  %v4219_v25 = vrot.slane %v4218_v58, 2  ;;  %v4141_v23 = vmax.f32 %v4139_v59, %v4140_v5  ;;  %v4147_v40 = vrot.slane %v4146_v34, 4 }
 0x2e5   : > { %v4206_v9 = vmax.f32 %v4204_v28, %v4205_v12  ;;  %v4213_v37 = vmax.f32 %v4211_v8, %v4212_v43  ;;  %v4154_v54 = vrot.slane %v4153_v61, 4  ;;  %v4160_v24 = vsel %vm3662_vm6, %v3295_v7, -inf }
 0x2e6   : > { %v4201_v33 = vmax.f32 %v4199_v56, %v4200_v1  ;;  %v4220_v46 = vmax.f32 %v4218_v58, %v4219_v25  ;;  %v4142_v2 = vrot.slane %v4141_v23, 2  ;;  %v4148_v31 = vmax.f32 %v4146_v34, %v4147_v40 }
 0x2e7   : > { %v4207_v60 = vrot.slane %v4206_v9, 1  ;;  %v4214_v4 = vrot.slane %v4213_v37, 1  ;;  %v4155_v6 = vmax.f32 %v4153_v61, %v4154_v54  ;;  %v4161_v45 = vrot.slane %v4160_v24, 4 }
 0x2e8   : > { %v4221_v49 = vrot.slane %v4220_v46, 1  ;;  %v4669_v3 = vsel %vm4559_vm7, %v4201_v33, -inf  ;;  %v4143_v11 = vmax.f32 %v4141_v23, %v4142_v2  ;;  %v4149_v36 = vrot.slane %v4148_v31, 2 }
 0x2e9   : > { %v4208_v44 = vmax.f32 %v4206_v9, %v4207_v60  ;;  %v4215_v10 = vmax.f32 %v4213_v37, %v4214_v4  ;;  %v4156_v62 = vrot.slane %v4155_v6, 2  ;;  %v4162_v63 = vmax.f32 %v4160_v24, %v4161_v45 }
 0x2ea   : > { %v4222_v14 = vmax.f32 %v4220_v46, %v4221_v49  ;;  %v4144_v48 = vrot.slane %v4143_v11, 1  ;;  %v4150_v57 = vmax.f32 %v4148_v31, %v4149_v36  ;;  %v4873_v17 = vsel %vm4840_vm10, %v4667_v19, %v4872_v21  ;;  %v11086_v31 = vld [vmem:[%s12202_s4 + $0x10] sm:$0xf] }
 0x2eb   : > { %v4672_v53 = vsel %vm4559_vm7, %v4208_v44, -inf  ;;  %v4675_v13 = vsel %vm4559_vm7, %v4215_v10, -inf  ;;  %v4157_v26 = vmax.f32 %v4155_v6, %v4156_v62  ;;  %v4163_v32 = vrot.slane %v4162_v63, 2  ;;  %8873 = vmatprep.subr.msk.bf16.mxu0 %vm5007_vm15, %v11086_v31  ;;  %v2772_v44 = vpop.f32.mrf.mxu0 }
 0x2ec   : > { %v4678_v38 = vsel %vm4559_vm7, %v4222_v14, -inf  ;;  %v4145_v55 = vmax.f32 %v4143_v11, %v4144_v48  ;;  %v4151_v41 = vrot.slane %v4150_v57, 1  ;;  %v2948_v18 = vmax.f32 %v11042_v50, 0.0 }
 0x2ed   : > { %v4158_v28 = vrot.slane %v4157_v26, 1  ;;  %v4164_v8 = vmax.f32 %v4162_v63, %v4163_v32  ;;  %v2875_v16 = vmul.f32 %v10874_v20, %v11037_v15  ;;  %v2839_v19 = vadd.f32 %v8770_v29, %v10655_v27 }
 0x2ee   : > { %v4152_v21 = vmax.f32 %v4150_v57, %v4151_v41  ;;  %v4668_v59 = vsel %vm4559_vm7, %v4145_v55, -inf  ;;  %v3364_v56 = vcombine.high %v2948_v18, %v2948_v18  ;;  %v3371_v58 = vrot.slane %v2948_v18, %v10567_v42 }
 0x2ef   : > { %v4159_v7 = vmax.f32 %v4157_v26, %v4158_v28  ;;  %v4165_v5 = vrot.slane %v4164_v8, 1  ;;  %v4670_v12 = vmax.f32 %v4668_v59, %v4669_v3  ;;  %v2914_v43 = vadd.f32 %v10886_v22, %v2875_v16 }
 0x2f0   : > { %v4671_v50 = vsel %vm4559_vm7, %v4152_v21, -inf  ;;  %v3378_v34 = vrot.slane %v3364_v56, %v10567_v42  ;;  %v3379_v61 = vcombine.high %v3371_v58, %v3371_v58  ;;  %v4279_v15 = vsel %vm3662_vm6, %v3371_v58, -inf }
 0x2f1   : > { %v4166_v1 = vmax.f32 %v4164_v8, %v4165_v5  ;;  %v4673_v27 = vmax.f32 %v4671_v50, %v4672_v53  ;;  %v4674_v25 = vsel %vm4559_vm7, %v4159_v7, -inf  ;;  %v4874_v23 = vsel %vm4842_vm11, %v4670_v12, %v4873_v17 }
 0x2f2   : > { %v4676_v40 = vmax.f32 %v4674_v25, %v4675_v13  ;;  %v3380_v9 = vcombine.high %v3378_v34, %v3378_v34  ;;  %v4280_v37 = vrot.slane %v4279_v15, 4  ;;  %v4286_v54 = vsel %vm3662_vm6, %v3379_v61, -inf }
 0x2f3   : > { %v4677_v24 = vsel %vm4559_vm7, %v4166_v1, -inf  ;;  %v4875_v33 = vsel %vm4844_vm12, %v4673_v27, %v4874_v23  ;;  %v4287_v46 = vrot.slane %v4286_v54, 4  ;;  %v4293_v2 = vsel %vm3662_vm6, %v3378_v34, -inf }
 0x2f4   : > { %v4679_v60 = vmax.f32 %v4677_v24, %v4678_v38  ;;  %v4876_v4 = vsel %vm4846_vm13, %v4676_v40, %v4875_v33  ;;  %v4281_v6 = vmax.f32 %v4279_v15, %v4280_v37  ;;  %v4294_v45 = vrot.slane %v4293_v2, 4 }
 0x2f5   : > { %v4288_v49 = vmax.f32 %v4286_v54, %v4287_v46  ;;  %v4300_v3 = vsel %vm3662_vm6, %v3380_v9, -inf  ;;  %v2946_v11 = vmax.f32 %v2914_v43, 0.0  ;;  %v2878_v36 = vmul.f32 %v10874_v20, %v2839_v19 }
 0x2f6   : > { %v4877_v10 = vsel %vm4848_vm14, %v4679_v60, %v4876_v4  ;;  %v4282_v62 = vrot.slane %v4281_v6, 2  ;;  %v4295_v63 = vmax.f32 %v4293_v2, %v4294_v45  ;;  %v4301_v14 = vrot.slane %v4300_v3, 4 }
 0x2f7   : > { %4912 = vst.msk [vmem:[#allocation3 + $0x51] sm:$0xff] %vm4559_vm7, %v4877_v10  ;;  %v4289_v48 = vrot.slane %v4288_v49, 2  ;;  %v3330_v57 = vcombine.high %v2946_v11, %v2946_v11  ;;  %v3337_v17 = vrot.slane %v2946_v11, %v10567_v42  ;;  %v2917_v29 = vadd.f32 %v10886_v22, %v2878_v36 }
 0x2f8   : > { %v4283_v53 = vmax.f32 %v4281_v6, %v4282_v62  ;;  %v4296_v13 = vrot.slane %v4295_v63, 2  ;;  %v4302_v26 = vmax.f32 %v4300_v3, %v4301_v14  ;;  %v2837_v32 = vadd.f32 %v2772_v44, %v10661_v47 }
 0x2f9   : > { %v4290_v38 = vmax.f32 %v4288_v49, %v4289_v48  ;;  %v3344_v55 = vrot.slane %v3330_v57, %v10567_v42  ;;  %v3345_v41 = vcombine.high %v3337_v17, %v3337_v17  ;;  %v4223_v18 = vsel %vm3662_vm6, %v3337_v17, -inf }
 0x2fa   : > { %v4284_v28 = vrot.slane %v4283_v53, 1  ;;  %v4297_v8 = vmax.f32 %v4295_v63, %v4296_v13  ;;  %v4303_v16 = vrot.slane %v4302_v26, 2  ;;  %v4224_v19 = vrot.slane %v4223_v18, 4 }
 0x2fb   : > { %v4291_v21 = vrot.slane %v4290_v38, 1  ;;  %v3346_v59 = vcombine.high %v3344_v55, %v3344_v55  ;;  %v4230_v56 = vsel %vm3662_vm6, %v3345_v41, -inf  ;;  %v4237_v58 = vsel %vm3662_vm6, %v3344_v55, -inf }
 0x2fc   : > { %v4285_v7 = vmax.f32 %v4283_v53, %v4284_v28  ;;  %v4298_v5 = vrot.slane %v4297_v8, 1  ;;  %v4304_v12 = vmax.f32 %v4302_v26, %v4303_v16  ;;  %v4225_v47 = vmax.f32 %v4223_v18, %v4224_v19  ;;  %v11118_v28 = vld [vmem:[%s12202_s4] sm:$0xf] }
 0x2fd   : > { %v4292_v43 = vmax.f32 %v4290_v38, %v4291_v21  ;;  %v4231_v50 = vrot.slane %v4230_v56, 4  ;;  %v4238_v34 = vrot.slane %v4237_v58, 4  ;;  %v4244_v61 = vsel %vm3662_vm6, %v3346_v59, -inf  ;;  %8870 = vmatprep.subr.msk.bf16.mxu1 %vm5007_vm15, %v11118_v28 }
 0x2fe   : > { %v4299_v15 = vmax.f32 %v4297_v8, %v4298_v5  ;;  %v4305_v1 = vrot.slane %v4304_v12, 1  ;;  %v4681_v27 = vsel %vm4559_vm7, %v4285_v7, -inf  ;;  %v4226_v25 = vrot.slane %v4225_v47, 2 }
 0x2ff   : > { %v4684_v23 = vsel %vm4559_vm7, %v4292_v43, -inf  ;;  %v4232_v40 = vmax.f32 %v4230_v56, %v4231_v50  ;;  %v4239_v9 = vmax.f32 %v4237_v58, %v4238_v34  ;;  %v4245_v37 = vrot.slane %v4244_v61, 4 }
 0x300   : > { %v4306_v54 = vmax.f32 %v4304_v12, %v4305_v1  ;;  %v4687_v24 = vsel %vm4559_vm7, %v4299_v15, -inf  ;;  %v4227_v33 = vmax.f32 %v4225_v47, %v4226_v25  ;;  %v2949_v46 = vmax.f32 %v2917_v29, 0.0 }
 0x301   : > { %v4233_v2 = vrot.slane %v4232_v40, 2  ;;  %v4240_v60 = vrot.slane %v4239_v9, 2  ;;  %v4246_v4 = vmax.f32 %v4244_v61, %v4245_v37  ;;  %v2876_v6 = vmul.f32 %v10874_v20, %v2837_v32 }
 0x302   : > { %v4690_v45 = vsel %vm4559_vm7, %v4306_v54, -inf  ;;  %v4228_v49 = vrot.slane %v4227_v33, 1  ;;  %v3381_v3 = vcombine.high %v2949_v46, %v2949_v46  ;;  %v3388_v11 = vrot.slane %v2949_v46, %v10567_v42 }
 0x303   : > { %v4234_v36 = vmax.f32 %v4232_v40, %v4233_v2  ;;  %v4241_v44 = vmax.f32 %v4239_v9, %v4240_v60  ;;  %v4247_v10 = vrot.slane %v4246_v4, 2  ;;  %v2915_v62 = vadd.f32 %v10886_v22, %v2876_v6  ;;  %v8773_v9 = vpop.f32.mrf.mxu0 }
 0x304   : > { %v4229_v63 = vmax.f32 %v4227_v33, %v4228_v49  ;;  %v3395_v14 = vrot.slane %v3381_v3, %v10567_v42  ;;  %v3396_v48 = vcombine.high %v3388_v11, %v3388_v11  ;;  %v4307_v57 = vsel %vm3662_vm6, %v3388_v11, -inf }
 0x305   : > { %v4235_v17 = vrot.slane %v4234_v36, 1  ;;  %v4242_v29 = vrot.slane %v4241_v44, 1  ;;  %v4248_v20 = vmax.f32 %v4246_v4, %v4247_v10  ;;  %v4308_v53 = vrot.slane %v4307_v57, 4 }
 0x306   : > { %v4680_v13 = vsel %vm4559_vm7, %v4229_v63, -inf  ;;  %v3397_v26 = vcombine.high %v3395_v14, %v3395_v14  ;;  %v4314_v32 = vsel %vm3662_vm6, %v3396_v48, -inf  ;;  %v4321_v38 = vsel %vm3662_vm6, %v3395_v14, -inf }
 0x307   : > { %v4236_v55 = vmax.f32 %v4234_v36, %v4235_v17  ;;  %v4243_v41 = vmax.f32 %v4241_v44, %v4242_v29  ;;  %v4249_v22 = vrot.slane %v4248_v20, 1  ;;  %v4682_v18 = vmax.f32 %v4680_v13, %v4681_v27 }
 0x308   : > { %v4309_v8 = vmax.f32 %v4307_v57, %v4308_v53  ;;  %v4315_v16 = vrot.slane %v4314_v32, 4  ;;  %v4322_v19 = vrot.slane %v4321_v38, 4  ;;  %v4328_v21 = vsel %vm3662_vm6, %v3397_v26, -inf  ;;  %v2785_v26 = vpop.f32.mrf.mxu0 }
 0x309   : > { %v4250_v59 = vmax.f32 %v4248_v20, %v4249_v22  ;;  %v4683_v56 = vsel %vm4559_vm7, %v4236_v55, -inf  ;;  %v4686_v58 = vsel %vm4559_vm7, %v4243_v41, -inf  ;;  %v4329_v7 = vrot.slane %v4328_v21, 4  ;;  %v11147_v41 = vld [vmem:[%s12200_s2] ss:$0 sm:$0xff] }
 0x30a   : > { %v4685_v5 = vmax.f32 %v4683_v56, %v4684_v23  ;;  %v4688_v12 = vmax.f32 %v4686_v58, %v4687_v24  ;;  %v4310_v47 = vrot.slane %v4309_v8, 2  ;;  %v4316_v43 = vmax.f32 %v4314_v32, %v4315_v16 }
 0x30b   : > { %v4689_v50 = vsel %vm4559_vm7, %v4250_v59, -inf  ;;  %v4323_v34 = vmax.f32 %v4321_v38, %v4322_v19  ;;  %v4330_v61 = vmax.f32 %v4328_v21, %v4329_v7  ;;  %v2947_v15 = vmax.f32 %v2915_v62, 0.0  ;;  %v11161_v7 = vld [vmem:[%s12201_s3] ss:$0 sm:$0xff] }
 0x30c   : > { %v4691_v1 = vmax.f32 %v4689_v50, %v4690_v45  ;;  %v4878_v27 = vsel %vm4836_vm8, %v4685_v5, %v4682_v18  ;;  %v4311_v25 = vmax.f32 %v4309_v8, %v4310_v47  ;;  %v4317_v40 = vrot.slane %v4316_v43, 2  ;;  %v11150_v18 = vld [vmem:[#allocation3] sm:$0xff]  ;;  %v11152_v8 = vld [vmem:[#allocation3 + $0x8] sm:$0x3]  ;;  %v11165_v47 = vld [vmem:[#allocation3 + $0x10] sm:$0xff] }
 0x30d   : > { %v4879_v37 = vsel %vm4838_vm9, %v4688_v12, %v4878_v27  ;;  %v4324_v54 = vrot.slane %v4323_v34, 2  ;;  %v4331_v33 = vrot.slane %v4330_v61, 2  ;;  %v3347_v46 = vcombine.high %v2947_v15, %v2947_v15 }
 0x30e   : > { %v4312_v23 = vrot.slane %v4311_v25, 1  ;;  %v4318_v24 = vmax.f32 %v4316_v43, %v4317_v40  ;;  %v3354_v2 = vrot.slane %v2947_v15, %v10567_v42  ;;  %v11130_v60 = vsel %vm4840_vm10, %v4691_v1, %v4879_v37  ;;  %v11170_v40 = vld [vmem:[#allocation3 + $0x18] sm:$0x3] }
 0x30f   : > { %v4325_v4 = vmax.f32 %v4323_v34, %v4324_v54  ;;  %v4332_v6 = vmax.f32 %v4330_v61, %v4331_v33  ;;  %v3361_v45 = vrot.slane %v3347_v46, %v10567_v42  ;;  %v2842_v49 = vadd.f32 %v8773_v9, %v10665_v52 }
 0x310   : > { %v4313_v3 = vmax.f32 %v4311_v25, %v4312_v23  ;;  %v4319_v11 = vrot.slane %v4318_v24, 1  ;;  %v3362_v36 = vcombine.high %v3354_v2, %v3354_v2  ;;  %v4251_v44 = vsel %vm3662_vm6, %v3354_v2, -inf }
 0x311   : > { %v4326_v10 = vrot.slane %v4325_v4, 1  ;;  %v4333_v62 = vrot.slane %v4332_v6, 1  ;;  %v3363_v63 = vcombine.high %v3361_v45, %v3361_v45  ;;  %v4252_v14 = vrot.slane %v4251_v44, 4 }
 0x312   : > { %v4320_v48 = vmax.f32 %v4318_v24, %v4319_v11  ;;  %v11136_v57 = vsel %vm4559_vm7, %v4313_v3, -inf  ;;  %v4258_v17 = vsel %vm3662_vm6, %v3362_v36, -inf  ;;  %v4265_v29 = vsel %vm3662_vm6, %v3361_v45, -inf }
 0x313   : > { %v4327_v20 = vmax.f32 %v4325_v4, %v4326_v10  ;;  %v4334_v53 = vmax.f32 %v4332_v6, %v4333_v62  ;;  %v4253_v52 = vmax.f32 %v4251_v44, %v4252_v14  ;;  %v4259_v13 = vrot.slane %v4258_v17, 4 }
 0x314   : > { %v11141_v32 = vsel %vm4559_vm7, %v4320_v48, -inf  ;;  %v4266_v38 = vrot.slane %v4265_v29, 4  ;;  %v4272_v55 = vsel %vm3662_vm6, %v3363_v63, -inf  ;;  %v2881_v22 = vmul.f32 %v11147_v41, %v2842_v49 }
 0x315   : > { %v4699_v16 = vsel %vm4559_vm7, %v4327_v20, -inf  ;;  %v11156_v19 = vsel %vm4559_vm7, %v4334_v53, -inf  ;;  %v4254_v21 = vrot.slane %v4253_v52, 2  ;;  %v4260_v59 = vmax.f32 %v4258_v17, %v4259_v13 }
 0x316   : > { %v4267_v56 = vmax.f32 %v4265_v29, %v4266_v38  ;;  %v4273_v58 = vrot.slane %v4272_v55, 4  ;;  %v2920_v5 = vadd.f32 %v11161_v7, %v2881_v22  ;;  %v2840_v12 = vadd.f32 %v2785_v26, %v10668_v30 }
 0x317   : > { %v4255_v43 = vmax.f32 %v4253_v52, %v4254_v21  ;;  %v4261_v50 = vrot.slane %v4260_v59, 2  ;;  %v4957_v34 = vrot.slane %v11150_v18, 1  ;;  %v4958_v61 = vrot.slane %v11152_v8, 1 }
 0x318   : > { %v4268_v15 = vrot.slane %v4267_v56, 2  ;;  %v4274_v1 = vmax.f32 %v4272_v55, %v4273_v58  ;;  %v2952_v27 = vmax.f32 %v2920_v5, 0.0  ;;  %v2879_v25 = vmul.f32 %v11147_v41, %v2840_v12 }
 0x319   : > { %v4256_v9 = vrot.slane %v4255_v43, 1  ;;  %v4262_v37 = vmax.f32 %v4260_v59, %v4261_v50  ;;  %v11173_v54 = vsel %vm668_vm4, %v4957_v34, %v4958_v61  ;;  %v4960_v30 = vrot.slane %v11165_v47, 1 }
 0x31a   : > { %v4269_v33 = vmax.f32 %v4267_v56, %v4268_v15  ;;  %v4275_v46 = vrot.slane %v4274_v1, 2  ;;  %v3432_v23 = vcombine.high %v2952_v27, %v2952_v27  ;;  %v3439_v24 = vrot.slane %v2952_v27, %v10567_v42  ;;  %v8774_v15 = vpop.f32.mrf.mxu0 }
 0x31b   : > { %v4257_v2 = vmax.f32 %v4255_v43, %v4256_v9  ;;  %v4263_v4 = vrot.slane %v4262_v37, 1  ;;  %v2918_v6 = vadd.f32 %v11161_v7, %v2879_v25  ;;  %v4961_v45 = vrot.slane %v11170_v40, 1 }
 0x31c   : > { %v4270_v49 = vrot.slane %v4269_v33, 1  ;;  %v4276_v3 = vmax.f32 %v4274_v1, %v4275_v46  ;;  %v3446_v11 = vrot.slane %v3432_v23, %v10567_v42  ;;  %v3447_v36 = vcombine.high %v3439_v24, %v3439_v24 }
 0x31d   : > { %v4264_v44 = vmax.f32 %v4262_v37, %v4263_v4  ;;  %v4692_v10 = vsel %vm4559_vm7, %v4257_v2, -inf  ;;  %v4391_v62 = vsel %vm3662_vm6, %v3439_v24, -inf  ;;  %v2950_v63 = vmax.f32 %v2918_v6, 0.0 }
 0x31e   : > { %v4271_v14 = vmax.f32 %v4269_v33, %v4270_v49  ;;  %v4277_v48 = vrot.slane %v4276_v3, 1  ;;  %v4694_v17 = vmax.f32 %v4692_v10, %v11136_v57  ;;  %v3448_v29 = vcombine.high %v3446_v11, %v3446_v11 }
 0x31f   : > { %v4695_v20 = vsel %vm4559_vm7, %v4264_v44, -inf  ;;  %v4392_v53 = vrot.slane %v4391_v62, 4  ;;  %v4398_v52 = vsel %vm3662_vm6, %v3447_v36, -inf  ;;  %v4405_v13 = vsel %vm3662_vm6, %v3446_v11, -inf  ;;  %v2592_v11 = vpop.f32.mrf.mxu1 }
 0x320   : > { %v4278_v26 = vmax.f32 %v4276_v3, %v4277_v48  ;;  %v4697_v38 = vmax.f32 %v4695_v20, %v11141_v32  ;;  %v4698_v55 = vsel %vm4559_vm7, %v4271_v14, -inf  ;;  %v4881_v22 = vsel %vm4842_vm11, %v4694_v17, %v11130_v60  ;;  %v2788_v3 = vpop.f32.mrf.mxu0 }
 0x321   : > { %v4700_v21 = vmax.f32 %v4698_v55, %v4699_v16  ;;  %v4393_v59 = vmax.f32 %v4391_v62, %v4392_v53  ;;  %v4399_v56 = vrot.slane %v4398_v52, 4  ;;  %v4406_v57 = vrot.slane %v4405_v13, 4 }
 0x322   : > { %v4701_v58 = vsel %vm4559_vm7, %v4278_v26, -inf  ;;  %v4882_v5 = vsel %vm4844_vm12, %v4697_v38, %v4881_v22  ;;  %v4412_v12 = vsel %vm3662_vm6, %v3448_v29, -inf  ;;  %v3398_v43 = vcombine.high %v2950_v63, %v2950_v63  ;;  %v8777_v38 = vpop.f32.mrf.mxu0 }
 0x323   : > { %v4703_v50 = vmax.f32 %v4701_v58, %v11156_v19  ;;  %v4883_v32 = vsel %vm4846_vm13, %v4700_v21, %v4882_v5  ;;  %v4394_v34 = vrot.slane %v4393_v59, 2  ;;  %v4400_v61 = vmax.f32 %v4398_v52, %v4399_v56 }
 0x324   : > { %v4407_v1 = vmax.f32 %v4405_v13, %v4406_v57  ;;  %v4413_v60 = vrot.slane %v4412_v12, 4  ;;  %v3405_v16 = vrot.slane %v2950_v63, %v10567_v42  ;;  %v3412_v27 = vrot.slane %v3398_v43, %v10567_v42 }
 0x325   : > { %v4884_v25 = vsel %vm4848_vm14, %v4703_v50, %v4883_v32  ;;  %v4395_v9 = vmax.f32 %v4393_v59, %v4394_v34  ;;  %v4401_v37 = vrot.slane %v4400_v61, 2  ;;  %v11199_v33 = vsel %vm668_vm4, %v4960_v30, %v4961_v45 }
 0x326   : > { %4913 = vst.msk [vmem:[#allocation3 + $0x61] sm:$0xff] %vm4559_vm7, %v4884_v25  ;;  %v4408_v19 = vrot.slane %v4407_v1, 2  ;;  %v4414_v46 = vmax.f32 %v4412_v12, %v4413_v60  ;;  %v3413_v23 = vcombine.high %v3405_v16, %v3405_v16  ;;  %v3414_v24 = vcombine.high %v3412_v27, %v3412_v27  ;;  %v2801_v60 = vpop.f32.mrf.mxu0 }
 0x327   : > { %v4396_v2 = vrot.slane %v4395_v9, 1  ;;  %v4402_v4 = vmax.f32 %v4400_v61, %v4401_v37  ;;  %v4335_v6 = vsel %vm3662_vm6, %v3405_v16, -inf  ;;  %v4349_v49 = vsel %vm3662_vm6, %v3412_v27, -inf }
 0x328   : > { %v4409_v36 = vmax.f32 %v4407_v1, %v4408_v19  ;;  %v4415_v44 = vrot.slane %v4414_v46, 2  ;;  %v4336_v10 = vrot.slane %v4335_v6, 4  ;;  %v4342_v30 = vsel %vm3662_vm6, %v3413_v23, -inf }
 0x329   : > { %v4397_v45 = vmax.f32 %v4395_v9, %v4396_v2  ;;  %v4403_v62 = vrot.slane %v4402_v4, 1  ;;  %v4343_v63 = vrot.slane %v4342_v30, 4  ;;  %v4350_v14 = vrot.slane %v4349_v49, 4 }
 0x32a   : > { %v4410_v48 = vrot.slane %v4409_v36, 1  ;;  %v4416_v17 = vmax.f32 %v4414_v46, %v4415_v44  ;;  %v4337_v29 = vmax.f32 %v4335_v6, %v4336_v10  ;;  %v4356_v20 = vsel %vm3662_vm6, %v3414_v24, -inf }
 0x32b   : > { %v2635_v53 = vadd.f32 %v2592_v11, %v10549_v51  ;;  %v4404_v52 = vmax.f32 %v4402_v4, %v4403_v62  ;;  %v4344_v13 = vmax.f32 %v4342_v30, %v4343_v63  ;;  %v4351_v26 = vmax.f32 %v4349_v49, %v4350_v14 }
 0x32c   : > { %v4411_v55 = vmax.f32 %v4409_v36, %v4410_v48  ;;  %v4417_v22 = vrot.slane %v4416_v17, 1  ;;  %v4338_v21 = vrot.slane %v4337_v29, 2  ;;  %v4357_v59 = vrot.slane %v4356_v20, 4 }
 0x32d   : > { %v4705_v56 = vsel %vm4559_vm7, %v4397_v45, -inf  ;;  %v4345_v57 = vrot.slane %v4344_v13, 2  ;;  %v4352_v58 = vrot.slane %v4351_v26, 2  ;;  %v4989_v5 = vpack.c.bf16 %v11199_v33, %v11173_v54 }
 0x32e   : > { %v4418_v12 = vmax.f32 %v4416_v17, %v4417_v22  ;;  %v4708_v43 = vsel %vm4559_vm7, %v4404_v52, -inf  ;;  %v4339_v50 = vmax.f32 %v4337_v29, %v4338_v21  ;;  %v4358_v51 = vmax.f32 %v4356_v20, %v4357_v59 }
 0x32f   : > { %v4346_v32 = vmax.f32 %v4344_v13, %v4345_v57  ;;  %v4353_v34 = vmax.f32 %v4351_v26, %v4352_v58  ;;  %8781 = vmatprep.mubr.msk.bf16.mxu1 %vm4559_vm7, %v4989_v5  ;;  %v2843_v61 = vadd.f32 %v8774_v15, %v10671_v35  ;;  %v2841_v1 = vadd.f32 %v2788_v3, %v10676_v0 }
 0x330   : > { %v4711_v16 = vsel %vm4559_vm7, %v4411_v55, -inf  ;;  %v4340_v27 = vrot.slane %v4339_v50, 1  ;;  %v4359_v25 = vrot.slane %v4358_v51, 2  ;;  %v2846_v54 = vadd.f32 %v8777_v38, %v10679_v39 }
 0x331   : > { %v4347_v9 = vrot.slane %v4346_v32, 1  ;;  %v4354_v37 = vrot.slane %v4353_v34, 1  ;;  %v2882_v19 = vmul.f32 %v11147_v41, %v2843_v61  ;;  %v2880_v46 = vmul.f32 %v11147_v41, %v2841_v1 }
 0x332   : > { %v4341_v23 = vmax.f32 %v4339_v50, %v4340_v27  ;;  %v4360_v24 = vmax.f32 %v4358_v51, %v4359_v25  ;;  %v2885_v2 = vmul.f32 %v11147_v41, %v2846_v54  ;;  %v2844_v35 = vadd.f32 %v2801_v60, %v2635_v53 }
 0x333   : > { %v4348_v15 = vmax.f32 %v4346_v32, %v4347_v9  ;;  %v4355_v0 = vmax.f32 %v4353_v34, %v4354_v37  ;;  %v2921_v4 = vadd.f32 %v11161_v7, %v2882_v19  ;;  %v2919_v6 = vadd.f32 %v11161_v7, %v2880_v46 }
 0x334   : > { %v11222_v49 = vsel %vm4559_vm7, %v4418_v12, -inf  ;;  %v4361_v39 = vrot.slane %v4360_v24, 1  ;;  %v4704_v3 = vsel %vm4559_vm7, %v4341_v23, -inf  ;;  %v2924_v11 = vadd.f32 %v11161_v7, %v2885_v2 }
 0x335   : > { %v4706_v36 = vmax.f32 %v4704_v3, %v4705_v56  ;;  %v4707_v44 = vsel %vm4559_vm7, %v4348_v15, -inf  ;;  %v4710_v10 = vsel %vm4559_vm7, %v4355_v0, -inf  ;;  %v2953_v30 = vmax.f32 %v2921_v4, 0.0 }
 0x336   : > { %v4362_v45 = vmax.f32 %v4360_v24, %v4361_v39  ;;  %v4709_v62 = vmax.f32 %v4707_v44, %v4708_v43  ;;  %v4712_v63 = vmax.f32 %v4710_v10, %v4711_v16  ;;  %v2951_v14 = vmax.f32 %v2919_v6, 0.0 }
 0x337   : > { %v3449_v48 = vcombine.high %v2953_v30, %v2953_v30  ;;  %v3456_v17 = vrot.slane %v2953_v30, %v10567_v42  ;;  %v11229_v29 = vmax.f32 %v2924_v11, 0.0  ;;  %v11232_v20 = vmul.f32 %v11147_v41, %v2844_v35 }
 0x338   : > { %v11235_v53 = vsel %vm4559_vm7, %v4362_v45, -inf  ;;  %v4885_v52 = vsel %vm4836_vm8, %v4709_v62, %v4706_v36  ;;  %v3415_v13 = vcombine.high %v2951_v14, %v2951_v14  ;;  %v3422_v26 = vrot.slane %v2951_v14, %v10567_v42 }
 0x339   : > { %v4715_v38 = vmax.f32 %v11235_v53, %v11222_v49  ;;  %v11242_v55 = vsel %vm4838_vm9, %v4712_v63, %v4885_v52  ;;  %v3463_v22 = vrot.slane %v3449_v48, %v10567_v42  ;;  %v3464_v21 = vcombine.high %v3456_v17, %v3456_v17 }
 0x33a   : > { %v4419_v59 = vsel %vm3662_vm6, %v3456_v17, -inf  ;;  %v3429_v56 = vrot.slane %v3415_v13, %v10567_v42  ;;  %v3430_v57 = vcombine.high %v3422_v26, %v3422_v26  ;;  %v4363_v58 = vsel %vm3662_vm6, %v3422_v26, -inf }
 0x33b   : > { %v3465_v5 = vcombine.high %v3463_v22, %v3463_v22  ;;  %v4420_v12 = vrot.slane %v4419_v59, 4  ;;  %v4426_v43 = vsel %vm3662_vm6, %v3464_v21, -inf  ;;  %v4433_v50 = vsel %vm3662_vm6, %v3463_v22, -inf }
 0x33c   : > { %v4427_v51 = vrot.slane %v4426_v43, 4  ;;  %v4434_v32 = vrot.slane %v4433_v50, 4  ;;  %v3431_v34 = vcombine.high %v3429_v56, %v3429_v56  ;;  %v4364_v61 = vrot.slane %v4363_v58, 4 }
 0x33d   : > { %v4421_v1 = vmax.f32 %v4419_v59, %v4420_v12  ;;  %v4440_v60 = vsel %vm3662_vm6, %v3465_v5, -inf  ;;  %v4370_v16 = vsel %vm3662_vm6, %v3430_v57, -inf  ;;  %v4377_v27 = vsel %vm3662_vm6, %v3429_v56, -inf }
 0x33e   : > { %v4428_v25 = vmax.f32 %v4426_v43, %v4427_v51  ;;  %v4435_v54 = vmax.f32 %v4433_v50, %v4434_v32  ;;  %v4441_v9 = vrot.slane %v4440_v60, 4  ;;  %v4365_v37 = vmax.f32 %v4363_v58, %v4364_v61 }
 0x33f   : > { %v4422_v19 = vrot.slane %v4421_v1, 2  ;;  %v4371_v46 = vrot.slane %v4370_v16, 4  ;;  %v4378_v23 = vrot.slane %v4377_v27, 4  ;;  %v4384_v24 = vsel %vm3662_vm6, %v3431_v34, -inf }
 0x340   : > { %v4429_v2 = vrot.slane %v4428_v25, 2  ;;  %v4436_v35 = vrot.slane %v4435_v54, 2  ;;  %v4442_v15 = vmax.f32 %v4440_v60, %v4441_v9  ;;  %v4366_v0 = vrot.slane %v4365_v37, 2 }
 0x341   : > { %v4423_v4 = vmax.f32 %v4421_v1, %v4422_v19  ;;  %v4372_v6 = vmax.f32 %v4370_v16, %v4371_v46  ;;  %v4379_v39 = vmax.f32 %v4377_v27, %v4378_v23  ;;  %v4385_v3 = vrot.slane %v4384_v24, 4 }
 0x342   : > { %v4430_v11 = vmax.f32 %v4428_v25, %v4429_v2  ;;  %v4437_v36 = vmax.f32 %v4435_v54, %v4436_v35  ;;  %v4443_v44 = vrot.slane %v4442_v15, 2  ;;  %v4367_v10 = vmax.f32 %v4365_v37, %v4366_v0 }
 0x343   : > { %v4424_v30 = vrot.slane %v4423_v4, 1  ;;  %v4373_v45 = vrot.slane %v4372_v6, 2  ;;  %v4380_v62 = vrot.slane %v4379_v39, 2  ;;  %v4386_v63 = vmax.f32 %v4384_v24, %v4385_v3 }
 0x344   : > { %v4431_v14 = vrot.slane %v4430_v11, 1  ;;  %v4438_v48 = vrot.slane %v4437_v36, 1  ;;  %v4444_v17 = vmax.f32 %v4442_v15, %v4443_v44  ;;  %v4368_v52 = vrot.slane %v4367_v10, 1 }
 0x345   : > { %v4425_v13 = vmax.f32 %v4423_v4, %v4424_v30  ;;  %v4374_v26 = vmax.f32 %v4372_v6, %v4373_v45  ;;  %v4381_v22 = vmax.f32 %v4379_v39, %v4380_v62  ;;  %v4387_v21 = vrot.slane %v4386_v63, 2 }
 0x346   : > { %v4432_v59 = vmax.f32 %v4430_v11, %v4431_v14  ;;  %v4439_v56 = vmax.f32 %v4437_v36, %v4438_v48  ;;  %v4445_v57 = vrot.slane %v4444_v17, 1  ;;  %v4369_v58 = vmax.f32 %v4367_v10, %v4368_v52 }
 0x347   : > { %v4375_v5 = vrot.slane %v4374_v26, 1  ;;  %v4382_v12 = vrot.slane %v4381_v22, 1  ;;  %v4388_v43 = vmax.f32 %v4386_v63, %v4387_v21  ;;  %v2922_v50 = vadd.f32 %v11161_v7, %v11232_v20 }
 0x348   : > { %v4446_v51 = vmax.f32 %v4444_v17, %v4445_v57  ;;  %v4717_v32 = vsel %vm4559_vm7, %v4425_v13, -inf  ;;  %v4720_v34 = vsel %vm4559_vm7, %v4432_v59, -inf  ;;  %v4716_v61 = vsel %vm4559_vm7, %v4369_v58, -inf }
 0x349   : > { %v4376_v1 = vmax.f32 %v4374_v26, %v4375_v5  ;;  %v4383_v60 = vmax.f32 %v4381_v22, %v4382_v12  ;;  %v4389_v16 = vrot.slane %v4388_v43, 1  ;;  %v4718_v27 = vmax.f32 %v4716_v61, %v4717_v32 }
 0x34a   : > { %v4723_v25 = vsel %vm4559_vm7, %v4439_v56, -inf  ;;  %v4887_v54 = vsel %vm4840_vm10, %v4715_v38, %v11242_v55  ;;  %v3500_v20 = vcombine.high %v11229_v29, %v11229_v29  ;;  %v3507_v9 = vrot.slane %v11229_v29, %v10567_v42 }
 0x34b   : > { %v4390_v37 = vmax.f32 %v4388_v43, %v4389_v16  ;;  %v4719_v19 = vsel %vm4559_vm7, %v4376_v1, -inf  ;;  %v4722_v46 = vsel %vm4559_vm7, %v4383_v60, -inf  ;;  %v4888_v23 = vsel %vm4842_vm11, %v4718_v27, %v4887_v54  ;;  %v8744_v60 = vpop.f32.mrf.mxu1 }
 0x34c   : > { %v4721_v24 = vmax.f32 %v4719_v19, %v4720_v34  ;;  %v4724_v2 = vmax.f32 %v4722_v46, %v4723_v25  ;;  %v3514_v35 = vrot.slane %v3500_v20, %v10567_v42  ;;  %v3515_v49 = vcombine.high %v3507_v9, %v3507_v9 }
 0x34d   : > { %v4726_v53 = vsel %vm4559_vm7, %v4446_v51, -inf  ;;  %v4725_v38 = vsel %vm4559_vm7, %v4390_v37, -inf  ;;  %v4503_v55 = vsel %vm3662_vm6, %v3507_v9, -inf  ;;  %v2954_v15 = vmax.f32 %v2922_v50, 0.0 }
 0x34e   : > { %v4727_v29 = vmax.f32 %v4725_v38, %v4726_v53  ;;  %v4889_v0 = vsel %vm4844_vm12, %v4721_v24, %v4888_v23  ;;  %v3516_v4 = vcombine.high %v3514_v35, %v3514_v35  ;;  %v4504_v6 = vrot.slane %v4503_v55, 4  ;;  %v12366_v53 = vld [vmem:[#allocation23_spill] sm:$0xff] }
 0x34f   : > { %v4890_v39 = vsel %vm4846_vm13, %v4724_v2, %v4889_v0  ;;  %v4510_v3 = vsel %vm3662_vm6, %v3515_v49, -inf  ;;  %v4517_v11 = vsel %vm3662_vm6, %v3514_v35, -inf  ;;  %v3466_v36 = vcombine.high %v2954_v15, %v2954_v15  ;;  %v11289_v35 = vld [vmem:[#allocation3 + $0x20] sm:$0xff]  ;;  %v11291_v49 = vld [vmem:[#allocation3 + $0x28] sm:$0x3] }
 0x350   : > { %v4891_v44 = vsel %vm4848_vm14, %v4727_v29, %v4890_v39  ;;  %v4505_v10 = vmax.f32 %v4503_v55, %v4504_v6  ;;  %v4511_v30 = vrot.slane %v4510_v3, 4  ;;  %v4518_v45 = vrot.slane %v4517_v11, 4  ;;  %v11294_v39 = vld [vmem:[#allocation3 + $0x30] sm:$0xff] }
 0x351   : > { %4914 = vst.msk [vmem:[#allocation3 + $0x71] sm:$0xff] %vm4559_vm7, %v4891_v44  ;;  %v4524_v62 = vsel %vm3662_vm6, %v3516_v4, -inf  ;;  %v3473_v63 = vrot.slane %v2954_v15, %v10567_v42  ;;  %v3480_v14 = vrot.slane %v3466_v36, %v10567_v42  ;;  %v2638_v38 = vadd.f32 %v8744_v60, %v12366_v53  ;;  %v11328_v53 = vld [vmem:[#allocation3 + $0x50] sm:$0xff] }
 0x352   : > { %v4506_v48 = vrot.slane %v4505_v10, 2  ;;  %v4512_v17 = vmax.f32 %v4510_v3, %v4511_v30  ;;  %v4519_v52 = vmax.f32 %v4517_v11, %v4518_v45  ;;  %v4525_v13 = vrot.slane %v4524_v62, 4  ;;  %v11296_v3 = vld [vmem:[#allocation3 + $0x38] sm:$0x3] }
 0x353   : > { %v3481_v26 = vcombine.high %v3473_v63, %v3473_v63  ;;  %v3482_v22 = vcombine.high %v3480_v14, %v3480_v14  ;;  %v4447_v21 = vsel %vm3662_vm6, %v3473_v63, -inf  ;;  %v4461_v59 = vsel %vm3662_vm6, %v3480_v14, -inf  ;;  %v11301_v14 = vld [vmem:[#allocation3 + $0x40] sm:$0xff] }
 0x354   : > { %v4507_v56 = vmax.f32 %v4505_v10, %v4506_v48  ;;  %v4513_v57 = vrot.slane %v4512_v17, 2  ;;  %v4520_v58 = vrot.slane %v4519_v52, 2  ;;  %v4526_v5 = vmax.f32 %v4524_v62, %v4525_v13  ;;  %v11303_v48 = vld [vmem:[#allocation3 + $0x48] sm:$0x3] }
 0x355   : > { %v4448_v12 = vrot.slane %v4447_v21, 4  ;;  %v4454_v43 = vsel %vm3662_vm6, %v3481_v26, -inf  ;;  %v4462_v50 = vrot.slane %v4461_v59, 4  ;;  %v4468_v51 = vsel %vm3662_vm6, %v3482_v22, -inf }
 0x356   : > { %v4508_v32 = vrot.slane %v4507_v56, 1  ;;  %v4514_v34 = vmax.f32 %v4512_v17, %v4513_v57  ;;  %v4521_v61 = vmax.f32 %v4519_v52, %v4520_v58  ;;  %v4527_v1 = vrot.slane %v4526_v5, 2  ;;  %v8778_v57 = vpop.f32.mrf.mxu0 }
 0x357   : > { %v4449_v16 = vmax.f32 %v4447_v21, %v4448_v12  ;;  %v4455_v27 = vrot.slane %v4454_v43, 4  ;;  %v4463_v25 = vmax.f32 %v4461_v59, %v4462_v50  ;;  %v4469_v54 = vrot.slane %v4468_v51, 4  ;;  %v2595_v50 = vpop.f32.mrf.mxu1 }
 0x358   : > { %v4509_v20 = vmax.f32 %v4507_v56, %v4508_v32  ;;  %v4515_v9 = vrot.slane %v4514_v34, 1  ;;  %v4522_v37 = vrot.slane %v4521_v61, 1  ;;  %v4528_v19 = vmax.f32 %v4526_v5, %v4527_v1 }
 0x359   : > { %v4450_v46 = vrot.slane %v4449_v16, 2  ;;  %v4456_v23 = vmax.f32 %v4454_v43, %v4455_v27  ;;  %v4464_v24 = vrot.slane %v4463_v25, 2  ;;  %v4470_v2 = vmax.f32 %v4468_v51, %v4469_v54 }
 0x35a   : > { %v4523_v55 = vmax.f32 %v4521_v61, %v4522_v37  ;;  %v4529_v15 = vrot.slane %v4528_v19, 1  ;;  %v4516_v11 = vmax.f32 %v4514_v34, %v4515_v9  ;;  %v4729_v36 = vsel %vm4559_vm7, %v4509_v20, -inf  ;;  %v2804_v37 = vpop.f32.mrf.mxu0 }
 0x35b   : > { %v4451_v29 = vmax.f32 %v4449_v16, %v4450_v46  ;;  %v4457_v0 = vrot.slane %v4456_v23, 2  ;;  %v4465_v4 = vmax.f32 %v4463_v25, %v4464_v24  ;;  %v4471_v6 = vrot.slane %v4470_v2, 2 }
 0x35c   : > { %v4963_v44 = vrot.slane %v11289_v35, 1  ;;  %v4964_v10 = vrot.slane %v11291_v49, 1  ;;  %v4530_v17 = vmax.f32 %v4528_v19, %v4529_v15  ;;  %v4735_v52 = vsel %vm4559_vm7, %v4523_v55, -inf  ;;  %v12367_v19 = vld [vmem:[#allocation15_spill] sm:$0xff] }
 0x35d   : > { %v4452_v30 = vrot.slane %v4451_v29, 1  ;;  %v4458_v45 = vmax.f32 %v4456_v23, %v4457_v0  ;;  %v4466_v62 = vrot.slane %v4465_v4, 1  ;;  %v4472_v63 = vmax.f32 %v4470_v2, %v4471_v6  ;;  %v8119_v6 = vld [vmem:[%s12202_s4 + $0x18] sm:$0xf] }
 0x35e   : > { %v4966_v13 = vrot.slane %v11294_v39, 1  ;;  %v4967_v26 = vrot.slane %v11296_v3, 1  ;;  %v4965_v58 = vsel %vm668_vm4, %v4963_v44, %v4964_v10  ;;  %v4969_v12 = vrot.slane %v11301_v14, 1 }
 0x35f   : > { %v4453_v22 = vmax.f32 %v4451_v29, %v4452_v30  ;;  %v4459_v21 = vrot.slane %v4458_v45, 1  ;;  %v4467_v59 = vmax.f32 %v4465_v4, %v4466_v62  ;;  %v4473_v56 = vrot.slane %v4472_v63, 1  ;;  %v11333_v4 = vld [vmem:[#allocation3 + $0x58] sm:$0x3]  ;;  %v11341_v30 = vld [vmem:[#allocation3 + $0x60] sm:$0xff] }
 0x360   : > { %v4968_v5 = vsel %vm668_vm4, %v4966_v13, %v4967_v26  ;;  %v4970_v43 = vrot.slane %v11303_v48, 1  ;;  %v4732_v1 = vsel %vm4559_vm7, %v4516_v11, -inf  ;;  %v4738_v25 = vsel %vm4559_vm7, %v4530_v17, -inf  ;;  %v11352_v17 = vld [vmem:[#allocation3 + $0x78] sm:$0x3] }
 0x361   : > { %v4460_v51 = vmax.f32 %v4458_v45, %v4459_v21  ;;  %v4474_v32 = vmax.f32 %v4472_v63, %v4473_v56  ;;  %v4728_v34 = vsel %vm4559_vm7, %v4453_v22, -inf  ;;  %v4734_v61 = vsel %vm4559_vm7, %v4467_v59, -inf  ;;  %v11343_v45 = vld [vmem:[#allocation3 + $0x68] sm:$0x3] }
 0x362   : > { %v4730_v60 = vmax.f32 %v4728_v34, %v4729_v36  ;;  %v4736_v16 = vmax.f32 %v4734_v61, %v4735_v52  ;;  %v11315_v27 = vpack.c.bf16 %v4968_v5, %v4965_v58  ;;  %v4971_v9 = vsel %vm668_vm4, %v4969_v12, %v4970_v43 }
 0x363   : > { %v4731_v54 = vsel %vm4559_vm7, %v4460_v51, -inf  ;;  %v4737_v20 = vsel %vm4559_vm7, %v4474_v32, -inf  ;;  %v2636_v46 = vadd.f32 %v2595_v50, %v12367_v19  ;;  %v11324_v2 = vpack.c.bf16 %v11294_v39, %v11289_v35 }
 0x364   : > { %v4733_v23 = vmax.f32 %v4731_v54, %v4732_v1  ;;  %v4739_v24 = vmax.f32 %v4737_v20, %v4738_v25  ;;  %8782 = vmatmul.mubr.msk.bf16.vlgmr.msra.gmra.mxu1 %vm4559_vm7, %v11315_v27  ;;  %v5162_v55 = vrot.slane %v11289_v35, 2  ;;  %v5163_v15 = vrot.slane %v11291_v49, 2  ;;  %v11345_v49 = vld [vmem:[#allocation3 + $0x70] sm:$0xff] }
 0x365   : > { %v5382_v29 = vpack.c.bf16 %v4965_v58, %v11199_v33  ;;  %v2847_v0 = vadd.f32 %v8778_v57, %v2638_v38  ;;  %v5383_v36 = vpack.c.bf16 %v4971_v9, %v4968_v5  ;;  %v2845_v44 = vadd.f32 %v2804_v37, %v2636_v46  ;;  %v11396_v54 = vld [vmem:[%s12202_s4 + $0x20] sm:$0xf] }
 0x366   : > { %v4892_v11 = vsel %vm4836_vm8, %v4733_v23, %v4730_v60  ;;  %v5401_v10 = vsel %vm5007_vm15, %v11086_v31, 0  ;;  %v5165_v38 = vrot.slane %v11294_v39, 2  ;;  %v4972_v63 = vrot.slane %v11328_v53, 1  ;;  %v8099_v31 = vld [vmem:[%s12202_s4 + $0x8] sm:$0xf] }
 0x367   : > { %v4893_v33 = vsel %vm4838_vm9, %v4736_v16, %v4892_v11  ;;  %8821 = vmatprep.mubr.msk.bf16.mxu0 %vm4559_vm7, %v5382_v29  ;;  %v2886_v62 = vmul.f32 %v11147_v41, %v2847_v0  ;;  %8820 = vmatpush3.bf16.msra.mxu0 %v5401_v10  ;;  %v2884_v52 = vmul.f32 %v11147_v41, %v2845_v44  ;;  %v4973_v26 = vrot.slane %v11333_v4, 1 }
 0x368   : > { %v11359_v13 = vsel %vm4840_vm10, %v4739_v24, %v4893_v33  ;;  %v5089_v22 = vsel %vm5007_vm15, %v11118_v28, 0  ;;  %8875 = vmatprep.subr.msk.bf16.mxu0 %vm5007_vm15, %v8119_v6  ;;  %v4975_v59 = vrot.slane %v11341_v30, 1  ;;  %v4976_v56 = vrot.slane %v11343_v45, 1 }
 0x369   : > { %v2925_v21 = vadd.f32 %v11161_v7, %v2886_v62  ;;  %8790 = vmatpush3.bf16.msra.mxu1 %v5089_v22  ;;  %v4978_v57 = vrot.slane %v11345_v49, 1  ;;  %v5166_v41 = vrot.slane %v11296_v3, 2  ;;  %v2923_v58 = vadd.f32 %v11161_v7, %v2884_v52 }
 0x36a   : > { %8822 = vmatmul.mubr.msk.bf16.vlgmr.msra.gmra.mxu0 %vm4559_vm7, %v5383_v36  ;;  %v4974_v5 = vsel %vm668_vm4, %v4972_v63, %v4973_v26  ;;  %v4979_v28 = vrot.slane %v11352_v17, 1  ;;  %8871 = vmatprep.subr.msk.bf16.mxu1 %vm5007_vm15, %v8099_v31  ;;  %v11376_v12 = vsel %vm1227_vm5, %v5162_v55, %v5163_v15  ;;  %v4977_v51 = vsel %vm668_vm4, %v4975_v59, %v4976_v56 }
 0x36b   : > { %v2957_v43 = vmax.f32 %v2925_v21, 0.0  ;;  %v11378_v50 = vpack.c.bf16 %v4974_v5, %v4971_v9  ;;  %v2955_v32 = vmax.f32 %v2923_v58, 0.0  ;;  %v5384_v7 = vpack.c.bf16 %v4977_v51, %v4974_v5 }
 0x36c   : > { %v11382_v34 = vsel %vm668_vm4, %v4978_v57, %v4979_v28  ;;  %v4936_v61 = vpack.c.bf16 %v11165_v47, %v11150_v18  ;;  %v5207_v25 = vsel %vm5007_vm15, %v8099_v31, 0  ;;  %v11402_v37 = vpack.c.bf16 %v11328_v53, %v11301_v14 }
 0x36d   : > { %v3517_v1 = vcombine.high %v2957_v43, %v2957_v43  ;;  %v3524_v60 = vrot.slane %v2957_v43, %v10567_v42  ;;  %8785 = vmatprep.mubr.msk.bf16.mxu1 %vm4559_vm7, %v11378_v50  ;;  %v11390_v16 = vpack.c.bf16 %v11382_v34, %v4977_v51  ;;  %v3483_v20 = vcombine.high %v2955_v32, %v2955_v32 }
 0x36e   : > { %v3490_v9 = vrot.slane %v2955_v32, %v10567_v42  ;;  %8825 = vmatprep.mubr.msk.bf16.mxu0 %vm4559_vm7, %v5384_v7  ;;  %v5581_v19 = vsel %vm5007_vm15, %v8119_v6, 0  ;;  %v11411_v55 = vpack.c.bf16 %v11345_v49, %v11341_v30 }
 0x36f   : > { %v3531_v46 = vrot.slane %v3517_v1, %v10567_v42  ;;  %v3532_v23 = vcombine.high %v3524_v60, %v3524_v60  ;;  %v4531_v24 = vsel %vm3662_vm6, %v3524_v60, -inf  ;;  %8786 = vmatmul.mubr.msk.bf16.gmra.mxu1 %vm4559_vm7, %v11390_v16  ;;  %8840 = vmatpush3.bf16.msra.mxu0 %v5581_v19  ;;  %v3497_v29 = vrot.slane %v3483_v20, %v10567_v42  ;;  %v8104_v60 = vld [vmem:[%s12202_s4 + $0xc] sm:$0xf] }
 0x370   : > { %v4532_v15 = vrot.slane %v4531_v24, 4  ;;  %v3498_v0 = vcombine.high %v3490_v9, %v3490_v9  ;;  %v4475_v11 = vsel %vm3662_vm6, %v3490_v9, -inf  ;;  %8791 = vmatprep.mubr.msk.bf16.mxu1 %vm4559_vm7, %v4936_v61  ;;  %8877 = vmatprep.subr.msk.bf16.mxu0 %vm5007_vm15, %v11396_v54 }
 0x371   : > { %v3533_v6 = vcombine.high %v3531_v46, %v3531_v46  ;;  %v4538_v36 = vsel %vm3662_vm6, %v3532_v23, -inf  ;;  %v4545_v44 = vsel %vm3662_vm6, %v3531_v46, -inf  ;;  %v4476_v10 = vrot.slane %v4475_v11, 4 }
 0x372   : > { %v4533_v33 = vmax.f32 %v4531_v24, %v4532_v15  ;;  %v4539_v62 = vrot.slane %v4538_v36, 4  ;;  %v4546_v63 = vrot.slane %v4545_v44, 4  ;;  %v3499_v31 = vcombine.high %v3497_v29, %v3497_v29 }
 0x373   : > { %v4552_v52 = vsel %vm3662_vm6, %v3533_v6, -inf  ;;  %v4477_v26 = vmax.f32 %v4475_v11, %v4476_v10  ;;  %v4482_v22 = vsel %vm3662_vm6, %v3498_v0, -inf  ;;  %v4489_v21 = vsel %vm3662_vm6, %v3497_v29, -inf }
 0x374   : > { %v4534_v59 = vrot.slane %v4533_v33, 2  ;;  %v4540_v56 = vmax.f32 %v4538_v36, %v4539_v62  ;;  %v4547_v57 = vmax.f32 %v4545_v44, %v4546_v63  ;;  %v4553_v58 = vrot.slane %v4552_v52, 4 }
 0x375   : > { %v4478_v5 = vrot.slane %v4477_v26, 2  ;;  %v4483_v28 = vrot.slane %v4482_v22, 4  ;;  %v4490_v43 = vrot.slane %v4489_v21, 4  ;;  %v4496_v51 = vsel %vm3662_vm6, %v3499_v31, -inf }
 0x376   : > { %v4535_v32 = vmax.f32 %v4533_v33, %v4534_v59  ;;  %v4541_v7 = vrot.slane %v4540_v56, 2  ;;  %v4548_v61 = vrot.slane %v4547_v57, 2  ;;  %v4554_v1 = vmax.f32 %v4552_v52, %v4553_v58 }
 0x377   : > { %v4479_v20 = vmax.f32 %v4477_v26, %v4478_v5  ;;  %v4484_v9 = vmax.f32 %v4482_v22, %v4483_v28  ;;  %v4491_v19 = vmax.f32 %v4489_v21, %v4490_v43  ;;  %v4497_v46 = vrot.slane %v4496_v51, 4  ;;  %8792 = vmatmul.mubr.msk.bf16.vlgmr.msra.gmra.mxu1 %vm4559_vm7, %v11324_v2 }
 0x378   : > { %v4536_v23 = vrot.slane %v4535_v32, 1  ;;  %v4542_v24 = vmax.f32 %v4540_v56, %v4541_v7  ;;  %v4549_v15 = vmax.f32 %v4547_v57, %v4548_v61  ;;  %v4555_v29 = vrot.slane %v4554_v1, 2  ;;  %8800 = vmatpush3.bf16.msra.mxu1 %v5207_v25  ;;  %8795 = vmatprep.mubr.msk.bf16.mxu1 %vm4559_vm7, %v11402_v37 }
 0x379   : > { %v4480_v0 = vrot.slane %v4479_v20, 1  ;;  %v4485_v11 = vrot.slane %v4484_v9, 2  ;;  %v4492_v6 = vrot.slane %v4491_v19, 2  ;;  %v4498_v36 = vmax.f32 %v4496_v51, %v4497_v46  ;;  %8872 = vmatprep.subr.msk.bf16.mxu1 %vm5007_vm15, %v8104_v60 }
 0x37a   : > { %v4537_v44 = vmax.f32 %v4535_v32, %v4536_v23  ;;  %v4543_v10 = vrot.slane %v4542_v24, 1  ;;  %v4550_v33 = vrot.slane %v4549_v15, 1  ;;  %v4556_v62 = vmax.f32 %v4554_v1, %v4555_v29 }
 0x37b   : > { %v4481_v63 = vmax.f32 %v4479_v20, %v4480_v0  ;;  %v4486_v31 = vmax.f32 %v4484_v9, %v4485_v11  ;;  %v4493_v52 = vmax.f32 %v4491_v19, %v4492_v6  ;;  %v4499_v26 = vrot.slane %v4498_v36, 2 }
 0x37c   : > { %v4544_v22 = vmax.f32 %v4542_v24, %v4543_v10  ;;  %v4551_v21 = vmax.f32 %v4549_v15, %v4550_v33  ;;  %v4557_v25 = vrot.slane %v4556_v62, 1  ;;  %v4741_v59 = vsel %vm4559_vm7, %v4537_v44, -inf }
 0x37d   : > { %v4487_v56 = vrot.slane %v4486_v31, 1  ;;  %v4494_v57 = vrot.slane %v4493_v52, 1  ;;  %v4500_v58 = vmax.f32 %v4498_v36, %v4499_v26  ;;  %v4740_v5 = vsel %vm4559_vm7, %v4481_v63, -inf }
 0x37e   : > { %v11439_v28 = vsel %vm1227_vm5, %v5165_v38, %v5166_v41  ;;  %v4558_v43 = vmax.f32 %v4556_v62, %v4557_v25  ;;  %v4744_v51 = vsel %vm4559_vm7, %v4544_v22, -inf  ;;  %v4742_v32 = vmax.f32 %v4740_v5, %v4741_v59  ;;  %v8114_v22 = vld [vmem:[%s12202_s4 + $0x14] sm:$0xf] }
 0x37f   : > { %v4488_v7 = vmax.f32 %v4486_v31, %v4487_v56  ;;  %v4495_v61 = vmax.f32 %v4493_v52, %v4494_v57  ;;  %v4501_v1 = vrot.slane %v4500_v58, 1  ;;  %8796 = vmatmul.mubr.msk.bf16.gmra.mxu1 %vm4559_vm7, %v11411_v55  ;;  %v5156_v20 = vrot.slane %v11150_v18, 2 }
 0x380   : > { %v4747_v9 = vsel %vm4559_vm7, %v4551_v21, -inf  ;;  %v4895_v3 = vsel %vm4842_vm11, %v4742_v32, %v11359_v13  ;;  %v5157_v38 = vrot.slane %v11152_v8, 2  ;;  %v5159_v41 = vrot.slane %v11165_v47, 2 }
 0x381   : > { %v4502_v19 = vmax.f32 %v4500_v58, %v4501_v1  ;;  %v4743_v46 = vsel %vm4559_vm7, %v4488_v7, -inf  ;;  %v4746_v23 = vsel %vm4559_vm7, %v4495_v61, -inf  ;;  %v5160_v24 = vrot.slane %v11170_v40, 2  ;;  %v8124_v1 = vld [vmem:[%s12202_s4 + $0x1c] sm:$0xf] }
 0x382   : > { %v11455_v15 = vpack.c.bf16 %v11439_v28, %v11376_v12  ;;  %v4745_v18 = vmax.f32 %v4743_v46, %v4744_v51  ;;  %v4748_v29 = vmax.f32 %v4746_v23, %v4747_v9  ;;  %v5158_v0 = vsel %vm1227_vm5, %v5156_v20, %v5157_v38 }
 0x383   : > { %v4750_v13 = vsel %vm4559_vm7, %v4558_v43, -inf  ;;  %v4749_v8 = vsel %vm4559_vm7, %v4502_v19, -inf  ;;  %v5161_v11 = vsel %vm1227_vm5, %v5159_v41, %v5160_v24  ;;  %v5301_v6 = vsel %vm5007_vm15, %v8104_v60, 0 }
 0x384   : > { %v4751_v36 = vmax.f32 %v4749_v8, %v4750_v13  ;;  %v4896_v44 = vsel %vm4844_vm12, %v4745_v18, %v4895_v3  ;;  %v5188_v40 = vpack.c.bf16 %v5161_v11, %v5158_v0  ;;  %v5168_v10 = vrot.slane %v11301_v14, 2 }
 0x385   : > { %v4897_v33 = vsel %vm4846_vm13, %v4748_v29, %v4896_v44  ;;  %v5169_v62 = vrot.slane %v11303_v48, 2  ;;  %v5171_v63 = vrot.slane %v11328_v53, 2  ;;  %v5172_v31 = vrot.slane %v11333_v4, 2 }
 0x386   : > { %v4898_v52 = vsel %vm4848_vm14, %v4751_v36, %v4897_v33  ;;  %v5178_v26 = vrot.slane %v11352_v17, 2  ;;  %8801 = vmatprep.mubr.msk.bf16.mxu1 %vm4559_vm7, %v5188_v40  ;;  %v5177_v60 = vrot.slane %v11345_v49, 2  ;;  %v5175_v21 = vrot.slane %v11343_v45, 2 }
 0x387   : > { %4915 = vst.msk [vmem:[#allocation3 + $0x81] sm:$0xff] %vm4559_vm7, %v4898_v52  ;;  %8802 = vmatmul.mubr.msk.bf16.vlgmr.msra.gmra.mxu1 %vm4559_vm7, %v11455_v15  ;;  %v5170_v48 = vsel %vm1227_vm5, %v5168_v10, %v5169_v62  ;;  %v5173_v4 = vsel %vm1227_vm5, %v5171_v63, %v5172_v31  ;;  %v5174_v25 = vrot.slane %v11341_v30, 2  ;;  %v5282_v43 = vpack.c.bf16 %v11289_v35, %v11165_v47 }
 0x388   : > { %8810 = vmatpush3.bf16.msra.mxu1 %v5301_v6  ;;  %v5190_v17 = vpack.c.bf16 %v5173_v4, %v5170_v48  ;;  %v5179_v59 = vsel %vm1227_vm5, %v5177_v60, %v5178_v26  ;;  %v5283_v61 = vpack.c.bf16 %v11301_v14, %v11294_v39  ;;  %v5499_v47 = vsel %vm5007_vm15, %v8114_v22, 0 }
 0x389   : > { %8874 = vmatprep.subr.msk.bf16.mxu1 %vm5007_vm15, %v8114_v22  ;;  %v5176_v56 = vsel %vm1227_vm5, %v5174_v25, %v5175_v21  ;;  %v5284_v35 = vpack.c.bf16 %v11341_v30, %v11328_v53  ;;  %v5755_v39 = vsel %vm5007_vm15, %v11396_v54, 0  ;;  %v4934_v53 = vld [vmem:[#allocation3 + $0x90] sm:$0xff]  ;;  %v5669_v54 = vsel %vm5007_vm15, %v8124_v1, 0 }
 0x38a   : > { %8805 = vmatprep.mubr.msk.bf16.mxu1 %vm4559_vm7, %v5190_v17  ;;  %v5191_v57 = vpack.c.bf16 %v5179_v59, %v5176_v56  ;;  %v5744_v9 = vrot.slane %v4934_v53, 2  ;;  %v5658_v19 = vrot.slane %v4934_v53, 1  ;;  %vm6387_vm6 = vcmask 1046532  }
 0x38e   : > { %v4932_v58 = vld [vmem:[#allocation3 + $0x80] sm:$0xff]  ;;  %v4933_v5 = vld [vmem:[#allocation3 + $0x88] sm:$0x3] }
 0x38f   : > { %v5378_v51 = vrot.slane %v4932_v58, 1  ;;  %v5379_v45 = vrot.slane %v4933_v5, 1  ;;  %8806 = vmatmul.mubr.msk.bf16.gmra.mxu1 %vm4559_vm7, %v5191_v57  ;;  %v5285_v14 = vpack.c.bf16 %v4932_v58, %v11345_v49  ;;  %v5574_v30 = vpack.c.bf16 %v4934_v53, %v4932_v58 }
 0x390   : > { %8811 = vmatprep.mubr.msk.bf16.mxu1 %vm4559_vm7, %v5282_v43  ;;  %v5482_v49 = vpack.c.bf16 %v5176_v56, %v5173_v4 }
 0x391   : > { %v5380_v32 = vsel %vm668_vm4, %v5378_v51, %v5379_v45 }
 0x392   : > { %v5385_v7 = vpack.c.bf16 %v5380_v32, %v11382_v34  ;;  %v5481_v34 = vpack.c.bf16 %v5170_v48, %v11439_v28 }
 0x394   : > { %8826 = vmatmul.mubr.msk.bf16.gmra.mxu0 %vm4559_vm7, %v5385_v7 }
 0x395   : > { %8841 = vmatprep.mubr.msk.bf16.mxu0 %vm4559_vm7, %v11324_v2  ;;  %v5480_v2 = vpack.c.bf16 %v11376_v12, %v5161_v11  ;;  %v4935_v12 = vld [vmem:[#allocation3 + $0x98] sm:$0x3] }
 0x396   : > { %v5745_v3 = vrot.slane %v4935_v12, 2  ;;  %v5659_v46 = vrot.slane %v4935_v12, 1 }
 0x397   : > { %8812 = vmatmul.mubr.msk.bf16.vlgmr.msra.gmra.mxu1 %vm4559_vm7, %v5283_v61 }
 0x398   : > { %8830 = vmatpush3.bf16.msra.mxu1 %v5499_v47  ;;  %8815 = vmatprep.mubr.msk.bf16.mxu1 %vm4559_vm7, %v5284_v35  ;;  %v5746_v38 = vsel %vm1227_vm5, %v5744_v9, %v5745_v3  ;;  %v5660_v23 = vsel %vm668_vm4, %v5658_v19, %v5659_v46  ;;  %v8905_v9 = vld [vmem:[#allocation6 + $0x24] ss:$16 sps:$4 sm:$0xff]   ;;  %v8906_v3 = vld [vmem:[#allocation6] ss:$16 sps:$4 sm:$0xff]   ;;  %v9020_v46 = vmov 0   ;;  %vm6358_vm4 = vcmask 125952  }
 0x399   : > { %8876 = vmatprep.subr.msk.bf16.mxu1 %vm5007_vm15, %v8124_v1  ;;  %v5662_v24 = vpack.c.bf16 %v5660_v23, %v5380_v32 }
 0x39c   : > { %8842 = vmatmul.mubr.msk.bf16.vlgmr.msra.gmra.mxu0 %vm4559_vm7, %v11402_v37  ;;  %v5476_v37 = vrot.slane %v4932_v58, 2 }
 0x39d   : > { %8845 = vmatprep.mubr.msk.bf16.mxu0 %vm4559_vm7, %v11411_v55  ;;  %8860 = vmatpush3.bf16.msra.mxu0 %v5755_v39  ;;  %v5477_v55 = vrot.slane %v4933_v5, 2 }
 0x39f   : > { %8816 = vmatmul.mubr.msk.bf16.gmra.mxu1 %vm4559_vm7, %v5285_v14  ;;  %v5478_v20 = vsel %vm1227_vm5, %v5476_v37, %v5477_v55  ;;  %vm6386_vm5 = vcmask 1042432  }
 0x3a0   : > { %8831 = vmatprep.mubr.msk.bf16.mxu1 %vm4559_vm7, %v5480_v2  ;;  %v5483_v28 = vpack.c.bf16 %v5478_v20, %v5179_v59  ;;  %v5748_v41 = vpack.c.bf16 %v5746_v38, %v5478_v20  ;;  %v8903_v20 = vld [vmem:[#allocation6 + $0x20] ss:$16 sps:$4 sm:$0xff]  }
 0x3a4   : > { %8846 = vmatmul.mubr.msk.bf16.gmra.mxu0 %vm4559_vm7, %v5574_v30 }
 0x3a5   : > { %8861 = vmatprep.mubr.msk.bf16.mxu0 %vm4559_vm7, %v11455_v15 }
 0x3a7   : > { %8832 = vmatmul.mubr.msk.bf16.vlgmr.msra.gmra.mxu1 %vm4559_vm7, %v5481_v34 }
 0x3a8   : > { %8850 = vmatpush3.bf16.msra.mxu1 %v5669_v54  ;;  %8835 = vmatprep.mubr.msk.bf16.mxu1 %vm4559_vm7, %v5482_v49 }
 0x3a9   : > { %6452 = vmatprep.subr.bf16.mxu1 %v8905_v9 }
 0x3ac   : > { %8862 = vmatmul.mubr.msk.bf16.vlgmr.msra.gmra.mxu0 %vm4559_vm7, %v5190_v17 }
 0x3ad   : > { %8865 = vmatprep.mubr.msk.bf16.mxu0 %vm4559_vm7, %v5191_v57 }
 0x3af   : > { %8836 = vmatmul.mubr.msk.bf16.gmra.mxu1 %vm4559_vm7, %v5483_v28 }
 0x3b0   : > { %8851 = vmatprep.mubr.msk.bf16.mxu1 %vm4559_vm7, %v11315_v27  ;;  %v12368_v27 = vmov 0.0  }
 0x3b1   : > { %6319 = vst.msk [vmem:[#allocation4] sm:$0x3f] %vm6318_vm0, %v12368_v27  ;;  %6321 = vst.msk [vmem:[#allocation4 + $0x10] sm:$0x3f] %vm6318_vm0, %v12368_v27 }
 0x3b2   : > { %6324 = vst.msk [vmem:[#allocation4 + $0x28] sm:$0x3f] %vm6318_vm0, %v12368_v27  ;;  %6320 = vst.msk [vmem:[#allocation4 + $0x8] sm:$0x3f] %vm6318_vm0, %v12368_v27 }
 0x3b3   : > { %6322 = vst.msk [vmem:[#allocation4 + $0x18] sm:$0x3f] %vm6318_vm0, %v12368_v27  ;;  %6323 = vst.msk [vmem:[#allocation4 + $0x20] sm:$0x3f] %vm6318_vm0, %v12368_v27 }
 0x3b4   : > { %8866 = vmatmul.mubr.msk.bf16.gmra.mxu0 %vm4559_vm7, %v5748_v41  ;;  %v8908_v41 = vld [vmem:[#allocation6 + $0x4] ss:$16 sps:$4 sm:$0xff]  }
 0x3b5   : > { %6579 = vmatprep.mubr.bf16.mxu0 %v9020_v46  ;;  %6561 = vmatprep.subr.bf16.mxu0 %v8908_v41 }
 0x3b6   : > { %6562 = vmatpush1.bf16.msra.mxu0 %v8906_v3 }
 0x3b7   : > { %8852 = vmatmul.mubr.msk.bf16.vlgmr.msra.gmra.mxu1 %vm4559_vm7, %v11378_v50 }
 0x3b8   : > { %8855 = vmatprep.mubr.msk.bf16.mxu1 %vm4559_vm7, %v11390_v16  ;;  %6453 = vmatpush1.bf16.msra.mxu1 %v8903_v20 }
 0x3bf   : > { %8856 = vmatmul.mubr.msk.bf16.gmra.mxu1 %vm4559_vm7, %v5662_v24  ;;  %vm6633_vm7 = vcmask 1045508  }
 0x3c0   : > { %6470 = vmatprep.mubr.bf16.mxu1 %v9020_v46 }
 0x424   : > { %v11537_v15 = vpop.f32.mrf.mxu1 }
 0x426   : > { %v11539_v18 = vpop.f32.mrf.mxu1 }
 0x428   : > { %v11547_v50 = vpop.f32.mrf.mxu1 }
 0x42a   : > { %v11549_v16 = vpop.f32.mrf.mxu1  ;;  %v11557_v26 = vpop.f32.mrf.mxu0 }
 0x42c   : > { %v11559_v4 = vpop.f32.mrf.mxu0 }
 0x42e   : > { %v11561_v25 = vpop.f32.mrf.mxu0 }
 0x42f   : > { %v8787_v29 = vpop.f32.mrf.mxu1 }
 0x430   : > { %v11565_v58 = vpop.f32.mrf.mxu0 }
 0x431   : > { %v5061_v0 = vpop.f32.mrf.mxu1 }
 0x433   : > { %v8788_v13 = vpop.f32.mrf.mxu1 }
 0x435   : > { %v5064_v8 = vpop.f32.mrf.mxu1 }
 0x437   : > { %v8793_v11 = vpop.f32.mrf.mxu1 }
 0x439   : > { %v11551_v6 = vpop.f32.mrf.mxu1 }
 0x43b   : > { %v11553_v36 = vpop.f32.mrf.mxu1 }
 0x43d   : > { %v11555_v44 = vpop.f32.mrf.mxu1 }
 0x43f   : > { %v8797_v40 = vpop.f32.mrf.mxu1 }
 0x440   : > { %v5150_v10 = vadd.f32 %v8797_v40, %v8787_v29  ;;  %v5134_v29 = vadd.f32 %v8793_v11, %v11537_v15 }
 0x441   : > { %v5141_v33 = vpop.f32.mrf.mxu1 }
 0x442   : > { %v5142_v62 = vadd.f32 %v5141_v33, %v5061_v0 }
 0x443   : > { %v8798_v63 = vpop.f32.mrf.mxu1 }
 0x444   : > { %v5153_v31 = vadd.f32 %v8798_v63, %v8788_v13 }
 0x445   : > { %v5144_v52 = vpop.f32.mrf.mxu1 }
 0x446   : > { %v5145_v60 = vadd.f32 %v5144_v52, %v5064_v8  ;;  %v5126_v8 = vadd.f32 %v11551_v6, %v11539_v18 }
 0x447   : > { %v8803_v22 = vpop.f32.mrf.mxu1 }
 0x448   : > { %v5276_v40 = vadd.f32 %v8803_v22, %v5134_v29 }
 0x449   : > { %v5243_v48 = vpop.f32.mrf.mxu1 }
 0x44a   : > { %v5274_v63 = vadd.f32 %v5243_v48, %v5126_v8 }
 0x44b   : > { %v8804_v21 = vpop.f32.mrf.mxu1 }
 0x44d   : > { %v5246_v17 = vpop.f32.mrf.mxu1 }
 0x44f   : > { %v8807_v59 = vpop.f32.mrf.mxu1 }
 0x450   : > { %v11563_v56 = vadd.f32 %v8807_v59, %v5150_v10 }
 0x451   : > { %v5259_v57 = vpop.f32.mrf.mxu1 }
 0x452   : > { %v5278_v5 = vadd.f32 %v5259_v57, %v5142_v62  ;;  %v5137_v62 = vadd.f32 %v11553_v36, %v11547_v50 }
 0x453   : > { %v8808_v43 = vpop.f32.mrf.mxu1 }
 0x454   : > { %v11567_v51 = vpop.f32.mrf.mxu0  ;;  %v11569_v45 = vadd.f32 %v8808_v43, %v5153_v31  ;;  %v5277_v15 = vadd.f32 %v8804_v21, %v5137_v62  ;;  %v8916_v43 = vld [vmem:[#allocation6 + $0x44] ss:$16 sps:$4 sm:$0xff]  }
 0x455   : > { %v5262_v32 = vpop.f32.mrf.mxu1  ;;  %6698 = vmatprep.subr.bf16.mxu0 %v8916_v43 }
 0x456   : > { %v5453_v7 = vpop.f32.mrf.mxu0  ;;  %v5279_v61 = vadd.f32 %v5262_v32, %v5145_v60  ;;  %v5129_v60 = vadd.f32 %v11555_v44, %v11549_v16 }
 0x457   : > { %v8813_v47 = vpop.f32.mrf.mxu1 }
 0x458   : > { %v11571_v35 = vpop.f32.mrf.mxu0  ;;  %v5370_v31 = vadd.f32 %v8813_v47, %v5276_v40  ;;  %v5275_v18 = vadd.f32 %v5246_v17, %v5129_v60 }
 0x459   : > { %v5337_v1 = vpop.f32.mrf.mxu1 }
 0x45a   : > { %v5456_v39 = vpop.f32.mrf.mxu0  ;;  %v5368_v59 = vadd.f32 %v5337_v1, %v5274_v63  ;;  %v5470_v22 = vadd.f32 %v11557_v26, %v5370_v31 }
 0x45b   : > { %v8814_v14 = vpop.f32.mrf.mxu1 }
 0x45c   : > { %v8843_v2 = vpop.f32.mrf.mxu0  ;;  %v5371_v6 = vadd.f32 %v8814_v14, %v5277_v15 }
 0x45d   : > { %v5340_v53 = vpop.f32.mrf.mxu1 }
 0x45e   : > { %v11573_v30 = vpop.f32.mrf.mxu0  ;;  %v5369_v36 = vadd.f32 %v5340_v53, %v5275_v18  ;;  %v5471_v21 = vadd.f32 %v11561_v25, %v5371_v6  ;;  %v11613_v25 = vld [vmem:[%s12203_s5] ss:$0 sm:$0xff] }
 0x45f   : > { %v8817_v34 = vpop.f32.mrf.mxu1 }
 0x460   : > { %v11575_v54 = vpop.f32.mrf.mxu0  ;;  %v5469_v26 = vadd.f32 %v11565_v58, %v5369_v36 }
 0x461   : > { %v5353_v37 = vpop.f32.mrf.mxu1 }
 0x462   : > { %v11577_v55 = vpop.f32.mrf.mxu0  ;;  %v5372_v49 = vadd.f32 %v5353_v37, %v5278_v5  ;;  %v8913_v5 = vld [vmem:[#allocation6 + $0x2c] ss:$16 sps:$4 sm:$0xff]  }
 0x463   : > { %v8818_v12 = vpop.f32.mrf.mxu1  ;;  %6495 = vmatprep.subr.bf16.mxu1 %v8913_v5 }
 0x464   : > { %v11579_v28 = vpop.f32.mrf.mxu0  ;;  %v11581_v38 = vadd.f32 %v5453_v7, %v5372_v49  ;;  %v5468_v7 = vadd.f32 %v11559_v4, %v5368_v59  ;;  %v5375_v4 = vadd.f32 %v8818_v12, %v11569_v45 }
 0x465   : > { %v5356_v19 = vpop.f32.mrf.mxu1 }
 0x466   : > { %v11584_v23 = vpop.f32.mrf.mxu0  ;;  %v5373_v24 = vadd.f32 %v5356_v19, %v5279_v61  ;;  %v5374_v61 = vadd.f32 %v8817_v34, %v11563_v56 }
 0x467   : > { %v8833_v27 = vpop.f32.mrf.mxu1 }
 0x468   : > { %v11588_v0 = vadd.f32 %v5456_v39, %v5373_v24  ;;  %v11592_v10 = vpop.f32.mrf.mxu0  ;;  %v5568_v48 = vadd.f32 %v8833_v27, %v5470_v22  ;;  %v5474_v20 = vadd.f32 %v11567_v51, %v5374_v61  ;;  %v5475_v24 = vadd.f32 %v11571_v35, %v5375_v4 }
 0x469   : > { %v5535_v13 = vpop.f32.mrf.mxu1 }
 0x46a   : > { %v11598_v11 = vpop.f32.mrf.mxu0  ;;  %v5566_v44 = vadd.f32 %v5535_v13, %v5468_v7  ;;  %v5650_v39 = vadd.f32 %v8843_v2, %v5568_v48 }
 0x46b   : > { %v8834_v33 = vpop.f32.mrf.mxu1 }
 0x46c   : > { %v8863_v50 = vpop.f32.mrf.mxu0  ;;  %v5569_v1 = vadd.f32 %v8834_v33, %v5471_v21  ;;  %v5648_v49 = vadd.f32 %v11573_v30, %v5566_v44  ;;  %v11619_v30 = vld [vmem:[%s12204_s6] ss:$0 sm:$0xff] }
 0x46d   : > { %v5538_v52 = vpop.f32.mrf.mxu1 }
 0x46e   : > { %v5791_v17 = vpop.f32.mrf.mxu0  ;;  %v5567_v37 = vadd.f32 %v5538_v52, %v5469_v26  ;;  %v5651_v58 = vadd.f32 %v11575_v54, %v5569_v1 }
 0x46f   : > { %v8837_v57 = vpop.f32.mrf.mxu1 }
 0x470   : > { %v8864_v34 = vpop.f32.mrf.mxu0  ;;  %v5572_v2 = vadd.f32 %v8837_v57, %v5474_v20  ;;  %v5649_v19 = vadd.f32 %v11577_v55, %v5567_v37 }
 0x471   : > { %v5551_v32 = vpop.f32.mrf.mxu1 }
 0x472   : > { %v5794_v29 = vpop.f32.mrf.mxu0  ;;  %v5570_v33 = vadd.f32 %v5551_v32, %v11581_v38  ;;  %v5654_v63 = vadd.f32 %v11579_v28, %v5572_v2 }
 0x473   : > { %v8838_v16 = vpop.f32.mrf.mxu1 }
 0x474   : > { %v5573_v62 = vadd.f32 %v8838_v16, %v5475_v24  ;;  %v8867_v59 = vpop.f32.mrf.mxu0  ;;  %v5652_v43 = vadd.f32 %v11584_v23, %v5570_v33 }
 0x475   : > { %v11604_v47 = vpop.f32.mrf.mxu1 }
 0x476   : > { %v11637_v32 = vadd.f32 %v11592_v10, %v5573_v62 }
 0x477   : > { %v8853_v14 = vpop.f32.mrf.mxu1 }
 0x478   : > { %v5738_v53 = vadd.f32 %v8853_v14, %v5650_v39 }
 0x479   : > { %v5705_v56 = vpop.f32.mrf.mxu1 }
 0x47a   : > { %v5824_v9 = vadd.f32 %v8863_v50, %v5738_v53  ;;  %v5736_v3 = vadd.f32 %v5705_v56, %v5648_v49 }
 0x47b   : > { %v8854_v45 = vpop.f32.mrf.mxu1 }
 0x47c   : > { %v5839_v51 = vmul.f32 %v11613_v25, %v5824_v9  ;;  %v5822_v12 = vadd.f32 %v5791_v17, %v5736_v3  ;;  %v5739_v41 = vadd.f32 %v8854_v45, %v5651_v58 }
 0x47d   : > { %v5708_v27 = vpop.f32.mrf.mxu1 }
 0x47e   : > { %v5854_v13 = vadd.f32 %v11619_v30, %v5839_v51  ;;  %v5837_v54 = vmul.f32 %v11613_v25, %v5822_v12  ;;  %v5825_v8 = vadd.f32 %v8864_v34, %v5739_v41  ;;  %v5737_v40 = vadd.f32 %v5708_v27, %v5649_v19 }
 0x47f   : > { %v8857_v31 = vpop.f32.mrf.mxu1 }
 0x480   : > { %v5862_v52 = vmax.f32 %v5854_v13, 0.0  ;;  %v5852_v60 = vadd.f32 %v11619_v30, %v5837_v54  ;;  %v5840_v55 = vmul.f32 %v11613_v25, %v5825_v8  ;;  %v5823_v35 = vadd.f32 %v5794_v29, %v5737_v40 }
 0x481   : > { %v5742_v15 = vadd.f32 %v8857_v31, %v5654_v63  ;;  %v5721_v38 = vpop.f32.mrf.mxu1 }
 0x482   : > { %v5910_v57 = vcombine.high %v5862_v52, %v5862_v52  ;;  %v5917_v5 = vrot.slane %v5862_v52, %v10567_v42  ;;  %v5860_v18 = vmax.f32 %v5852_v60, 0.0  ;;  %v5855_v6 = vadd.f32 %v11619_v30, %v5840_v55 }
 0x483   : > { %v5838_v22 = vmul.f32 %v11613_v25, %v5823_v35  ;;  %v11633_v28 = vadd.f32 %v8867_v59, %v5742_v15  ;;  %v11644_v61 = vadd.f32 %v5721_v38, %v5652_v43 }
 0x484   : > { %v5924_v50 = vrot.slane %v5910_v57, %v10567_v42  ;;  %v5925_v36 = vcombine.high %v5917_v5, %v5917_v5  ;;  %v6101_v48 = vsel %vm6044_vm1, %v5917_v5, -inf  ;;  %v5876_v7 = vcombine.high %v5860_v18, %v5860_v18 }
 0x485   : > { %v6102_v16 = vrot.slane %v6101_v48, 4  ;;  %v5883_v44 = vrot.slane %v5860_v18, %v10567_v42  ;;  %v11642_v21 = vmax.f32 %v5855_v6, 0.0 }
 0x486   : > { %v5926_v17 = vcombine.high %v5924_v50, %v5924_v50  ;;  %v6108_v1 = vsel %vm6044_vm1, %v5925_v36, -inf  ;;  %v6115_v23 = vsel %vm6044_vm1, %v5924_v50, -inf  ;;  %v5890_v10 = vrot.slane %v5876_v7, %v10567_v42 }
 0x487   : > { %v6103_v26 = vmax.f32 %v6101_v48, %v6102_v16  ;;  %v6109_v39 = vrot.slane %v6108_v1, 4  ;;  %v6116_v14 = vrot.slane %v6115_v23, 4  ;;  %v5891_v37 = vcombine.high %v5883_v44, %v5883_v44 }
 0x488   : > { %v6122_v53 = vsel %vm6044_vm1, %v5926_v17, -inf  ;;  %v5892_v49 = vcombine.high %v5890_v10, %v5890_v10  ;;  %v6045_v4 = vsel %vm6044_vm1, %v5883_v44, -inf  ;;  %v6059_v20 = vsel %vm6044_vm1, %v5890_v10, -inf }
 0x489   : > { %v6104_v56 = vrot.slane %v6103_v26, 2  ;;  %v6110_v34 = vmax.f32 %v6108_v1, %v6109_v39  ;;  %v6117_v9 = vmax.f32 %v6115_v23, %v6116_v14  ;;  %v6123_v3 = vrot.slane %v6122_v53, 4 }
 0x48a   : > { %v6046_v58 = vrot.slane %v6045_v4, 4  ;;  %v6052_v2 = vsel %vm6044_vm1, %v5891_v37, -inf  ;;  %v6060_v45 = vrot.slane %v6059_v20, 4  ;;  %v6066_v51 = vsel %vm6044_vm1, %v5892_v49, -inf }
 0x48b   : > { %v6105_v12 = vmax.f32 %v6103_v26, %v6104_v56  ;;  %v6111_v41 = vrot.slane %v6110_v34, 2  ;;  %v6118_v19 = vrot.slane %v6117_v9, 2  ;;  %v6124_v24 = vmax.f32 %v6122_v53, %v6123_v3 }
 0x48c   : > { %v6047_v27 = vmax.f32 %v6045_v4, %v6046_v58  ;;  %v6053_v29 = vrot.slane %v6052_v2, 4  ;;  %v6061_v13 = vmax.f32 %v6059_v20, %v6060_v45  ;;  %v6067_v54 = vrot.slane %v6066_v51, 4 }
 0x48d   : > { %v6106_v8 = vrot.slane %v6105_v12, 1  ;;  %v6112_v40 = vmax.f32 %v6110_v34, %v6111_v41  ;;  %v6119_v33 = vmax.f32 %v6117_v9, %v6118_v19  ;;  %v6125_v62 = vrot.slane %v6124_v24, 2 }
 0x48e   : > { %v6048_v63 = vrot.slane %v6047_v27, 2  ;;  %v6054_v31 = vmax.f32 %v6052_v2, %v6053_v29  ;;  %v6062_v52 = vrot.slane %v6061_v13, 2  ;;  %v6068_v60 = vmax.f32 %v6066_v51, %v6067_v54 }
 0x48f   : > { %v6107_v55 = vmax.f32 %v6105_v12, %v6106_v8  ;;  %v6113_v35 = vrot.slane %v6112_v40, 1  ;;  %v6120_v15 = vrot.slane %v6119_v33, 1  ;;  %v6126_v59 = vmax.f32 %v6124_v24, %v6125_v62 }
 0x490   : > { %v6049_v57 = vmax.f32 %v6047_v27, %v6048_v63  ;;  %v6055_v5 = vrot.slane %v6054_v31, 2  ;;  %v6063_v18 = vmax.f32 %v6061_v13, %v6062_v52  ;;  %v6069_v6 = vrot.slane %v6068_v60, 2 }
 0x491   : > { %v6114_v38 = vmax.f32 %v6112_v40, %v6113_v35  ;;  %v6121_v43 = vmax.f32 %v6119_v33, %v6120_v15  ;;  %v6127_v50 = vrot.slane %v6126_v59, 1  ;;  %v5853_v36 = vadd.f32 %v11619_v30, %v5838_v22 }
 0x492   : > { %v6050_v48 = vrot.slane %v6049_v57, 1  ;;  %v6056_v7 = vmax.f32 %v6054_v31, %v6055_v5  ;;  %v6064_v16 = vrot.slane %v6063_v18, 1  ;;  %v6070_v44 = vmax.f32 %v6068_v60, %v6069_v6 }
 0x493   : > { %v6128_v17 = vmax.f32 %v6126_v59, %v6127_v50  ;;  %v11656_v1 = vsel %vm6269_vm2, %v6107_v55, -inf  ;;  %v11659_v23 = vsel %vm6269_vm2, %v6114_v38, -inf  ;;  %v5927_v10 = vcombine.high %v11642_v21, %v11642_v21 }
 0x494   : > { %v6051_v26 = vmax.f32 %v6049_v57, %v6050_v48  ;;  %v6057_v39 = vrot.slane %v6056_v7, 1  ;;  %v6065_v14 = vmax.f32 %v6063_v18, %v6064_v16  ;;  %v6071_v37 = vrot.slane %v6070_v44, 1 }
 0x495   : > { %v11664_v22 = vsel %vm6269_vm2, %v6121_v43, -inf  ;;  %v5934_v53 = vrot.slane %v11642_v21, %v10567_v42  ;;  %v5941_v49 = vrot.slane %v5927_v10, %v10567_v42  ;;  %v5861_v4 = vmax.f32 %v5853_v36, 0.0 }
 0x496   : > { %v11670_v20 = vsel %vm6269_vm2, %v6128_v17, -inf  ;;  %v6058_v56 = vmax.f32 %v6056_v7, %v6057_v39  ;;  %v11672_v34 = vmax.f32 %v6070_v44, %v6071_v37  ;;  %v11675_v9 = vsel %vm6269_vm2, %v6051_v26, -inf }
 0x497   : > { %v5942_v3 = vcombine.high %v5934_v53, %v5934_v53  ;;  %v5943_v58 = vcombine.high %v5941_v49, %v5941_v49  ;;  %v6129_v2 = vsel %vm6044_vm1, %v5934_v53, -inf  ;;  %v6143_v45 = vsel %vm6044_vm1, %v5941_v49, -inf }
 0x498   : > { %v11680_v21 = vsel %vm6269_vm2, %v6058_v56, -inf  ;;  %v11683_v51 = vsel %vm6269_vm2, %v6065_v14, -inf  ;;  %v6130_v12 = vrot.slane %v6129_v2, 4  ;;  %v6144_v41 = vrot.slane %v6143_v45, 4 }
 0x499   : > { %v6136_v19 = vsel %vm6044_vm1, %v5942_v3, -inf  ;;  %v6150_v24 = vsel %vm6044_vm1, %v5943_v58, -inf  ;;  %v5893_v27 = vcombine.high %v5861_v4, %v5861_v4  ;;  %v5900_v29 = vrot.slane %v5861_v4, %v10567_v42 }
 0x49a   : > { %v6131_v13 = vmax.f32 %v6129_v2, %v6130_v12  ;;  %v6137_v54 = vrot.slane %v6136_v19, 4  ;;  %v6145_v8 = vmax.f32 %v6143_v45, %v6144_v41  ;;  %v6151_v40 = vrot.slane %v6150_v24, 4 }
 0x49b   : > { %v5907_v33 = vrot.slane %v5893_v27, %v10567_v42  ;;  %v5908_v62 = vcombine.high %v5900_v29, %v5900_v29  ;;  %v6073_v63 = vsel %vm6044_vm1, %v5900_v29, -inf  ;;  %v5843_v31 = vmul.f32 %v11613_v25, %v11633_v28 }
 0x49c   : > { %v6132_v52 = vrot.slane %v6131_v13, 2  ;;  %v6138_v60 = vmax.f32 %v6136_v19, %v6137_v54  ;;  %v6146_v55 = vrot.slane %v6145_v8, 2  ;;  %v6152_v35 = vmax.f32 %v6150_v24, %v6151_v40 }
 0x49d   : > { %v5909_v15 = vcombine.high %v5907_v33, %v5907_v33  ;;  %v6074_v59 = vrot.slane %v6073_v63, 4  ;;  %v6080_v57 = vsel %vm6044_vm1, %v5908_v62, -inf  ;;  %v6087_v5 = vsel %vm6044_vm1, %v5907_v33, -inf  ;;  %v8858_v62 = vpop.f32.mrf.mxu1 }
 0x49e   : > { %v6133_v18 = vmax.f32 %v6131_v13, %v6132_v52  ;;  %v6139_v6 = vrot.slane %v6138_v60, 2  ;;  %v6147_v38 = vmax.f32 %v6145_v8, %v6146_v55  ;;  %v6153_v43 = vrot.slane %v6152_v35, 2 }
 0x49f   : > { %v6075_v50 = vmax.f32 %v6073_v63, %v6074_v59  ;;  %v6081_v36 = vrot.slane %v6080_v57, 4  ;;  %v6088_v48 = vrot.slane %v6087_v5, 4  ;;  %v6094_v7 = vsel %vm6044_vm1, %v5909_v15, -inf  ;;  %v5807_v63 = vpop.f32.mrf.mxu0 }
 0x4a0   : > { %v6134_v28 = vrot.slane %v6133_v18, 1  ;;  %v6140_v16 = vmax.f32 %v6138_v60, %v6139_v6  ;;  %v6148_v44 = vrot.slane %v6147_v38, 1  ;;  %v6154_v17 = vmax.f32 %v6152_v35, %v6153_v43 }
 0x4a1   : > { %v6076_v10 = vrot.slane %v6075_v50, 2  ;;  %v6082_v26 = vmax.f32 %v6080_v57, %v6081_v36  ;;  %v6089_v39 = vmax.f32 %v6087_v5, %v6088_v48  ;;  %v6095_v14 = vrot.slane %v6094_v7, 4 }
 0x4a2   : > { %v6135_v37 = vmax.f32 %v6133_v18, %v6134_v28  ;;  %v6141_v53 = vrot.slane %v6140_v16, 1  ;;  %v6149_v49 = vmax.f32 %v6147_v38, %v6148_v44  ;;  %v6155_v4 = vrot.slane %v6154_v17, 1 }
 0x4a3   : > { %v6077_v56 = vmax.f32 %v6075_v50, %v6076_v10  ;;  %v6083_v3 = vrot.slane %v6082_v26, 2  ;;  %v6090_v58 = vrot.slane %v6089_v39, 2  ;;  %v6096_v2 = vmax.f32 %v6094_v7, %v6095_v14  ;;  %v8868_v50 = vpop.f32.mrf.mxu0 }
 0x4a4   : > { %v6142_v45 = vmax.f32 %v6140_v16, %v6141_v53  ;;  %v6156_v12 = vmax.f32 %v6154_v17, %v6155_v4  ;;  %v6283_v41 = vsel %vm6269_vm2, %v6135_v37, -inf  ;;  %v6289_v19 = vsel %vm6269_vm2, %v6149_v49, -inf }
 0x4a5   : > { %v6284_v24 = vmax.f32 %v11656_v1, %v6283_v41  ;;  %v6290_v27 = vmax.f32 %v11664_v22, %v6289_v19  ;;  %v6078_v29 = vrot.slane %v6077_v56, 1  ;;  %v6084_v13 = vmax.f32 %v6082_v26, %v6083_v3 }
 0x4a6   : > { %v6286_v54 = vsel %vm6269_vm2, %v6142_v45, -inf  ;;  %v6292_v8 = vsel %vm6269_vm2, %v6156_v12, -inf  ;;  %v6091_v40 = vmax.f32 %v6089_v39, %v6090_v58  ;;  %v6097_v33 = vrot.slane %v6096_v2, 2 }
 0x4a7   : > { %v6287_v52 = vmax.f32 %v11659_v23, %v6286_v54  ;;  %v6293_v60 = vmax.f32 %v11670_v20, %v6292_v8  ;;  %v6079_v55 = vmax.f32 %v6077_v56, %v6078_v29  ;;  %v6085_v35 = vrot.slane %v6084_v13, 1 }
 0x4a8   : > { %v6092_v15 = vrot.slane %v6091_v40, 1  ;;  %v6098_v1 = vmax.f32 %v6096_v2, %v6097_v33  ;;  %v5858_v22 = vadd.f32 %v11619_v30, %v5843_v31  ;;  %v5826_v59 = vadd.f32 %v5807_v63, %v11644_v61 }
 0x4a9   : > { %v6344_v57 = vsel %vm4836_vm8, %v6287_v52, %v6284_v24  ;;  %v6086_v5 = vmax.f32 %v6084_v13, %v6085_v35  ;;  %v6271_v18 = vsel %vm6269_vm2, %v6079_v55, -inf  ;;  %v5743_v6 = vadd.f32 %v8858_v62, %v11637_v32 }
 0x4aa   : > { %v6345_v38 = vsel %vm4838_vm9, %v6290_v27, %v6344_v57  ;;  %v6093_v23 = vmax.f32 %v6091_v40, %v6092_v15  ;;  %v6099_v43 = vrot.slane %v6098_v1, 1  ;;  %v6272_v20 = vmax.f32 %v11675_v9, %v6271_v18 }
 0x4ab   : > { %v6346_v36 = vsel %vm4840_vm10, %v6293_v60, %v6345_v38  ;;  %v6274_v31 = vsel %vm6269_vm2, %v6086_v5, -inf  ;;  %v5866_v48 = vmax.f32 %v5858_v22, 0.0  ;;  %v5841_v61 = vmul.f32 %v11613_v25, %v5826_v59 }
 0x4ac   : > { %6360 = vst.msk [vmem:[#allocation4 + $0x11] sm:$0xf] %vm6358_vm4, %v6346_v36  ;;  %v6100_v7 = vmax.f32 %v6098_v1, %v6099_v43  ;;  %v6275_v28 = vmax.f32 %v11680_v21, %v6274_v31  ;;  %v6277_v32 = vsel %vm6269_vm2, %v6093_v23, -inf  ;;  %v5829_v16 = vadd.f32 %v8868_v50, %v5743_v6  ;;  %v5724_v6 = vpop.f32.mrf.mxu1 }
 0x4ad   : > { %v6278_v44 = vmax.f32 %v11683_v51, %v6277_v32  ;;  %v5978_v17 = vcombine.high %v5866_v48, %v5866_v48  ;;  %v5985_v9 = vrot.slane %v5866_v48, %v10567_v42  ;;  %v5856_v10 = vadd.f32 %v11619_v30, %v5841_v61 }
 0x4ae   : > { %v6279_v26 = vsel %vm6269_vm2, %v11672_v34, -inf  ;;  %v6280_v39 = vsel %vm6269_vm2, %v6100_v7, -inf  ;;  %v6341_v14 = vsel %vm4836_vm8, %v6275_v28, %v6272_v20  ;;  %v5844_v56 = vmul.f32 %v11613_v25, %v5829_v16  ;;  %v5810_v16 = vpop.f32.mrf.mxu0 }
 0x4af   : > { %v6281_v37 = vmax.f32 %v6279_v26, %v6280_v39  ;;  %v6342_v21 = vsel %vm4838_vm9, %v6278_v44, %v6341_v14  ;;  %v5992_v53 = vrot.slane %v5978_v17, %v10567_v42  ;;  %v5993_v49 = vcombine.high %v5985_v9, %v5985_v9 }
 0x4b0   : > { %v6213_v51 = vsel %vm6044_vm1, %v5985_v9, -inf  ;;  %v5864_v4 = vmax.f32 %v5856_v10, 0.0  ;;  %v5859_v40 = vadd.f32 %v11619_v30, %v5844_v56  ;;  %v5571_v60 = vadd.f32 %v11604_v47, %v11588_v0 }
 0x4b1   : > { %v6343_v3 = vsel %vm4840_vm10, %v6281_v37, %v6342_v21  ;;  %v5994_v58 = vcombine.high %v5992_v53, %v5992_v53  ;;  %v6214_v2 = vrot.slane %v6213_v51, 4  ;;  %v6220_v34 = vsel %vm6044_vm1, %v5993_v49, -inf }
 0x4b2   : > { %6359 = vst.msk [vmem:[#allocation4 + $0x9] sm:$0xf] %vm6358_vm4, %v6343_v3  ;;  %v6221_v45 = vrot.slane %v6220_v34, 4  ;;  %v6227_v12 = vsel %vm6044_vm1, %v5992_v53, -inf  ;;  %v5944_v41 = vcombine.high %v5864_v4, %v5864_v4  ;;  %v5951_v19 = vrot.slane %v5864_v4, %v10567_v42 }
 0x4b3   : > { %v6215_v24 = vmax.f32 %v6213_v51, %v6214_v2  ;;  %v6228_v27 = vrot.slane %v6227_v12, 4  ;;  %v6234_v29 = vsel %vm6044_vm1, %v5994_v58, -inf  ;;  %v5867_v57 = vmax.f32 %v5859_v40, 0.0 }
 0x4b4   : > { %v6222_v13 = vmax.f32 %v6220_v34, %v6221_v45  ;;  %v6235_v54 = vrot.slane %v6234_v29, 4  ;;  %v5959_v8 = vcombine.high %v5951_v19, %v5951_v19  ;;  %v5958_v63 = vrot.slane %v5944_v41, %v10567_v42 }
 0x4b5   : > { %v6216_v33 = vrot.slane %v6215_v24, 2  ;;  %v6229_v62 = vmax.f32 %v6227_v12, %v6228_v27  ;;  %v6157_v52 = vsel %vm6044_vm1, %v5951_v19, -inf  ;;  %v5653_v20 = vadd.f32 %v11598_v11, %v5571_v60 }
 0x4b6   : > { %v6223_v55 = vrot.slane %v6222_v13, 2  ;;  %v6236_v35 = vmax.f32 %v6234_v29, %v6235_v54  ;;  %v6158_v15 = vrot.slane %v6157_v52, 4  ;;  %v6164_v59 = vsel %vm6044_vm1, %v5959_v8, -inf }
 0x4b7   : > { %v6230_v1 = vrot.slane %v6229_v62, 2  ;;  %v6217_v22 = vmax.f32 %v6215_v24, %v6216_v33  ;;  %v6171_v18 = vsel %vm6044_vm1, %v5958_v63, -inf  ;;  %v5960_v23 = vcombine.high %v5958_v63, %v5958_v63 }
 0x4b8   : > { %v6224_v5 = vmax.f32 %v6222_v13, %v6223_v55  ;;  %v6237_v38 = vrot.slane %v6236_v35, 2  ;;  %v6159_v43 = vmax.f32 %v6157_v52, %v6158_v15  ;;  %v6165_v36 = vrot.slane %v6164_v59, 4 }
 0x4b9   : > { %v6231_v50 = vmax.f32 %v6229_v62, %v6230_v1  ;;  %v6218_v0 = vrot.slane %v6217_v22, 1  ;;  %v6172_v47 = vrot.slane %v6171_v18, 4  ;;  %v5995_v31 = vcombine.high %v5867_v57, %v5867_v57 }
 0x4ba   : > { %v5741_v48 = vadd.f32 %v5724_v6, %v5653_v20  ;;  %v6225_v61 = vrot.slane %v6224_v5, 1  ;;  %v6238_v7 = vmax.f32 %v6236_v35, %v6237_v38  ;;  %v6160_v28 = vrot.slane %v6159_v43, 2 }
 0x4bb   : > { %v6178_v32 = vsel %vm6044_vm1, %v5960_v23, -inf  ;;  %v6232_v44 = vrot.slane %v6231_v50, 1  ;;  %v6166_v17 = vmax.f32 %v6164_v59, %v6165_v36  ;;  %v6002_v9 = vrot.slane %v5867_v57, %v10567_v42 }
 0x4bc   : > { %v6219_v10 = vmax.f32 %v6217_v22, %v6218_v0  ;;  %v6173_v26 = vmax.f32 %v6171_v18, %v6172_v47  ;;  %v6009_v11 = vrot.slane %v5995_v31, %v10567_v42  ;;  %v5827_v39 = vadd.f32 %v5810_v16, %v5741_v48 }
 0x4bd   : > { %v6226_v14 = vmax.f32 %v6224_v5, %v6225_v61  ;;  %v6179_v37 = vrot.slane %v6178_v32, 4  ;;  %v6010_v21 = vcombine.high %v6002_v9, %v6002_v9  ;;  %v6241_v53 = vsel %vm6044_vm1, %v6002_v9, -inf }
 0x4be   : > { %v6239_v49 = vrot.slane %v6238_v7, 1  ;;  %v11745_v51 = vmax.f32 %v6159_v43, %v6160_v28  ;;  %v6011_v4 = vcombine.high %v6009_v11, %v6009_v11  ;;  %v6242_v56 = vrot.slane %v6241_v53, 4 }
 0x4bf   : > { %v6233_v3 = vmax.f32 %v6231_v50, %v6232_v44  ;;  %v6167_v58 = vrot.slane %v6166_v17, 2  ;;  %v6248_v2 = vsel %vm6044_vm1, %v6010_v21, -inf  ;;  %v6255_v34 = vsel %vm6044_vm1, %v6009_v11, -inf }
 0x4c0   : > { %v11750_v45 = vsel %vm6269_vm2, %v6219_v10, -inf  ;;  %v6243_v12 = vmax.f32 %v6241_v53, %v6242_v56  ;;  %v6249_v41 = vrot.slane %v6248_v2, 4  ;;  %v6256_v19 = vrot.slane %v6255_v34, 4 }
 0x4c1   : > { %v6174_v24 = vrot.slane %v6173_v26, 2  ;;  %v6180_v27 = vmax.f32 %v6178_v32, %v6179_v37  ;;  %v6262_v29 = vsel %vm6044_vm1, %v6011_v4, -inf  ;;  %v5842_v13 = vmul.f32 %v11613_v25, %v5827_v39 }
 0x4c2   : > { %v6244_v54 = vrot.slane %v6243_v12, 2  ;;  %v6250_v8 = vmax.f32 %v6248_v2, %v6249_v41  ;;  %v6257_v40 = vmax.f32 %v6255_v34, %v6256_v19  ;;  %v6263_v33 = vrot.slane %v6262_v29, 4 }
 0x4c3   : > { %v6240_v62 = vmax.f32 %v6238_v7, %v6239_v49  ;;  %v6309_v63 = vsel %vm6269_vm2, %v6226_v14, -inf  ;;  %v6162_v52 = vrot.slane %v11745_v51, 1  ;;  %v5857_v60 = vadd.f32 %v11619_v30, %v5842_v13 }
 0x4c4   : > { %v6245_v55 = vmax.f32 %v6243_v12, %v6244_v54  ;;  %v6251_v35 = vrot.slane %v6250_v8, 2  ;;  %v6258_v15 = vrot.slane %v6257_v40, 2  ;;  %v6264_v1 = vmax.f32 %v6262_v29, %v6263_v33 }
 0x4c5   : > { %v6312_v22 = vsel %vm6269_vm2, %v6233_v3, -inf  ;;  %v6168_v59 = vmax.f32 %v6166_v17, %v6167_v58  ;;  %v6181_v57 = vrot.slane %v6180_v27, 2  ;;  %v5865_v25 = vmax.f32 %v5857_v60, 0.0 }
 0x4c6   : > { %v6246_v5 = vrot.slane %v6245_v55, 1  ;;  %v6252_v18 = vmax.f32 %v6250_v8, %v6251_v35  ;;  %v6259_v6 = vmax.f32 %v6257_v40, %v6258_v15  ;;  %v6265_v38 = vrot.slane %v6264_v1, 2 }
 0x4c7   : > { %v6315_v23 = vsel %vm6269_vm2, %v6240_v62, -inf  ;;  %v6175_v43 = vmax.f32 %v6173_v26, %v6174_v24  ;;  %v5961_v20 = vcombine.high %v5865_v25, %v5865_v25  ;;  %v5968_v50 = vrot.slane %v5865_v25, %v10567_v42 }
 0x4c8   : > { %v6247_v30 = vmax.f32 %v6245_v55, %v6246_v5  ;;  %v6253_v36 = vrot.slane %v6252_v18, 1  ;;  %v6260_v0 = vrot.slane %v6259_v6, 1  ;;  %v6266_v47 = vmax.f32 %v6264_v1, %v6265_v38 }
 0x4c9   : > { %v6182_v31 = vmax.f32 %v6180_v27, %v6181_v57  ;;  %v5975_v48 = vrot.slane %v5961_v20, %v10567_v42  ;;  %v5976_v61 = vcombine.high %v5968_v50, %v5968_v50  ;;  %v6185_v7 = vsel %vm6044_vm1, %v5968_v50, -inf }
 0x4ca   : > { %v6254_v28 = vmax.f32 %v6252_v18, %v6253_v36  ;;  %v6261_v32 = vmax.f32 %v6259_v6, %v6260_v0  ;;  %v6267_v16 = vrot.slane %v6266_v47, 1  ;;  %v6307_v44 = vsel %vm6269_vm2, %v6247_v30, -inf }
 0x4cb   : > { %v6308_v17 = vmax.f32 %v11750_v45, %v6307_v44  ;;  %v5977_v9 = vcombine.high %v5975_v48, %v5975_v48  ;;  %v6186_v10 = vrot.slane %v6185_v7, 4  ;;  %v6192_v26 = vsel %vm6044_vm1, %v5976_v61, -inf }
 0x4cc   : > { %v6268_v11 = vmax.f32 %v6266_v47, %v6267_v16  ;;  %v6310_v39 = vsel %vm6269_vm2, %v6254_v28, -inf  ;;  %v6313_v14 = vsel %vm6269_vm2, %v6261_v32, -inf  ;;  %v6193_v42 = vrot.slane %v6192_v26, 4  ;;  %v11784_v32 = vld [vmem:[#allocation4 + $0x8] sm:$0x3f] }
 0x4cd   : > { %v6311_v37 = vmax.f32 %v6309_v63, %v6310_v39  ;;  %v6314_v21 = vmax.f32 %v6312_v22, %v6313_v14  ;;  %v6187_v53 = vmax.f32 %v6185_v7, %v6186_v10  ;;  %v6199_v49 = vsel %vm6044_vm1, %v5975_v48, -inf  ;;  %v6363_v7 = vld [vmem:[#allocation4] sm:$0x3f]  ;;  %v11791_v10 = vld [vmem:[#allocation4 + $0x10] sm:$0x3f] }
 0x4ce   : > { %v6316_v4 = vsel %vm6269_vm2, %v6268_v11, -inf  ;;  %v6194_v56 = vmax.f32 %v6192_v26, %v6193_v42  ;;  %v6200_v3 = vrot.slane %v6199_v49, 4  ;;  %v6206_v58 = vsel %vm6044_vm1, %v5977_v9, -inf }
 0x4cf   : > { %v6317_v2 = vmax.f32 %v6315_v23, %v6316_v4  ;;  %v6350_v34 = vsel %vm4836_vm8, %v6311_v37, %v6308_v17  ;;  %v6188_v45 = vrot.slane %v6187_v53, 2  ;;  %v6207_v12 = vrot.slane %v6206_v58, 4 }
 0x4d0   : > { %v6169_v41 = vrot.slane %v6168_v59, 1  ;;  %v6351_v19 = vsel %vm4838_vm9, %v6314_v21, %v6350_v34  ;;  %v6195_v24 = vrot.slane %v6194_v56, 2  ;;  %v6201_v27 = vmax.f32 %v6199_v49, %v6200_v3 }
 0x4d1   : > { %v6352_v29 = vsel %vm4840_vm10, %v6317_v2, %v6351_v19  ;;  %v6189_v13 = vmax.f32 %v6187_v53, %v6188_v45  ;;  %v6208_v54 = vmax.f32 %v6206_v58, %v6207_v12  ;;  %v6176_v8 = vrot.slane %v6175_v43, 1  ;;  %v8914_v45 = vld [vmem:[#allocation6 + $0x40] ss:$16 sps:$4 sm:$0xff]  }
 0x4d2   : > { %6362 = vst.msk [vmem:[#allocation4 + $0x21] sm:$0xf] %vm6358_vm4, %v6352_v29  ;;  %v6196_v40 = vmax.f32 %v6194_v56, %v6195_v24  ;;  %v6202_v33 = vrot.slane %v6201_v27, 2  ;;  %v6163_v62 = vmax.f32 %v11745_v51, %v6162_v52  ;;  %v6183_v63 = vrot.slane %v6182_v31, 1 }
 0x4d3   : > { %v6190_v60 = vrot.slane %v6189_v13, 1  ;;  %v6209_v55 = vrot.slane %v6208_v54, 2  ;;  %v6170_v35 = vmax.f32 %v6168_v59, %v6169_v41  ;;  %v6177_v25 = vmax.f32 %v6175_v43, %v6176_v8 }
 0x4d4   : > { %v6197_v15 = vrot.slane %v6196_v40, 1  ;;  %v6203_v1 = vmax.f32 %v6201_v27, %v6202_v33  ;;  %v6184_v6 = vmax.f32 %v6182_v31, %v6183_v63  ;;  %v6294_v38 = vsel %vm6269_vm2, %v6163_v62, -inf  ;;  %v8965_v27 = vld [vmem:[#allocation6 + $0x108] ss:$16 sps:$4 sm:$0xff]  }
 0x4d5   : > { %v6191_v22 = vmax.f32 %v6189_v13, %v6190_v60  ;;  %v6210_v57 = vmax.f32 %v6208_v54, %v6209_v55  ;;  %v6297_v50 = vsel %vm6269_vm2, %v6170_v35, -inf  ;;  %v6300_v0 = vsel %vm6269_vm2, %v6177_v25, -inf  ;;  %v8911_v25 = vld [vmem:[#allocation6 + $0x28] ss:$16 sps:$4 sm:$0xff]  }
 0x4d6   : > { %v6198_v5 = vmax.f32 %v6196_v40, %v6197_v15  ;;  %v6204_v18 = vrot.slane %v6203_v1, 1  ;;  %v6303_v47 = vsel %vm6269_vm2, %v6184_v6, -inf  ;;  %v6382_v17 = vcombine.high %v6363_v7, %v6363_v7  ;;  %v8926_v40 = vld [vmem:[#allocation6 + $0x64] ss:$16 sps:$4 sm:$0xff]   ;;  %v8923_v6 = vld [vmem:[#allocation6 + $0xc] ss:$16 sps:$4 sm:$0xff]  }
 0x4d7   : > { %v6211_v23 = vrot.slane %v6210_v57, 1  ;;  %v6295_v20 = vsel %vm6269_vm2, %v6191_v22, -inf  ;;  %v6383_v9 = vcombine.high %v11784_v32, %v11784_v32  ;;  %v8136_v26 = vrot.slane %v6363_v7, 9 }
 0x4d8   : > { %v6205_v51 = vmax.f32 %v6203_v1, %v6204_v18  ;;  %v6296_v52 = vmax.f32 %v6294_v38, %v6295_v20  ;;  %v6298_v30 = vsel %vm6269_vm2, %v6198_v5, -inf  ;;  %v6391_v11 = vrot.slane %v6382_v17, 5 }
 0x4d9   : > { %v6212_v59 = vmax.f32 %v6210_v57, %v6211_v23  ;;  %v6299_v36 = vmax.f32 %v6297_v50, %v6298_v30  ;;  %v6384_v39 = vcombine.high %v11791_v10, %v11791_v10  ;;  %v6395_v14 = vrot.slane %v6383_v9, 5  ;;  %v8924_v23 = vld [vmem:[#allocation6 + $0x60] ss:$16 sps:$4 sm:$0xff]   ;;  %v8921_v30 = vld [vmem:[#allocation6 + $0x8] ss:$16 sps:$4 sm:$0xff]  }
 0x4da   : > { %v6301_v43 = vsel %vm6269_vm2, %v6205_v51, -inf  ;;  %v8137_v37 = vrot.slane %v11784_v32, 9  ;;  %v6373_v53 = vcombine.low %v6363_v7, %v11784_v32  ;;  %v8152_v4 = vrot.slane %v6363_v7, 10  ;;  %v11852_v50 = vld [vmem:[#allocation4 + $0x20] sm:$0x3f] }
 0x4db   : > { %v6302_v31 = vmax.f32 %v6300_v0, %v6301_v43  ;;  %v6304_v48 = vsel %vm6269_vm2, %v6212_v59, -inf  ;;  %v6347_v61 = vsel %vm4836_vm8, %v6299_v36, %v6296_v52  ;;  %vm11795_vm8 = vmor %vm6386_vm5, %vm6387_vm6  ;;  %v6637_v56 = vrot.slane %v6382_v17, 6  ;;  %v8934_v51 = vld [vmem:[#allocation6 + $0x84] ss:$16 sps:$4 sm:$0xff]   ;;  %v8931_v36 = vld [vmem:[#allocation6 + $0x4c] ss:$16 sps:$4 sm:$0xff]  }
 0x4dc   : > { %v6305_v28 = vmax.f32 %v6303_v47, %v6304_v48  ;;  %v6392_v49 = vsel %vm11795_vm8, %v8136_v26, %v6391_v11  ;;  %v11808_v2 = vsel %vm11795_vm8, %v8137_v37, %v6395_v14  ;;  %v6399_v34 = vrot.slane %v6384_v39, 5  ;;  %v8932_v43 = vld [vmem:[#allocation6 + $0x80] ss:$16 sps:$4 sm:$0xff]   ;;  %v8941_v48 = vld [vmem:[#allocation6 + $0xa4] ss:$16 sps:$4 sm:$0xff]  }
 0x4dd   : > { %v6348_v16 = vsel %vm4838_vm9, %v6302_v31, %v6347_v61  ;;  %v8138_v12 = vrot.slane %v11791_v10, 9  ;;  %v6641_v19 = vrot.slane %v6383_v9, 6  ;;  %v6645_v24 = vrot.slane %v6384_v39, 6  ;;  %vm11813_vm9 = vmor %vm848_vm3, %vm6633_vm7  ;;  %v8939_v17 = vld [vmem:[#allocation6 + $0xa0] ss:$16 sps:$4 sm:$0xff]  }
 0x4de   : > { %v6349_v44 = vsel %vm4840_vm10, %v6305_v28, %v6348_v16  ;;  %v6638_v33 = vsel %vm11813_vm9, %v8152_v4, %v6637_v56  ;;  %v8153_v62 = vrot.slane %v11784_v32, 10  ;;  %v8154_v63 = vrot.slane %v11791_v10, 10  ;;  %v8929_v28 = vld [vmem:[#allocation6 + $0x48] ss:$16 sps:$4 sm:$0xff]   ;;  %v8938_v16 = vld [vmem:[#allocation6 + $0x6c] ss:$16 sps:$4 sm:$0xff]  }
 0x4df   : > { %6361 = vst.msk [vmem:[#allocation4 + $0x19] sm:$0xf] %vm6358_vm4, %v6349_v44  ;;  %v6400_v60 = vsel %vm11795_vm8, %v8138_v12, %v6399_v34  ;;  %v6405_v35 = vcombine.low %v6392_v49, %v11808_v2  ;;  %v6906_v52 = vcombine.high %v11852_v50, %v11852_v50  ;;  %v6779_v0 = vcombine.low %v11784_v32, %v11791_v10  ;;  %v8947_v26 = vld [vmem:[#allocation6 + $0xc4] ss:$16 sps:$4 sm:$0xff]   ;;  %v8936_v14 = vld [vmem:[#allocation6 + $0x68] ss:$16 sps:$4 sm:$0xff]  }
 0x4e0   : > { %v11837_v22 = vsel %vm11813_vm9, %v8153_v62, %v6641_v19  ;;  %v11841_v57 = vsel %vm11813_vm9, %v8154_v63, %v6645_v24  ;;  %v8168_v61 = vrot.slane %v11852_v50, 9  ;;  %v6911_v44 = vcombine.low %v11808_v2, %v6400_v60  ;;  %v8945_v49 = vld [vmem:[#allocation6 + $0xc0] ss:$16 sps:$4 sm:$0xff]   ;;  %v6368_v56 = vld [vmem:[#allocation4 + $0x28] sm:$0x3f] }
 0x4e1   : > { %v6651_v38 = vcombine.low %v6638_v33, %v11837_v22  ;;  %v6909_v47 = vrot.slane %v6906_v52, 5  ;;  %v7040_v9 = vrot.slane %v6906_v52, 6  ;;  %v8175_v11 = vrot.slane %v11852_v50, 10  ;;  %v8942_v34 = vld [vmem:[#allocation6 + $0x88] ss:$16 sps:$4 sm:$0xff]   ;;  %v7681_v52 = vld [vmem:[%s12208_s10 + $0xd0] sm:$0xff] }
 0x4e2   : > { %v7295_v2 = vcombine.high %v6368_v56, %v6368_v56  ;;  %v7170_v12 = vcombine.low %v11852_v50, %v6368_v56  ;;  %v8188_v19 = vrot.slane %v6368_v56, 9  ;;  %v8195_v62 = vrot.slane %v6368_v56, 10  ;;  %v7656_v56 = vld [vmem:[%s12208_s10 + $0x8] sm:$0xff] }
 0x4e3   : > { %v11868_v7 = vsel %vm11795_vm8, %v8168_v61, %v6909_v47  ;;  %v7041_v39 = vsel %vm11813_vm9, %v8175_v11, %v7040_v9  ;;  %v7678_v47 = vld [vmem:[%s12208_s10 + $0xb8] sm:$0xff]  ;;  %v7661_v61 = vld [vmem:[%s12208_s10 + $0x30] sm:$0xff]  ;;  %v7659_v9 = vld [vmem:[%s12208_s10 + $0x20] sm:$0xff]  ;;  %vm7866_vm3 = vcmask 0  }
 0x4e4   : > { %v7298_v24 = vrot.slane %v7295_v2, 5  ;;  %v7427_v63 = vrot.slane %v7295_v2, 6  ;;  %v7658_v11 = vld [vmem:[%s12208_s10 + $0x18] sm:$0xff]  ;;  %v7671_v2 = vld [vmem:[%s12208_s10 + $0x80] sm:$0xff] }
 0x4e6   : > { %v6366_v21 = vld [vmem:[#allocation4 + $0x18] sm:$0x3f]  ;;  %v7428_v42 = vsel %vm11813_vm9, %v8195_v62, %v7427_v63  ;;  %v7707_v63 = vld [vmem:[%s12208_s10 + $0x1a0] sm:$0xff] }
 0x4e7   : > { %v11804_v3 = vcombine.low %v11791_v10, %v6366_v21  ;;  %v6385_v58 = vcombine.high %v6366_v21, %v6366_v21  ;;  %v8139_v41 = vrot.slane %v6366_v21, 9  ;;  %v8155_v54 = vrot.slane %v6366_v21, 10  ;;  %v7692_v62 = vld [vmem:[%s12208_s10 + $0x128] sm:$0xff] }
 0x4e8   : > { %v6780_v59 = vcombine.low %v6366_v21, %v11852_v50  ;;  %v8944_v21 = vld [vmem:[#allocation6 + $0x8c] ss:$16 sps:$4 sm:$0xff]  }
 0x4e9   : > { %v6377_v29 = vpack.c.bf16 %v11804_v3, %v6373_v53  ;;  %v6403_v13 = vrot.slane %v6385_v58, 5  ;;  %v6649_v8 = vrot.slane %v6385_v58, 6  ;;  %v7042_v53 = vcombine.low %v11837_v22, %v11841_v57  ;;  %v8954_v58 = vld [vmem:[#allocation6 + $0xe4] ss:$16 sps:$4 sm:$0xff]  }
 0x4ea   : > { %v6783_v31 = vpack.c.bf16 %v6780_v59, %v6779_v0  ;;  %v7682_v50 = vld [vmem:[%s12208_s10 + $0xd8] sm:$0xff]  ;;  %v7680_v59 = vld [vmem:[%s12208_s10 + $0xc8] sm:$0xff]  ;;  %v7679_v0 = vld [vmem:[%s12208_s10 + $0xc0] sm:$0xff] }
 0x4eb   : > { %8150 = vmatmul.mubr.msk.bf16.vlgmr.msra.gmra.mxu0 %vm6269_vm2, %v6377_v29  ;;  %v6404_v55 = vsel %vm11795_vm8, %v8139_v41, %v6403_v13  ;;  %v11830_v15 = vsel %vm11813_vm9, %v8155_v54, %v6649_v8  ;;  %v8952_v41 = vld [vmem:[#allocation6 + $0xe0] ss:$16 sps:$4 sm:$0xff]   ;;  %v8961_v13 = vld [vmem:[#allocation6 + $0x104] ss:$16 sps:$4 sm:$0xff]   ;;  %v7299_v54 = vsel %vm11795_vm8, %v8188_v19, %v7298_v24  ;;  %v8949_v8 = vld [vmem:[#allocation6 + $0xa8] ss:$16 sps:$4 sm:$0xff]  }
 0x4ec   : > { %v11832_v1 = vcombine.low %v6400_v60, %v6404_v55  ;;  %6699 = vmatpush1.bf16.msra.mxu0 %v8914_v45  ;;  %6716 = vmatprep.mubr.bf16.mxu0 %v9020_v46  ;;  %v11845_v5 = vcombine.low %v11841_v57, %v11830_v15  ;;  %v6912_v32 = vcombine.low %v6404_v55, %v11868_v7  ;;  %v8951_v45 = vld [vmem:[#allocation6 + $0xac] ss:$16 sps:$4 sm:$0xff]   ;;  %v8956_v55 = vld [vmem:[#allocation6 + $0xc8] ss:$16 sps:$4 sm:$0xff]  }
 0x4ed   : > { %6826 = vmatprep.subr.bf16.mxu0 %v8926_v40  ;;  %v7043_v37 = vcombine.low %v11830_v15, %v7041_v39  ;;  %v8958_v40 = vld [vmem:[#allocation6 + $0xcc] ss:$16 sps:$4 sm:$0xff]   ;;  %v7300_v33 = vcombine.low %v11868_v7, %v7299_v54  ;;  %v7429_v15 = vcombine.low %v7041_v39, %v7428_v42 }
 0x4ee   : > { %v6409_v18 = vpack.c.bf16 %v11832_v1, %v6405_v35  ;;  %v6655_v20 = vpack.c.bf16 %v11845_v5, %v6651_v38  ;;  %v6915_v10 = vpack.c.bf16 %v6912_v32, %v6911_v44  ;;  %v8964_v35 = vld [vmem:[#allocation6 + $0xec] ss:$16 sps:$4 sm:$0xff]  }
 0x4ef   : > { %v7046_v4 = vpack.c.bf16 %v7043_v37, %v7042_v53  ;;  %v7302_v60 = vpack.c.bf16 %v7300_v33, %v11832_v1  ;;  %v7431_v22 = vpack.c.bf16 %v7429_v15, %v11845_v5  ;;  %v8962_v1 = vld [vmem:[#allocation6 + $0xe8] ss:$16 sps:$4 sm:$0xff]   ;;  %v8967_v57 = vld [vmem:[#allocation6 + $0x10c] ss:$16 sps:$4 sm:$0xff]  }
 0x4f0   : > { %8144 = vmatmul.mubr.msk.bf16.vlgmr.msra.gmra.mxu1 %vm6269_vm2, %v6409_v18  ;;  %v7670_v5 = vld [vmem:[%s12208_s10 + $0x78] sm:$0xff]  ;;  %v7668_v38 = vld [vmem:[%s12208_s10 + $0x68] sm:$0xff]  ;;  %v7675_v44 = vld [vmem:[%s12208_s10 + $0xa0] sm:$0xff] }
 0x4f1   : > { %6496 = vmatpush1.bf16.msra.mxu1 %v8911_v25  ;;  %6513 = vmatprep.mubr.bf16.mxu1 %v9020_v46  ;;  %v7686_v25 = vld [vmem:[%s12208_s10 + $0xf8] sm:$0xff]  ;;  %v7676_v7 = vld [vmem:[%s12208_s10 + $0xa8] sm:$0xff]  ;;  %v7715_v53 = vld [vmem:[%s12208_s10 + $0x1e0] sm:$0xff] }
 0x4f2   : > { %6604 = vmatprep.subr.bf16.mxu1 %v8923_v6  ;;  %v7684_v6 = vld [vmem:[%s12208_s10 + $0xe8] sm:$0xff]  ;;  %v7710_v54 = vld [vmem:[%s12208_s10 + $0x1b8] sm:$0xff]  ;;  %v7693_v33 = vld [vmem:[%s12208_s10 + $0x130] sm:$0xff] }
 0x4f3   : > { %8160 = vmatmul.mubr.msk.bf16.vlgmr.msra.gmra.mxu0 %vm6269_vm2, %v6655_v20  ;;  %v7660_v32 = vld [vmem:[%s12208_s10 + $0x28] sm:$0xff]  ;;  %v7706_v42 = vld [vmem:[%s12208_s10 + $0x198] sm:$0xff]  ;;  %v7689_v15 = vld [vmem:[%s12208_s10 + $0x110] sm:$0xff] }
 0x4f4   : > { %6827 = vmatpush1.bf16.msra.mxu0 %v8924_v23  ;;  %6844 = vmatprep.mubr.bf16.mxu0 %v9020_v46  ;;  %v7683_v23 = vld [vmem:[%s12208_s10 + $0xe0] sm:$0xff]  ;;  %v7716_v39 = vld [vmem:[%s12208_s10 + $0x1e8] sm:$0xff] }
 0x4f5   : > { %6958 = vmatprep.subr.bf16.mxu0 %v8934_v51  ;;  %v7666_v51 = vld [vmem:[%s12208_s10 + $0x58] sm:$0xff]  ;;  %v7700_v37 = vld [vmem:[%s12208_s10 + $0x168] sm:$0xff] }
 0x4f6   : > { %v7712_v19 = vld [vmem:[%s12208_s10 + $0x1c8] sm:$0xff] }
 0x4f7   : > { %v7696_v24 = vld [vmem:[%s12208_s10 + $0x148] sm:$0xff] }
 0x4f8   : > { %8145 = vmatmul.mubr.msk.bf16.vlgmr.msra.gmra.mxu1 %vm6269_vm2, %v6409_v18  ;;  %v7685_v18 = vld [vmem:[%s12208_s10 + $0xf0] sm:$0xff] }
 0x4f9   : > { %6605 = vmatpush1.bf16.msra.mxu1 %v8921_v30  ;;  %6622 = vmatprep.mubr.bf16.mxu1 %v9020_v46  ;;  %v7665_v30 = vld [vmem:[%s12208_s10 + $0x50] sm:$0xff] }
 0x4fa   : > { %6741 = vmatprep.subr.bf16.mxu1 %v8931_v36  ;;  %v7664_v36 = vld [vmem:[%s12208_s10 + $0x48] sm:$0xff] }
 0x4fb   : > { %8166 = vmatmul.mubr.msk.bf16.vlgmr.msra.gmra.mxu0 %vm6269_vm2, %v6783_v31 }
 0x4fc   : > { %6959 = vmatpush1.bf16.msra.mxu0 %v8932_v43  ;;  %6976 = vmatprep.mubr.bf16.mxu0 %v9020_v46  ;;  %v7663_v43 = vld [vmem:[%s12208_s10 + $0x40] sm:$0xff] }
 0x4fd   : > { %7089 = vmatprep.subr.bf16.mxu0 %v8941_v48  ;;  %v7677_v48 = vld [vmem:[%s12208_s10 + $0xb0] sm:$0xff] }
 0x500   : > { %8151 = vmatmul.mubr.msk.bf16.vlgmr.msra.gmra.mxu1 %vm6269_vm2, %v6377_v29  ;;  %v7172_v29 = vpack.c.bf16 %v7170_v12, %v11804_v3  ;;  %v8959_v3 = vld [vmem:[#allocation6 + $0x100] ss:$16 sps:$4 sm:$0xff]  }
 0x501   : > { %6742 = vmatpush1.bf16.msra.mxu1 %v8929_v28  ;;  %6759 = vmatprep.mubr.bf16.mxu1 %v9020_v46  ;;  %v7718_v28 = vld [vmem:[%s12208_s10 + $0x1f8] sm:$0xff]  ;;  %v7713_v12 = vld [vmem:[%s12208_s10 + $0x1d0] sm:$0xff] }
 0x502   : > { %6869 = vmatprep.subr.bf16.mxu1 %v8938_v16  ;;  %v7702_v16 = vld [vmem:[%s12208_s10 + $0x178] sm:$0xff] }
 0x503   : > { %8173 = vmatmul.mubr.msk.bf16.vlgmr.msra.gmra.mxu0 %vm6269_vm2, %v6915_v10 }
 0x504   : > { %7090 = vmatpush1.bf16.msra.mxu0 %v8939_v17  ;;  %7107 = vmatprep.mubr.bf16.mxu0 %v9020_v46  ;;  %v7717_v17 = vld [vmem:[%s12208_s10 + $0x1f0] sm:$0xff] }
 0x505   : > { %7215 = vmatprep.subr.bf16.mxu0 %v8947_v26  ;;  %v7674_v26 = vld [vmem:[%s12208_s10 + $0x98] sm:$0xff] }
 0x508   : > { %8161 = vmatmul.mubr.msk.bf16.vlgmr.msra.gmra.mxu1 %vm6269_vm2, %v6655_v20  ;;  %v7667_v20 = vld [vmem:[%s12208_s10 + $0x60] sm:$0xff] }
 0x509   : > { %6870 = vmatpush1.bf16.msra.mxu1 %v8936_v14  ;;  %6887 = vmatprep.mubr.bf16.mxu1 %v9020_v46  ;;  %v7673_v14 = vld [vmem:[%s12208_s10 + $0x90] sm:$0xff] }
 0x50a   : > { %7001 = vmatprep.subr.bf16.mxu1 %v8944_v21  ;;  %v7657_v21 = vld [vmem:[%s12208_s10 + $0x10] sm:$0xff] }
 0x50b   : > { %8180 = vmatmul.mubr.msk.bf16.vlgmr.msra.gmra.mxu0 %vm6269_vm2, %v7046_v4 }
 0x50c   : > { %7216 = vmatpush1.bf16.msra.mxu0 %v8945_v49  ;;  %7233 = vmatprep.mubr.bf16.mxu0 %v9020_v46  ;;  %v7672_v49 = vld [vmem:[%s12208_s10 + $0x88] sm:$0xff] }
 0x50d   : > { %7345 = vmatprep.subr.bf16.mxu0 %v8954_v58  ;;  %v7714_v58 = vld [vmem:[%s12208_s10 + $0x1d8] sm:$0xff] }
 0x510   : > { %8167 = vmatmul.mubr.msk.bf16.vlgmr.msra.gmra.mxu1 %vm6269_vm2, %v6783_v31  ;;  %v7662_v31 = vld [vmem:[%s12208_s10 + $0x38] sm:$0xff] }
 0x511   : > { %7002 = vmatpush1.bf16.msra.mxu1 %v8942_v34  ;;  %7019 = vmatprep.mubr.bf16.mxu1 %v9020_v46  ;;  %v7698_v34 = vld [vmem:[%s12208_s10 + $0x158] sm:$0xff] }
 0x512   : > { %7132 = vmatprep.subr.bf16.mxu1 %v8951_v45  ;;  %v7655_v45 = vld [vmem:[%s12208_s10] sm:$0xff] }
 0x513   : > { %8186 = vmatmul.mubr.msk.bf16.vlgmr.msra.gmra.mxu0 %vm6269_vm2, %v7172_v29 }
 0x514   : > { %7346 = vmatpush1.bf16.msra.mxu0 %v8952_v41  ;;  %7363 = vmatprep.mubr.bf16.mxu0 %v9020_v46  ;;  %v7697_v41 = vld [vmem:[%s12208_s10 + $0x150] sm:$0xff] }
 0x515   : > { %7474 = vmatprep.subr.bf16.mxu0 %v8961_v13  ;;  %v7695_v13 = vld [vmem:[%s12208_s10 + $0x140] sm:$0xff] }
 0x518   : > { %8174 = vmatmul.mubr.msk.bf16.vlgmr.msra.gmra.mxu1 %vm6269_vm2, %v6915_v10  ;;  %v7701_v10 = vld [vmem:[%s12208_s10 + $0x170] sm:$0xff] }
 0x519   : > { %7133 = vmatpush1.bf16.msra.mxu1 %v8949_v8  ;;  %7150 = vmatprep.mubr.bf16.mxu1 %v9020_v46  ;;  %v7694_v8 = vld [vmem:[%s12208_s10 + $0x138] sm:$0xff] }
 0x51a   : > { %7258 = vmatprep.subr.bf16.mxu1 %v8958_v40  ;;  %v7709_v40 = vld [vmem:[%s12208_s10 + $0x1b0] sm:$0xff] }
 0x51b   : > { %8193 = vmatmul.mubr.msk.bf16.vlgmr.msra.gmra.mxu0 %vm6269_vm2, %v7302_v60 }
 0x51c   : > { %7475 = vmatpush1.bf16.msra.mxu0 %v8959_v3  ;;  %7492 = vmatprep.mubr.bf16.mxu0 %v9020_v46  ;;  %v7708_v3 = vld [vmem:[%s12208_s10 + $0x1a8] sm:$0xff] }
 0x51d   : > { %8403 = vmatprep.subr.mxu0 %v7686_v25 }
 0x520   : > { %8181 = vmatmul.mubr.msk.bf16.vlgmr.msra.gmra.mxu1 %vm6269_vm2, %v7046_v4  ;;  %v7699_v4 = vld [vmem:[%s12208_s10 + $0x160] sm:$0xff] }
 0x521   : > { %7259 = vmatpush1.bf16.msra.mxu1 %v8956_v55  ;;  %7276 = vmatprep.mubr.bf16.mxu1 %v9020_v46  ;;  %v7690_v55 = vld [vmem:[%s12208_s10 + $0x118] sm:$0xff] }
 0x522   : > { %7388 = vmatprep.subr.bf16.mxu1 %v8964_v35  ;;  %v7705_v35 = vld [vmem:[%s12208_s10 + $0x190] sm:$0xff] }
 0x523   : > { %8200 = vmatmul.mubr.msk.bf16.vlgmr.msra.gmra.mxu0 %vm6269_vm2, %v7431_v22 }
 0x524   : > { %8404 = vmatpush3.msra.mxu0 %v7670_v5 }
 0x525   : > { %8405 = vmatprep.subr.mxu0 %v7685_v18 }
 0x528   : > { %8187 = vmatmul.mubr.msk.bf16.vlgmr.msra.gmra.mxu1 %vm6269_vm2, %v7172_v29  ;;  %v7711_v29 = vld [vmem:[%s12208_s10 + $0x1c0] sm:$0xff] }
 0x529   : > { %7389 = vmatpush1.bf16.msra.mxu1 %v8962_v1  ;;  %7406 = vmatprep.mubr.bf16.mxu1 %v9020_v46  ;;  %v7688_v1 = vld [vmem:[%s12208_s10 + $0x108] sm:$0xff] }
 0x52a   : > { %7517 = vmatprep.subr.bf16.mxu1 %v8967_v57  ;;  %v7703_v57 = vld [vmem:[%s12208_s10 + $0x180] sm:$0xff] }
 0x530   : > { %8194 = vmatmul.mubr.msk.bf16.vlgmr.msra.gmra.mxu1 %vm6269_vm2, %v7302_v60  ;;  %v7691_v60 = vld [vmem:[%s12208_s10 + $0x120] sm:$0xff] }
 0x531   : > { %7518 = vmatpush1.bf16.msra.mxu1 %v8965_v27  ;;  %7535 = vmatprep.mubr.bf16.mxu1 %v9020_v46  ;;  %v7669_v46 = vld [vmem:[%s12208_s10 + $0x70] sm:$0xff]  ;;  %v7687_v27 = vld [vmem:[%s12208_s10 + $0x100] sm:$0xff] }
 0x532   : > { %8406 = vmatpush3.msra.mxu0 %v7669_v46  ;;  %8438 = vmatprep.subr.mxu1 %v7718_v28 }
 0x533   : > { %8407 = vmatprep.subr.mxu0 %v7684_v6 }
 0x534   : > { %8408 = vmatpush3.msra.mxu0 %v7668_v38 }
 0x535   : > { %8409 = vmatprep.subr.mxu0 %v7683_v23 }
 0x536   : > { %8410 = vmatpush3.msra.mxu0 %v7667_v20 }
 0x537   : > { %8411 = vmatprep.subr.mxu0 %v7682_v50 }
 0x538   : > { %8201 = vmatmul.mubr.msk.bf16.vlgmr.msra.gmra.mxu1 %vm6269_vm2, %v7431_v22  ;;  %8412 = vmatpush3.msra.mxu0 %v7666_v51  ;;  %v7704_v22 = vld [vmem:[%s12208_s10 + $0x188] sm:$0xff] }
 0x539   : > { %8413 = vmatprep.subr.mxu0 %v7681_v52  ;;  %8439 = vmatpush3.msra.mxu1 %v7702_v16 }
 0x53a   : > { %8414 = vmatpush3.msra.mxu0 %v7665_v30  ;;  %8440 = vmatprep.subr.mxu1 %v7717_v17 }
 0x53b   : > { %8415 = vmatprep.subr.mxu0 %v7680_v59  ;;  %8441 = vmatpush3.msra.mxu1 %v7701_v10 }
 0x53c   : > { %8416 = vmatpush3.msra.mxu0 %v7664_v36  ;;  %8442 = vmatprep.subr.mxu1 %v7716_v39 }
 0x53d   : > { %8417 = vmatprep.subr.mxu0 %v7679_v0  ;;  %8443 = vmatpush3.msra.mxu1 %v7700_v37 }
 0x53e   : > { %8418 = vmatpush3.msra.mxu0 %v7663_v43  ;;  %8444 = vmatprep.subr.mxu1 %v7715_v53 }
 0x53f   : > { %8419 = vmatprep.subr.mxu0 %v7678_v47  ;;  %8445 = vmatpush3.msra.mxu1 %v7699_v4 }
 0x540   : > { %8420 = vmatpush3.msra.mxu0 %v7662_v31  ;;  %8446 = vmatprep.subr.mxu1 %v7714_v58 }
 0x541   : > { %8421 = vmatprep.subr.mxu0 %v7677_v48  ;;  %8447 = vmatpush3.msra.mxu1 %v7698_v34 }
 0x542   : > { %8422 = vmatpush3.msra.mxu0 %v7661_v61  ;;  %8448 = vmatprep.subr.mxu1 %v7713_v12 }
 0x543   : > { %8423 = vmatprep.subr.mxu0 %v7676_v7  ;;  %8449 = vmatpush3.msra.mxu1 %v7697_v41 }
 0x544   : > { %8424 = vmatpush3.msra.mxu0 %v7660_v32  ;;  %8450 = vmatprep.subr.mxu1 %v7712_v19 }
 0x545   : > { %8425 = vmatprep.subr.mxu0 %v7675_v44  ;;  %8451 = vmatpush3.msra.mxu1 %v7696_v24 }
 0x546   : > { %8426 = vmatpush3.msra.mxu0 %v7659_v9  ;;  %8452 = vmatprep.subr.mxu1 %v7711_v29 }
 0x547   : > { %8427 = vmatprep.subr.mxu0 %v7674_v26  ;;  %8453 = vmatpush3.msra.mxu1 %v7695_v13 }
 0x548   : > { %8428 = vmatpush3.msra.mxu0 %v7658_v11  ;;  %8454 = vmatprep.subr.mxu1 %v7710_v54 }
 0x549   : > { %8429 = vmatprep.subr.mxu0 %v7673_v14  ;;  %8455 = vmatpush3.msra.mxu1 %v7694_v8 }
 0x54a   : > { %8430 = vmatpush3.msra.mxu0 %v7657_v21  ;;  %8456 = vmatprep.subr.mxu1 %v7709_v40 }
 0x54b   : > { %8431 = vmatprep.subr.mxu0 %v7672_v49  ;;  %8457 = vmatpush3.msra.mxu1 %v7693_v33 }
 0x54c   : > { %8432 = vmatpush3.msra.mxu0 %v7656_v56  ;;  %8458 = vmatprep.subr.mxu1 %v7708_v3 }
 0x54d   : > { %8433 = vmatprep.subr.mxu0 %v7671_v2  ;;  %8459 = vmatpush3.msra.mxu1 %v7692_v62 }
 0x54e   : > { %8434 = vmatpush3.msra.mxu0 %v7655_v45  ;;  %8460 = vmatprep.subr.mxu1 %v7707_v63 }
 0x54f   : > { %8461 = vmatpush3.msra.mxu1 %v7691_v60 }
 0x550   : > { %8462 = vmatprep.subr.mxu1 %v7706_v42 }
 0x551   : > { %8463 = vmatpush3.msra.mxu1 %v7690_v55 }
 0x552   : > { %8464 = vmatprep.subr.mxu1 %v7705_v35 }
 0x553   : > { %8465 = vmatpush3.msra.mxu1 %v7689_v15  ;;  %v12373_v15 = vld [vmem:[#allocation21_spill] sm:$0xff] }
 0x554   : > { %8466 = vmatprep.subr.mxu1 %v7704_v22  ;;  %v7558_v22 = vsub.s32 0, %v12373_v15 }
 0x555   : > { %8467 = vmatpush3.msra.mxu1 %v7688_v1 }
 0x556   : > { %8468 = vmatprep.subr.mxu1 %v7703_v57 }
 0x557   : > { %8469 = vmatpush3.msra.mxu1 %v7687_v27 }
 0x5ab   : > { %v6581_v25 = vpop.f32.mrf.mxu0 }
 0x5ad   : > { %v6583_v5 = vpop.f32.mrf.mxu0 }
 0x5af   : > { %v6585_v18 = vpop.f32.mrf.mxu0 }
 0x5b0   : > { %v6472_v46 = vpop.f32.mrf.mxu1 }
 0x5b1   : > { %v6587_v6 = vpop.f32.mrf.mxu0  ;;  %v6582_v2 = vadd.f32 %v6581_v25, %v6472_v46 }
 0x5b2   : > { %v6474_v38 = vpop.f32.mrf.mxu1 }
 0x5b3   : > { %v6718_v23 = vpop.f32.mrf.mxu0  ;;  %v6584_v12 = vadd.f32 %v6583_v5, %v6474_v38 }
 0x5b4   : > { %v6476_v20 = vpop.f32.mrf.mxu1  ;;  %v6770_v24 = vadd.f32 %v6718_v23, %v6582_v2 }
 0x5b5   : > { %v6720_v50 = vpop.f32.mrf.mxu0  ;;  %v6586_v29 = vadd.f32 %v6585_v18, %v6476_v20  ;;  %v12147_v18 = vld [vmem:[%s12206_s8] sm:$0xf] }
 0x5b6   : > { %v6478_v51 = vpop.f32.mrf.mxu1  ;;  %v6771_v8 = vadd.f32 %v6720_v50, %v6584_v12 }
 0x5b7   : > { %v6722_v52 = vpop.f32.mrf.mxu0  ;;  %v6588_v40 = vadd.f32 %v6587_v6, %v6478_v51  ;;  %v7562_v6 = vsub.s32 1, %v12373_v15 }
 0x5b8   : > { %v12103_v30 = vpop.f32.mrf.mxu1  ;;  %v6774_v63 = vadd.f32 %v6722_v52, %v6586_v29 }
 0x5b9   : > { %v6724_v59 = vpop.f32.mrf.mxu0 }
 0x5ba   : > { %v12105_v36 = vpop.f32.mrf.mxu1  ;;  %v6775_v1 = vadd.f32 %v6724_v59, %v6588_v40  ;;  %v7559_v59 = vrot.slane %v12147_v18, %v7558_v22 }
 0x5bb   : > { %v6846_v0 = vpop.f32.mrf.mxu0 }
 0x5bc   : > { %v12107_v43 = vpop.f32.mrf.mxu1  ;;  %v6898_v33 = vadd.f32 %v6846_v0, %v6770_v24 }
 0x5bd   : > { %v6848_v47 = vpop.f32.mrf.mxu0 }
 0x5be   : > { %v12109_v31 = vpop.f32.mrf.mxu1  ;;  %v6899_v60 = vadd.f32 %v6848_v47, %v6771_v8 }
 0x5bf   : > { %v6850_v48 = vpop.f32.mrf.mxu0 }
 0x5c0   : > { %v12111_v61 = vpop.f32.mrf.mxu1  ;;  %v6902_v57 = vadd.f32 %v6850_v48, %v6774_v63 }
 0x5c1   : > { %v6852_v7 = vpop.f32.mrf.mxu0 }
 0x5c2   : > { %v12113_v28 = vpop.f32.mrf.mxu1  ;;  %v6903_v38 = vadd.f32 %v6852_v7, %v6775_v1 }
 0x5c3   : > { %v6978_v32 = vpop.f32.mrf.mxu0 }
 0x5c4   : > { %v12115_v16 = vpop.f32.mrf.mxu1  ;;  %v7030_v42 = vadd.f32 %v6978_v32, %v6898_v33 }
 0x5c5   : > { %v6980_v44 = vpop.f32.mrf.mxu0 }
 0x5c6   : > { %v12117_v17 = vpop.f32.mrf.mxu1  ;;  %v7031_v27 = vadd.f32 %v6980_v44, %v6899_v60 }
 0x5c7   : > { %v6982_v9 = vpop.f32.mrf.mxu0 }
 0x5c8   : > { %v12119_v10 = vpop.f32.mrf.mxu1  ;;  %v7034_v23 = vadd.f32 %v6982_v9, %v6902_v57  ;;  %v7563_v9 = vrot.slane %v12147_v18, %v7562_v6 }
 0x5c9   : > { %v6984_v26 = vpop.f32.mrf.mxu0 }
 0x5ca   : > { %v12121_v11 = vpop.f32.mrf.mxu1  ;;  %v7035_v0 = vadd.f32 %v6984_v26, %v6903_v38 }
 0x5cb   : > { %v7109_v39 = vpop.f32.mrf.mxu0 }
 0x5cc   : > { %v12123_v14 = vpop.f32.mrf.mxu1  ;;  %v7161_v25 = vadd.f32 %v7109_v39, %v7030_v42  ;;  %v12158_v39 = vld [vmem:[%s12207_s9] sm:$0xf] }
 0x5cd   : > { %v7111_v37 = vpop.f32.mrf.mxu0  ;;  %v7589_v26 = vrot.slane %v12158_v39, %v7558_v22  ;;  %v7593_v42 = vrot.slane %v12158_v39, %v7562_v6  ;;  %v6625_v22 = vadd.f32 %v12111_v61, %v12103_v30 }
 0x5ce   : > { %v12125_v21 = vpop.f32.mrf.mxu1  ;;  %v7162_v20 = vadd.f32 %v7111_v37, %v7031_v27 }
 0x5cf   : > { %v7113_v53 = vpop.f32.mrf.mxu0 }
 0x5d0   : > { %v12127_v49 = vpop.f32.mrf.mxu1  ;;  %v7165_v47 = vadd.f32 %v7113_v53, %v7034_v23 }
 0x5d1   : > { %v7115_v4 = vpop.f32.mrf.mxu0 }
 0x5d2   : > { %v12129_v56 = vpop.f32.mrf.mxu1  ;;  %v7166_v37 = vadd.f32 %v7115_v4, %v7035_v0 }
 0x5d3   : > { %v7235_v58 = vpop.f32.mrf.mxu0 }
 0x5d4   : > { %v12131_v34 = vpop.f32.mrf.mxu1  ;;  %v7287_v50 = vadd.f32 %v7235_v58, %v7161_v25 }
 0x5d5   : > { %v7237_v45 = vpop.f32.mrf.mxu0 }
 0x5d6   : > { %v12133_v41 = vpop.f32.mrf.mxu1  ;;  %v7288_v48 = vadd.f32 %v7237_v45, %v7162_v20  ;;  %v6627_v20 = vadd.f32 %v12113_v28, %v12105_v36  ;;  %v6631_v36 = vadd.f32 %v12117_v17, %v12109_v31 }
 0x5d7   : > { %v7239_v19 = vpop.f32.mrf.mxu0 }
 0x5d8   : > { %v12135_v13 = vpop.f32.mrf.mxu1  ;;  %v7291_v58 = vadd.f32 %v7239_v19, %v7165_v47 }
 0x5d9   : > { %v7241_v54 = vpop.f32.mrf.mxu0 }
 0x5da   : > { %v12137_v3 = vpop.f32.mrf.mxu1  ;;  %v7292_v45 = vadd.f32 %v7241_v54, %v7166_v37 }
 0x5db   : > { %v7365_v62 = vpop.f32.mrf.mxu0 }
 0x5dc   : > { %v12139_v55 = vpop.f32.mrf.mxu1  ;;  %v7417_v32 = vadd.f32 %v7365_v62, %v7287_v50  ;;  %v6772_v50 = vadd.f32 %v12119_v10, %v6625_v22 }
 0x5dd   : > { %v7367_v35 = vpop.f32.mrf.mxu0 }
 0x5de   : > { %v12142_v5 = vpop.f32.mrf.mxu1  ;;  %v7418_v2 = vadd.f32 %v7367_v35, %v7288_v48  ;;  %v6773_v48 = vadd.f32 %v12121_v11, %v6627_v20  ;;  %v6900_v30 = vadd.f32 %v12127_v49, %v6772_v50  ;;  %v6777_v11 = vadd.f32 %v12125_v21, %v6631_v36 }
 0x5df   : > { %v7369_v46 = vpop.f32.mrf.mxu0 }
 0x5e0   : > { %v12150_v51 = vpop.f32.mrf.mxu1  ;;  %v7421_v29 = vadd.f32 %v7369_v46, %v7291_v58  ;;  %v6901_v10 = vadd.f32 %v12129_v56, %v6773_v48  ;;  %v7032_v37 = vadd.f32 %v12135_v13, %v6900_v30  ;;  %v7570_v56 = vsub.s32 3, %v12373_v15 }
 0x5e1   : > { %v7371_v52 = vpop.f32.mrf.mxu0  ;;  %v6905_v13 = vadd.f32 %v12133_v41, %v6777_v11 }
 0x5e2   : > { %v12153_v44 = vpop.f32.mrf.mxu1  ;;  %v7422_v63 = vadd.f32 %v7371_v52, %v7292_v45 }
 0x5e3   : > { %v7494_v7 = vpop.f32.mrf.mxu0 }
 0x5e4   : > { %v7546_v12 = vadd.f32 %v7494_v7, %v7417_v32  ;;  %v7156_v24 = vpop.f32.mrf.mxu1 }
 0x5e5   : > { %v7496_v53 = vpop.f32.mrf.mxu0 }
 0x5e6   : > { %v7576_v8 = vmul.f32 %v7559_v59, %v7546_v12  ;;  %v7547_v40 = vadd.f32 %v7496_v53, %v7418_v2  ;;  %v7158_v33 = vpop.f32.mrf.mxu1  ;;  %v7033_v12 = vadd.f32 %v12137_v3, %v6901_v10  ;;  %v7037_v3 = vadd.f32 %v12142_v5, %v6905_v13 }
 0x5e7   : > { %v7498_v62 = vpop.f32.mrf.mxu0 }
 0x5e8   : > { %v7577_v60 = vmul.f32 %v7563_v9, %v7547_v40  ;;  %v7550_v1 = vadd.f32 %v7498_v62, %v7421_v29  ;;  %v7278_v57 = vpop.f32.mrf.mxu1  ;;  %v7606_v19 = vadd.f32 %v7589_v26, %v7576_v8  ;;  %v7164_v45 = vadd.f32 %v12153_v44, %v7033_v12 }
 0x5e9   : > { %v7500_v4 = vpop.f32.mrf.mxu0 }
 0x5ea   : > { %v7580_v35 = vmul.f32 %v7559_v59, %v7550_v1  ;;  %v7551_v27 = vadd.f32 %v7500_v4, %v7422_v63  ;;  %v7280_v25 = vpop.f32.mrf.mxu1  ;;  %v7607_v54 = vadd.f32 %v7593_v42, %v7577_v60  ;;  %v7614_v6 = vmax.f32 %v7606_v19, 0.0 }
 0x5eb   : > { %v6629_v59 = vadd.f32 %v12115_v16, %v12107_v43  ;;  %v7566_v16 = vsub.s32 2, %v12373_v15  ;;  %v7290_v62 = vadd.f32 %v7280_v25, %v7164_v45  ;;  %v7571_v15 = vrot.slane %v12147_v18, %v7570_v56 }
 0x5ec   : > { %v7610_v46 = vadd.f32 %v7589_v26, %v7580_v35  ;;  %v7581_v38 = vmul.f32 %v7563_v9, %v7551_v27  ;;  %v7282_v23 = vpop.f32.mrf.mxu1  ;;  %v7615_v61 = vmax.f32 %v7607_v54, 0.0  ;;  %v7163_v26 = vadd.f32 %v12150_v51, %v7032_v37 }
 0x5ed   : > { %v6776_v28 = vadd.f32 %v12123_v14, %v6629_v59  ;;  %v7168_v1 = vadd.f32 %v7158_v33, %v7037_v3  ;;  %v7597_v19 = vrot.slane %v12158_v39, %v7566_v16  ;;  %v7601_v25 = vrot.slane %v12158_v39, %v7570_v56 }
 0x5ee   : > { %v7618_v52 = vmax.f32 %v7610_v46, 0.0  ;;  %v7611_v0 = vadd.f32 %v7593_v42, %v7581_v38  ;;  %v7284_v47 = vpop.f32.mrf.mxu1  ;;  %v7289_v29 = vadd.f32 %v7278_v57, %v7163_v26 }
 0x5ef   : > { %v6904_v49 = vadd.f32 %v12131_v34, %v6776_v28  ;;  %v7567_v34 = vrot.slane %v12147_v18, %v7566_v16  ;;  %v7294_v22 = vadd.f32 %v7284_v47, %v7168_v1 }
 0x5f0   : > { %v7622_v32 = vadd.f32 %v7618_v52, %v7614_v6  ;;  %v7619_v7 = vmax.f32 %v7611_v0, 0.0  ;;  %v7408_v9 = vpop.f32.mrf.mxu1 }
 0x5f1   : > { %v7036_v53 = vadd.f32 %v12139_v55, %v6904_v49  ;;  %v7419_v63 = vadd.f32 %v7408_v9, %v7289_v29 }
 0x5f2   : > { %v7623_v58 = vrot.slane %v7622_v32, 4  ;;  %v7629_v2 = vadd.f32 %v7619_v7, %v7615_v61  ;;  %v7410_v43 = vpop.f32.mrf.mxu1 }
 0x5f3   : > { %v7167_v51 = vadd.f32 %v7156_v24, %v7036_v53  ;;  %v7420_v4 = vadd.f32 %v7410_v43, %v7290_v62 }
 0x5f4   : > { %v7624_v31 = vadd.f32 %v7623_v58, %v7622_v32  ;;  %v7630_v17 = vrot.slane %v7629_v2, 4  ;;  %v7412_v14 = vpop.f32.mrf.mxu1 }
 0x5f5   : > { %v7293_v55 = vadd.f32 %v7282_v23, %v7167_v51 }
 0x5f6   : > { %v7625_v8 = vrot.slane %v7624_v31, 2  ;;  %v7414_v21 = vpop.f32.mrf.mxu1  ;;  %v7631_v40 = vadd.f32 %v7630_v17, %v7629_v2 }
 0x5f7   : > { %v7423_v54 = vadd.f32 %v7412_v14, %v7293_v55  ;;  %v7424_v20 = vadd.f32 %v7414_v21, %v7294_v22  ;;  %v7719_v21 = vld [vmem:[#allocation5] sm:$0x1] }
 0x5f8   : > { %v7626_v60 = vadd.f32 %v7625_v8, %v7624_v31  ;;  %v7537_v42 = vpop.f32.mrf.mxu1  ;;  %v7632_v41 = vrot.slane %v7631_v40, 2 }
 0x5f9   : > { %v7548_v44 = vadd.f32 %v7537_v42, %v7419_v63 }
 0x5fa   : > { %v7627_v57 = vrot.slane %v7626_v60, 1  ;;  %v7539_v35 = vpop.f32.mrf.mxu1  ;;  %v7633_v27 = vadd.f32 %v7632_v41, %v7631_v40 }
 0x5fb   : > { %v7578_v5 = vmul.f32 %v7567_v34, %v7548_v44  ;;  %v7549_v24 = vadd.f32 %v7539_v35, %v7420_v4 }
 0x5fc   : > { %v7541_v46 = vpop.f32.mrf.mxu1  ;;  %v7634_v38 = vrot.slane %v7633_v27, 1  ;;  %v7628_v33 = vadd.f32 %v7627_v57, %v7626_v60 }
 0x5fd   : > { %v7579_v18 = vmul.f32 %v7571_v15, %v7549_v24  ;;  %v7552_v50 = vadd.f32 %v7541_v46, %v7423_v54  ;;  %v7608_v52 = vadd.f32 %v7597_v19, %v7578_v5 }
 0x5fe   : > { %v7543_v23 = vpop.f32.mrf.mxu1  ;;  %v7635_v6 = vadd.f32 %v7634_v38, %v7633_v27  ;;  %v7651_v32 = vmul.f32 0.0625, %v7628_v33 }
 0x5ff   : > { %v7582_v0 = vmul.f32 %v7567_v34, %v7552_v50  ;;  %v7553_v59 = vadd.f32 %v7543_v23, %v7424_v20  ;;  %v7609_v30 = vadd.f32 %v7601_v25, %v7579_v18  ;;  %v7616_v7 = vmax.f32 %v7608_v52, 0.0 }
 0x600   : > { %v7652_v48 = vmul.f32 0.0625, %v7635_v6 }
 0x601   : > { %v7612_v61 = vadd.f32 %v7597_v19, %v7582_v0  ;;  %v7583_v47 = vmul.f32 %v7571_v15, %v7553_v59  ;;  %v7617_v36 = vmax.f32 %v7609_v30, 0.0 }
 0x602   : > { %7784 = vmatprep.mubr.f32.mxu0 %v7652_v48 }
 0x603   : > { %v7620_v9 = vmax.f32 %v7612_v61, 0.0  ;;  %v7613_v39 = vadd.f32 %v7601_v25, %v7583_v47  ;;  %7785 = vmatmul.mubr.f32.vlgmr.msra.gmra.mxu0 %v7651_v32 }
 0x605   : > { %v7636_v28 = vadd.f32 %v7620_v9, %v7616_v7  ;;  %v7621_v10 = vmax.f32 %v7613_v39, 0.0 }
 0x607   : > { %v7637_v37 = vrot.slane %v7636_v28, 4  ;;  %v7643_v58 = vadd.f32 %v7621_v10, %v7617_v36 }
 0x609   : > { %v7638_v2 = vadd.f32 %v7637_v37, %v7636_v28  ;;  %v7644_v43 = vrot.slane %v7643_v58, 4 }
 0x60b   : > { %v7639_v16 = vrot.slane %v7638_v2, 2  ;;  %v7645_v11 = vadd.f32 %v7644_v43, %v7643_v58 }
 0x60d   : > { %v7640_v49 = vadd.f32 %v7639_v16, %v7638_v2  ;;  %v7646_v12 = vrot.slane %v7645_v11, 2 }
 0x60f   : > { %v7641_v26 = vrot.slane %v7640_v49, 1  ;;  %v7647_v31 = vadd.f32 %v7646_v12, %v7645_v11 }
 0x611   : > { %v7648_v17 = vrot.slane %v7647_v31, 1  ;;  %v7642_v14 = vadd.f32 %v7641_v26, %v7640_v49 }
 0x613   : > { %v7649_v56 = vadd.f32 %v7648_v17, %v7647_v31  ;;  %v7653_v53 = vmul.f32 0.0625, %v7642_v14 }
 0x615   : > { %v7654_v13 = vmul.f32 0.0625, %v7649_v56 }
 0x617   : > { %7854 = vmatprep.mubr.f32.mxu1 %v7654_v13 }
 0x618   : > { %7855 = vmatmul.mubr.f32.vlgmr.msra.gmra.mxu1 %v7653_v53 }
 0x6c3   : > { %v8435_v45 = vpop.f32.mrf.mxu0 }
 0x6c5   : > { %v8436_v29 = vpop.f32.mrf.mxu0 }
 0x6c6   : > { %v8437_v8 = vadd.f32 %v8436_v29, %v8435_v45 }
 0x6c8   : > { %v7787_v3 = vadd.f32 %v8437_v8, %v7719_v21 }
 0x6d8   : > { %v8470_v34 = vpop.f32.mrf.mxu1 }
 0x6da   : > { %v8471_v40 = vpop.f32.mrf.mxu1 }
 0x6db   : > { %v8472_v51 = vadd.f32 %v8471_v40, %v8470_v34 }
 0x6dd   : > { %v7857_v62 = vadd.f32 %v8472_v51, %v7787_v3 }
 0x6df   : > { %v7860_v63 = vsub.f32 0.0, %v7857_v62 }
 0x6e1   : > { %v7861_v60 = vmul.f32 1.442695, %v7860_v63 }
 0x6e3   : > { %8968 = vpow2.f32 %v7861_v60 }
 0x6f0   : > { %v8969_v42 = vpop.eup %8968 }
 0x6f1   : > { %v7863_v15 = vadd.f32 1.0, %v8969_v42 }
 0x6f3   : > { %8970 = vrcp.f32 %v7863_v15 }
 0x700   : > { %v8971_v41 = vpop.eup %8970 }
 0x701   : > { %7867 = vst.msk [vmem:[%s426_s17] sm:$0x1] %vm7866_vm3, %v8971_v41 }
 0x702 PF: > { %s25_s23 = sadd.s32 1, %s9012_s23  }
 0x703   : > { %p22_p1 = scmp.ge.s32.totalorder %s25_s23, 4  }
 0x705   :  { %24 = sbr.rel (!%p22_p1) target bundleno = 4 (0x4), region = 130 }
 0x70a   :  { %7885 = vsyncpa [#allocation7], 1 }
 0x70b   :  { %7887 = vsyncpa [#allocation7 + $0x1], 1 }

</bundles_post_ra>
